<compile_context>
chip_gen: v7x
topology: tpu7x:2x2x1
jax: 0.10.0
libtpu: 0.0.40
codegen_flags: <defaults>
</compile_context>

<pallas_src>
import jax
import jax.numpy as jnp
from jax.experimental import pallas as pl
from jax.experimental.pallas import tpu as pltpu

EPS = 1e-5
LANE = 128


def _round_up(v, m=LANE):
    return ((v + m - 1) // m) * m


def _pad2d(a, rows, cols):
    return jnp.pad(a, ((0, rows - a.shape[0]), (0, cols - a.shape[1])))


def _bn_train(y, gamma, beta, count):
    """Training-mode BatchNorm, one-pass (sum / sum-of-squares) statistics.

    y: (M, C) f32, stats over axis 0 (== N*H*W). Padded (all-zero) channels stay
    exactly zero because their gamma/beta pads are zero.
    (A two-pass / shifted accumulation is preferable once this is gridded for
    very large M; fine at these magnitudes.)
    """
    s1 = jnp.sum(y, axis=0, keepdims=True)
    s2 = jnp.sum(y * y, axis=0, keepdims=True)
    inv_n = 1.0 / count
    mu = s1 * inv_n
    var = jnp.maximum(s2 * inv_n - mu * mu, 0.0)
    return (y - mu) * (jax.lax.rsqrt(var + EPS) * gamma) + beta


# ---------------------------------------------------------------------------
# Fused kernel: conv1+bn1+relu -> (VMEM zero-halo) -> conv2(9 accumulated taps)
#               +bn2+relu -> conv3+bn3 -> SE (batched pool/fc1/relu/fc2/sigmoid)
#               -> scale + identity + relu.  All activations stay in VMEM;
#               output is a single lane-dense (M, 128) f32 store.
# ---------------------------------------------------------------------------
def se_bottleneck_kernel(x_ref,
                         w1_ref, g1_ref, be1_ref,
                         w2_ref, g2_ref, be2_ref,
                         w3_ref, g3_ref, be3_ref,
                         fw1_ref, fb1_ref, fw2_ref, fb2_ref,
                         o_ref, h1p_ref):
    Np, Hp, Wpad, PP = h1p_ref.shape          # halo scratch: (N, H+2, Wpad>=W+2, 128)
    H = Hp - 2
    M, C4P = o_ref.shape
    HW = M // Np
    W = HW // H
    fm = float(M)

    x = x_ref[...]                            # (M, CinP) f32 - also the residual

    # ---- conv1: 1x1 as an MXU matmul (bf16 operands, f32 accumulation) + bn1 + relu.
    #      Conv bias omitted: train-mode BN mean-subtraction cancels it exactly.
    y1 = jnp.dot(x.astype(jnp.bfloat16), w1_ref[...],
                 preferred_element_type=jnp.float32)
    h1 = jnp.maximum(_bn_train(y1, g1_ref[...], be1_ref[...], fm), 0.0)

    # ---- zero-halo in VMEM: zero only the border, write the interior once.
    zrow = jnp.zeros((Np, 1, Wpad, PP), h1p_ref.dtype)
    h1p_ref[:, 0:1, :, :] = zrow
    h1p_ref[:, H + 1:H + 2, :, :] = zrow
    zcol = jnp.zeros((Np, H, 1, PP), h1p_ref.dtype)
    h1p_ref[:, 1:H + 1, 0:1, :] = zcol
    h1p_ref[:, 1:H + 1, W + 1:W + 2, :] = zcol
    h1p_ref[:, 1:H + 1, 1:W + 1, :] = h1.reshape(Np, H, W, PP)

    # ---- conv2: 3x3, stride=1, padding=1 as 9 accumulated K=128 matmuls
    #      (no (M, 9*128) im2col slab; each window is consumed directly by the MXU).
    y2 = None
    for t in range(9):
        dy, dx = t // 3, t % 3
        win = h1p_ref[:, dy:dy + H, dx:dx + W, :].reshape(M, PP)
        part = jnp.dot(win.astype(jnp.bfloat16), w2_ref[t],
                       preferred_element_type=jnp.float32)
        y2 = part if y2 is None else y2 + part
    h2 = jnp.maximum(_bn_train(y2, g2_ref[...], be2_ref[...], fm), 0.0)

    # ---- conv3: 1x1 + bn3 (no ReLU before SE / residual)
    y3 = jnp.dot(h2.astype(jnp.bfloat16), w3_ref[...],
                 preferred_element_type=jnp.float32)
    h3 = _bn_train(y3, g3_ref[...], be3_ref[...], fm)

    # ---- Squeeze-and-Excitation, batched over the whole batch:
    #      one pooled reduction, one fc1 dot, one fc2 dot (f32, tiny).
    h3r = h3.reshape(Np, HW, C4P)
    pooled = jnp.sum(h3r, axis=1) * (1.0 / float(HW))               # (Np, C4P)
    s = jnp.maximum(jnp.dot(pooled, fw1_ref[...],
                            preferred_element_type=jnp.float32) + fb1_ref[...], 0.0)
    s = jax.nn.sigmoid(jnp.dot(s, fw2_ref[...],
                               preferred_element_type=jnp.float32) + fb2_ref[...])

    # ---- scale + residual + final ReLU: one lane-dense (M, 128) store.
    out = jnp.maximum(h3r * s[:, None, :] + x.reshape(Np, HW, C4P), 0.0)
    o_ref[...] = out.reshape(M, C4P)


# ---------------------------------------------------------------------------
# Parameter preparation: pad every channel dim to 128 lanes, reshape the 3x3
# weight to per-tap (9, 128, 128) layout, cast matmul weights to bf16.
# (In a real network this is done once at init, not per forward call.)
# ---------------------------------------------------------------------------
def prepare_params(p):
    cin, plane = p["w1"].shape
    c4 = p["w3"].shape[1]
    r = p["fw1"].shape[1]
    CinP, PP, C4P, RP = (_round_up(cin), _round_up(plane),
                         _round_up(c4), _round_up(r))

    w1 = _pad2d(p["w1"], CinP, PP).astype(jnp.bfloat16)
    g1 = _pad2d(p["g1"], 1, PP)
    be1 = _pad2d(p["be1"], 1, PP)

    # conv2 weight: HWIO (3,3,plane,plane) -> padded -> per-tap (9, PP, PP)
    w2 = jnp.pad(p["w2"], ((0, 0), (0, 0), (0, PP - plane), (0, PP - plane)))
    w2 = w2.reshape(9, PP, PP).astype(jnp.bfloat16)
    g2 = _pad2d(p["g2"], 1, PP)
    be2 = _pad2d(p["be2"], 1, PP)

    w3 = _pad2d(p["w3"], PP, C4P).astype(jnp.bfloat16)
    g3 = _pad2d(p["g3"], 1, C4P)
    be3 = _pad2d(p["be3"], 1, C4P)

    fw1 = _pad2d(p["fw1"], C4P, RP)
    fb1 = _pad2d(p["fb1"], 1, RP)
    fw2 = _pad2d(p["fw2"], RP, C4P)
    fb2 = _pad2d(p["fb2"], 1, C4P)

    kp = (w1, g1, be1, w2, g2, be2, w3, g3, be3, fw1, fb1, fw2, fb2)
    return kp, (CinP, PP, C4P, RP)


# ---------------------------------------------------------------------------
# Wrappers
# ---------------------------------------------------------------------------
def se_bottleneck_forward_nhwc(x_nhwc, p, prepared=None):
    """Hot-path entry point (NHWC in / NHWC out, no layout transposes).

    Pass `prepared=prepare_params(p)` to hoist parameter padding out of the
    per-call path; when params are closed over a jit, XLA constant-folds it.
    """
    N, H, W, cin = x_nhwc.shape
    c4 = p["w3"].shape[1]
    kp, (CinP, PP, C4P, RP) = prepared if prepared is not None else prepare_params(p)
    # Identity residual path requires Cin == plane*expansion (stride=1, no down_sample).
    assert cin == c4 and CinP == C4P, "identity path requires in_channels == plane*expansion"

    M = N * H * W
    Wpad = _round_up(W + 2, 8)                # (8,128)-friendly halo extent
    x2d = jnp.pad(x_nhwc.reshape(M, cin), ((0, 0), (0, CinP - cin)))  # (M, 128) f32

    # Live-set-derived scoped-VMEM budget (generous margin, capped for v7x).
    est = (12 * M * C4P * 4                       # f32 activation slabs / temporaries
           + N * (H + 2) * Wpad * PP * 4          # halo scratch
           + (9 * PP * PP + CinP * PP + PP * C4P) * 2   # bf16 conv weights
           + (C4P * RP + RP * C4P + 8 * C4P) * 4        # SE params / bn params
           + (2 << 20))                           # slack
    vmem_limit = int(min(max(2 * est, 16 << 20), 64 << 20))

    vmem = pl.BlockSpec(memory_space=pltpu.MemorySpace.VMEM)
    out2d = pl.pallas_call(
        se_bottleneck_kernel,
        out_shape=jax.ShapeDtypeStruct((M, C4P), jnp.float32),
        in_specs=[vmem] * (1 + len(kp)),
        out_specs=vmem,
        scratch_shapes=[pltpu.VMEM((N, H + 2, Wpad, PP), jnp.float32)],
        compiler_params=pltpu.CompilerParams(vmem_limit_bytes=vmem_limit),
    )(x2d, *kp)

    return out2d[:, :c4].reshape(N, H, W, c4)


def se_bottleneck_forward(x_nchw, p):
    """PyTorch-parity wrapper: NCHW in / NCHW out (transposes are glue only)."""
    x_nhwc = jnp.transpose(x_nchw, (0, 2, 3, 1))
    out_nhwc = se_bottleneck_forward_nhwc(x_nhwc, p)
    return jnp.transpose(out_nhwc, (0, 3, 1, 2))


# ---------------------------------------------------------------------------
# Pure-JAX reference (independent: uses lax.conv for the 3x3 path; keeps the
# module's conv biases, which are mathematically cancelled by train-mode BN).
# matmul_dtype=jnp.bfloat16 mirrors the kernel's MXU precision policy
# (bf16 operands, f32 accumulation, f32 BN stats) for a tight algorithmic check.
# ---------------------------------------------------------------------------
def ref_forward(x_nchw, p, matmul_dtype=jnp.float32):
    x = jnp.transpose(x_nchw, (0, 2, 3, 1))
    mm = lambda a: a.astype(matmul_dtype)

    def bn2d(y, g, b):
        mu = jnp.mean(y, axis=(0, 1, 2), keepdims=True)
        var = jnp.mean(jnp.square(y - mu), axis=(0, 1, 2), keepdims=True)
        return (y - mu) * jax.lax.rsqrt(var + EPS) * g.reshape(1, 1, 1, -1) \
            + b.reshape(1, 1, 1, -1)

    h = jnp.einsum("nhwc,cp->nhwp", mm(x), mm(p["w1"]),
                   preferred_element_type=jnp.float32) + p["b1"].reshape(1, 1, 1, -1)
    h = jax.nn.relu(bn2d(h, p["g1"], p["be1"]))
    h = jax.lax.conv_general_dilated(
        mm(h), mm(p["w2"]), window_strides=(1, 1), padding="SAME",
        dimension_numbers=("NHWC", "HWIO", "NHWC"),
        preferred_element_type=jnp.float32) + p["b2"].reshape(1, 1, 1, -1)
    h = jax.nn.relu(bn2d(h, p["g2"], p["be2"]))
    h = jnp.einsum("nhwc,cp->nhwp", mm(h), mm(p["w3"]),
                   preferred_element_type=jnp.float32) + p["b3"].reshape(1, 1, 1, -1)
    h = bn2d(h, p["g3"], p["be3"])
    pooled = jnp.mean(h, axis=(1, 2))
    s = jax.nn.relu(pooled @ p["fw1"] + p["fb1"])
    s = jax.nn.sigmoid(s @ p["fw2"] + p["fb2"])
    out = jax.nn.relu(h * s[:, None, None, :] + x)
    return jnp.transpose(out, (0, 3, 1, 2))


# ---------------------------------------------------------------------------
if __name__ == "__main__":
    # Module config: in_channels = plane * expansion so the residual add is
    # valid on the default stride=1, down_sample=None path.
    plane = 8
    expansion = 4
    in_channels = plane * expansion          # 32
    c4 = plane * expansion                   # 32
    r = round(plane / expansion)             # 2
    N, H, W = 2, 16, 16

    key = jax.random.PRNGKey(0)
    ks = jax.random.split(key, 17)

    def nrm(k, shape, scale=0.1):
        return (jax.random.normal(k, shape) * scale).astype(jnp.float32)

    params = dict(
        # conv1: 1x1 (in_channels -> plane), weight stored as (Cin, P)
        w1=nrm(ks[0], (in_channels, plane)), b1=nrm(ks[1], (1, plane)),
        g1=(1.0 + nrm(ks[2], (1, plane))),   be1=nrm(ks[3], (1, plane)),
        # conv2: 3x3 (plane -> plane), weight stored HWIO (3, 3, P, P)
        w2=nrm(ks[4], (3, 3, plane, plane)), b2=nrm(ks[5], (1, plane)),
        g2=(1.0 + nrm(ks[6], (1, plane))),   be2=nrm(ks[7], (1, plane)),
        # conv3: 1x1 (plane -> plane*4), weight stored as (P, C4)
        w3=nrm(ks[8], (plane, c4)),          b3=nrm(ks[9], (1, c4)),
        g3=(1.0 + nrm(ks[10], (1, c4))),     be3=nrm(ks[11], (1, c4)),
        # SE fully-connected layers (pre-transposed to (in, out))
        fw1=nrm(ks[12], (c4, r)),            fb1=nrm(ks[13], (1, r)),
        fw2=nrm(ks[14], (r, c4)),            fb2=nrm(ks[15], (1, c4)),
    )

    x = jax.random.normal(ks[16], (N, in_channels, H, W), dtype=jnp.float32)

    fwd = jax.jit(lambda xx: se_bottleneck_forward(xx, params))
    out = jax.block_until_ready(fwd(x))

    assert out.shape == (N, c4, H, W), out.shape
    assert bool(jnp.all(jnp.isfinite(out))), "non-finite output"

    # Tight algorithmic check vs. a reference using the same matmul precision
    # policy (bf16 operands, f32 accumulation / BN stats).
    ref_bf16 = ref_forward(x, params, matmul_dtype=jnp.bfloat16)
    err_algo = float(jnp.max(jnp.abs(out - ref_bf16)))
    assert err_algo < 5e-3, f"mismatch vs precision-matched reference: {err_algo}"

    # Sanity band vs. the full-f32 reference (difference is dominated by the
    # intentional bf16 rounding of MXU operands).
    ref_f32 = ref_forward(x, params, matmul_dtype=jnp.float32)
    err_max = float(jnp.max(jnp.abs(out - ref_f32)))
    err_mean = float(jnp.mean(jnp.abs(out - ref_f32)))
    assert err_max < 1e-1 and err_mean < 1e-2, (err_max, err_mean)

    print("KERNEL_OK")
</pallas_src>

<mosaic_0001>
module attributes {stable_mosaic.version = 11 : i64} {
  func.func @se_bottleneck_kernel(%arg0: memref<512x128xf32, #tpu.memory_space<vmem>>, %arg1: memref<128x128xbf16, #tpu.memory_space<vmem>>, %arg2: memref<1x128xf32, #tpu.memory_space<vmem>>, %arg3: memref<1x128xf32, #tpu.memory_space<vmem>>, %arg4: memref<9x128x128xbf16, #tpu.memory_space<vmem>>, %arg5: memref<1x128xf32, #tpu.memory_space<vmem>>, %arg6: memref<1x128xf32, #tpu.memory_space<vmem>>, %arg7: memref<128x128xbf16, #tpu.memory_space<vmem>>, %arg8: memref<1x128xf32, #tpu.memory_space<vmem>>, %arg9: memref<1x128xf32, #tpu.memory_space<vmem>>, %arg10: memref<128x128xf32, #tpu.memory_space<vmem>>, %arg11: memref<1x128xf32, #tpu.memory_space<vmem>>, %arg12: memref<128x128xf32, #tpu.memory_space<vmem>>, %arg13: memref<1x128xf32, #tpu.memory_space<vmem>>, %arg14: memref<512x128xf32, #tpu.memory_space<vmem>>, %arg15: memref<2x18x24x128xf32, #tpu.memory_space<vmem>>) attributes {dimension_semantics = [], scalar_prefetch = 0 : i64, scratch_operands = 1 : i64, tpu.core_type = #tpu.core_type<tc>} {
    %c0 = arith.constant 0 : index
    %c0_0 = arith.constant 0 : index
    %0 = vector.load %arg0[%c0, %c0_0] : memref<512x128xf32, #tpu.memory_space<vmem>>, vector<512x128xf32>
    %1 = arith.truncf %0 : vector<512x128xf32> to vector<512x128xbf16>
    %c0_1 = arith.constant 0 : index
    %c0_2 = arith.constant 0 : index
    %2 = vector.load %arg1[%c0_1, %c0_2] : memref<128x128xbf16, #tpu.memory_space<vmem>>, vector<128x128xbf16>
    %cst = arith.constant dense<0.000000e+00> : vector<512x128xf32>
    %3 = tpu.matmul %1, %2, %cst {dimension_numbers = #tpu.dot_dimension_numbers<[1], [0], [0], [1], [0, 0, 1, 1], [], []>} : vector<512x128xbf16>, vector<128x128xbf16>, vector<512x128xf32> -> vector<512x128xf32>
    %c0_3 = arith.constant 0 : index
    %c0_4 = arith.constant 0 : index
    %4 = vector.load %arg2[%c0_3, %c0_4] : memref<1x128xf32, #tpu.memory_space<vmem>>, vector<1x128xf32>
    %c0_5 = arith.constant 0 : index
    %c0_6 = arith.constant 0 : index
    %5 = vector.load %arg3[%c0_5, %c0_6] : memref<1x128xf32, #tpu.memory_space<vmem>>, vector<1x128xf32>
    %cst_7 = arith.constant dense<0.000000e+00> : vector<128xf32>
    %6 = vector.multi_reduction <add>, %3, %cst_7 [0] : vector<512x128xf32> to vector<128xf32>
    %7 = vector.shape_cast %6 : vector<128xf32> to vector<1x128xf32>
    %8 = arith.mulf %3, %3 : vector<512x128xf32>
    %cst_8 = arith.constant dense<0.000000e+00> : vector<128xf32>
    %9 = vector.multi_reduction <add>, %8, %cst_8 [0] : vector<512x128xf32> to vector<128xf32>
    %10 = vector.shape_cast %9 : vector<128xf32> to vector<1x128xf32>
    %cst_9 = arith.constant 0.001953125 : f32
    %11 = vector.broadcast %cst_9 : f32 to vector<1x128xf32>
    %12 = arith.mulf %7, %11 : vector<1x128xf32>
    %cst_10 = arith.constant 0.001953125 : f32
    %13 = vector.broadcast %cst_10 : f32 to vector<1x128xf32>
    %14 = arith.mulf %10, %13 : vector<1x128xf32>
    %15 = arith.mulf %12, %12 : vector<1x128xf32>
    %16 = arith.subf %14, %15 : vector<1x128xf32>
    %cst_11 = arith.constant 0.000000e+00 : f32
    %17 = vector.broadcast %cst_11 : f32 to vector<1x128xf32>
    %18 = arith.maximumf %16, %17 : vector<1x128xf32>
    %19 = vector.broadcast %12 : vector<1x128xf32> to vector<512x128xf32>
    %20 = arith.subf %3, %19 : vector<512x128xf32>
    %cst_12 = arith.constant 9.99999974E-6 : f32
    %21 = vector.broadcast %cst_12 : f32 to vector<1x128xf32>
    %22 = arith.addf %18, %21 : vector<1x128xf32>
    %23 = math.rsqrt %22 : vector<1x128xf32>
    %24 = arith.mulf %23, %4 : vector<1x128xf32>
    %25 = vector.broadcast %24 : vector<1x128xf32> to vector<512x128xf32>
    %26 = arith.mulf %20, %25 : vector<512x128xf32>
    %27 = vector.broadcast %5 : vector<1x128xf32> to vector<512x128xf32>
    %28 = arith.addf %26, %27 : vector<512x128xf32>
    %cst_13 = arith.constant 0.000000e+00 : f32
    %29 = vector.broadcast %cst_13 : f32 to vector<512x128xf32>
    %30 = arith.maximumf %28, %29 : vector<512x128xf32>
    %cst_14 = arith.constant 0.000000e+00 : f32
    %31 = vector.broadcast %cst_14 : f32 to vector<2x1x24x128xf32>
    %c0_15 = arith.constant 0 : index
    %c0_16 = arith.constant 0 : index
    %c0_17 = arith.constant 0 : index
    %c0_18 = arith.constant 0 : index
    %32 = vector.load %arg15[%c0_15, %c0_16, %c0_17, %c0_18] : memref<2x18x24x128xf32, #tpu.memory_space<vmem>>, vector<2x1x24x128xf32>
    tpu.vector_store %arg15[%c0_15, %c0_16, %c0_17, %c0_18], %31 {strides = array<i32>} : memref<2x18x24x128xf32, #tpu.memory_space<vmem>>, vector<2x1x24x128xf32>,
    %c0_19 = arith.constant 0 : index
    %c17 = arith.constant 17 : index
    %c0_20 = arith.constant 0 : index
    %c0_21 = arith.constant 0 : index
    %33 = vector.load %arg15[%c0_19, %c17, %c0_20, %c0_21] : memref<2x18x24x128xf32, #tpu.memory_space<vmem>>, vector<2x1x24x128xf32>
    tpu.vector_store %arg15[%c0_19, %c17, %c0_20, %c0_21], %31 {strides = array<i32>} : memref<2x18x24x128xf32, #tpu.memory_space<vmem>>, vector<2x1x24x128xf32>,
    %cst_22 = arith.constant 0.000000e+00 : f32
    %34 = vector.broadcast %cst_22 : f32 to vector<2x16x1x128xf32>
    %c0_23 = arith.constant 0 : index
    %c1 = arith.constant 1 : index
    %c0_24 = arith.constant 0 : index
    %c0_25 = arith.constant 0 : index
    %35 = vector.load %arg15[%c0_23, %c1, %c0_24, %c0_25] : memref<2x18x24x128xf32, #tpu.memory_space<vmem>>, vector<2x16x1x128xf32>
    tpu.vector_store %arg15[%c0_23, %c1, %c0_24, %c0_25], %34 {strides = array<i32>} : memref<2x18x24x128xf32, #tpu.memory_space<vmem>>, vector<2x16x1x128xf32>,
    %c0_26 = arith.constant 0 : index
    %c1_27 = arith.constant 1 : index
    %c17_28 = arith.constant 17 : index
    %c0_29 = arith.constant 0 : index
    %36 = vector.load %arg15[%c0_26, %c1_27, %c17_28, %c0_29] : memref<2x18x24x128xf32, #tpu.memory_space<vmem>>, vector<2x16x1x128xf32>
    tpu.vector_store %arg15[%c0_26, %c1_27, %c17_28, %c0_29], %34 {strides = array<i32>} : memref<2x18x24x128xf32, #tpu.memory_space<vmem>>, vector<2x16x1x128xf32>,
    %37 = vector.shape_cast %30 : vector<512x128xf32> to vector<2x16x16x128xf32>
    %c0_30 = arith.constant 0 : index
    %c1_31 = arith.constant 1 : index
    %c1_32 = arith.constant 1 : index
    %c0_33 = arith.constant 0 : index
    %38 = vector.load %arg15[%c0_30, %c1_31, %c1_32, %c0_33] : memref<2x18x24x128xf32, #tpu.memory_space<vmem>>, vector<2x16x16x128xf32>
    tpu.vector_store %arg15[%c0_30, %c1_31, %c1_32, %c0_33], %37 {strides = array<i32>} : memref<2x18x24x128xf32, #tpu.memory_space<vmem>>, vector<2x16x16x128xf32>,
    %c0_34 = arith.constant 0 : index
    %c0_35 = arith.constant 0 : index
    %c0_36 = arith.constant 0 : index
    %c0_37 = arith.constant 0 : index
    %39 = vector.load %arg15[%c0_34, %c0_35, %c0_36, %c0_37] : memref<2x18x24x128xf32, #tpu.memory_space<vmem>>, vector<2x16x16x128xf32>
    %40 = vector.shape_cast %39 : vector<2x16x16x128xf32> to vector<512x128xf32>
    %41 = arith.truncf %40 : vector<512x128xf32> to vector<512x128xbf16>
    %c0_38 = arith.constant 0 : index
    %c0_39 = arith.constant 0 : index
    %c0_40 = arith.constant 0 : index
    %42 = vector.load %arg4[%c0_38, %c0_39, %c0_40] : memref<9x128x128xbf16, #tpu.memory_space<vmem>>, vector<1x128x128xbf16>
    %43 = vector.shape_cast %42 : vector<1x128x128xbf16> to vector<128x128xbf16>
    %cst_41 = arith.constant dense<0.000000e+00> : vector<512x128xf32>
    %44 = tpu.matmul %41, %43, %cst_41 {dimension_numbers = #tpu.dot_dimension_numbers<[1], [0], [0], [1], [0, 0, 1, 1], [], []>} : vector<512x128xbf16>, vector<128x128xbf16>, vector<512x128xf32> -> vector<512x128xf32>
    %c0_42 = arith.constant 0 : index
    %c0_43 = arith.constant 0 : index
    %c1_44 = arith.constant 1 : index
    %c0_45 = arith.constant 0 : index
    %45 = vector.load %arg15[%c0_42, %c0_43, %c1_44, %c0_45] : memref<2x18x24x128xf32, #tpu.memory_space<vmem>>, vector<2x16x16x128xf32>
    %46 = vector.shape_cast %45 : vector<2x16x16x128xf32> to vector<512x128xf32>
    %47 = arith.truncf %46 : vector<512x128xf32> to vector<512x128xbf16>
    %c1_46 = arith.constant 1 : index
    %c0_47 = arith.constant 0 : index
    %c0_48 = arith.constant 0 : index
    %48 = vector.load %arg4[%c1_46, %c0_47, %c0_48] : memref<9x128x128xbf16, #tpu.memory_space<vmem>>, vector<1x128x128xbf16>
    %49 = vector.shape_cast %48 : vector<1x128x128xbf16> to vector<128x128xbf16>
    %cst_49 = arith.constant dense<0.000000e+00> : vector<512x128xf32>
    %50 = tpu.matmul %47, %49, %cst_49 {dimension_numbers = #tpu.dot_dimension_numbers<[1], [0], [0], [1], [0, 0, 1, 1], [], []>} : vector<512x128xbf16>, vector<128x128xbf16>, vector<512x128xf32> -> vector<512x128xf32>
    %51 = arith.addf %44, %50 : vector<512x128xf32>
    %c0_50 = arith.constant 0 : index
    %c0_51 = arith.constant 0 : index
    %c2 = arith.constant 2 : index
    %c0_52 = arith.constant 0 : index
    %52 = vector.load %arg15[%c0_50, %c0_51, %c2, %c0_52] : memref<2x18x24x128xf32, #tpu.memory_space<vmem>>, vector<2x16x16x128xf32>
    %53 = vector.shape_cast %52 : vector<2x16x16x128xf32> to vector<512x128xf32>
    %54 = arith.truncf %53 : vector<512x128xf32> to vector<512x128xbf16>
    %c2_53 = arith.constant 2 : index
    %c0_54 = arith.constant 0 : index
    %c0_55 = arith.constant 0 : index
    %55 = vector.load %arg4[%c2_53, %c0_54, %c0_55] : memref<9x128x128xbf16, #tpu.memory_space<vmem>>, vector<1x128x128xbf16>
    %56 = vector.shape_cast %55 : vector<1x128x128xbf16> to vector<128x128xbf16>
    %cst_56 = arith.constant dense<0.000000e+00> : vector<512x128xf32>
    %57 = tpu.matmul %54, %56, %cst_56 {dimension_numbers = #tpu.dot_dimension_numbers<[1], [0], [0], [1], [0, 0, 1, 1], [], []>} : vector<512x128xbf16>, vector<128x128xbf16>, vector<512x128xf32> -> vector<512x128xf32>
    %58 = arith.addf %51, %57 : vector<512x128xf32>
    %c0_57 = arith.constant 0 : index
    %c1_58 = arith.constant 1 : index
    %c0_59 = arith.constant 0 : index
    %c0_60 = arith.constant 0 : index
    %59 = vector.load %arg15[%c0_57, %c1_58, %c0_59, %c0_60] : memref<2x18x24x128xf32, #tpu.memory_space<vmem>>, vector<2x16x16x128xf32>
    %60 = vector.shape_cast %59 : vector<2x16x16x128xf32> to vector<512x128xf32>
    %61 = arith.truncf %60 : vector<512x128xf32> to vector<512x128xbf16>
    %c3 = arith.constant 3 : index
    %c0_61 = arith.constant 0 : index
    %c0_62 = arith.constant 0 : index
    %62 = vector.load %arg4[%c3, %c0_61, %c0_62] : memref<9x128x128xbf16, #tpu.memory_space<vmem>>, vector<1x128x128xbf16>
    %63 = vector.shape_cast %62 : vector<1x128x128xbf16> to vector<128x128xbf16>
    %cst_63 = arith.constant dense<0.000000e+00> : vector<512x128xf32>
    %64 = tpu.matmul %61, %63, %cst_63 {dimension_numbers = #tpu.dot_dimension_numbers<[1], [0], [0], [1], [0, 0, 1, 1], [], []>} : vector<512x128xbf16>, vector<128x128xbf16>, vector<512x128xf32> -> vector<512x128xf32>
    %65 = arith.addf %58, %64 : vector<512x128xf32>
    %c0_64 = arith.constant 0 : index
    %c1_65 = arith.constant 1 : index
    %c1_66 = arith.constant 1 : index
    %c0_67 = arith.constant 0 : index
    %66 = vector.load %arg15[%c0_64, %c1_65, %c1_66, %c0_67] : memref<2x18x24x128xf32, #tpu.memory_space<vmem>>, vector<2x16x16x128xf32>
    %67 = vector.shape_cast %66 : vector<2x16x16x128xf32> to vector<512x128xf32>
    %68 = arith.truncf %67 : vector<512x128xf32> to vector<512x128xbf16>
    %c4 = arith.constant 4 : index
    %c0_68 = arith.constant 0 : index
    %c0_69 = arith.constant 0 : index
    %69 = vector.load %arg4[%c4, %c0_68, %c0_69] : memref<9x128x128xbf16, #tpu.memory_space<vmem>>, vector<1x128x128xbf16>
    %70 = vector.shape_cast %69 : vector<1x128x128xbf16> to vector<128x128xbf16>
    %cst_70 = arith.constant dense<0.000000e+00> : vector<512x128xf32>
    %71 = tpu.matmul %68, %70, %cst_70 {dimension_numbers = #tpu.dot_dimension_numbers<[1], [0], [0], [1], [0, 0, 1, 1], [], []>} : vector<512x128xbf16>, vector<128x128xbf16>, vector<512x128xf32> -> vector<512x128xf32>
    %72 = arith.addf %65, %71 : vector<512x128xf32>
    %c0_71 = arith.constant 0 : index
    %c1_72 = arith.constant 1 : index
    %c2_73 = arith.constant 2 : index
    %c0_74 = arith.constant 0 : index
    %73 = vector.load %arg15[%c0_71, %c1_72, %c2_73, %c0_74] : memref<2x18x24x128xf32, #tpu.memory_space<vmem>>, vector<2x16x16x128xf32>
    %74 = vector.shape_cast %73 : vector<2x16x16x128xf32> to vector<512x128xf32>
    %75 = arith.truncf %74 : vector<512x128xf32> to vector<512x128xbf16>
    %c5 = arith.constant 5 : index
    %c0_75 = arith.constant 0 : index
    %c0_76 = arith.constant 0 : index
    %76 = vector.load %arg4[%c5, %c0_75, %c0_76] : memref<9x128x128xbf16, #tpu.memory_space<vmem>>, vector<1x128x128xbf16>
    %77 = vector.shape_cast %76 : vector<1x128x128xbf16> to vector<128x128xbf16>
    %cst_77 = arith.constant dense<0.000000e+00> : vector<512x128xf32>
    %78 = tpu.matmul %75, %77, %cst_77 {dimension_numbers = #tpu.dot_dimension_numbers<[1], [0], [0], [1], [0, 0, 1, 1], [], []>} : vector<512x128xbf16>, vector<128x128xbf16>, vector<512x128xf32> -> vector<512x128xf32>
    %79 = arith.addf %72, %78 : vector<512x128xf32>
    %c0_78 = arith.constant 0 : index
    %c2_79 = arith.constant 2 : index
    %c0_80 = arith.constant 0 : index
    %c0_81 = arith.constant 0 : index
    %80 = vector.load %arg15[%c0_78, %c2_79, %c0_80, %c0_81] : memref<2x18x24x128xf32, #tpu.memory_space<vmem>>, vector<2x16x16x128xf32>
    %81 = vector.shape_cast %80 : vector<2x16x16x128xf32> to vector<512x128xf32>
    %82 = arith.truncf %81 : vector<512x128xf32> to vector<512x128xbf16>
    %c6 = arith.constant 6 : index
    %c0_82 = arith.constant 0 : index
    %c0_83 = arith.constant 0 : index
    %83 = vector.load %arg4[%c6, %c0_82, %c0_83] : memref<9x128x128xbf16, #tpu.memory_space<vmem>>, vector<1x128x128xbf16>
    %84 = vector.shape_cast %83 : vector<1x128x128xbf16> to vector<128x128xbf16>
    %cst_84 = arith.constant dense<0.000000e+00> : vector<512x128xf32>
    %85 = tpu.matmul %82, %84, %cst_84 {dimension_numbers = #tpu.dot_dimension_numbers<[1], [0], [0], [1], [0, 0, 1, 1], [], []>} : vector<512x128xbf16>, vector<128x128xbf16>, vector<512x128xf32> -> vector<512x128xf32>
    %86 = arith.addf %79, %85 : vector<512x128xf32>
    %c0_85 = arith.constant 0 : index
    %c2_86 = arith.constant 2 : index
    %c1_87 = arith.constant 1 : index
    %c0_88 = arith.constant 0 : index
    %87 = vector.load %arg15[%c0_85, %c2_86, %c1_87, %c0_88] : memref<2x18x24x128xf32, #tpu.memory_space<vmem>>, vector<2x16x16x128xf32>
    %88 = vector.shape_cast %87 : vector<2x16x16x128xf32> to vector<512x128xf32>
    %89 = arith.truncf %88 : vector<512x128xf32> to vector<512x128xbf16>
    %c7 = arith.constant 7 : index
    %c0_89 = arith.constant 0 : index
    %c0_90 = arith.constant 0 : index
    %90 = vector.load %arg4[%c7, %c0_89, %c0_90] : memref<9x128x128xbf16, #tpu.memory_space<vmem>>, vector<1x128x128xbf16>
    %91 = vector.shape_cast %90 : vector<1x128x128xbf16> to vector<128x128xbf16>
    %cst_91 = arith.constant dense<0.000000e+00> : vector<512x128xf32>
    %92 = tpu.matmul %89, %91, %cst_91 {dimension_numbers = #tpu.dot_dimension_numbers<[1], [0], [0], [1], [0, 0, 1, 1], [], []>} : vector<512x128xbf16>, vector<128x128xbf16>, vector<512x128xf32> -> vector<512x128xf32>
    %93 = arith.addf %86, %92 : vector<512x128xf32>
    %c0_92 = arith.constant 0 : index
    %c2_93 = arith.constant 2 : index
    %c2_94 = arith.constant 2 : index
    %c0_95 = arith.constant 0 : index
    %94 = vector.load %arg15[%c0_92, %c2_93, %c2_94, %c0_95] : memref<2x18x24x128xf32, #tpu.memory_space<vmem>>, vector<2x16x16x128xf32>
    %95 = vector.shape_cast %94 : vector<2x16x16x128xf32> to vector<512x128xf32>
    %96 = arith.truncf %95 : vector<512x128xf32> to vector<512x128xbf16>
    %c8 = arith.constant 8 : index
    %c0_96 = arith.constant 0 : index
    %c0_97 = arith.constant 0 : index
    %97 = vector.load %arg4[%c8, %c0_96, %c0_97] : memref<9x128x128xbf16, #tpu.memory_space<vmem>>, vector<1x128x128xbf16>
    %98 = vector.shape_cast %97 : vector<1x128x128xbf16> to vector<128x128xbf16>
    %cst_98 = arith.constant dense<0.000000e+00> : vector<512x128xf32>
    %99 = tpu.matmul %96, %98, %cst_98 {dimension_numbers = #tpu.dot_dimension_numbers<[1], [0], [0], [1], [0, 0, 1, 1], [], []>} : vector<512x128xbf16>, vector<128x128xbf16>, vector<512x128xf32> -> vector<512x128xf32>
    %100 = arith.addf %93, %99 : vector<512x128xf32>
    %c0_99 = arith.constant 0 : index
    %c0_100 = arith.constant 0 : index
    %101 = vector.load %arg5[%c0_99, %c0_100] : memref<1x128xf32, #tpu.memory_space<vmem>>, vector<1x128xf32>
    %c0_101 = arith.constant 0 : index
    %c0_102 = arith.constant 0 : index
    %102 = vector.load %arg6[%c0_101, %c0_102] : memref<1x128xf32, #tpu.memory_space<vmem>>, vector<1x128xf32>
    %cst_103 = arith.constant dense<0.000000e+00> : vector<128xf32>
    %103 = vector.multi_reduction <add>, %100, %cst_103 [0] : vector<512x128xf32> to vector<128xf32>
    %104 = vector.shape_cast %103 : vector<128xf32> to vector<1x128xf32>
    %105 = arith.mulf %100, %100 : vector<512x128xf32>
    %cst_104 = arith.constant dense<0.000000e+00> : vector<128xf32>
    %106 = vector.multi_reduction <add>, %105, %cst_104 [0] : vector<512x128xf32> to vector<128xf32>
    %107 = vector.shape_cast %106 : vector<128xf32> to vector<1x128xf32>
    %cst_105 = arith.constant 0.001953125 : f32
    %108 = vector.broadcast %cst_105 : f32 to vector<1x128xf32>
    %109 = arith.mulf %104, %108 : vector<1x128xf32>
    %cst_106 = arith.constant 0.001953125 : f32
    %110 = vector.broadcast %cst_106 : f32 to vector<1x128xf32>
    %111 = arith.mulf %107, %110 : vector<1x128xf32>
    %112 = arith.mulf %109, %109 : vector<1x128xf32>
    %113 = arith.subf %111, %112 : vector<1x128xf32>
    %cst_107 = arith.constant 0.000000e+00 : f32
    %114 = vector.broadcast %cst_107 : f32 to vector<1x128xf32>
    %115 = arith.maximumf %113, %114 : vector<1x128xf32>
    %116 = vector.broadcast %109 : vector<1x128xf32> to vector<512x128xf32>
    %117 = arith.subf %100, %116 : vector<512x128xf32>
    %cst_108 = arith.constant 9.99999974E-6 : f32
    %118 = vector.broadcast %cst_108 : f32 to vector<1x128xf32>
    %119 = arith.addf %115, %118 : vector<1x128xf32>
    %120 = math.rsqrt %119 : vector<1x128xf32>
    %121 = arith.mulf %120, %101 : vector<1x128xf32>
    %122 = vector.broadcast %121 : vector<1x128xf32> to vector<512x128xf32>
    %123 = arith.mulf %117, %122 : vector<512x128xf32>
    %124 = vector.broadcast %102 : vector<1x128xf32> to vector<512x128xf32>
    %125 = arith.addf %123, %124 : vector<512x128xf32>
    %cst_109 = arith.constant 0.000000e+00 : f32
    %126 = vector.broadcast %cst_109 : f32 to vector<512x128xf32>
    %127 = arith.maximumf %125, %126 : vector<512x128xf32>
    %128 = arith.truncf %127 : vector<512x128xf32> to vector<512x128xbf16>
    %c0_110 = arith.constant 0 : index
    %c0_111 = arith.constant 0 : index
    %129 = vector.load %arg7[%c0_110, %c0_111] : memref<128x128xbf16, #tpu.memory_space<vmem>>, vector<128x128xbf16>
    %cst_112 = arith.constant dense<0.000000e+00> : vector<512x128xf32>
    %130 = tpu.matmul %128, %129, %cst_112 {dimension_numbers = #tpu.dot_dimension_numbers<[1], [0], [0], [1], [0, 0, 1, 1], [], []>} : vector<512x128xbf16>, vector<128x128xbf16>, vector<512x128xf32> -> vector<512x128xf32>
    %c0_113 = arith.constant 0 : index
    %c0_114 = arith.constant 0 : index
    %131 = vector.load %arg8[%c0_113, %c0_114] : memref<1x128xf32, #tpu.memory_space<vmem>>, vector<1x128xf32>
    %c0_115 = arith.constant 0 : index
    %c0_116 = arith.constant 0 : index
    %132 = vector.load %arg9[%c0_115, %c0_116] : memref<1x128xf32, #tpu.memory_space<vmem>>, vector<1x128xf32>
    %cst_117 = arith.constant dense<0.000000e+00> : vector<128xf32>
    %133 = vector.multi_reduction <add>, %130, %cst_117 [0] : vector<512x128xf32> to vector<128xf32>
    %134 = vector.shape_cast %133 : vector<128xf32> to vector<1x128xf32>
    %135 = arith.mulf %130, %130 : vector<512x128xf32>
    %cst_118 = arith.constant dense<0.000000e+00> : vector<128xf32>
    %136 = vector.multi_reduction <add>, %135, %cst_118 [0] : vector<512x128xf32> to vector<128xf32>
    %137 = vector.shape_cast %136 : vector<128xf32> to vector<1x128xf32>
    %cst_119 = arith.constant 0.001953125 : f32
    %138 = vector.broadcast %cst_119 : f32 to vector<1x128xf32>
    %139 = arith.mulf %134, %138 : vector<1x128xf32>
    %cst_120 = arith.constant 0.001953125 : f32
    %140 = vector.broadcast %cst_120 : f32 to vector<1x128xf32>
    %141 = arith.mulf %137, %140 : vector<1x128xf32>
    %142 = arith.mulf %139, %139 : vector<1x128xf32>
    %143 = arith.subf %141, %142 : vector<1x128xf32>
    %cst_121 = arith.constant 0.000000e+00 : f32
    %144 = vector.broadcast %cst_121 : f32 to vector<1x128xf32>
    %145 = arith.maximumf %143, %144 : vector<1x128xf32>
    %146 = vector.broadcast %139 : vector<1x128xf32> to vector<512x128xf32>
    %147 = arith.subf %130, %146 : vector<512x128xf32>
    %cst_122 = arith.constant 9.99999974E-6 : f32
    %148 = vector.broadcast %cst_122 : f32 to vector<1x128xf32>
    %149 = arith.addf %145, %148 : vector<1x128xf32>
    %150 = math.rsqrt %149 : vector<1x128xf32>
    %151 = arith.mulf %150, %131 : vector<1x128xf32>
    %152 = vector.broadcast %151 : vector<1x128xf32> to vector<512x128xf32>
    %153 = arith.mulf %147, %152 : vector<512x128xf32>
    %154 = vector.broadcast %132 : vector<1x128xf32> to vector<512x128xf32>
    %155 = arith.addf %153, %154 : vector<512x128xf32>
    %156 = vector.shape_cast %155 : vector<512x128xf32> to vector<2x256x128xf32>
    %cst_123 = arith.constant dense<0.000000e+00> : vector<2x128xf32>
    %157 = vector.multi_reduction <add>, %156, %cst_123 [1] : vector<2x256x128xf32> to vector<2x128xf32>
    %cst_124 = arith.constant 3.906250e-03 : f32
    %158 = vector.broadcast %cst_124 : f32 to vector<2x128xf32>
    %159 = arith.mulf %157, %158 : vector<2x128xf32>
    %c0_125 = arith.constant 0 : index
    %c0_126 = arith.constant 0 : index
    %160 = vector.load %arg10[%c0_125, %c0_126] : memref<128x128xf32, #tpu.memory_space<vmem>>, vector<128x128xf32>
    %cst_127 = arith.constant dense<0.000000e+00> : vector<2x128xf32>
    %161 = tpu.matmul %159, %160, %cst_127 {dimension_numbers = #tpu.dot_dimension_numbers<[1], [0], [0], [1], [0, 0, 1, 1], [], []>} : vector<2x128xf32>, vector<128x128xf32>, vector<2x128xf32> -> vector<2x128xf32>
    %c0_128 = arith.constant 0 : index
    %c0_129 = arith.constant 0 : index
    %162 = vector.load %arg11[%c0_128, %c0_129] : memref<1x128xf32, #tpu.memory_space<vmem>>, vector<1x128xf32>
    %163 = vector.broadcast %162 : vector<1x128xf32> to vector<2x128xf32>
    %164 = arith.addf %161, %163 : vector<2x128xf32>
    %cst_130 = arith.constant 0.000000e+00 : f32
    %165 = vector.broadcast %cst_130 : f32 to vector<2x128xf32>
    %166 = arith.maximumf %164, %165 : vector<2x128xf32>
    %c0_131 = arith.constant 0 : index
    %c0_132 = arith.constant 0 : index
    %167 = vector.load %arg12[%c0_131, %c0_132] : memref<128x128xf32, #tpu.memory_space<vmem>>, vector<128x128xf32>
    %cst_133 = arith.constant dense<0.000000e+00> : vector<2x128xf32>
    %168 = tpu.matmul %166, %167, %cst_133 {dimension_numbers = #tpu.dot_dimension_numbers<[1], [0], [0], [1], [0, 0, 1, 1], [], []>} : vector<2x128xf32>, vector<128x128xf32>, vector<2x128xf32> -> vector<2x128xf32>
    %c0_134 = arith.constant 0 : index
    %c0_135 = arith.constant 0 : index
    %169 = vector.load %arg13[%c0_134, %c0_135] : memref<1x128xf32, #tpu.memory_space<vmem>>, vector<1x128xf32>
    %170 = vector.broadcast %169 : vector<1x128xf32> to vector<2x128xf32>
    %171 = arith.addf %168, %170 : vector<2x128xf32>
    %172 = arith.negf %171 : vector<2x128xf32>
    %173 = math.exp %172 : vector<2x128xf32>
    %cst_136 = arith.constant 1.000000e+00 : f32
    %174 = vector.broadcast %cst_136 : f32 to vector<2x128xf32>
    %175 = arith.addf %174, %173 : vector<2x128xf32>
    %176 = arith.divf %174, %175 : vector<2x128xf32>
    %177 = vector.shape_cast %176 : vector<2x128xf32> to vector<2x1x128xf32>
    %178 = vector.broadcast %177 : vector<2x1x128xf32> to vector<2x256x128xf32>
    %179 = arith.mulf %156, %178 : vector<2x256x128xf32>
    %180 = vector.shape_cast %0 : vector<512x128xf32> to vector<2x256x128xf32>
    %181 = arith.addf %179, %180 : vector<2x256x128xf32>
    %cst_137 = arith.constant 0.000000e+00 : f32
    %182 = vector.broadcast %cst_137 : f32 to vector<2x256x128xf32>
    %183 = arith.maximumf %181, %182 : vector<2x256x128xf32>
    %184 = vector.shape_cast %183 : vector<2x256x128xf32> to vector<512x128xf32>
    %c0_138 = arith.constant 0 : index
    %c0_139 = arith.constant 0 : index
    %185 = vector.load %arg14[%c0_138, %c0_139] : memref<512x128xf32, #tpu.memory_space<vmem>>, vector<512x128xf32>
    tpu.vector_store %arg14[%c0_138, %c0_139], %184 {strides = array<i32>} : memref<512x128xf32, #tpu.memory_space<vmem>>, vector<512x128xf32>,
    return
  }
}

</mosaic_0001>

<bundles_post_ra>
// kernel: _lambda_.1
= control target key start
LH: loop header
LB: loop body
LE: loop exit
PB: predicated region body
PF: predicated region fallthrough
CT: control target
= control target key end

     0   :  { %s15383_s0 = inlined_call_operand.vmem [shape: f32[512,128], index: 0, kind: input, shape index: {}]   ;;  %s15384_s1 = inlined_call_operand.vmem [shape: bf16[128,128], index: 1, kind: input, shape index: {}]   ;;  %s15385_s2 = inlined_call_operand.vmem [shape: f32[1,128], index: 2, kind: input, shape index: {}]   ;;  %s15386_s3 = inlined_call_operand.vmem [shape: f32[1,128], index: 3, kind: input, shape index: {}]   ;;  %s15387_s4 = inlined_call_operand.vmem [shape: bf16[9,128,128], index: 4, kind: input, shape index: {}]   ;;  %s15388_s5 = inlined_call_operand.vmem [shape: f32[1,128], index: 5, kind: input, shape index: {}]   ;;  %s15389_s6 = inlined_call_operand.vmem [shape: f32[1,128], index: 6, kind: input, shape index: {}]   ;;  %s15390_s7 = inlined_call_operand.vmem [shape: bf16[128,128], index: 7, kind: input, shape index: {}]   ;;  %s15391_s8 = inlined_call_operand.vmem [shape: f32[1,128], index: 8, kind: input, shape index: {}]   ;;  %s15392_s9 = inlined_call_operand.vmem [shape: f32[1,128], index: 9, kind: input, shape index: {}]   ;;  %s15393_s10 = inlined_call_operand.vmem [shape: f32[128,128], index: 10, kind: input, shape index: {}]   ;;  %s15394_s11 = inlined_call_operand.vmem [shape: f32[1,128], index: 11, kind: input, shape index: {}]   ;;  %s15395_s12 = inlined_call_operand.vmem [shape: f32[128,128], index: 12, kind: input, shape index: {}]   ;;  %s15396_s13 = inlined_call_operand.vmem [shape: f32[1,128], index: 13, kind: input, shape index: {}]   ;;  %s15397_s14 = inlined_call_operand.hbm [shape: f32[512,128], index: 14, kind: output, shape index: {}]  }
   0x1   :  { %v9701_v0 = vld [vmem:[%s15384_s1] sm:$0xff]   ;;  %v9702_v1 = vld [vmem:[%s15384_s1 + $0x8] sm:$0xff]   ;;  %v9703_v2 = vld [vmem:[%s15384_s1 + $0x10] sm:$0xff]  }
   0x2   :  { %8168 = vmatprep.subr.bf16.mxu0 %v9701_v0  ;;  %v9704_v3 = vld [vmem:[%s15384_s1 + $0x18] sm:$0xff]   ;;  %v49_v4 = vld [vmem:[%s15383_s0] sm:$0xff]  ;;  %v50_v5 = vld [vmem:[%s15383_s0 + $0x8] sm:$0xff] }
   0x3   :  { %8169 = vmatpush3.bf16.msra.mxu0 %v9701_v0  ;;  %v113_v6 = vpack.c.bf16 %v50_v5, %v49_v4  ;;  %v9705_v7 = vld [vmem:[%s15384_s1 + $0x20] sm:$0xff]   ;;  %v9706_v8 = vld [vmem:[%s15384_s1 + $0x28] sm:$0xff]   ;;  %v9707_v9 = vld [vmem:[%s15384_s1 + $0x30] sm:$0xff]  }
   0x4   :  { %8170 = vmatprep.subr.bf16.mxu0 %v9702_v1  ;;  %v9708_v10 = vld [vmem:[%s15384_s1 + $0x38] sm:$0xff]   ;;  %v51_v11 = vld [vmem:[%s15383_s0 + $0x10] sm:$0xff]  ;;  %v53_v13 = vld [vmem:[%s15383_s0 + $0x20] sm:$0xff] }
   0x5   :  { %8184 = vmatprep.mubr.bf16.mxu0 %v113_v6  ;;  %v52_v12 = vld [vmem:[%s15383_s0 + $0x18] sm:$0xff]  ;;  %v54_v14 = vld [vmem:[%s15383_s0 + $0x28] sm:$0xff]  ;;  %v55_v17 = vld [vmem:[%s15383_s0 + $0x30] sm:$0xff] }
   0x6   :  { %v114_v15 = vpack.c.bf16 %v52_v12, %v51_v11  ;;  %v115_v16 = vpack.c.bf16 %v54_v14, %v53_v13  ;;  %v56_v18 = vld [vmem:[%s15383_s0 + $0x38] sm:$0xff]  ;;  %v57_v19 = vld [vmem:[%s15383_s0 + $0x40] sm:$0xff]  ;;  %v58_v20 = vld [vmem:[%s15383_s0 + $0x48] sm:$0xff] }
   0x7   :  { %8171 = vmatpush3.bf16.msra.mxu0 %v9702_v1  ;;  %v116_v21 = vpack.c.bf16 %v56_v18, %v55_v17  ;;  %v117_v22 = vpack.c.bf16 %v58_v20, %v57_v19  ;;  %v59_v23 = vld [vmem:[%s15383_s0 + $0x50] sm:$0xff]  ;;  %v60_v24 = vld [vmem:[%s15383_s0 + $0x58] sm:$0xff]  ;;  %v61_v25 = vld [vmem:[%s15383_s0 + $0x60] sm:$0xff] }
   0x8   :  { %8172 = vmatprep.subr.bf16.mxu0 %v9703_v2  ;;  %v62_v26 = vld [vmem:[%s15383_s0 + $0x68] sm:$0xff]  ;;  %v118_v27 = vpack.c.bf16 %v60_v24, %v59_v23  ;;  %v63_v29 = vld [vmem:[%s15383_s0 + $0x70] sm:$0xff]  ;;  %v64_v30 = vld [vmem:[%s15383_s0 + $0x78] sm:$0xff] }
   0x9   :  { %v119_v28 = vpack.c.bf16 %v62_v26, %v61_v25  ;;  %v65_v31 = vld [vmem:[%s15383_s0 + $0x80] sm:$0xff]  ;;  %v66_v32 = vld [vmem:[%s15383_s0 + $0x88] sm:$0xff]  ;;  %v120_v33 = vpack.c.bf16 %v64_v30, %v63_v29  ;;  %v67_v35 = vld [vmem:[%s15383_s0 + $0x90] sm:$0xff] }
   0xa   :  { %v121_v34 = vpack.c.bf16 %v66_v32, %v65_v31  ;;  %v68_v36 = vld [vmem:[%s15383_s0 + $0x98] sm:$0xff]  ;;  %v69_v37 = vld [vmem:[%s15383_s0 + $0xa0] sm:$0xff]  ;;  %v70_v38 = vld [vmem:[%s15383_s0 + $0xa8] sm:$0xff] }
   0xb   :  { %8173 = vmatpush3.bf16.msra.mxu0 %v9703_v2  ;;  %v122_v39 = vpack.c.bf16 %v68_v36, %v67_v35  ;;  %v123_v40 = vpack.c.bf16 %v70_v38, %v69_v37  ;;  %v71_v41 = vld [vmem:[%s15383_s0 + $0xb0] sm:$0xff]  ;;  %v72_v42 = vld [vmem:[%s15383_s0 + $0xb8] sm:$0xff]  ;;  %v73_v43 = vld [vmem:[%s15383_s0 + $0xc0] sm:$0xff] }
   0xc   :  { %8174 = vmatprep.subr.bf16.mxu0 %v9704_v3  ;;  %v74_v44 = vld [vmem:[%s15383_s0 + $0xc8] sm:$0xff]  ;;  %v124_v45 = vpack.c.bf16 %v72_v42, %v71_v41  ;;  %v75_v47 = vld [vmem:[%s15383_s0 + $0xd0] sm:$0xff]  ;;  %v76_v48 = vld [vmem:[%s15383_s0 + $0xd8] sm:$0xff] }
   0xd   :  { %v125_v46 = vpack.c.bf16 %v74_v44, %v73_v43  ;;  %v77_v49 = vld [vmem:[%s15383_s0 + $0xe0] sm:$0xff]  ;;  %v78_v50 = vld [vmem:[%s15383_s0 + $0xe8] sm:$0xff]  ;;  %v126_v51 = vpack.c.bf16 %v76_v48, %v75_v47 }
   0xe   :  { %v127_v52 = vpack.c.bf16 %v78_v50, %v77_v49 }
   0xf   :  { %8175 = vmatpush3.bf16.msra.mxu0 %v9704_v3 }
  0x10   :  { %8176 = vmatprep.subr.bf16.mxu0 %v9705_v7 }
  0x13   :  { %8177 = vmatpush3.bf16.msra.mxu0 %v9705_v7 }
  0x14   :  { %8178 = vmatprep.subr.bf16.mxu0 %v9706_v8 }
  0x17   :  { %8179 = vmatpush3.bf16.msra.mxu0 %v9706_v8 }
  0x18   :  { %8180 = vmatprep.subr.bf16.mxu0 %v9707_v9 }
  0x1b   :  { %8181 = vmatpush3.bf16.msra.mxu0 %v9707_v9 }
  0x1c   :  { %8182 = vmatprep.subr.bf16.mxu0 %v9708_v10 }
  0x1f   :  { %8183 = vmatpush3.bf16.msra.mxu0 %v9708_v10 }
  0x22   :  { %8185 = vmatmul.mubr.bf16.vlgmr.msra.gmra.mrb[0].mxu0 %v114_v15 }
  0x23   :  { %8188 = vmatprep.mubr.bf16.mxu0 %v115_v16 }
  0x2a   :  { %8189 = vmatmul.mubr.bf16.gmra.mrb[4].mxu0 %v116_v21 }
  0x2b   :  { %8192 = vmatprep.mubr.bf16.mxu0 %v117_v22 }
  0x32   :  { %8193 = vmatmul.mubr.bf16.gmra.mrb[8].mxu0 %v118_v27 }
  0x33   :  { %8196 = vmatprep.mubr.bf16.mxu0 %v119_v28 }
  0x3a   :  { %8197 = vmatmul.mubr.bf16.gmra.mrb[12].mxu0 %v120_v33 }
  0x3b   :  { %8200 = vmatprep.mubr.bf16.mxu0 %v121_v34 }
  0x42   :  { %8201 = vmatmul.mubr.bf16.gmra.mrb[16].mxu0 %v122_v39 }
  0x43   :  { %8204 = vmatprep.mubr.bf16.mxu0 %v123_v40 }
  0x4a   :  { %8205 = vmatmul.mubr.bf16.gmra.mrb[20].mxu0 %v124_v45 }
  0x4b   :  { %8208 = vmatprep.mubr.bf16.mxu0 %v125_v46 }
  0x52   :  { %8209 = vmatmul.mubr.bf16.gmra.mrb[24].mxu0 %v126_v51 }
  0x53   :  { %19 = vsyncpa [#allocation4], 0  ;;  %8212 = vmatprep.mubr.bf16.mxu0 %v127_v52  ;;  %v79_v53 = vld [vmem:[%s15383_s0 + $0xf0] sm:$0xff]  ;;  %v80_v54 = vld [vmem:[%s15383_s0 + $0xf8] sm:$0xff]  ;;  %vm9899_vm0 = vmmov 0   ;;  %vm6994_vm1 = vcmask 1041409  }
  0x54   :  { %v81_v55 = vld [vmem:[%s15383_s0 + $0x100] sm:$0xff]  ;;  %v82_v56 = vld [vmem:[%s15383_s0 + $0x108] sm:$0xff]  ;;  %v128_v57 = vpack.c.bf16 %v80_v54, %v79_v53  ;;  %v83_v59 = vld [vmem:[%s15383_s0 + $0x110] sm:$0xff] }
  0x55   :  { %v129_v58 = vpack.c.bf16 %v82_v56, %v81_v55  ;;  %v84_v60 = vld [vmem:[%s15383_s0 + $0x118] sm:$0xff]  ;;  %v85_v61 = vld [vmem:[%s15383_s0 + $0x120] sm:$0xff]  ;;  %v86_v62 = vld [vmem:[%s15383_s0 + $0x128] sm:$0xff] }
  0x56   :  { %v130_v63 = vpack.c.bf16 %v84_v60, %v83_v59  ;;  %v131_v0 = vpack.c.bf16 %v86_v62, %v85_v61  ;;  %v87_v1 = vld [vmem:[%s15383_s0 + $0x130] sm:$0xff]  ;;  %v88_v2 = vld [vmem:[%s15383_s0 + $0x138] sm:$0xff]  ;;  %v89_v3 = vld [vmem:[%s15383_s0 + $0x140] sm:$0xff] }
  0x57   :  { %v90_v4 = vld [vmem:[%s15383_s0 + $0x148] sm:$0xff]  ;;  %v132_v5 = vpack.c.bf16 %v88_v2, %v87_v1  ;;  %v91_v7 = vld [vmem:[%s15383_s0 + $0x150] sm:$0xff]  ;;  %v92_v8 = vld [vmem:[%s15383_s0 + $0x158] sm:$0xff] }
  0x58   :  { %v133_v6 = vpack.c.bf16 %v90_v4, %v89_v3  ;;  %v93_v9 = vld [vmem:[%s15383_s0 + $0x160] sm:$0xff]  ;;  %v94_v10 = vld [vmem:[%s15383_s0 + $0x168] sm:$0xff]  ;;  %v134_v11 = vpack.c.bf16 %v92_v8, %v91_v7  ;;  %v95_v13 = vld [vmem:[%s15383_s0 + $0x170] sm:$0xff] }
  0x59   :  { %v135_v12 = vpack.c.bf16 %v94_v10, %v93_v9  ;;  %v96_v14 = vld [vmem:[%s15383_s0 + $0x178] sm:$0xff]  ;;  %v97_v15 = vld [vmem:[%s15383_s0 + $0x180] sm:$0xff]  ;;  %v98_v16 = vld [vmem:[%s15383_s0 + $0x188] sm:$0xff] }
  0x5a   :  { %8213 = vmatmul.mubr.bf16.gmra.mrb[28].mxu0 %v128_v57  ;;  %v136_v17 = vpack.c.bf16 %v96_v14, %v95_v13  ;;  %v137_v18 = vpack.c.bf16 %v98_v16, %v97_v15  ;;  %v99_v19 = vld [vmem:[%s15383_s0 + $0x190] sm:$0xff]  ;;  %v100_v20 = vld [vmem:[%s15383_s0 + $0x198] sm:$0xff]  ;;  %v101_v21 = vld [vmem:[%s15383_s0 + $0x1a0] sm:$0xff] }
  0x5b   :  { %8216 = vmatprep.mubr.bf16.mxu0 %v129_v58  ;;  %v102_v22 = vld [vmem:[%s15383_s0 + $0x1a8] sm:$0xff]  ;;  %v138_v23 = vpack.c.bf16 %v100_v20, %v99_v19  ;;  %v103_v25 = vld [vmem:[%s15383_s0 + $0x1b0] sm:$0xff]  ;;  %v104_v26 = vld [vmem:[%s15383_s0 + $0x1b8] sm:$0xff] }
  0x5c   :  { %v139_v24 = vpack.c.bf16 %v102_v22, %v101_v21  ;;  %v105_v27 = vld [vmem:[%s15383_s0 + $0x1c0] sm:$0xff]  ;;  %v106_v28 = vld [vmem:[%s15383_s0 + $0x1c8] sm:$0xff]  ;;  %v140_v29 = vpack.c.bf16 %v104_v26, %v103_v25  ;;  %v107_v31 = vld [vmem:[%s15383_s0 + $0x1d0] sm:$0xff] }
  0x5d   :  { %v141_v30 = vpack.c.bf16 %v106_v28, %v105_v27  ;;  %v108_v32 = vld [vmem:[%s15383_s0 + $0x1d8] sm:$0xff]  ;;  %v109_v33 = vld [vmem:[%s15383_s0 + $0x1e0] sm:$0xff]  ;;  %v110_v34 = vld [vmem:[%s15383_s0 + $0x1e8] sm:$0xff] }
  0x5e   :  { %v142_v35 = vpack.c.bf16 %v108_v32, %v107_v31  ;;  %v143_v36 = vpack.c.bf16 %v110_v34, %v109_v33  ;;  %v111_v37 = vld [vmem:[%s15383_s0 + $0x1f0] sm:$0xff]  ;;  %v112_v38 = vld [vmem:[%s15383_s0 + $0x1f8] sm:$0xff] }
  0x5f   :  { %v144_v39 = vpack.c.bf16 %v112_v38, %v111_v37 }
  0x62   :  { %8217 = vmatmul.mubr.bf16.gmra.mrb[32].mxu0 %v130_v63 }
  0x63   :  { %8220 = vmatprep.mubr.bf16.mxu0 %v131_v0 }
  0x6a   :  { %8221 = vmatmul.mubr.bf16.gmra.mrb[36].mxu0 %v132_v5 }
  0x6b   :  { %8224 = vmatprep.mubr.bf16.mxu0 %v133_v6 }
  0x72   :  { %8225 = vmatmul.mubr.bf16.gmra.mrb[40].mxu0 %v134_v11 }
  0x73   :  { %8228 = vmatprep.mubr.bf16.mxu0 %v135_v12 }
  0x7a   :  { %8229 = vmatmul.mubr.bf16.gmra.mrb[44].mxu0 %v136_v17 }
  0x7b   :  { %8232 = vmatprep.mubr.bf16.mxu0 %v137_v18 }
  0x82   :  { %8233 = vmatmul.mubr.bf16.gmra.mrb[48].mxu0 %v138_v23 }
  0x83   :  { %8236 = vmatprep.mubr.bf16.mxu0 %v139_v24 }
  0x8a   :  { %8237 = vmatmul.mubr.bf16.gmra.mrb[52].mxu0 %v140_v29 }
  0x8b   :  { %8240 = vmatprep.mubr.bf16.mxu0 %v141_v30 }
  0x92   :  { %8241 = vmatmul.mubr.bf16.gmra.mrb[56].mxu0 %v142_v35 }
  0x93   :  { %8244 = vmatprep.mubr.bf16.mxu0 %v143_v36 }
  0x9a   :  { %8245 = vmatmul.mubr.bf16.gmra.mrb[60].mxu0 %v144_v39 }
  0xf5   :  { %v10195_v40 = vpop.f32.mrb[0].mxu0 }
  0xf6   :  { %v10197_v41 = vpop.f32.mrb[1].mxu0  ;;  %v571_v47 = vmul.f32 %v10195_v40, %v10195_v40 }
  0xf7   :  { %v10199_v42 = vpop.f32.mrb[2].mxu0  ;;  %v569_v44 = vmul.f32 %v10197_v41, %v10197_v41 }
  0xf8   :  { %v10201_v43 = vpop.f32.mrb[3].mxu0  ;;  %v572_v50 = vmul.f32 %v10199_v42, %v10199_v42 }
  0xf9   :  { %v500_v45 = vadd.f32 %v10201_v43, %v10197_v41  ;;  %v570_v46 = vmul.f32 %v10201_v43, %v10201_v43 }
  0xfb   :  { %v501_v48 = vadd.f32 %v10195_v40, %v500_v45  ;;  %v633_v49 = vadd.f32 %v570_v46, %v569_v44 }
  0xfd   :  { %v634_v51 = vadd.f32 %v633_v49, %v571_v47  ;;  %v10214_v52 = vpop.f32.mrb[4].mxu0  ;;  %v502_v53 = vadd.f32 %v10199_v42, %v501_v48 }
  0xfe   :  { %v10217_v54 = vpop.f32.mrb[5].mxu0  ;;  %v575_v63 = vmul.f32 %v10214_v52, %v10214_v52 }
  0xff   :  { %v503_v55 = vadd.f32 %v502_v53, %v10217_v54  ;;  %v573_v56 = vmul.f32 %v10217_v54, %v10217_v54  ;;  %v635_v57 = vadd.f32 %v634_v51, %v572_v50  ;;  %v10222_v58 = vpop.f32.mrb[6].mxu0 }
 0x100   :  { %v10224_v59 = vpop.f32.mrb[7].mxu0  ;;  %v576_v2 = vmul.f32 %v10222_v58, %v10222_v58 }
 0x101   :  { %v636_v60 = vadd.f32 %v635_v57, %v573_v56  ;;  %v504_v61 = vadd.f32 %v503_v55, %v10224_v59  ;;  %v574_v62 = vmul.f32 %v10224_v59, %v10224_v59 }
 0x103   :  { %v505_v0 = vadd.f32 %v10214_v52, %v504_v61  ;;  %v637_v1 = vadd.f32 %v636_v60, %v574_v62 }
 0x105   :  { %v638_v3 = vadd.f32 %v637_v1, %v575_v63  ;;  %v10234_v4 = vpop.f32.mrb[8].mxu0  ;;  %v506_v5 = vadd.f32 %v10222_v58, %v505_v0 }
 0x106   :  { %v10237_v6 = vpop.f32.mrb[9].mxu0  ;;  %v579_v15 = vmul.f32 %v10234_v4, %v10234_v4 }
 0x107   :  { %v507_v7 = vadd.f32 %v506_v5, %v10237_v6  ;;  %v577_v8 = vmul.f32 %v10237_v6, %v10237_v6  ;;  %v639_v9 = vadd.f32 %v638_v3, %v576_v2  ;;  %v10242_v10 = vpop.f32.mrb[10].mxu0 }
 0x108   :  { %v10244_v11 = vpop.f32.mrb[11].mxu0  ;;  %v580_v18 = vmul.f32 %v10242_v10, %v10242_v10 }
 0x109   :  { %v640_v12 = vadd.f32 %v639_v9, %v577_v8  ;;  %v508_v13 = vadd.f32 %v507_v7, %v10244_v11  ;;  %v578_v14 = vmul.f32 %v10244_v11, %v10244_v11 }
 0x10b   :  { %v509_v16 = vadd.f32 %v10234_v4, %v508_v13  ;;  %v641_v17 = vadd.f32 %v640_v12, %v578_v14 }
 0x10d   :  { %v642_v19 = vadd.f32 %v641_v17, %v579_v15  ;;  %v10254_v20 = vpop.f32.mrb[12].mxu0  ;;  %v510_v21 = vadd.f32 %v10242_v10, %v509_v16 }
 0x10e   :  { %v10257_v22 = vpop.f32.mrb[13].mxu0  ;;  %v583_v31 = vmul.f32 %v10254_v20, %v10254_v20 }
 0x10f   :  { %v511_v23 = vadd.f32 %v510_v21, %v10257_v22  ;;  %v581_v24 = vmul.f32 %v10257_v22, %v10257_v22  ;;  %v643_v25 = vadd.f32 %v642_v19, %v580_v18  ;;  %v10262_v26 = vpop.f32.mrb[14].mxu0 }
 0x110   :  { %v10264_v27 = vpop.f32.mrb[15].mxu0  ;;  %v584_v34 = vmul.f32 %v10262_v26, %v10262_v26 }
 0x111   :  { %v644_v28 = vadd.f32 %v643_v25, %v581_v24  ;;  %v512_v29 = vadd.f32 %v511_v23, %v10264_v27  ;;  %v582_v30 = vmul.f32 %v10264_v27, %v10264_v27 }
 0x113   :  { %v513_v32 = vadd.f32 %v10254_v20, %v512_v29  ;;  %v645_v33 = vadd.f32 %v644_v28, %v582_v30 }
 0x115   :  { %v646_v35 = vadd.f32 %v645_v33, %v583_v31  ;;  %v10274_v36 = vpop.f32.mrb[16].mxu0  ;;  %v514_v37 = vadd.f32 %v10262_v26, %v513_v32 }
 0x116   :  { %v10277_v38 = vpop.f32.mrb[17].mxu0  ;;  %v587_v51 = vmul.f32 %v10274_v36, %v10274_v36 }
 0x117   :  { %v515_v39 = vadd.f32 %v514_v37, %v10277_v38  ;;  %v585_v44 = vmul.f32 %v10277_v38, %v10277_v38  ;;  %v647_v45 = vadd.f32 %v646_v35, %v584_v34  ;;  %v10282_v46 = vpop.f32.mrb[18].mxu0 }
 0x118   :  { %v10284_v47 = vpop.f32.mrb[19].mxu0  ;;  %v588_v56 = vmul.f32 %v10282_v46, %v10282_v46 }
 0x119   :  { %v648_v48 = vadd.f32 %v647_v45, %v585_v44  ;;  %v516_v49 = vadd.f32 %v515_v39, %v10284_v47  ;;  %v586_v50 = vmul.f32 %v10284_v47, %v10284_v47  ;;  %v9709_v44 = vld [vmem:[%s15387_s4 + $0x40] sm:$0xff]  }
 0x11a   :  { %8248 = vmatprep.subr.bf16.mxu0 %v9709_v44 }
 0x11b   :  { %v517_v53 = vadd.f32 %v10274_v36, %v516_v49  ;;  %v649_v55 = vadd.f32 %v648_v48, %v586_v50  ;;  %8249 = vmatpush3.bf16.msra.mxu0 %v9709_v44 }
 0x11d   :  { %v650_v57 = vadd.f32 %v649_v55, %v587_v51  ;;  %v10294_v60 = vpop.f32.mrb[20].mxu0  ;;  %v518_v61 = vadd.f32 %v10282_v46, %v517_v53 }
 0x11e   :  { %v10297_v62 = vpop.f32.mrb[21].mxu0  ;;  %v591_v9 = vmul.f32 %v10294_v60, %v10294_v60 }
 0x11f   :  { %v519_v63 = vadd.f32 %v518_v61, %v10297_v62  ;;  %v589_v0 = vmul.f32 %v10297_v62, %v10297_v62  ;;  %v651_v1 = vadd.f32 %v650_v57, %v588_v56  ;;  %v10302_v2 = vpop.f32.mrb[22].mxu0  ;;  %v9711_v61 = vld [vmem:[%s15387_s4 + $0x48] sm:$0xff]  }
 0x120   :  { %v10304_v3 = vpop.f32.mrb[23].mxu0  ;;  %v592_v14 = vmul.f32 %v10302_v2, %v10302_v2  ;;  %8250 = vmatprep.subr.bf16.mxu0 %v9711_v61 }
 0x121   :  { %v652_v5 = vadd.f32 %v651_v1, %v589_v0  ;;  %v520_v7 = vadd.f32 %v519_v63, %v10304_v3  ;;  %v590_v8 = vmul.f32 %v10304_v3, %v10304_v3  ;;  %8251 = vmatpush3.bf16.msra.mxu0 %v9711_v61 }
 0x123   :  { %v521_v12 = vadd.f32 %v10294_v60, %v520_v7  ;;  %v653_v13 = vadd.f32 %v652_v5, %v590_v8 }
 0x125   :  { %v654_v15 = vadd.f32 %v653_v13, %v591_v9  ;;  %v10314_v16 = vpop.f32.mrb[24].mxu0  ;;  %v522_v17 = vadd.f32 %v10302_v2, %v521_v12  ;;  %v9713_v12 = vld [vmem:[%s15387_s4 + $0x50] sm:$0xff]  }
 0x126   :  { %v10317_v18 = vpop.f32.mrb[25].mxu0  ;;  %v595_v31 = vmul.f32 %v10314_v16, %v10314_v16  ;;  %8252 = vmatprep.subr.bf16.mxu0 %v9713_v12 }
 0x127   :  { %v523_v19 = vadd.f32 %v522_v17, %v10317_v18  ;;  %v593_v21 = vmul.f32 %v10317_v18, %v10317_v18  ;;  %v655_v23 = vadd.f32 %v654_v15, %v592_v14  ;;  %v10322_v24 = vpop.f32.mrb[26].mxu0  ;;  %v9710_v14 = vld [vmem:[%s15387_s4 + $0xc0] sm:$0xff]   ;;  %8253 = vmatpush3.bf16.msra.mxu0 %v9713_v12  ;;  %v9719_v12 = vld [vmem:[%s15387_s4 + $0x68] sm:$0xff]  }
 0x128   :  { %v10324_v25 = vpop.f32.mrb[27].mxu0  ;;  %v596_v34 = vmul.f32 %v10322_v24, %v10322_v24  ;;  %9166 = vmatprep.subr.bf16.mxu1 %v9710_v14 }
 0x129   :  { %v656_v28 = vadd.f32 %v655_v23, %v593_v21  ;;  %v524_v29 = vadd.f32 %v523_v19, %v10324_v25  ;;  %v594_v30 = vmul.f32 %v10324_v25, %v10324_v25  ;;  %9174 = vmatpush3.bf16.msra.mxu1 %v9710_v14  ;;  %v10419_v14 = vld [vmem:[%s15387_s4 + $0xd8] sm:$0xff]  }
 0x12b   :  { %v525_v32 = vadd.f32 %v10314_v16, %v524_v29  ;;  %v657_v33 = vadd.f32 %v656_v28, %v594_v30 }
 0x12d   :  { %v658_v35 = vadd.f32 %v657_v33, %v595_v31  ;;  %v10334_v37 = vpop.f32.mrb[28].mxu0  ;;  %v526_v39 = vadd.f32 %v10322_v24, %v525_v32  ;;  %v9715_v31 = vld [vmem:[%s15387_s4 + $0x58] sm:$0xff]   ;;  %v9712_v32 = vld [vmem:[%s15387_s4 + $0xc8] sm:$0xff]  }
 0x12e   :  { %v10340_v45 = vpop.f32.mrb[29].mxu0  ;;  %v599_v63 = vmul.f32 %v10334_v37, %v10334_v37  ;;  %8254 = vmatprep.subr.bf16.mxu0 %v9715_v31  ;;  %9167 = vmatprep.subr.bf16.mxu1 %v9712_v32 }
 0x12f   :  { %v527_v48 = vadd.f32 %v526_v39, %v10340_v45  ;;  %v597_v49 = vmul.f32 %v10340_v45, %v10340_v45  ;;  %v659_v50 = vadd.f32 %v658_v35, %v596_v34  ;;  %v10345_v51 = vpop.f32.mrb[30].mxu0  ;;  %8255 = vmatpush3.bf16.msra.mxu0 %v9715_v31  ;;  %9175 = vmatpush3.bf16.msra.mxu1 %v9712_v32 }
 0x130   :  { %v10347_v53 = vpop.f32.mrb[31].mxu0  ;;  %v600_v5 = vmul.f32 %v10345_v51, %v10345_v51 }
 0x131   :  { %v660_v55 = vadd.f32 %v659_v50, %v597_v49  ;;  %v528_v56 = vadd.f32 %v527_v48, %v10347_v53  ;;  %v598_v57 = vmul.f32 %v10347_v53, %v10347_v53  ;;  %v9717_v50 = vld [vmem:[%s15387_s4 + $0x60] sm:$0xff]  }
 0x132   :  { %8256 = vmatprep.subr.bf16.mxu0 %v9717_v50 }
 0x133   :  { %v529_v0 = vadd.f32 %v10334_v37, %v528_v56  ;;  %v661_v1 = vadd.f32 %v660_v55, %v598_v57  ;;  %v9714_v56 = vld [vmem:[%s15387_s4 + $0xd0] sm:$0xff]   ;;  %8257 = vmatpush3.bf16.msra.mxu0 %v9717_v50 }
 0x134   :  { %9168 = vmatprep.subr.bf16.mxu1 %v9714_v56  ;;  %8258 = vmatprep.subr.bf16.mxu0 %v9719_v12 }
 0x135   :  { %v662_v7 = vadd.f32 %v661_v1, %v599_v63  ;;  %v10360_v8 = vpop.f32.mrb[32].mxu0  ;;  %v530_v9 = vadd.f32 %v10345_v51, %v529_v0  ;;  %9176 = vmatpush3.bf16.msra.mxu1 %v9714_v56 }
 0x136   :  { %v10366_v13 = vpop.f32.mrb[33].mxu0  ;;  %v603_v33 = vmul.f32 %v10360_v8, %v10360_v8  ;;  %9169 = vmatprep.subr.bf16.mxu1 %v10419_v14 }
 0x137   :  { %v531_v15 = vadd.f32 %v530_v9, %v10366_v13  ;;  %v601_v17 = vmul.f32 %v10366_v13, %v10366_v13  ;;  %v663_v19 = vadd.f32 %v662_v7, %v600_v5  ;;  %v10374_v21 = vpop.f32.mrb[34].mxu0  ;;  %8259 = vmatpush3.bf16.msra.mxu0 %v9719_v12 }
 0x138   :  { %v10376_v23 = vpop.f32.mrb[35].mxu0  ;;  %v604_v39 = vmul.f32 %v10374_v21, %v10374_v21 }
 0x139   :  { %v664_v28 = vadd.f32 %v663_v19, %v601_v17  ;;  %v532_v29 = vadd.f32 %v531_v15, %v10376_v23  ;;  %v602_v30 = vmul.f32 %v10376_v23, %v10376_v23  ;;  %9177 = vmatpush3.bf16.msra.mxu1 %v10419_v14 }
 0x13b   :  { %v533_v34 = vadd.f32 %v10360_v8, %v532_v29  ;;  %v665_v35 = vadd.f32 %v664_v28, %v602_v30  ;;  %v9897_v28 = vmov 0.0  }
 0x13c   :  { %976 = vst [vmem:[#allocation2] sm:$0xff] %v9897_v28  ;;  %977 = vst [vmem:[#allocation2 + $0x8] sm:$0xff] %v9897_v28 }
 0x13d   :  { %v666_v44 = vadd.f32 %v665_v35, %v603_v33  ;;  %v10392_v48 = vpop.f32.mrb[36].mxu0  ;;  %v534_v49 = vadd.f32 %v10374_v21, %v533_v34  ;;  %978 = vst [vmem:[#allocation2 + $0x10] sm:$0xff] %v9897_v28  ;;  %979 = vst [vmem:[#allocation2 + $0x1b0] sm:$0xff] %v9897_v28  ;;  %v9721_v33 = vld [vmem:[%s15387_s4 + $0x70] sm:$0xff]   ;;  %v9718_v35 = vld [vmem:[%s15387_s4 + $0xe0] sm:$0xff]  }
 0x13e   :  { %v10398_v55 = vpop.f32.mrb[37].mxu0  ;;  %v10423_v15 = vmul.f32 %v10392_v48, %v10392_v48  ;;  %980 = vst [vmem:[#allocation2 + $0x1b8] sm:$0xff] %v9897_v28  ;;  %981 = vst [vmem:[#allocation2 + $0x1c0] sm:$0xff] %v9897_v28  ;;  %8260 = vmatprep.subr.bf16.mxu0 %v9721_v33  ;;  %9170 = vmatprep.subr.bf16.mxu1 %v9718_v35 }
 0x13f   :  { %v535_v57 = vadd.f32 %v534_v49, %v10398_v55  ;;  %v605_v61 = vmul.f32 %v10398_v55, %v10398_v55  ;;  %v667_v63 = vadd.f32 %v666_v44, %v604_v39  ;;  %v10406_v0 = vpop.f32.mrb[38].mxu0  ;;  %983 = vst [vmem:[#allocation2 + $0x198] sm:$0xff] %v9897_v28  ;;  %984 = vst [vmem:[#allocation2 + $0x1a0] sm:$0xff] %v9897_v28  ;;  %8261 = vmatpush3.bf16.msra.mxu0 %v9721_v33  ;;  %v9722_v33 = vld [vmem:[%s15387_s4 + $0xf0] sm:$0xff]  }
 0x140   :  { %v10408_v1 = vpop.f32.mrb[39].mxu0  ;;  %985 = vst [vmem:[#allocation2 + $0x1a8] sm:$0xff] %v9897_v28  ;;  %986 = vst [vmem:[#allocation2 + $0x348] sm:$0xff] %v9897_v28  ;;  %v608_v29 = vmul.f32 %v10406_v0, %v10406_v0  ;;  %9178 = vmatpush3.bf16.msra.mxu1 %v9718_v35 }
 0x141   :  { %v668_v5 = vadd.f32 %v667_v63, %v605_v61  ;;  %v536_v7 = vadd.f32 %v535_v57, %v10408_v1  ;;  %v606_v9 = vmul.f32 %v10408_v1, %v10408_v1  ;;  %987 = vst [vmem:[#allocation2 + $0x350] sm:$0xff] %v9897_v28  ;;  %988 = vst [vmem:[#allocation2 + $0x358] sm:$0xff] %v9897_v28 }
 0x142   :  { %990 = vst [vmem:[#allocation2 + $0x18] sm:$0x1] %v9897_v28  ;;  %991 = vst [vmem:[#allocation2 + $0x30] sm:$0x1] %v9897_v28 }
 0x143   :  { %v10426_v17 = vadd.f32 %v10392_v48, %v536_v7  ;;  %v10428_v19 = vadd.f32 %v668_v5, %v606_v9  ;;  %992 = vst [vmem:[#allocation2 + $0x48] sm:$0x1] %v9897_v28  ;;  %993 = vst [vmem:[#allocation2 + $0x60] sm:$0x1] %v9897_v28  ;;  %v9723_v5 = vld [vmem:[%s15387_s4 + $0x78] sm:$0xff]   ;;  %v9720_v7 = vld [vmem:[%s15387_s4 + $0xe8] sm:$0xff]  }
 0x144   :  { %994 = vst [vmem:[#allocation2 + $0x78] sm:$0x1] %v9897_v28  ;;  %995 = vst [vmem:[#allocation2 + $0x90] sm:$0x1] %v9897_v28  ;;  %8262 = vmatprep.subr.bf16.mxu0 %v9723_v5  ;;  %9171 = vmatprep.subr.bf16.mxu1 %v9720_v7 }
 0x145   :  { %996 = vst [vmem:[#allocation2 + $0xa8] sm:$0x1] %v9897_v28  ;;  %997 = vst [vmem:[#allocation2 + $0xc0] sm:$0x1] %v9897_v28  ;;  %v670_v30 = vadd.f32 %v10428_v19, %v10423_v15  ;;  %v10511_v31 = vpop.f32.mrb[40].mxu0  ;;  %v538_v32 = vadd.f32 %v10406_v0, %v10426_v17  ;;  %v1230_v15 = vld [vmem:[#allocation2 + $0x1] sm:$0xff]  ;;  %8263 = vmatpush3.bf16.msra.mxu0 %v9723_v5  ;;  %9179 = vmatpush3.bf16.msra.mxu1 %v9720_v7 }
 0x146   :  { %998 = vst [vmem:[#allocation2 + $0xd8] sm:$0x1] %v9897_v28  ;;  %999 = vst [vmem:[#allocation2 + $0xf0] sm:$0x1] %v9897_v28  ;;  %v10519_v34 = vpop.f32.mrb[41].mxu0  ;;  %v611_v9 = vmul.f32 %v10511_v31, %v10511_v31  ;;  %v1231_v17 = vld [vmem:[#allocation2 + $0x9] sm:$0xff]  ;;  %9172 = vmatprep.subr.bf16.mxu1 %v9722_v33 }
 0x147   :  { %1000 = vst [vmem:[#allocation2 + $0x108] sm:$0x1] %v9897_v28  ;;  %1001 = vst [vmem:[#allocation2 + $0x120] sm:$0x1] %v9897_v28  ;;  %v539_v39 = vadd.f32 %v538_v32, %v10519_v34  ;;  %v609_v44 = vmul.f32 %v10519_v34, %v10519_v34  ;;  %v671_v49 = vadd.f32 %v670_v30, %v608_v29  ;;  %v10527_v50 = vpop.f32.mrb[42].mxu0 }
 0x148   :  { %1002 = vst [vmem:[#allocation2 + $0x138] sm:$0x1] %v9897_v28  ;;  %1003 = vst [vmem:[#allocation2 + $0x150] sm:$0x1] %v9897_v28  ;;  %v10529_v56 = vpop.f32.mrb[43].mxu0  ;;  %v1294_v19 = vpack.c.bf16 %v1231_v17, %v1230_v15 }
 0x149   :  { %1004 = vst [vmem:[#allocation2 + $0x168] sm:$0x1] %v9897_v28  ;;  %1005 = vst [vmem:[#allocation2 + $0x180] sm:$0x1] %v9897_v28  ;;  %v672_v57 = vadd.f32 %v671_v49, %v609_v44  ;;  %v540_v61 = vadd.f32 %v539_v39, %v10529_v56  ;;  %v610_v63 = vmul.f32 %v10529_v56, %v10529_v56  ;;  %v9724_v39 = vld [vmem:[%s15387_s4 + $0xf8] sm:$0xff]   ;;  %9180 = vmatpush3.bf16.msra.mxu1 %v9722_v33 }
 0x14a   :  { %1006 = vst [vmem:[#allocation2 + $0x1c8] sm:$0x1] %v9897_v28  ;;  %1007 = vst [vmem:[#allocation2 + $0x1e0] sm:$0x1] %v9897_v28  ;;  %8264 = vmatprep.mubr.bf16.mxu0 %v1294_v19  ;;  %9173 = vmatprep.subr.bf16.mxu1 %v9724_v39 }
 0x14b   :  { %1008 = vst [vmem:[#allocation2 + $0x1f8] sm:$0x1] %v9897_v28  ;;  %1009 = vst [vmem:[#allocation2 + $0x210] sm:$0x1] %v9897_v28  ;;  %v541_v12 = vadd.f32 %v10511_v31, %v540_v61  ;;  %v673_v14 = vadd.f32 %v672_v57, %v610_v63 }
 0x14c   :  { %1010 = vst [vmem:[#allocation2 + $0x228] sm:$0x1] %v9897_v28  ;;  %1011 = vst [vmem:[#allocation2 + $0x240] sm:$0x1] %v9897_v28 }
 0x14d   :  { %1012 = vst [vmem:[#allocation2 + $0x258] sm:$0x1] %v9897_v28  ;;  %1013 = vst [vmem:[#allocation2 + $0x270] sm:$0x1] %v9897_v28  ;;  %v674_v29 = vadd.f32 %v673_v14, %v611_v9  ;;  %v10545_v30 = vpop.f32.mrb[44].mxu0  ;;  %v542_v32 = vadd.f32 %v10527_v50, %v541_v12  ;;  %v10569_v12 = vld [vmem:[%s15387_s4 + $0x100] sm:$0xff]   ;;  %9181 = vmatpush3.bf16.msra.mxu1 %v9724_v39 }
 0x14e   :  { %1014 = vst [vmem:[#allocation2 + $0x288] sm:$0x1] %v9897_v28  ;;  %1015 = vst [vmem:[#allocation2 + $0x2a0] sm:$0x1] %v9897_v28  ;;  %v10551_v35 = vpop.f32.mrb[45].mxu0  ;;  %v615_v14 = vmul.f32 %v10545_v30, %v10545_v30  ;;  %8568 = vmatprep.subr.bf16.mxu1 %v10569_v12 }
 0x14f   :  { %1016 = vst [vmem:[#allocation2 + $0x2b8] sm:$0x1] %v9897_v28  ;;  %1017 = vst [vmem:[#allocation2 + $0x2d0] sm:$0x1] %v9897_v28  ;;  %v543_v44 = vadd.f32 %v542_v32, %v10551_v35  ;;  %v613_v49 = vmul.f32 %v10551_v35, %v10551_v35  ;;  %v10559_v61 = vpop.f32.mrb[46].mxu0 }
 0x150   :  { %1018 = vst [vmem:[#allocation2 + $0x2e8] sm:$0x1] %v9897_v28  ;;  %1019 = vst [vmem:[#allocation2 + $0x300] sm:$0x1] %v9897_v28  ;;  %v10561_v63 = vpop.f32.mrb[47].mxu0  ;;  %v616_v19 = vmul.f32 %v10559_v61, %v10559_v61 }
 0x151   :  { %1020 = vst [vmem:[#allocation2 + $0x318] sm:$0x1] %v9897_v28  ;;  %1021 = vst [vmem:[#allocation2 + $0x330] sm:$0x1] %v9897_v28  ;;  %v544_v7 = vadd.f32 %v543_v44, %v10561_v63  ;;  %v614_v9 = vmul.f32 %v10561_v63, %v10561_v63 }
 0x152   :  { %1022 = vst [vmem:[#allocation2 + $0x29] sm:$0x1] %v9897_v28  ;;  %1023 = vst [vmem:[#allocation2 + $0x41] sm:$0x1] %v9897_v28 }
 0x153   :  { %1024 = vst [vmem:[#allocation2 + $0x59] sm:$0x1] %v9897_v28  ;;  %1025 = vst [vmem:[#allocation2 + $0x71] sm:$0x1] %v9897_v28  ;;  %v545_v15 = vadd.f32 %v10545_v30, %v544_v7 }
 0x154   :  { %1026 = vst [vmem:[#allocation2 + $0x89] sm:$0x1] %v9897_v28  ;;  %1027 = vst [vmem:[#allocation2 + $0xa1] sm:$0x1] %v9897_v28 }
 0x155   :  { %1028 = vst [vmem:[#allocation2 + $0xb9] sm:$0x1] %v9897_v28  ;;  %1029 = vst [vmem:[#allocation2 + $0xd1] sm:$0x1] %v9897_v28  ;;  %v546_v32 = vadd.f32 %v10559_v61, %v545_v15 }
 0x156   :  { %1030 = vst [vmem:[#allocation2 + $0xe9] sm:$0x1] %v9897_v28  ;;  %1031 = vst [vmem:[#allocation2 + $0x101] sm:$0x1] %v9897_v28 }
 0x157   :  { %1032 = vst [vmem:[#allocation2 + $0x119] sm:$0x1] %v9897_v28  ;;  %1033 = vst [vmem:[#allocation2 + $0x131] sm:$0x1] %v9897_v28 }
 0x158   :  { %1034 = vst [vmem:[#allocation2 + $0x149] sm:$0x1] %v9897_v28  ;;  %1035 = vst [vmem:[#allocation2 + $0x161] sm:$0x1] %v9897_v28 }
 0x159   :  { %1036 = vst [vmem:[#allocation2 + $0x179] sm:$0x1] %v9897_v28  ;;  %1037 = vst [vmem:[#allocation2 + $0x191] sm:$0x1] %v9897_v28 }
 0x15a   :  { %1038 = vst [vmem:[#allocation2 + $0x1d9] sm:$0x1] %v9897_v28  ;;  %1039 = vst [vmem:[#allocation2 + $0x1f1] sm:$0x1] %v9897_v28 }
 0x15b   :  { %1040 = vst [vmem:[#allocation2 + $0x209] sm:$0x1] %v9897_v28  ;;  %1041 = vst [vmem:[#allocation2 + $0x221] sm:$0x1] %v9897_v28 }
 0x15c   :  { %1042 = vst [vmem:[#allocation2 + $0x239] sm:$0x1] %v9897_v28  ;;  %1043 = vst [vmem:[#allocation2 + $0x251] sm:$0x1] %v9897_v28 }
 0x15d   :  { %1044 = vst [vmem:[#allocation2 + $0x269] sm:$0x1] %v9897_v28  ;;  %1045 = vst [vmem:[#allocation2 + $0x281] sm:$0x1] %v9897_v28 }
 0x15e   :  { %1046 = vst [vmem:[#allocation2 + $0x299] sm:$0x1] %v9897_v28  ;;  %1047 = vst [vmem:[#allocation2 + $0x2b1] sm:$0x1] %v9897_v28 }
 0x15f   :  { %1048 = vst [vmem:[#allocation2 + $0x2c9] sm:$0x1] %v9897_v28  ;;  %1049 = vst [vmem:[#allocation2 + $0x2e1] sm:$0x1] %v9897_v28 }
 0x160   :  { %1050 = vst [vmem:[#allocation2 + $0x2f9] sm:$0x1] %v9897_v28  ;;  %1051 = vst [vmem:[#allocation2 + $0x311] sm:$0x1] %v9897_v28 }
 0x161   :  { %1052 = vst [vmem:[#allocation2 + $0x329] sm:$0x1] %v9897_v28  ;;  %1053 = vst [vmem:[#allocation2 + $0x341] sm:$0x1] %v9897_v28  ;;  %v612_v28 = vmul.f32 %v10527_v50, %v10527_v50 }
 0x162   :  { %15580 = vst [vmem:[#allocation6_spill] sm:$0xff] %v10511_v31  ;;  %15581 = vst [vmem:[#allocation7_spill] sm:$0xff] %v10519_v34 }
 0x163   :  { %15582 = vst [vmem:[#allocation8_spill] sm:$0xff] %v10527_v50  ;;  %15583 = vst [vmem:[#allocation9_spill] sm:$0xff] %v10529_v56  ;;  %v675_v57 = vadd.f32 %v674_v29, %v612_v28  ;;  %v10576_v29 = vpop.f32.mrb[48].mxu0  ;;  %v774_v56 = vlaneseq }
 0x164   :  { %15584 = vst [vmem:[#allocation10_spill] sm:$0xff] %v10545_v30  ;;  %15585 = vst [vmem:[#allocation11_spill] sm:$0xff] %v10551_v35  ;;  %v10579_v33 = vpop.f32.mrb[49].mxu0  ;;  %v619_v15 = vmul.f32 %v10576_v29, %v10576_v29 }
 0x165   :  { %15586 = vst [vmem:[#allocation12_spill] sm:$0xff] %v10559_v61  ;;  %15587 = vst [vmem:[#allocation13_spill] sm:$0xff] %v10561_v63  ;;  %v676_v5 = vadd.f32 %v675_v57, %v613_v49  ;;  %v547_v44 = vadd.f32 %v546_v32, %v10579_v33  ;;  %v617_v49 = vmul.f32 %v10579_v33, %v10579_v33 }
 0x166   :  { %15588 = vst [vmem:[#allocation14_spill] sm:$0xff] %v10569_v12  ;;  %15589 = vst [vmem:[#allocation15_spill] sm:$0xff] %v10576_v29 }
 0x167   :  { %v677_v17 = vadd.f32 %v676_v5, %v614_v9  ;;  %15590 = vst [vmem:[#allocation16_spill] sm:$0xff] %v10579_v33  ;;  %v10585_v5 = vpop.f32.mrb[50].mxu0 }
 0x168   :  { %15591 = vst [vmem:[#allocation17_spill] sm:$0xff] %v10585_v5  ;;  %v10587_v7 = vpop.f32.mrb[51].mxu0  ;;  %v620_v12 = vmul.f32 %v10585_v5, %v10585_v5 }
 0x169   :  { %v678_v28 = vadd.f32 %v677_v17, %v615_v14  ;;  %15592 = vst [vmem:[#allocation18_spill] sm:$0xff] %v10587_v7  ;;  %v548_v14 = vadd.f32 %v547_v44, %v10587_v7  ;;  %v618_v39 = vmul.f32 %v10587_v7, %v10587_v7 }
 0x16b   :  { %v679_v57 = vadd.f32 %v678_v28, %v616_v19  ;;  %v549_v17 = vadd.f32 %v10576_v29, %v548_v14  ;;  %v10597_v28 = vpop.f32.mrb[52].mxu0 }
 0x16c   :  { %15593 = vst [vmem:[#allocation19_spill] sm:$0xff] %v10597_v28 }
 0x16d   :  { %v680_v9 = vadd.f32 %v679_v57, %v617_v49  ;;  %v550_v33 = vadd.f32 %v10585_v5, %v549_v17  ;;  %v10600_v49 = vpop.f32.mrb[53].mxu0  ;;  %v623_v17 = vmul.f32 %v10597_v28, %v10597_v28 }
 0x16e   :  { %15594 = vst [vmem:[#allocation20_spill] sm:$0xff] %v10600_v49  ;;  %v621_v57 = vmul.f32 %v10600_v49, %v10600_v49  ;;  %v10605_v61 = vpop.f32.mrb[54].mxu0 }
 0x16f   :  { %v681_v32 = vadd.f32 %v680_v9, %v618_v39  ;;  %v551_v44 = vadd.f32 %v550_v33, %v10600_v49  ;;  %15595 = vst [vmem:[#allocation21_spill] sm:$0xff] %v10605_v61  ;;  %v10607_v14 = vpop.f32.mrb[55].mxu0  ;;  %v624_v49 = vmul.f32 %v10605_v61, %v10605_v61 }
 0x170   :  { %15596 = vst [vmem:[#allocation22_spill] sm:$0xff] %v10607_v14 }
 0x171   :  { %v682_v19 = vadd.f32 %v681_v32, %v619_v15  ;;  %v552_v39 = vadd.f32 %v551_v44, %v10607_v14  ;;  %v622_v15 = vmul.f32 %v10607_v14, %v10607_v14 }
 0x173   :  { %v683_v7 = vadd.f32 %v682_v19, %v620_v12  ;;  %v553_v32 = vadd.f32 %v10597_v28, %v552_v39  ;;  %v10617_v19 = vpop.f32.mrb[56].mxu0 }
 0x174   :  { %15597 = vst [vmem:[#allocation23_spill] sm:$0xff] %v10617_v19 }
 0x175   :  { %v684_v9 = vadd.f32 %v683_v7, %v621_v57  ;;  %v554_v5 = vadd.f32 %v10605_v61, %v553_v32  ;;  %v10620_v7 = vpop.f32.mrb[57].mxu0  ;;  %v627_v32 = vmul.f32 %v10617_v19, %v10617_v19 }
 0x176   :  { %15598 = vst [vmem:[#allocation24_spill] sm:$0xff] %v10620_v7  ;;  %v625_v57 = vmul.f32 %v10620_v7, %v10620_v7  ;;  %v10625_v29 = vpop.f32.mrb[58].mxu0 }
 0x177   :  { %v685_v33 = vadd.f32 %v684_v9, %v622_v15  ;;  %v555_v44 = vadd.f32 %v554_v5, %v10620_v7  ;;  %15599 = vst [vmem:[#allocation25_spill] sm:$0xff] %v10625_v29  ;;  %v10627_v39 = vpop.f32.mrb[59].mxu0  ;;  %v628_v7 = vmul.f32 %v10625_v29, %v10625_v29 }
 0x178   :  { %15600 = vst [vmem:[#allocation26_spill] sm:$0xff] %v10627_v39 }
 0x179   :  { %v686_v12 = vadd.f32 %v685_v33, %v623_v17  ;;  %v556_v15 = vadd.f32 %v555_v44, %v10627_v39  ;;  %v626_v17 = vmul.f32 %v10627_v39, %v10627_v39 }
 0x17b   :  { %v687_v14 = vadd.f32 %v686_v12, %v624_v49  ;;  %v557_v33 = vadd.f32 %v10617_v19, %v556_v15  ;;  %v10637_v12 = vpop.f32.mrb[60].mxu0 }
 0x17c   :  { %15601 = vst [vmem:[#allocation27_spill] sm:$0xff] %v10637_v12 }
 0x17d   :  { %v688_v9 = vadd.f32 %v687_v14, %v625_v57  ;;  %v558_v61 = vadd.f32 %v10625_v29, %v557_v33  ;;  %v10640_v14 = vpop.f32.mrb[61].mxu0  ;;  %v631_v33 = vmul.f32 %v10637_v12, %v10637_v12 }
 0x17e   :  { %15602 = vst [vmem:[#allocation28_spill] sm:$0xff] %v10640_v14  ;;  %v629_v57 = vmul.f32 %v10640_v14, %v10640_v14  ;;  %v10645_v28 = vpop.f32.mrb[62].mxu0 }
 0x17f   :  { %v689_v5 = vadd.f32 %v688_v9, %v626_v17  ;;  %v559_v44 = vadd.f32 %v558_v61, %v10640_v14  ;;  %v10647_v15 = vpop.f32.mrb[63].mxu0  ;;  %v632_v14 = vmul.f32 %v10645_v28, %v10645_v28 }
 0x181   :  { %v690_v49 = vadd.f32 %v689_v5, %v627_v32  ;;  %v560_v17 = vadd.f32 %v559_v44, %v10647_v15  ;;  %v630_v32 = vmul.f32 %v10647_v15, %v10647_v15 }
 0x183   :  { %v691_v39 = vadd.f32 %v690_v49, %v628_v7  ;;  %v561_v5 = vadd.f32 %v10637_v12, %v560_v17  ;;  %v10660_v12 = vshrl.u32 %v774_v56, 7 }
 0x185   :  { %v692_v9 = vadd.f32 %v691_v39, %v629_v57  ;;  %v562_v7 = vadd.f32 %v10645_v28, %v561_v5  ;;  %15603 = vst [vmem:[#allocation29_spill] sm:$0xff] %v10660_v12 }
 0x187   :  { %v693_v61 = vadd.f32 %v692_v9, %v630_v32  ;;  %v563_v29 = vrot.slane %v562_v7, 4 }
 0x189   :  { %v694_v49 = vadd.f32 %v693_v61, %v631_v33  ;;  %v564_v39 = vadd.f32 %v563_v29, %v562_v7  ;;  %v15622_v29 = vld [vmem:[#allocation23_spill] sm:$0xff] }
 0x18a   :  { %v15626_v7 = vld [vmem:[#allocation27_spill] sm:$0xff] }
 0x18b   :  { %v695_v19 = vadd.f32 %v694_v49, %v632_v14  ;;  %v565_v44 = vrot.slane %v564_v39, 2  ;;  %v15609_v49 = vld [vmem:[#allocation13_spill] sm:$0xff] }
 0x18d   :  { %v696_v57 = vrot.slane %v695_v19, 4  ;;  %v566_v63 = vadd.f32 %v565_v44, %v564_v39  ;;  %v15604_v44 = vld [vmem:[#allocation7_spill] sm:$0xff] }
 0x18f   :  { %v697_v30 = vadd.f32 %v696_v57, %v695_v19  ;;  %v567_v50 = vrot.slane %v566_v63, 1 }
 0x191   :  { %v698_v35 = vrot.slane %v697_v30, 2  ;;  %v568_v34 = vadd.f32 %v567_v50, %v566_v63 }
 0x193   :  { %v699_v31 = vadd.f32 %v698_v35, %v697_v30  ;;  %v10658_v32 = vmul.f32 0.001953125, %v568_v34  ;;  %v498_v30 = vld [vmem:[%s15385_s2] sm:$0x1] }
 0x194   :  { %v10804_v35 = vld [vmem:[%s15386_s3] ss:$0 sm:$0xff] }
 0x195   :  { %v700_v17 = vrot.slane %v699_v31, 1  ;;  %v704_v14 = vmul.f32 %v10658_v32, %v10658_v32  ;;  %v15627_v50 = vsub.f32 %v10647_v15, %v10658_v32  ;;  %v15631_v15 = vsub.f32 %v10199_v42, %v10658_v32 }
 0x197   :  { %v701_v9 = vadd.f32 %v700_v17, %v699_v31  ;;  %v15605_v17 = vld [vmem:[#allocation9_spill] sm:$0xff]  ;;  %v15628_v31 = vsub.f32 %v10197_v41, %v10658_v32 }
 0x199   :  { %v703_v5 = vmul.f32 0.001953125, %v701_v9  ;;  %v15606_v9 = vld [vmem:[#allocation6_spill] sm:$0xff] }
 0x19b   :  { %v705_v56 = vsub.f32 %v703_v5, %v704_v14  ;;  %v15607_v5 = vld [vmem:[#allocation8_spill] sm:$0xff]  ;;  %v15608_v14 = vld [vmem:[#allocation11_spill] sm:$0xff] }
 0x19d   :  { %v706_v57 = vmax.f32 %v705_v56, 0.0  ;;  %v10792_v56 = vsub.s32 0, %v10660_v12 }
 0x19f   :  { %v771_v39 = vadd.f32 1e-05, %v706_v57  ;;  %v15624_v57 = vld [vmem:[#allocation28_spill] sm:$0xff]  ;;  %15625 = vst [vmem:[#allocation7_spill] sm:$0xff] %v10792_v56 }
 0x1a1   :  { %9789 = vrsqrt.f32 %v771_v39  ;;  %v15623_v39 = vld [vmem:[#allocation25_spill] sm:$0xff] }
 0x1ab   :  { %v9790_v61 = vpop.eup %9789 }
 0x1ac   :  { %v773_v33 = vmul.f32 %v9790_v61, %v498_v30  ;;  %v15629_v30 = vsub.f32 %v10201_v43, %v10658_v32  ;;  %v15630_v61 = vsub.f32 %v10195_v40, %v10658_v32 }
 0x1ae   :  { %v10799_v19 = vrot.slane %v773_v33, %v10792_v56 }
 0x1b0   :  { %v839_v63 = vmul.f32 %v10799_v19, %v15627_v50  ;;  %v10814_v34 = vmul.f32 %v10799_v19, %v15628_v31  ;;  %v10820_v33 = vmul.f32 %v10799_v19, %v15629_v30  ;;  %v10826_v12 = vmul.f32 %v10799_v19, %v15630_v61 }
 0x1b1   :  { %v10832_v41 = vmul.f32 %v10799_v19, %v15631_v15  ;;  %v15632_v31 = vsub.f32 %v10217_v54, %v10658_v32  ;;  %v15633_v50 = vsub.f32 %v10224_v59, %v10658_v32  ;;  %v15634_v30 = vsub.f32 %v10214_v52, %v10658_v32 }
 0x1b2   :  { %v909_v61 = vadd.f32 %v10804_v35, %v839_v63  ;;  %v15635_v54 = vsub.f32 %v10222_v58, %v10658_v32  ;;  %v15636_v59 = vsub.f32 %v10237_v6, %v10658_v32  ;;  %v15637_v52 = vsub.f32 %v10244_v11, %v10658_v32 }
 0x1b3   :  { %v10838_v43 = vmul.f32 %v10799_v19, %v15632_v31  ;;  %v10844_v40 = vmul.f32 %v10799_v19, %v15633_v50  ;;  %v10850_v42 = vmul.f32 %v10799_v19, %v15634_v30  ;;  %v15638_v63 = vsub.f32 %v10234_v4, %v10658_v32 }
 0x1b4   :  { %v10857_v15 = vmul.f32 %v10799_v19, %v15635_v54  ;;  %v10863_v31 = vmul.f32 %v10799_v19, %v15636_v59  ;;  %v10869_v50 = vmul.f32 %v10799_v19, %v15637_v52  ;;  %v15639_v30 = vsub.f32 %v10242_v10, %v10658_v32 }
 0x1b5   :  { %v10875_v58 = vmul.f32 %v10799_v19, %v15638_v63  ;;  %v15640_v54 = vsub.f32 %v10257_v22, %v10658_v32  ;;  %v15641_v59 = vsub.f32 %v10264_v27, %v10658_v32  ;;  %v973_v52 = vmax.f32 %v909_v61, 0.0 }
 0x1b6   :  { %v10881_v6 = vmul.f32 %v10799_v19, %v15639_v30  ;;  %v15642_v63 = vsub.f32 %v10254_v20, %v10658_v32  ;;  %v15643_v30 = vsub.f32 %v10262_v26, %v10658_v32  ;;  %v15645_v61 = vsub.f32 %v10284_v47, %v10658_v32 }
 0x1b7   :  { %v10887_v11 = vmul.f32 %v10799_v19, %v15640_v54  ;;  %v10893_v4 = vmul.f32 %v10799_v19, %v15641_v59  ;;  %v15644_v54 = vsub.f32 %v10277_v38, %v10658_v32  ;;  %v15646_v59 = vsub.f32 %v10274_v36, %v10658_v32  ;;  %1115 = vst [vmem:[#allocation2 + $0x321] sm:$0xff] %v973_v52 }
 0x1b8   :  { %v10899_v10 = vmul.f32 %v10799_v19, %v15642_v63  ;;  %v10905_v22 = vmul.f32 %v10799_v19, %v15643_v30  ;;  %v10917_v20 = vmul.f32 %v10799_v19, %v15645_v61  ;;  %v15647_v63 = vsub.f32 %v10282_v46, %v10658_v32 }
 0x1b9   :  { %v10911_v27 = vmul.f32 %v10799_v19, %v15644_v54  ;;  %v10923_v26 = vmul.f32 %v10799_v19, %v15646_v59  ;;  %v15648_v30 = vsub.f32 %v10297_v62, %v10658_v32  ;;  %v15649_v54 = vsub.f32 %v10304_v3, %v10658_v32 }
 0x1ba   :  { %v10929_v38 = vmul.f32 %v10799_v19, %v15647_v63  ;;  %v15650_v61 = vsub.f32 %v10294_v60, %v10658_v32  ;;  %v15651_v59 = vsub.f32 %v10302_v2, %v10658_v32  ;;  %v15652_v52 = vsub.f32 %v10317_v18, %v10658_v32 }
 0x1bb   :  { %v10935_v47 = vmul.f32 %v10799_v19, %v15648_v30  ;;  %v10941_v36 = vmul.f32 %v10799_v19, %v15649_v54  ;;  %v15653_v63 = vsub.f32 %v10324_v25, %v10658_v32  ;;  %v15654_v30 = vsub.f32 %v10314_v16, %v10658_v32 }
 0x1bc   :  { %v10947_v46 = vmul.f32 %v10799_v19, %v15650_v61  ;;  %v10953_v62 = vmul.f32 %v10799_v19, %v15651_v59  ;;  %v10959_v3 = vmul.f32 %v10799_v19, %v15652_v52  ;;  %v15655_v54 = vsub.f32 %v10322_v24, %v10658_v32 }
 0x1bd   :  { %v10965_v60 = vmul.f32 %v10799_v19, %v15653_v63  ;;  %v10971_v2 = vmul.f32 %v10799_v19, %v15654_v30  ;;  %v15656_v61 = vsub.f32 %v10340_v45, %v10658_v32  ;;  %v15657_v59 = vsub.f32 %v10347_v53, %v10658_v32 }
 0x1be   :  { %v10977_v18 = vmul.f32 %v10799_v19, %v15655_v54  ;;  %v15658_v52 = vsub.f32 %v10334_v37, %v10658_v32  ;;  %v15659_v63 = vsub.f32 %v10345_v51, %v10658_v32  ;;  %v15660_v30 = vsub.f32 %v10366_v13, %v10658_v32 }
 0x1bf   :  { %v10983_v25 = vmul.f32 %v10799_v19, %v15656_v61  ;;  %v10989_v16 = vmul.f32 %v10799_v19, %v15657_v59  ;;  %v15661_v54 = vsub.f32 %v10376_v23, %v10658_v32  ;;  %v15662_v61 = vsub.f32 %v10360_v8, %v10658_v32 }
 0x1c0   :  { %v10995_v24 = vmul.f32 %v10799_v19, %v15658_v52  ;;  %v11001_v45 = vmul.f32 %v10799_v19, %v15659_v63  ;;  %v11007_v53 = vmul.f32 %v10799_v19, %v15660_v30  ;;  %v15663_v59 = vsub.f32 %v10374_v21, %v10658_v32 }
 0x1c1   :  { %v11013_v37 = vmul.f32 %v10799_v19, %v15661_v54  ;;  %v11019_v51 = vmul.f32 %v10799_v19, %v15662_v61  ;;  %v15664_v52 = vsub.f32 %v10398_v55, %v10658_v32  ;;  %v15665_v63 = vsub.f32 %v10408_v1, %v10658_v32 }
 0x1c2   :  { %v11025_v13 = vmul.f32 %v10799_v19, %v15663_v59  ;;  %v15666_v30 = vsub.f32 %v10392_v48, %v10658_v32  ;;  %v15667_v54 = vsub.f32 %v10406_v0, %v10658_v32  ;;  %v15668_v61 = vsub.f32 %v15604_v44, %v10658_v32 }
 0x1c3   :  { %v11031_v23 = vmul.f32 %v10799_v19, %v15664_v52  ;;  %v11037_v8 = vmul.f32 %v10799_v19, %v15665_v63  ;;  %v15669_v59 = vsub.f32 %v15605_v17, %v10658_v32  ;;  %v15670_v52 = vsub.f32 %v15606_v9, %v10658_v32 }
 0x1c4   :  { %v11043_v21 = vmul.f32 %v10799_v19, %v15666_v30  ;;  %v11049_v55 = vmul.f32 %v10799_v19, %v15667_v54  ;;  %v11055_v1 = vmul.f32 %v10799_v19, %v15668_v61  ;;  %v15671_v63 = vsub.f32 %v15607_v5, %v10658_v32  ;;  %v15675_v61 = vld [vmem:[#allocation10_spill] sm:$0xff] }
 0x1c5   :  { %v11061_v48 = vmul.f32 %v10799_v19, %v15669_v59  ;;  %v11067_v0 = vmul.f32 %v10799_v19, %v15670_v52  ;;  %v15672_v30 = vsub.f32 %v15608_v14, %v10658_v32  ;;  %v15673_v54 = vsub.f32 %v15609_v49, %v10658_v32  ;;  %v15678_v52 = vld [vmem:[#allocation12_spill] sm:$0xff] }
 0x1c6   :  { %v11073_v44 = vmul.f32 %v10799_v19, %v15671_v63  ;;  %v15676_v59 = vsub.f32 %v15675_v61, %v10658_v32  ;;  %v15679_v63 = vsub.f32 %v15678_v52, %v10658_v32 }
 0x1c7   :  { %v11079_v17 = vmul.f32 %v10799_v19, %v15672_v30  ;;  %v11085_v9 = vmul.f32 %v10799_v19, %v15673_v54  ;;  %v15681_v30 = vld [vmem:[#allocation16_spill] sm:$0xff]  ;;  %v15684_v54 = vld [vmem:[#allocation18_spill] sm:$0xff] }
 0x1c8   :  { %v11091_v5 = vmul.f32 %v10799_v19, %v15676_v59  ;;  %v11097_v14 = vmul.f32 %v10799_v19, %v15679_v63  ;;  %v15682_v56 = vsub.f32 %v15681_v30, %v10658_v32  ;;  %v15687_v59 = vld [vmem:[#allocation15_spill] sm:$0xff]  ;;  %v15690_v63 = vld [vmem:[#allocation17_spill] sm:$0xff] }
 0x1c9   :  { %15674 = vst [vmem:[#allocation9_spill] sm:$0xff] %v11085_v9  ;;  %v15685_v9 = vsub.f32 %v15684_v54, %v10658_v32 }
 0x1ca   :  { %15677 = vst [vmem:[#allocation6_spill] sm:$0xff] %v11091_v5  ;;  %15680 = vst [vmem:[#allocation8_spill] sm:$0xff] %v11097_v14  ;;  %v11103_v49 = vmul.f32 %v10799_v19, %v15682_v56  ;;  %v15688_v5 = vsub.f32 %v15687_v59, %v10658_v32  ;;  %v15691_v14 = vsub.f32 %v15690_v63, %v10658_v32  ;;  %v15693_v56 = vld [vmem:[#allocation20_spill] sm:$0xff] }
 0x1cb   :  { %v11109_v61 = vmul.f32 %v10799_v19, %v15685_v9  ;;  %v15696_v9 = vld [vmem:[#allocation22_spill] sm:$0xff] }
 0x1cc   :  { %15683 = vst [vmem:[#allocation11_spill] sm:$0xff] %v11103_v49  ;;  %v11115_v52 = vmul.f32 %v10799_v19, %v15688_v5  ;;  %v11121_v30 = vmul.f32 %v10799_v19, %v15691_v14  ;;  %v15694_v49 = vsub.f32 %v15693_v56, %v10658_v32  ;;  %v15699_v5 = vld [vmem:[#allocation19_spill] sm:$0xff]  ;;  %v15701_v14 = vld [vmem:[#allocation21_spill] sm:$0xff] }
 0x1cd   :  { %15686 = vst [vmem:[#allocation13_spill] sm:$0xff] %v11109_v61  ;;  %v15697_v61 = vsub.f32 %v15696_v9, %v10658_v32 }
 0x1ce   :  { %15689 = vst [vmem:[#allocation23_spill] sm:$0xff] %v11115_v52  ;;  %15692 = vst [vmem:[#allocation25_spill] sm:$0xff] %v11121_v30  ;;  %v11127_v54 = vmul.f32 %v10799_v19, %v15694_v49  ;;  %v15700_v52 = vsub.f32 %v15699_v5, %v10658_v32  ;;  %v15702_v30 = vsub.f32 %v15701_v14, %v10658_v32  ;;  %v15703_v49 = vld [vmem:[#allocation24_spill] sm:$0xff] }
 0x1cf   :  { %v11133_v59 = vmul.f32 %v10799_v19, %v15697_v61  ;;  %v15705_v61 = vld [vmem:[#allocation26_spill] sm:$0xff] }
 0x1d0   :  { %15695 = vst [vmem:[#allocation28_spill] sm:$0xff] %v11127_v54  ;;  %v11139_v63 = vmul.f32 %v10799_v19, %v15700_v52  ;;  %v11145_v56 = vmul.f32 %v10799_v19, %v15702_v30  ;;  %v15704_v54 = vsub.f32 %v15703_v49, %v10658_v32  ;;  %v15707_v52 = vsub.f32 %v15622_v29, %v10658_v32 }
 0x1d1   :  { %15698 = vst [vmem:[#allocation27_spill] sm:$0xff] %v11133_v59  ;;  %v15706_v59 = vsub.f32 %v15705_v61, %v10658_v32  ;;  %v15708_v30 = vsub.f32 %v15623_v39, %v10658_v32 }
 0x1d2   :  { %v11151_v9 = vmul.f32 %v10799_v19, %v15704_v54  ;;  %v11163_v14 = vmul.f32 %v10799_v19, %v15707_v52  ;;  %v15709_v54 = vsub.f32 %v15624_v57, %v10658_v32  ;;  %v15711_v52 = vsub.f32 %v10645_v28, %v10658_v32 }
 0x1d3   :  { %v11157_v5 = vmul.f32 %v10799_v19, %v15706_v59  ;;  %v11169_v49 = vmul.f32 %v10799_v19, %v15708_v30  ;;  %v15710_v59 = vsub.f32 %v15626_v7, %v10658_v32  ;;  %v11191_v30 = vadd.f32 %v10804_v35, %v10814_v34 }
 0x1d4   :  { %v11175_v61 = vmul.f32 %v10799_v19, %v15709_v54  ;;  %v11187_v39 = vmul.f32 %v10799_v19, %v15711_v52  ;;  %v11195_v57 = vadd.f32 %v10804_v35, %v10820_v33  ;;  %v11199_v7 = vadd.f32 %v10804_v35, %v10826_v12  ;;  %v15721_v52 = vld [vmem:[#allocation8_spill] sm:$0xff] }
 0x1d5   :  { %v11181_v29 = vmul.f32 %v10799_v19, %v15710_v59  ;;  %v11203_v54 = vadd.f32 %v10804_v35, %v10832_v41  ;;  %v11207_v28 = vadd.f32 %v10804_v35, %v10838_v43  ;;  %v11211_v32 = vadd.f32 %v10804_v35, %v10844_v40  ;;  %v11232_v41 = vld [vmem:[%s15387_s4] sm:$0xff]  }
 0x1d6   :  { %v11215_v19 = vadd.f32 %v10804_v35, %v10850_v42  ;;  %v11219_v12 = vadd.f32 %v10804_v35, %v10857_v15  ;;  %v11223_v34 = vadd.f32 %v10804_v35, %v10863_v31  ;;  %v11227_v33 = vadd.f32 %v10804_v35, %v10869_v50  ;;  %15712 = vst [vmem:[#allocation10_spill] sm:$0xff] %v11232_v41  ;;  %v15719_v59 = vld [vmem:[#allocation6_spill] sm:$0xff] }
 0x1d7   :  { %v11236_v43 = vadd.f32 %v10804_v35, %v10875_v58  ;;  %v11240_v40 = vadd.f32 %v10804_v35, %v10881_v6  ;;  %v11244_v42 = vadd.f32 %v10804_v35, %v10887_v11  ;;  %v11248_v15 = vadd.f32 %v10804_v35, %v10893_v4  ;;  %8328 = vmatprep.subr.bf16.mxu0 %v11232_v41  ;;  %v15723_v41 = vld [vmem:[#allocation11_spill] sm:$0xff] }
 0x1d8   :  { %v11252_v31 = vadd.f32 %v10804_v35, %v10899_v10  ;;  %v11256_v50 = vadd.f32 %v10804_v35, %v10905_v22  ;;  %v11260_v58 = vadd.f32 %v10804_v35, %v10911_v27  ;;  %v11264_v6 = vadd.f32 %v10804_v35, %v10917_v20 }
 0x1d9   :  { %v11269_v11 = vadd.f32 %v10804_v35, %v10923_v26  ;;  %v11273_v4 = vadd.f32 %v10804_v35, %v10929_v38  ;;  %v11277_v10 = vadd.f32 %v10804_v35, %v10935_v47  ;;  %v11281_v22 = vadd.f32 %v10804_v35, %v10941_v36 }
 0x1da   :  { %v11285_v27 = vadd.f32 %v10804_v35, %v10947_v46  ;;  %v11289_v20 = vadd.f32 %v10804_v35, %v10953_v62  ;;  %v11293_v26 = vadd.f32 %v10804_v35, %v10959_v3  ;;  %v11297_v38 = vadd.f32 %v10804_v35, %v10965_v60 }
 0x1db   :  { %v11301_v47 = vadd.f32 %v10804_v35, %v10971_v2  ;;  %v11305_v36 = vadd.f32 %v10804_v35, %v10977_v18  ;;  %v11309_v46 = vadd.f32 %v10804_v35, %v10983_v25  ;;  %v11313_v62 = vadd.f32 %v10804_v35, %v10989_v16 }
 0x1dc   :  { %v11317_v3 = vadd.f32 %v10804_v35, %v10995_v24  ;;  %v11321_v60 = vadd.f32 %v10804_v35, %v11001_v45  ;;  %v11325_v2 = vadd.f32 %v10804_v35, %v11007_v53  ;;  %v11329_v18 = vadd.f32 %v10804_v35, %v11013_v37 }
 0x1dd   :  { %v11333_v25 = vadd.f32 %v10804_v35, %v11019_v51  ;;  %v11337_v16 = vadd.f32 %v10804_v35, %v11025_v13  ;;  %v11341_v24 = vadd.f32 %v10804_v35, %v11031_v23  ;;  %v11345_v45 = vadd.f32 %v10804_v35, %v11037_v8 }
 0x1de   :  { %v11349_v53 = vadd.f32 %v10804_v35, %v11043_v21  ;;  %v11353_v37 = vadd.f32 %v10804_v35, %v11049_v55  ;;  %v11357_v51 = vadd.f32 %v10804_v35, %v11055_v1  ;;  %v11361_v13 = vadd.f32 %v10804_v35, %v11061_v48  ;;  %v15717_v55 = vld [vmem:[#allocation9_spill] sm:$0xff] }
 0x1df   :  { %15713 = vst [vmem:[#allocation12_spill] sm:$0xff] %v11337_v16  ;;  %v11365_v23 = vadd.f32 %v10804_v35, %v11067_v0  ;;  %v11369_v8 = vadd.f32 %v10804_v35, %v11073_v44  ;;  %v11373_v21 = vadd.f32 %v10804_v35, %v11079_v17  ;;  %v11377_v1 = vadd.f32 %v10804_v35, %v15717_v55 }
 0x1e0   :  { %v11381_v48 = vadd.f32 %v10804_v35, %v15719_v59  ;;  %v11385_v0 = vadd.f32 %v10804_v35, %v15721_v52  ;;  %v11389_v44 = vadd.f32 %v10804_v35, %v15723_v41 }
 0x1e1   :  { %15714 = vst [vmem:[#allocation16_spill] sm:$0xff] %v11365_v23  ;;  %15715 = vst [vmem:[#allocation18_spill] sm:$0xff] %v11369_v8  ;;  %v15724_v8 = vld [vmem:[#allocation13_spill] sm:$0xff] }
 0x1e2   :  { %15716 = vst [vmem:[#allocation15_spill] sm:$0xff] %v11373_v21  ;;  %15718 = vst [vmem:[#allocation17_spill] sm:$0xff] %v11377_v1  ;;  %v11393_v17 = vadd.f32 %v10804_v35, %v15724_v8  ;;  %v15725_v21 = vld [vmem:[#allocation23_spill] sm:$0xff]  ;;  %v15727_v1 = vld [vmem:[#allocation25_spill] sm:$0xff]  ;;  %v11413_v8 = vadd.f32 %v10804_v35, %v11139_v63  ;;  %v11433_v63 = vadd.f32 %v10804_v35, %v11169_v49  ;;  %v15459_v49 = vmax.f32 %v11203_v54, 0.0 }
 0x1e3   :  { %15720 = vst [vmem:[#allocation20_spill] sm:$0xff] %v11381_v48  ;;  %15722 = vst [vmem:[#allocation22_spill] sm:$0xff] %v11385_v0  ;;  %v11397_v55 = vadd.f32 %v10804_v35, %v15725_v21  ;;  %v11401_v59 = vadd.f32 %v10804_v35, %v15727_v1  ;;  %v15728_v48 = vld [vmem:[#allocation28_spill] sm:$0xff]  ;;  %v15729_v0 = vld [vmem:[#allocation27_spill] sm:$0xff]  ;;  %v11417_v21 = vadd.f32 %v10804_v35, %v11145_v56 }
 0x1e4   :  { %v11405_v52 = vadd.f32 %v10804_v35, %v15728_v48  ;;  %v11409_v41 = vadd.f32 %v10804_v35, %v15729_v0  ;;  %15730 = vst [vmem:[#allocation21_spill] sm:$0xff] %v11413_v8  ;;  %v11421_v1 = vadd.f32 %v10804_v35, %v11151_v9  ;;  %v11425_v48 = vadd.f32 %v10804_v35, %v11157_v5 }
 0x1e5   :  { %15726 = vst [vmem:[#allocation19_spill] sm:$0xff] %v11397_v55  ;;  %15731 = vst [vmem:[#allocation24_spill] sm:$0xff] %v11417_v21  ;;  %v11429_v0 = vadd.f32 %v10804_v35, %v11163_v14  ;;  %v11437_v56 = vadd.f32 %v10804_v35, %v11175_v61  ;;  %v11441_v9 = vadd.f32 %v10804_v35, %v11181_v29  ;;  %v15457_v14 = vmax.f32 %v11195_v57, 0.0 }
 0x1e6   :  { %15732 = vst [vmem:[#allocation26_spill] sm:$0xff] %v11421_v1  ;;  %15733 = vst [vmem:[#allocation9_spill] sm:$0xff] %v11425_v48  ;;  %v11445_v5 = vadd.f32 %v10804_v35, %v11187_v39  ;;  %v15456_v48 = vmax.f32 %v11191_v30, 0.0  ;;  %v15461_v35 = vmax.f32 %v11227_v33, 0.0  ;;  %v15462_v39 = vmax.f32 %v11236_v43, 0.0 }
 0x1e7   :  { %15734 = vst [vmem:[#allocation6_spill] sm:$0xff] %v11429_v0  ;;  %15735 = vst [vmem:[#allocation8_spill] sm:$0xff] %v11433_v63  ;;  %v15458_v0 = vmax.f32 %v11199_v7, 0.0  ;;  %v15460_v63 = vmax.f32 %v11207_v28, 0.0  ;;  %v15740_v61 = vmax.f32 %v11219_v12, 0.0  ;;  %v15742_v29 = vmax.f32 %v11240_v40, 0.0 }
 0x1e8   :  { %15736 = vst [vmem:[#allocation11_spill] sm:$0xff] %v11437_v56  ;;  %15737 = vst [vmem:[#allocation13_spill] sm:$0xff] %v11441_v9  ;;  %v15464_v56 = vmax.f32 %v11260_v58, 0.0  ;;  %v942_v9 = vmax.f32 %v11317_v3, 0.0 }
 0x1e9   :  { %1054 = vst [vmem:[#allocation2 + $0x19] sm:$0xff] %v15456_v48  ;;  %1055 = vst [vmem:[#allocation2 + $0x21] sm:$0xff] %v15457_v14  ;;  %v15738_v48 = vmax.f32 %v11211_v32, 0.0  ;;  %v15739_v14 = vmax.f32 %v11215_v19, 0.0  ;;  %v15758_v3 = vld [vmem:[#allocation17_spill] sm:$0xff] }
 0x1ea   :  { %1056 = vst [vmem:[#allocation2 + $0x31] sm:$0xff] %v15458_v0  ;;  %1057 = vst [vmem:[#allocation2 + $0x39] sm:$0xff] %v15459_v49  ;;  %v15463_v0 = vmax.f32 %v11256_v50, 0.0  ;;  %v15741_v49 = vmax.f32 %v11223_v34, 0.0 }
 0x1eb   :  { %1058 = vst [vmem:[#allocation2 + $0x49] sm:$0xff] %v15460_v63  ;;  %1059 = vst [vmem:[#allocation2 + $0x51] sm:$0xff] %v15738_v48  ;;  %v15465_v48 = vmax.f32 %v11273_v4, 0.0  ;;  %v15470_v63 = vmax.f32 %v11329_v18, 0.0 }
 0x1ec   :  { %1060 = vst [vmem:[#allocation2 + $0x61] sm:$0xff] %v15739_v14  ;;  %1061 = vst [vmem:[#allocation2 + $0x69] sm:$0xff] %v15740_v61  ;;  %v15743_v61 = vmax.f32 %v11244_v42, 0.0  ;;  %v15467_v14 = vmax.f32 %v11293_v26, 0.0 }
 0x1ed   :  { %1062 = vst [vmem:[#allocation2 + $0x79] sm:$0xff] %v15741_v49  ;;  %1063 = vst [vmem:[#allocation2 + $0x81] sm:$0xff] %v15461_v35  ;;  %v15744_v49 = vmax.f32 %v11248_v15, 0.0  ;;  %v15745_v35 = vmax.f32 %v11252_v31, 0.0 }
 0x1ee   :  { %1064 = vst [vmem:[#allocation2 + $0x91] sm:$0xff] %v15462_v39  ;;  %1065 = vst [vmem:[#allocation2 + $0x99] sm:$0xff] %v15742_v29  ;;  %v15466_v39 = vmax.f32 %v11289_v20, 0.0  ;;  %v15746_v29 = vmax.f32 %v11264_v6, 0.0 }
 0x1ef   :  { %1066 = vst [vmem:[#allocation2 + $0xa9] sm:$0xff] %v15743_v61  ;;  %1067 = vst [vmem:[#allocation2 + $0xb1] sm:$0xff] %v15744_v49  ;;  %v15747_v61 = vmax.f32 %v11269_v11, 0.0  ;;  %v15469_v49 = vmax.f32 %v11325_v2, 0.0 }
 0x1f0   :  { %1068 = vst [vmem:[#allocation2 + $0xc1] sm:$0xff] %v15745_v35  ;;  %1069 = vst [vmem:[#allocation2 + $0xc9] sm:$0xff] %v15463_v0  ;;  %v15468_v35 = vmax.f32 %v11305_v36, 0.0  ;;  %v15748_v0 = vmax.f32 %v11277_v10, 0.0 }
 0x1f1   :  { %1070 = vst [vmem:[#allocation2 + $0xd9] sm:$0xff] %v15464_v56  ;;  %1071 = vst [vmem:[#allocation2 + $0xe1] sm:$0xff] %v15746_v29  ;;  %v15749_v56 = vmax.f32 %v11281_v22, 0.0  ;;  %v15750_v29 = vmax.f32 %v11285_v27, 0.0 }
 0x1f2   :  { %1072 = vst [vmem:[#allocation2 + $0xf1] sm:$0xff] %v15747_v61  ;;  %1073 = vst [vmem:[#allocation2 + $0xf9] sm:$0xff] %v15465_v48  ;;  %v943_v61 = vmax.f32 %v11321_v60, 0.0  ;;  %v15759_v60 = vld [vmem:[#allocation20_spill] sm:$0xff]  ;;  %v15760_v48 = vmax.f32 %v11337_v16, 0.0  ;;  %v15765_v16 = vmax.f32 %v11353_v37, 0.0 }
 0x1f3   :  { %1074 = vst [vmem:[#allocation2 + $0x109] sm:$0xff] %v15748_v0  ;;  %1075 = vst [vmem:[#allocation2 + $0x111] sm:$0xff] %v15749_v56  ;;  %v15751_v0 = vmax.f32 %v11297_v38, 0.0  ;;  %v15752_v56 = vmax.f32 %v11301_v47, 0.0 }
 0x1f4   :  { %1076 = vst [vmem:[#allocation2 + $0x121] sm:$0xff] %v15750_v29  ;;  %1077 = vst [vmem:[#allocation2 + $0x129] sm:$0xff] %v15466_v39  ;;  %v15753_v39 = vmax.f32 %v11309_v46, 0.0 }
 0x1f5   :  { %1078 = vst [vmem:[#allocation2 + $0x139] sm:$0xff] %v15467_v14  ;;  %1079 = vst [vmem:[#allocation2 + $0x141] sm:$0xff] %v15751_v0  ;;  %v15754_v14 = vmax.f32 %v11313_v62, 0.0 }
 0x1f6   :  { %1080 = vst [vmem:[#allocation2 + $0x151] sm:$0xff] %v15752_v56  ;;  %1081 = vst [vmem:[#allocation2 + $0x159] sm:$0xff] %v15468_v35  ;;  %v15757_v35 = vld [vmem:[#allocation15_spill] sm:$0xff]  ;;  %v15786_v56 = vmax.f32 %v11417_v21, 0.0  ;;  %v15792_v21 = vmax.f32 %v11199_v7, 0.0  ;;  %v15797_v7 = vmax.f32 %v11211_v32, 0.0 }
 0x1f7   :  { %1082 = vst [vmem:[#allocation2 + $0x169] sm:$0xff] %v15753_v39  ;;  %1083 = vst [vmem:[#allocation2 + $0x171] sm:$0xff] %v15754_v14  ;;  %v15755_v39 = vmax.f32 %v11333_v25, 0.0  ;;  %v15756_v14 = vld [vmem:[#allocation18_spill] sm:$0xff]  ;;  %v15802_v32 = vmax.f32 %v11236_v43, 0.0  ;;  %v9735_v43 = vld [vmem:[%s15387_s4 + $0x8] sm:$0xff]  }
 0x1f8   :  { %1084 = vst [vmem:[#allocation2 + $0x181] sm:$0xff] %v942_v9  ;;  %1085 = vst [vmem:[#allocation2 + $0x189] sm:$0xff] %v943_v61  ;;  %v15761_v61 = vmax.f32 %v11341_v24, 0.0  ;;  %v15769_v9 = vmax.f32 %v15756_v14, 0.0 }
 0x1f9   :  { %1086 = vst [vmem:[#allocation2 + $0x1c9] sm:$0xff] %v15469_v49  ;;  %1087 = vst [vmem:[#allocation2 + $0x1d1] sm:$0xff] %v15470_v63  ;;  %v15762_v49 = vmax.f32 %v11345_v45, 0.0  ;;  %v15763_v63 = vmax.f32 %v11349_v53, 0.0 }
 0x1fa   :  { %1088 = vst [vmem:[#allocation2 + $0x1e1] sm:$0xff] %v15755_v39  ;;  %1089 = vst [vmem:[#allocation2 + $0x1e9] sm:$0xff] %v15760_v48  ;;  %v15764_v39 = vld [vmem:[#allocation22_spill] sm:$0xff]  ;;  %v15766_v48 = vmax.f32 %v11357_v51, 0.0 }
 0x1fb   :  { %1090 = vst [vmem:[#allocation2 + $0x1f9] sm:$0xff] %v15761_v61  ;;  %1091 = vst [vmem:[#allocation2 + $0x201] sm:$0xff] %v15762_v49  ;;  %v15767_v61 = vmax.f32 %v11361_v13, 0.0  ;;  %v15768_v49 = vmax.f32 %v11365_v23, 0.0  ;;  %v15774_v23 = vld [vmem:[#allocation6_spill] sm:$0xff]  ;;  %v15775_v14 = vmax.f32 %v15764_v39, 0.0 }
 0x1fc   :  { %1092 = vst [vmem:[#allocation2 + $0x211] sm:$0xff] %v15763_v63  ;;  %1093 = vst [vmem:[#allocation2 + $0x219] sm:$0xff] %v15765_v16  ;;  %v15770_v16 = vmax.f32 %v15757_v35, 0.0  ;;  %v15773_v63 = vld [vmem:[#allocation9_spill] sm:$0xff]  ;;  %v975_v39 = vmax.f32 %v11445_v5, 0.0  ;;  %v2554_v0 = vld [vmem:[#allocation2 + $0x128] sm:$0xff] }
 0x1fd   :  { %1094 = vst [vmem:[#allocation2 + $0x229] sm:$0xff] %v15766_v48  ;;  %1095 = vst [vmem:[#allocation2 + $0x231] sm:$0xff] %v15767_v61  ;;  %v15771_v48 = vmax.f32 %v15758_v3, 0.0  ;;  %v15772_v61 = vmax.f32 %v15759_v60, 0.0  ;;  %v15779_v60 = vld [vmem:[#allocation8_spill] sm:$0xff]  ;;  %v15780_v3 = vld [vmem:[#allocation11_spill] sm:$0xff] }
 0x1fe   :  { %1096 = vst [vmem:[#allocation2 + $0x241] sm:$0xff] %v15768_v49  ;;  %1097 = vst [vmem:[#allocation2 + $0x249] sm:$0xff] %v15769_v9  ;;  %v15776_v9 = vmax.f32 %v11389_v44, 0.0  ;;  %v2552_v49 = vld [vmem:[#allocation2 + $0x110] sm:$0xff]  ;;  %v15781_v35 = vld [vmem:[#allocation13_spill] sm:$0xff]  ;;  %v15788_v5 = vmax.f32 %v15773_v63, 0.0 }
 0x1ff   :  { %1098 = vst [vmem:[#allocation2 + $0x259] sm:$0xff] %v15770_v16  ;;  %1099 = vst [vmem:[#allocation2 + $0x261] sm:$0xff] %v15771_v48  ;;  %v15777_v16 = vmax.f32 %v11393_v17, 0.0  ;;  %v15778_v48 = vmax.f32 %v11397_v55, 0.0  ;;  %v974_v29 = vmax.f32 %v15781_v35, 0.0  ;;  %v2553_v55 = vld [vmem:[#allocation2 + $0x120] sm:$0xff] }
 0x200   :  { %1100 = vst [vmem:[#allocation2 + $0x271] sm:$0xff] %v15772_v61  ;;  %1101 = vst [vmem:[#allocation2 + $0x279] sm:$0xff] %v15775_v14  ;;  %v2551_v61 = vld [vmem:[#allocation2 + $0x108] sm:$0xff]  ;;  %v15782_v14 = vmax.f32 %v11401_v59, 0.0  ;;  %v15787_v35 = vmax.f32 %v11421_v1, 0.0  ;;  %v2556_v63 = vld [vmem:[#allocation2 + $0x140] sm:$0xff] }
 0x201   :  { %1102 = vst [vmem:[#allocation2 + $0x289] sm:$0xff] %v15776_v9  ;;  %1103 = vst [vmem:[#allocation2 + $0x291] sm:$0xff] %v15777_v16  ;;  %v15783_v9 = vmax.f32 %v11405_v52, 0.0  ;;  %v15784_v16 = vmax.f32 %v11409_v41, 0.0 }
 0x202   :  { %1104 = vst [vmem:[#allocation2 + $0x2a1] sm:$0xff] %v15778_v48  ;;  %1105 = vst [vmem:[#allocation2 + $0x2a9] sm:$0xff] %v15782_v14  ;;  %v15785_v48 = vmax.f32 %v11413_v8, 0.0  ;;  %v15789_v14 = vmax.f32 %v15774_v23, 0.0 }
 0x203   :  { %1106 = vst [vmem:[#allocation2 + $0x2b9] sm:$0xff] %v15783_v9  ;;  %1107 = vst [vmem:[#allocation2 + $0x2c1] sm:$0xff] %v15784_v16  ;;  %v15790_v9 = vmax.f32 %v11191_v30, 0.0  ;;  %v15791_v16 = vmax.f32 %v11195_v57, 0.0  ;;  %v15795_v30 = vmax.f32 %v15780_v3, 0.0  ;;  %v15796_v57 = vmax.f32 %v11207_v28, 0.0 }
 0x204   :  { %1108 = vst [vmem:[#allocation2 + $0x2d1] sm:$0xff] %v15785_v48  ;;  %1109 = vst [vmem:[#allocation2 + $0x2d9] sm:$0xff] %v15786_v56  ;;  %v11630_v48 = vpack.c.bf16 %v2552_v49, %v2551_v61  ;;  %v15793_v56 = vmax.f32 %v11203_v54, 0.0  ;;  %v15798_v54 = vmax.f32 %v11215_v19, 0.0  ;;  %v15800_v61 = vmax.f32 %v11223_v34, 0.0 }
 0x205   :  { %1110 = vst [vmem:[#allocation2 + $0x2e9] sm:$0xff] %v15787_v35  ;;  %1111 = vst [vmem:[#allocation2 + $0x2f1] sm:$0xff] %v15788_v5  ;;  %v11628_v8 = vpack.c.bf16 %v15791_v16, %v15790_v9  ;;  %v11638_v35 = vpack.c.bf16 %v2554_v0, %v2553_v55  ;;  %v2555_v5 = vld [vmem:[#allocation2 + $0x138] sm:$0xff]  ;;  %v11648_v49 = vpack.c.bf16 %v15797_v7, %v15796_v57  ;;  %v15799_v55 = vmax.f32 %v11219_v12, 0.0  ;;  %v9726_v0 = vld [vmem:[%s15387_s4 + $0x108] sm:$0xff]  }
 0x206   :  { %1112 = vst [vmem:[#allocation2 + $0x301] sm:$0xff] %v15789_v14  ;;  %v11636_v1 = vpack.c.bf16 %v15793_v56, %v15792_v21  ;;  %v15794_v14 = vmax.f32 %v15779_v60, 0.0  ;;  %1114 = vst [vmem:[#allocation2 + $0x319] sm:$0xff] %v15795_v30  ;;  %8524 = vmatprep.mubr.bf16.mxu1 %v11630_v48  ;;  %v11667_v28 = vpack.c.bf16 %v2556_v63, %v2555_v5  ;;  %v15803_v19 = vmax.f32 %v11240_v40, 0.0  ;;  %v15808_v40 = vld [vmem:[#allocation14_spill] sm:$0xff] }
 0x207   :  { %1116 = vst [vmem:[#allocation2 + $0x331] sm:$0xff] %v974_v29  ;;  %1117 = vst [vmem:[#allocation2 + $0x339] sm:$0xff] %v975_v39  ;;  %v11654_v21 = vpack.c.bf16 %v15799_v55, %v15798_v54  ;;  %v15801_v29 = vmax.f32 %v11227_v33, 0.0  ;;  %8265 = vmatmul.mubr.bf16.vlgmr.msra.gmra.mrb[64].mxu0 %v11628_v8  ;;  %8525 = vmatmul.mubr.bf16.vlgmr.msra.gmra.mrb[0].mxu1 %v11638_v35  ;;  %v15804_v34 = vmax.f32 %v11244_v42, 0.0  ;;  %v15805_v33 = vmax.f32 %v11248_v15, 0.0 }
 0x208   :  { %1113 = vst [vmem:[#allocation2 + $0x309] sm:$0xff] %v15794_v14  ;;  %v11673_v12 = vpack.c.bf16 %v15803_v19, %v15802_v32  ;;  %8268 = vmatprep.mubr.bf16.mxu0 %v11636_v1  ;;  %v15806_v16 = vmax.f32 %v11252_v31, 0.0  ;;  %v15807_v63 = vmax.f32 %v11256_v50, 0.0  ;;  %8569 = vmatpush3.bf16.msra.mxu1 %v15808_v40  ;;  %v15809_v42 = vmax.f32 %v11260_v58, 0.0  ;;  %v9727_v31 = vld [vmem:[%s15387_s4 + $0x110] sm:$0xff]  }
 0x209   :  { %v11663_v39 = vpack.c.bf16 %v15801_v29, %v15800_v61  ;;  %v11681_v9 = vpack.c.bf16 %v15805_v33, %v15804_v34  ;;  %8528 = vmatprep.mubr.bf16.mxu1 %v11667_v28  ;;  %v15810_v15 = vmax.f32 %v11264_v6, 0.0  ;;  %8570 = vmatprep.subr.bf16.mxu1 %v9726_v0  ;;  %v15811_v50 = vmax.f32 %v11269_v11, 0.0  ;;  %v2557_v61 = vld [vmem:[#allocation2 + $0x150] sm:$0xff]  ;;  %v2558_v29 = vld [vmem:[#allocation2 + $0x158] sm:$0xff]  ;;  %v15821_v34 = vld [vmem:[#allocation10_spill] sm:$0xff] }
 0x20a   :  { %v11687_v56 = vpack.c.bf16 %v15807_v63, %v15806_v16  ;;  %v15812_v14 = vmax.f32 %v11273_v4, 0.0  ;;  %v15813_v57 = vmax.f32 %v11277_v10, 0.0  ;;  %v15814_v7 = vmax.f32 %v11281_v22, 0.0  ;;  %8329 = vmatpush3.bf16.msra.mxu0 %v15821_v34  ;;  %v15845_v34 = vld [vmem:[#allocation22_spill] sm:$0xff] }
 0x20b   :  { %v11698_v5 = vpack.c.bf16 %v15810_v15, %v15809_v42  ;;  %v15815_v6 = vmax.f32 %v11285_v27, 0.0  ;;  %v15816_v54 = vmax.f32 %v11289_v20, 0.0  ;;  %v15817_v11 = vmax.f32 %v11293_v26, 0.0  ;;  %v2559_v27 = vld [vmem:[#allocation2 + $0x168] sm:$0xff]  ;;  %v2560_v20 = vld [vmem:[#allocation2 + $0x170] sm:$0xff]  ;;  %8330 = vmatprep.subr.bf16.mxu0 %v9735_v43 }
 0x20c   :  { %v11707_v30 = vpack.c.bf16 %v15812_v14, %v15811_v50  ;;  %v11713_v58 = vpack.c.bf16 %v15814_v7, %v15813_v57  ;;  %v15818_v4 = vmax.f32 %v11297_v38, 0.0  ;;  %v15819_v10 = vmax.f32 %v11301_v47, 0.0  ;;  %8571 = vmatpush3.bf16.msra.mxu1 %v9726_v0  ;;  %v15835_v7 = vld [vmem:[#allocation16_spill] sm:$0xff] }
 0x20d   :  { %v11719_v55 = vpack.c.bf16 %v15816_v54, %v15815_v6  ;;  %v15820_v22 = vmax.f32 %v11305_v36, 0.0  ;;  %v15822_v33 = vmax.f32 %v11309_v46, 0.0  ;;  %v15823_v16 = vmax.f32 %v11313_v62, 0.0  ;;  %v15827_v36 = vld [vmem:[#allocation12_spill] sm:$0xff]  ;;  %8572 = vmatprep.subr.bf16.mxu1 %v9727_v31 }
 0x20e   :  { %v11725_v32 = vpack.c.bf16 %v15818_v4, %v15817_v11  ;;  %v15824_v26 = vmax.f32 %v11325_v2, 0.0  ;;  %v15825_v38 = vmax.f32 %v11329_v18, 0.0  ;;  %v15826_v47 = vmax.f32 %v11333_v25, 0.0  ;;  %v9728_v25 = vld [vmem:[%s15387_s4 + $0x118] sm:$0xff]   ;;  %v15839_v11 = vld [vmem:[#allocation15_spill] sm:$0xff]  ;;  %8331 = vmatpush3.bf16.msra.mxu0 %v9735_v43 }
 0x20f   :  { %v11731_v19 = vpack.c.bf16 %v15820_v22, %v15819_v10  ;;  %v11738_v63 = vpack.c.bf16 %v15823_v16, %v15822_v33  ;;  %v15828_v42 = vmax.f32 %v15827_v36, 0.0  ;;  %v15829_v46 = vmax.f32 %v11341_v24, 0.0  ;;  %8269 = vmatmul.mubr.bf16.gmra.mrb[68].mxu0 %v11648_v49  ;;  %v9736_v36 = vld [vmem:[%s15387_s4 + $0x10] sm:$0xff]   ;;  %v2563_v43 = vld [vmem:[#allocation2 + $0x1c8] sm:$0xff] }
 0x210   :  { %v11744_v40 = vpack.c.bf16 %v15825_v38, %v15824_v26  ;;  %v15830_v62 = vmax.f32 %v11345_v45, 0.0  ;;  %v15831_v2 = vmax.f32 %v11349_v53, 0.0  ;;  %v15832_v18 = vmax.f32 %v11353_v37, 0.0  ;;  %v15837_v53 = vld [vmem:[#allocation18_spill] sm:$0xff]  ;;  %8272 = vmatprep.mubr.bf16.mxu0 %v11654_v21  ;;  %8573 = vmatpush3.bf16.msra.mxu1 %v9727_v31 }
 0x211   :  { %v11750_v15 = vpack.c.bf16 %v15828_v42, %v15826_v47  ;;  %v11764_v57 = vpack.c.bf16 %v2558_v29, %v2557_v61  ;;  %v15833_v0 = vmax.f32 %v11357_v51, 0.0  ;;  %v15834_v24 = vmax.f32 %v11361_v13, 0.0  ;;  %v15841_v29 = vld [vmem:[#allocation17_spill] sm:$0xff]  ;;  %v15843_v51 = vld [vmem:[#allocation20_spill] sm:$0xff]  ;;  %8574 = vmatprep.subr.bf16.mxu1 %v9728_v25  ;;  %8332 = vmatprep.subr.bf16.mxu0 %v9736_v36 }
 0x212   :  { %v11756_v50 = vpack.c.bf16 %v15830_v62, %v15829_v46  ;;  %v11762_v14 = vpack.c.bf16 %v15832_v18, %v15831_v2  ;;  %v15836_v6 = vmax.f32 %v15835_v7, 0.0  ;;  %v15838_v54 = vmax.f32 %v15837_v53, 0.0  ;;  %v15854_v2 = vld [vmem:[#allocation21_spill] sm:$0xff]  ;;  %8333 = vmatpush3.bf16.msra.mxu0 %v9736_v36  ;;  %v9740_v36 = vld [vmem:[%s15387_s4 + $0x28] sm:$0xff]  }
 0x213   :  { %v11773_v45 = vpack.c.bf16 %v15834_v24, %v15833_v0  ;;  %v15840_v61 = vmax.f32 %v15839_v11, 0.0  ;;  %v15842_v4 = vmax.f32 %v15841_v29, 0.0  ;;  %v11788_v22 = vpack.c.bf16 %v2560_v20, %v2559_v27  ;;  %8529 = vmatmul.mubr.bf16.gmra.mrb[4].mxu1 %v11764_v57  ;;  %v15849_v27 = vld [vmem:[#allocation19_spill] sm:$0xff]  ;;  %v15856_v0 = vld [vmem:[#allocation24_spill] sm:$0xff]  ;;  %v2561_v29 = vld [vmem:[#allocation2 + $0x180] sm:$0xff] }
 0x214   :  { %v11779_v37 = vpack.c.bf16 %v15838_v54, %v15836_v6  ;;  %v15844_v13 = vmax.f32 %v15843_v51, 0.0  ;;  %v15846_v33 = vmax.f32 %v15845_v34, 0.0  ;;  %v15847_v26 = vmax.f32 %v11389_v44, 0.0  ;;  %v9738_v51 = vld [vmem:[%s15387_s4 + $0x18] sm:$0xff]   ;;  %8575 = vmatpush3.bf16.msra.mxu1 %v9728_v25  ;;  %v9731_v25 = vld [vmem:[%s15387_s4 + $0x130] sm:$0xff]  }
 0x215   :  { %v11785_v10 = vpack.c.bf16 %v15842_v4, %v15840_v61  ;;  %v15848_v38 = vmax.f32 %v11393_v17, 0.0  ;;  %v15850_v20 = vmax.f32 %v15849_v27, 0.0  ;;  %v15851_v42 = vmax.f32 %v11401_v59, 0.0  ;;  %8532 = vmatprep.mubr.bf16.mxu1 %v11788_v22  ;;  %v9729_v59 = vld [vmem:[%s15387_s4 + $0x120] sm:$0xff]   ;;  %v2562_v4 = vld [vmem:[#allocation2 + $0x188] sm:$0xff]  ;;  %8334 = vmatprep.subr.bf16.mxu0 %v9738_v51  ;;  %v2567_v27 = vld [vmem:[#allocation2 + $0x1f8] sm:$0xff] }
 0x216   :  { %v11794_v16 = vpack.c.bf16 %v15846_v33, %v15844_v13  ;;  %v15852_v44 = vmax.f32 %v11405_v52, 0.0  ;;  %v15853_v17 = vmax.f32 %v11409_v41, 0.0  ;;  %v15855_v18 = vmax.f32 %v15854_v2, 0.0  ;;  %v15858_v52 = vld [vmem:[#allocation26_spill] sm:$0xff]  ;;  %v15860_v41 = vld [vmem:[#allocation9_spill] sm:$0xff]  ;;  %v2564_v13 = vld [vmem:[#allocation2 + $0x1d0] sm:$0xff]  ;;  %8576 = vmatprep.subr.bf16.mxu1 %v9729_v59  ;;  %8335 = vmatpush3.bf16.msra.mxu0 %v9738_v51 }
 0x217   :  { %v11800_v47 = vpack.c.bf16 %v15848_v38, %v15847_v26  ;;  %v11811_v46 = vpack.c.bf16 %v15851_v42, %v15850_v20  ;;  %v15857_v24 = vmax.f32 %v15856_v0, 0.0  ;;  %v15859_v6 = vmax.f32 %v15858_v52, 0.0  ;;  %8273 = vmatmul.mubr.bf16.gmra.mrb[72].mxu0 %v11663_v39  ;;  %v9739_v33 = vld [vmem:[%s15387_s4 + $0x20] sm:$0xff]   ;;  %v2566_v38 = vld [vmem:[#allocation2 + $0x1e8] sm:$0xff]  ;;  %v9741_v2 = vld [vmem:[%s15387_s4 + $0x30] sm:$0xff]  }
 0x218   :  { %v11817_v62 = vpack.c.bf16 %v15853_v17, %v15852_v44  ;;  %v15861_v53 = vmax.f32 %v15860_v41, 0.0  ;;  %v15862_v31 = vmax.f32 %v15774_v23, 0.0  ;;  %v15863_v11 = vmax.f32 %v15779_v60, 0.0  ;;  %v9730_v23 = vld [vmem:[%s15387_s4 + $0x128] sm:$0xff]   ;;  %8276 = vmatprep.mubr.bf16.mxu0 %v11673_v12  ;;  %8577 = vmatpush3.bf16.msra.mxu1 %v9729_v59  ;;  %v2565_v26 = vld [vmem:[#allocation2 + $0x1e0] sm:$0xff]  ;;  %v9732_v44 = vld [vmem:[%s15387_s4 + $0x138] sm:$0xff]  }
 0x219   :  { %v11824_v7 = vpack.c.bf16 %v15857_v24, %v15855_v18  ;;  %v2610_v34 = vpack.c.bf16 %v2562_v4, %v2561_v29  ;;  %v11848_v60 = vpack.c.bf16 %v2564_v13, %v2563_v43  ;;  %8578 = vmatprep.subr.bf16.mxu1 %v9730_v23  ;;  %8336 = vmatprep.subr.bf16.mxu0 %v9739_v33  ;;  %v2568_v20 = vld [vmem:[#allocation2 + $0x200] sm:$0xff]  ;;  %v2569_v0 = vld [vmem:[#allocation2 + $0x210] sm:$0xff]  ;;  %v2570_v24 = vld [vmem:[#allocation2 + $0x218] sm:$0xff] }
 0x21a   :  { %v11833_v54 = vpack.c.bf16 %v15861_v53, %v15859_v6  ;;  %v11839_v61 = vpack.c.bf16 %v15863_v11, %v15862_v31  ;;  %v11861_v42 = vpack.c.bf16 %v2566_v38, %v2565_v26  ;;  %8337 = vmatpush3.bf16.msra.mxu0 %v9739_v33  ;;  %v11867_v17 = vpack.c.bf16 %v2568_v20, %v2567_v27  ;;  %v11878_v18 = vld [vmem:[%s15387_s4 + $0x140] sm:$0xff]   ;;  %v9743_v59 = vld [vmem:[%s15387_s4 + $0x38] sm:$0xff]   ;;  %v2572_v52 = vld [vmem:[#allocation2 + $0x230] sm:$0xff] }
 0x21b   :  { %8533 = vmatmul.mubr.bf16.gmra.mrb[8].mxu1 %v2610_v34  ;;  %8338 = vmatprep.subr.bf16.mxu0 %v9740_v36  ;;  %v11883_v6 = vpack.c.bf16 %v2570_v24, %v2569_v0  ;;  %v2573_v53 = vld [vmem:[#allocation2 + $0x240] sm:$0xff]  ;;  %v2574_v31 = vld [vmem:[#allocation2 + $0x248] sm:$0xff]  ;;  %v2575_v11 = vld [vmem:[#allocation2 + $0x258] sm:$0xff] }
 0x21c   :  { %8536 = vmatprep.mubr.bf16.mxu1 %v11848_v60  ;;  %8579 = vmatpush3.bf16.msra.mxu1 %v9730_v23  ;;  %v2576_v29 = vld [vmem:[#allocation2 + $0x260] sm:$0xff]  ;;  %v11892_v4 = vpack.c.bf16 %v2574_v31, %v2573_v53  ;;  %v2579_v43 = vld [vmem:[#allocation2 + $0x288] sm:$0xff]  ;;  %v2580_v13 = vld [vmem:[#allocation2 + $0x290] sm:$0xff] }
 0x21d   :  { %8580 = vmatprep.subr.bf16.mxu1 %v9731_v25  ;;  %v11895_v51 = vpack.c.bf16 %v2576_v29, %v2575_v11  ;;  %v11903_v23 = vpack.c.bf16 %v2580_v13, %v2579_v43  ;;  %v2581_v33 = vld [vmem:[#allocation2 + $0x2a0] sm:$0xff]  ;;  %v2583_v26 = vld [vmem:[#allocation2 + $0x2b8] sm:$0xff]  ;;  %v3065_v29 = vld [vmem:[#allocation2 + $0x109] sm:$0xff] }
 0x21e   :  { %8339 = vmatpush3.bf16.msra.mxu0 %v9740_v36  ;;  %v2584_v38 = vld [vmem:[#allocation2 + $0x2c0] sm:$0xff]  ;;  %v2586_v20 = vld [vmem:[#allocation2 + $0x2d8] sm:$0xff] }
 0x21f   :  { %8277 = vmatmul.mubr.bf16.gmra.mrb[76].mxu0 %v11681_v9  ;;  %8340 = vmatprep.subr.bf16.mxu0 %v9741_v2 }
 0x220   :  { %8280 = vmatprep.mubr.bf16.mxu0 %v11687_v56  ;;  %8581 = vmatpush3.bf16.msra.mxu1 %v9731_v25  ;;  %v2571_v56 = vld [vmem:[#allocation2 + $0x228] sm:$0xff] }
 0x221   :  { %8582 = vmatprep.subr.bf16.mxu1 %v9732_v44  ;;  %v11887_v41 = vpack.c.bf16 %v2572_v52, %v2571_v56  ;;  %v2582_v25 = vld [vmem:[#allocation2 + $0x2a8] sm:$0xff]  ;;  %v2591_v56 = vld [vmem:[#allocation2 + $0x318] sm:$0xff]  ;;  %v2592_v52 = vld [vmem:[#allocation2 + $0x320] sm:$0xff] }
 0x222   :  { %8341 = vmatpush3.bf16.msra.mxu0 %v9741_v2  ;;  %v11908_v27 = vpack.c.bf16 %v2582_v25, %v2581_v33  ;;  %v2588_v2 = vld [vmem:[#allocation2 + $0x2f0] sm:$0xff]  ;;  %v11926_v31 = vpack.c.bf16 %v2592_v52, %v2591_v56  ;;  %v1121_v33 = vld [vmem:[#allocation2 + $0x20] sm:$0xff]  ;;  %v1124_v56 = vld [vmem:[#allocation2 + $0x48] sm:$0xff] }
 0x223   :  { %8537 = vmatmul.mubr.bf16.gmra.mrb[12].mxu1 %v11861_v42  ;;  %8342 = vmatprep.subr.bf16.mxu0 %v9743_v59  ;;  %v1122_v25 = vld [vmem:[#allocation2 + $0x30] sm:$0xff] }
 0x224   :  { %8540 = vmatprep.mubr.bf16.mxu1 %v11867_v17  ;;  %8583 = vmatpush3.bf16.msra.mxu1 %v9732_v44  ;;  %v2587_v44 = vld [vmem:[#allocation2 + $0x2e8] sm:$0xff]  ;;  %v1125_v52 = vld [vmem:[#allocation2 + $0x50] sm:$0xff] }
 0x225   :  { %8648 = vmatprep.subr.bf16.mxu1 %v11878_v18  ;;  %v11918_v24 = vpack.c.bf16 %v2588_v2, %v2587_v44 }
 0x226   :  { %8343 = vmatpush3.bf16.msra.mxu0 %v9743_v59  ;;  %v2590_v59 = vld [vmem:[#allocation2 + $0x308] sm:$0xff] }
 0x227   :  { %8281 = vmatmul.mubr.bf16.gmra.mrb[80].mxu0 %v11698_v5  ;;  %v2577_v5 = vld [vmem:[#allocation2 + $0x270] sm:$0xff] }
 0x228   :  { %8284 = vmatprep.mubr.bf16.mxu0 %v11707_v30  ;;  %v2578_v30 = vld [vmem:[#allocation2 + $0x278] sm:$0xff] }
 0x229   :  { %v11900_v34 = vpack.c.bf16 %v2578_v30, %v2577_v5  ;;  %v3066_v5 = vld [vmem:[#allocation2 + $0x111] sm:$0xff]  ;;  %v9799_v30 = vld [vmem:[#allocation2] sm:$0xff] }
 0x22b   :  { %8541 = vmatmul.mubr.bf16.gmra.mrb[16].mxu1 %v11883_v6 }
 0x22c   :  { %8544 = vmatprep.mubr.bf16.mxu1 %v11887_v41 }
 0x22f   :  { %8285 = vmatmul.mubr.bf16.gmra.mrb[84].mxu0 %v11713_v58  ;;  %v1262_v58 = vld [vmem:[#allocation2 + $0x1b1] sm:$0xff] }
 0x230   :  { %8288 = vmatprep.mubr.bf16.mxu0 %v11719_v55  ;;  %v1263_v55 = vld [vmem:[#allocation2 + $0x1b9] sm:$0xff] }
 0x231   :  { %v1310_v36 = vpack.c.bf16 %v1263_v55, %v1262_v58  ;;  %v3119_v58 = vpack.c.bf16 %v3066_v5, %v3065_v29  ;;  %v1120_v55 = vld [vmem:[#allocation2 + $0x18] sm:$0xff]  ;;  %v3077_v29 = vld [vmem:[#allocation2 + $0x1c9] sm:$0xff] }
 0x232   :  { %v3078_v5 = vld [vmem:[#allocation2 + $0x1d1] sm:$0xff] }
 0x233   :  { %8545 = vmatmul.mubr.bf16.gmra.mrb[20].mxu1 %v11892_v4 }
 0x234   :  { %8548 = vmatprep.mubr.bf16.mxu1 %v11895_v51 }
 0x237   :  { %8289 = vmatmul.mubr.bf16.gmra.mrb[88].mxu0 %v11725_v32  ;;  %v11911_v32 = vpack.c.bf16 %v2584_v38, %v2583_v26  ;;  %v1123_v26 = vld [vmem:[#allocation2 + $0x38] sm:$0xff]  ;;  %v3067_v38 = vld [vmem:[#allocation2 + $0x121] sm:$0xff] }
 0x238   :  { %8292 = vmatprep.mubr.bf16.mxu0 %v11731_v19  ;;  %v2585_v19 = vld [vmem:[#allocation2 + $0x2d0] sm:$0xff]  ;;  %v1184_v44 = vpack.c.bf16 %v1123_v26, %v1122_v25  ;;  %v1134_v25 = vld [vmem:[#allocation2 + $0xc0] sm:$0xff] }
 0x239   :  { %v11915_v0 = vpack.c.bf16 %v2586_v20, %v2585_v19  ;;  %v3069_v19 = vld [vmem:[#allocation2 + $0x139] sm:$0xff]  ;;  %v1183_v20 = vpack.c.bf16 %v1121_v33, %v1120_v55  ;;  %v1132_v55 = vld [vmem:[#allocation2 + $0xa8] sm:$0xff]  ;;  %v1133_v33 = vld [vmem:[#allocation2 + $0xb0] sm:$0xff] }
 0x23a   :  { %v9757_v26 = vld [vmem:[%s15387_s4 + $0xb0] sm:$0xff]  }
 0x23b   :  { %8549 = vmatmul.mubr.bf16.gmra.mrb[24].mxu1 %v11900_v34 }
 0x23c   :  { %8552 = vmatprep.mubr.bf16.mxu1 %v11903_v23 }
 0x23f   :  { %8293 = vmatmul.mubr.bf16.gmra.mrb[92].mxu0 %v11738_v63  ;;  %v2589_v63 = vld [vmem:[#allocation2 + $0x300] sm:$0xff] }
 0x240   :  { %8296 = vmatprep.mubr.bf16.mxu0 %v1310_v36  ;;  %v11923_v53 = vpack.c.bf16 %v2590_v59, %v2589_v63  ;;  %v3068_v36 = vld [vmem:[#allocation2 + $0x129] sm:$0xff] }
 0x241   :  { %v3120_v2 = vpack.c.bf16 %v3068_v36, %v3067_v38  ;;  %v9751_v63 = vld [vmem:[%s15387_s4 + $0x88] sm:$0xff]  }
 0x242   :  { %v1135_v38 = vld [vmem:[#allocation2 + $0xc8] sm:$0xff] }
 0x243   :  { %8553 = vmatmul.mubr.bf16.gmra.mrb[28].mxu1 %v11908_v27  ;;  %v3079_v36 = vld [vmem:[#allocation2 + $0x1e1] sm:$0xff] }
 0x244   :  { %8556 = vmatprep.mubr.bf16.mxu1 %v11911_v32 }
 0x247   :  { %8297 = vmatmul.mubr.bf16.gmra.mrb[96].mxu0 %v11744_v40  ;;  %v2593_v40 = vld [vmem:[#allocation2 + $0x330] sm:$0xff] }
 0x248   :  { %8300 = vmatprep.mubr.bf16.mxu0 %v11750_v15  ;;  %v2594_v15 = vld [vmem:[#allocation2 + $0x338] sm:$0xff] }
 0x249   :  { %v2626_v11 = vpack.c.bf16 %v2594_v15, %v2593_v40  ;;  %v1126_v40 = vld [vmem:[#allocation2 + $0x60] sm:$0xff]  ;;  %v9752_v15 = vld [vmem:[%s15387_s4 + $0x90] sm:$0xff]  }
 0x24b   :  { %8557 = vmatmul.mubr.bf16.gmra.mrb[32].mxu1 %v11915_v0 }
 0x24c   :  { %8560 = vmatprep.mubr.bf16.mxu1 %v11918_v24 }
 0x24f   :  { %8301 = vmatmul.mubr.bf16.gmra.mrb[100].mxu0 %v11756_v50  ;;  %v9737_v50 = vld [vmem:[%s15387_s4 + $0x148] sm:$0xff]  }
 0x250   :  { %8304 = vmatprep.mubr.bf16.mxu0 %v11762_v14  ;;  %v9742_v14 = vld [vmem:[%s15387_s4 + $0x150] sm:$0xff]  }
 0x253   :  { %8561 = vmatmul.mubr.bf16.gmra.mrb[36].mxu1 %v11923_v53 }
 0x254   :  { %8564 = vmatprep.mubr.bf16.mxu1 %v11926_v31 }
 0x257   :  { %8305 = vmatmul.mubr.bf16.gmra.mrb[104].mxu0 %v11773_v45  ;;  %v9746_v45 = vld [vmem:[%s15387_s4 + $0x168] sm:$0xff]  }
 0x258   :  { %8308 = vmatprep.mubr.bf16.mxu0 %v11779_v37  ;;  %v3060_v37 = vld [vmem:[#allocation2 + $0xc9] sm:$0xff] }
 0x25b   :  { %8565 = vmatmul.mubr.bf16.gmra.mrb[40].mxu1 %v2626_v11  ;;  %v1127_v11 = vld [vmem:[#allocation2 + $0x68] sm:$0xff] }
 0x25c   :  { %8584 = vmatprep.mubr.bf16.mxu1 %v11628_v8  ;;  %v9744_v8 = vld [vmem:[%s15387_s4 + $0x158] sm:$0xff]  }
 0x25f   :  { %8309 = vmatmul.mubr.bf16.gmra.mrb[108].mxu0 %v11785_v10  ;;  %v3061_v10 = vld [vmem:[#allocation2 + $0xd9] sm:$0xff] }
 0x260   :  { %8312 = vmatprep.mubr.bf16.mxu0 %v11794_v16  ;;  %v3062_v16 = vld [vmem:[#allocation2 + $0xe1] sm:$0xff] }
 0x263   :  { %8585 = vmatmul.mubr.bf16.vlgmr.msra.gmra.mrb[44].mxu1 %v11636_v1  ;;  %v11952_v1 = vld [vmem:[%s15387_s4 + $0x80] sm:$0xff]  }
 0x264   :  { %8649 = vmatpush3.bf16.msra.mxu1 %v11878_v18  ;;  %8588 = vmatprep.mubr.bf16.mxu1 %v11648_v49  ;;  %v9745_v49 = vld [vmem:[%s15387_s4 + $0x160] sm:$0xff]  }
 0x265   :  { %8650 = vmatprep.subr.bf16.mxu1 %v9737_v50  ;;  %8408 = vmatprep.subr.bf16.mxu0 %v11952_v1  ;;  %v3064_v18 = vld [vmem:[#allocation2 + $0xf9] sm:$0xff] }
 0x267   :  { %8313 = vmatmul.mubr.bf16.gmra.mrb[112].mxu0 %v11800_v47 }
 0x268   :  { %8651 = vmatpush3.bf16.msra.mxu1 %v9737_v50  ;;  %8316 = vmatprep.mubr.bf16.mxu0 %v11811_v46  ;;  %v9748_v46 = vld [vmem:[%s15387_s4 + $0x178] sm:$0xff]  }
 0x269   :  { %8652 = vmatprep.subr.bf16.mxu1 %v9742_v14  ;;  %v3071_v50 = vld [vmem:[#allocation2 + $0x151] sm:$0xff] }
 0x26b   :  { %8589 = vmatmul.mubr.bf16.gmra.mrb[48].mxu1 %v11654_v21  ;;  %v9747_v21 = vld [vmem:[%s15387_s4 + $0x170] sm:$0xff]  }
 0x26c   :  { %8592 = vmatprep.mubr.bf16.mxu1 %v11663_v39  ;;  %8653 = vmatpush3.bf16.msra.mxu1 %v9742_v14  ;;  %v3059_v39 = vld [vmem:[#allocation2 + $0xc1] sm:$0xff]  ;;  %v3072_v14 = vld [vmem:[#allocation2 + $0x159] sm:$0xff] }
 0x26d   :  { %8654 = vmatprep.subr.bf16.mxu1 %v9744_v8  ;;  %v3116_v47 = vpack.c.bf16 %v3060_v37, %v3059_v39  ;;  %v3122_v39 = vpack.c.bf16 %v3072_v14, %v3071_v50  ;;  %v3083_v50 = vld [vmem:[#allocation2 + $0x211] sm:$0xff]  ;;  %v3084_v14 = vld [vmem:[#allocation2 + $0x219] sm:$0xff] }
 0x26f   :  { %8317 = vmatmul.mubr.bf16.gmra.mrb[116].mxu0 %v11817_v62  ;;  %v11981_v62 = vld [vmem:[%s15387_s4 + $0x180] sm:$0xff]  }
 0x270   :  { %8655 = vmatpush3.bf16.msra.mxu1 %v9744_v8  ;;  %8320 = vmatprep.mubr.bf16.mxu0 %v11824_v7  ;;  %v3063_v7 = vld [vmem:[#allocation2 + $0xf1] sm:$0xff]  ;;  %v3073_v8 = vld [vmem:[#allocation2 + $0x169] sm:$0xff] }
 0x271   :  { %8656 = vmatprep.subr.bf16.mxu1 %v9745_v49  ;;  %v3118_v13 = vpack.c.bf16 %v3064_v18, %v3063_v7  ;;  %v3075_v7 = vld [vmem:[#allocation2 + $0x181] sm:$0xff]  ;;  %v3076_v18 = vld [vmem:[#allocation2 + $0x189] sm:$0xff] }
 0x273   :  { %8593 = vmatmul.mubr.bf16.gmra.mrb[52].mxu1 %v11673_v12  ;;  %v3117_v12 = vpack.c.bf16 %v3062_v16, %v3061_v10  ;;  %v1128_v10 = vld [vmem:[#allocation2 + $0x78] sm:$0xff]  ;;  %v1129_v16 = vld [vmem:[#allocation2 + $0x80] sm:$0xff] }
 0x274   :  { %8596 = vmatprep.mubr.bf16.mxu1 %v11681_v9  ;;  %8657 = vmatpush3.bf16.msra.mxu1 %v9745_v49  ;;  %v11976_v9 = vld [vmem:[#allocation2 + $0x321] sm:$0xff]  ;;  %v3074_v49 = vld [vmem:[#allocation2 + $0x171] sm:$0xff] }
 0x275   :  { %8658 = vmatprep.subr.bf16.mxu1 %v9746_v45  ;;  %v3123_v37 = vpack.c.bf16 %v3074_v49, %v3073_v8  ;;  %v3085_v8 = vld [vmem:[#allocation2 + $0x229] sm:$0xff]  ;;  %v3086_v49 = vld [vmem:[#allocation2 + $0x231] sm:$0xff] }
 0x277   :  { %8321 = vmatmul.mubr.bf16.gmra.mrb[120].mxu0 %v11833_v54  ;;  %v11983_v54 = vpack.c.bf16 %v9799_v30, %v9799_v30  ;;  %v1187_v30 = vpack.c.bf16 %v1129_v16, %v1128_v10  ;;  %v3087_v10 = vld [vmem:[#allocation2 + $0x241] sm:$0xff]  ;;  %v3088_v16 = vld [vmem:[#allocation2 + $0x249] sm:$0xff] }
 0x278   :  { %8659 = vmatpush3.bf16.msra.mxu1 %v9746_v45  ;;  %8324 = vmatprep.mubr.bf16.mxu0 %v11839_v61  ;;  %v15864_v61 = vmax.f32 %v15780_v3, 0.0  ;;  %v3070_v3 = vld [vmem:[#allocation2 + $0x141] sm:$0xff]  ;;  %v1185_v45 = vpack.c.bf16 %v1125_v52, %v1124_v56  ;;  %v1136_v52 = vld [vmem:[#allocation2 + $0xd8] sm:$0xff] }
 0x279   :  { %8660 = vmatprep.subr.bf16.mxu1 %v9747_v21  ;;  %v3121_v59 = vpack.c.bf16 %v3070_v3, %v3069_v19  ;;  %v3080_v19 = vld [vmem:[#allocation2 + $0x1e9] sm:$0xff]  ;;  %v3081_v3 = vld [vmem:[#allocation2 + $0x1f9] sm:$0xff] }
 0x27a   :  { %v1325_v43 = vpack.c.bf16 %v11976_v9, %v15864_v61 }
 0x27b   :  { %8597 = vmatmul.mubr.bf16.gmra.mrb[56].mxu1 %v3116_v47  ;;  %v1130_v47 = vld [vmem:[#allocation2 + $0x90] sm:$0xff] }
 0x27c   :  { %8600 = vmatprep.mubr.bf16.mxu1 %v3117_v12  ;;  %8661 = vmatpush3.bf16.msra.mxu1 %v9747_v21  ;;  %v1186_v21 = vpack.c.bf16 %v1127_v11, %v1126_v40  ;;  %v1131_v12 = vld [vmem:[#allocation2 + $0x98] sm:$0xff]  ;;  %v1137_v40 = vld [vmem:[#allocation2 + $0xe0] sm:$0xff] }
 0x27d   :  { %8662 = vmatprep.subr.bf16.mxu1 %v9748_v46  ;;  %v1188_v61 = vpack.c.bf16 %v1131_v12, %v1130_v47  ;;  %v1139_v11 = vld [vmem:[#allocation2 + $0xf8] sm:$0xff]  ;;  %v3130_v12 = vpack.c.bf16 %v3088_v16, %v3087_v10  ;;  %v9763_v16 = vld [vmem:[%s15387_s4 + $0x1b0] sm:$0xff]  }
 0x27e   :  { %v3089_v47 = vld [vmem:[#allocation2 + $0x259] sm:$0xff] }
 0x27f   :  { %8325 = vmatmul.mubr.bf16.gmra.mrb[124].mxu0 %v1325_v43  ;;  %v3124_v43 = vpack.c.bf16 %v3076_v18, %v3075_v7  ;;  %v3091_v18 = vld [vmem:[#allocation2 + $0x271] sm:$0xff] }
 0x280   :  { %8663 = vmatpush3.bf16.msra.mxu1 %v9748_v46  ;;  %8344 = vmatprep.mubr.bf16.mxu0 %v11983_v54  ;;  %v9755_v46 = vld [vmem:[%s15387_s4 + $0xa0] sm:$0xff]  }
 0x281   :  { %8728 = vmatprep.subr.bf16.mxu1 %v11981_v62 }
 0x283   :  { %8601 = vmatmul.mubr.bf16.gmra.mrb[60].mxu1 %v3118_v13  ;;  %v9756_v13 = vld [vmem:[%s15387_s4 + $0xa8] sm:$0xff]  }
 0x284   :  { %8604 = vmatprep.mubr.bf16.mxu1 %v3119_v58  ;;  %v3125_v58 = vpack.c.bf16 %v3078_v5, %v3077_v29  ;;  %v3092_v29 = vld [vmem:[#allocation2 + $0x279] sm:$0xff]  ;;  %v3093_v5 = vld [vmem:[#allocation2 + $0x289] sm:$0xff] }
 0x287   :  { %8345 = vmatmul.mubr.bf16.vlgmr.msra.gmra.mrb[64].mxu0 %v1183_v20  ;;  %v3082_v20 = vld [vmem:[#allocation2 + $0x201] sm:$0xff] }
 0x288   :  { %8348 = vmatprep.mubr.bf16.mxu0 %v1184_v44  ;;  %8409 = vmatpush3.bf16.msra.mxu0 %v11952_v1  ;;  %v9754_v1 = vld [vmem:[%s15387_s4 + $0x98] sm:$0xff]   ;;  %v1189_v44 = vpack.c.bf16 %v1133_v33, %v1132_v55  ;;  %v3127_v56 = vpack.c.bf16 %v3082_v20, %v3081_v3  ;;  %v3098_v55 = vld [vmem:[#allocation2 + $0x2c1] sm:$0xff]  ;;  %v3104_v3 = vld [vmem:[#allocation2 + $0x309] sm:$0xff] }
 0x289   :  { %8410 = vmatprep.subr.bf16.mxu0 %v9751_v63 }
 0x28b   :  { %8605 = vmatmul.mubr.bf16.gmra.mrb[0].mxu1 %v3120_v2  ;;  %v1190_v2 = vpack.c.bf16 %v1135_v38, %v1134_v25  ;;  %v3099_v25 = vld [vmem:[#allocation2 + $0x2d1] sm:$0xff] }
 0x28c   :  { %8608 = vmatprep.mubr.bf16.mxu1 %v3121_v59  ;;  %8411 = vmatpush3.bf16.msra.mxu0 %v9751_v63  ;;  %v3126_v63 = vpack.c.bf16 %v3080_v19, %v3079_v36  ;;  %v9759_v59 = vld [vmem:[%s15387_s4 + $0xb8] sm:$0xff]   ;;  %v3103_v19 = vld [vmem:[#allocation2 + $0x301] sm:$0xff] }
 0x28d   :  { %8412 = vmatprep.subr.bf16.mxu0 %v9752_v15  ;;  %v3102_v38 = vld [vmem:[#allocation2 + $0x2f1] sm:$0xff]  ;;  %v3138_v20 = vpack.c.bf16 %v3104_v3, %v3103_v19 }
 0x28e   :  { %v3588_v19 = vld [vmem:[#allocation2 + $0x172] sm:$0xff] }
 0x28f   :  { %8349 = vmatmul.mubr.bf16.gmra.mrb[68].mxu0 %v1185_v45  ;;  %v1191_v45 = vpack.c.bf16 %v1137_v40, %v1136_v52  ;;  %v3563_v52 = vld [vmem:[#allocation2 + $0x4a] sm:$0xff] }
 0x290   :  { %8352 = vmatprep.mubr.bf16.mxu0 %v1186_v21  ;;  %8413 = vmatpush3.bf16.msra.mxu0 %v9752_v15  ;;  %v1138_v15 = vld [vmem:[#allocation2 + $0xf0] sm:$0xff] }
 0x291   :  { %8414 = vmatprep.subr.bf16.mxu0 %v9754_v1  ;;  %v1192_v21 = vpack.c.bf16 %v1139_v11, %v1138_v15  ;;  %v9753_v15 = vld [vmem:[%s15387_s4 + $0x188] sm:$0xff]  }
 0x292   :  { %v3565_v11 = vld [vmem:[#allocation2 + $0x62] sm:$0xff] }
 0x293   :  { %8609 = vmatmul.mubr.bf16.gmra.mrb[4].mxu1 %v3122_v39  ;;  %v3128_v39 = vpack.c.bf16 %v3084_v14, %v3083_v50  ;;  %v3566_v50 = vld [vmem:[#allocation2 + $0x6a] sm:$0xff]  ;;  %v3567_v14 = vld [vmem:[#allocation2 + $0x7a] sm:$0xff] }
 0x294   :  { %8612 = vmatprep.mubr.bf16.mxu1 %v3123_v37  ;;  %8415 = vmatpush3.bf16.msra.mxu0 %v9754_v1  ;;  %v12015_v1 = vld [vmem:[%s15387_s4 + $0xc0] sm:$0xff]   ;;  %v3129_v37 = vpack.c.bf16 %v3086_v49, %v3085_v8 }
 0x295   :  { %8416 = vmatprep.subr.bf16.mxu0 %v9755_v46  ;;  %v3568_v8 = vld [vmem:[#allocation2 + $0x82] sm:$0xff] }
 0x296   :  { %v9761_v49 = vld [vmem:[%s15387_s4 + $0x1a0] sm:$0xff]  }
 0x297   :  { %8353 = vmatmul.mubr.bf16.gmra.mrb[72].mxu0 %v1187_v30  ;;  %v3094_v30 = vld [vmem:[#allocation2 + $0x291] sm:$0xff] }
 0x298   :  { %8356 = vmatprep.mubr.bf16.mxu0 %v1188_v61  ;;  %8417 = vmatpush3.bf16.msra.mxu0 %v9755_v46  ;;  %v3090_v46 = vld [vmem:[#allocation2 + $0x261] sm:$0xff]  ;;  %v3132_v61 = vpack.c.bf16 %v3092_v29, %v3091_v18 }
 0x299   :  { %8418 = vmatprep.subr.bf16.mxu0 %v9756_v13  ;;  %v3131_v7 = vpack.c.bf16 %v3090_v46, %v3089_v47  ;;  %v3573_v47 = vld [vmem:[#allocation2 + $0xc2] sm:$0xff]  ;;  %v3574_v46 = vld [vmem:[#allocation2 + $0xca] sm:$0xff] }
 0x29a   :  { %v2017_v29 = vld [vmem:[#allocation2 + $0x2] sm:$0xff] }
 0x29b   :  { %8613 = vmatmul.mubr.bf16.gmra.mrb[8].mxu1 %v3124_v43  ;;  %v3133_v43 = vpack.c.bf16 %v3094_v30, %v3093_v5  ;;  %v2018_v5 = vld [vmem:[#allocation2 + $0xa] sm:$0xff]  ;;  %v12091_v30 = vld [vmem:[%s15387_s4 + $0x1c0] sm:$0xff]  }
 0x29c   :  { %8616 = vmatprep.mubr.bf16.mxu1 %v3125_v58  ;;  %8419 = vmatpush3.bf16.msra.mxu0 %v9756_v13  ;;  %v3095_v13 = vld [vmem:[#allocation2 + $0x2a1] sm:$0xff]  ;;  %v3096_v58 = vld [vmem:[#allocation2 + $0x2a9] sm:$0xff] }
 0x29d   :  { %8420 = vmatprep.subr.bf16.mxu0 %v9757_v26  ;;  %v3134_v33 = vpack.c.bf16 %v3096_v58, %v3095_v13  ;;  %v3580_v13 = vld [vmem:[#allocation2 + $0x112] sm:$0xff]  ;;  %v2081_v58 = vpack.c.bf16 %v2018_v5, %v2017_v29  ;;  %v3611_v29 = vld [vmem:[#allocation2 + $0x2ba] sm:$0xff]  ;;  %v3612_v5 = vld [vmem:[#allocation2 + $0x2c2] sm:$0xff] }
 0x29f   :  { %8357 = vmatmul.mubr.bf16.gmra.mrb[76].mxu0 %v1189_v44 }
 0x2a0   :  { %8360 = vmatprep.mubr.bf16.mxu0 %v1190_v2  ;;  %8421 = vmatpush3.bf16.msra.mxu0 %v9757_v26  ;;  %v3100_v26 = vld [vmem:[#allocation2 + $0x2d9] sm:$0xff]  ;;  %v3107_v2 = vld [vmem:[#allocation2 + $0x331] sm:$0xff] }
 0x2a1   :  { %8422 = vmatprep.subr.bf16.mxu0 %v9759_v59  ;;  %v3136_v36 = vpack.c.bf16 %v3100_v26, %v3099_v25  ;;  %v3584_v25 = vld [vmem:[#allocation2 + $0x142] sm:$0xff] }
 0x2a3   :  { %8617 = vmatmul.mubr.bf16.gmra.mrb[12].mxu1 %v3126_v63  ;;  %v3108_v63 = vld [vmem:[#allocation2 + $0x339] sm:$0xff] }
 0x2a4   :  { %8620 = vmatprep.mubr.bf16.mxu1 %v3127_v56  ;;  %8423 = vmatpush3.bf16.msra.mxu0 %v9759_v59  ;;  %v3560_v59 = vld [vmem:[#allocation2 + $0x22] sm:$0xff]  ;;  %v3140_v56 = vpack.c.bf16 %v3108_v63, %v3107_v2  ;;  %v3590_v2 = vld [vmem:[#allocation2 + $0x18a] sm:$0xff] }
 0x2a5   :  { %8488 = vmatprep.subr.bf16.mxu0 %v12015_v1  ;;  %v3591_v63 = vld [vmem:[#allocation2 + $0x1ca] sm:$0xff] }
 0x2a7   :  { %8361 = vmatmul.mubr.bf16.gmra.mrb[80].mxu0 %v1191_v45  ;;  %v3569_v45 = vld [vmem:[#allocation2 + $0x92] sm:$0xff] }
 0x2a8   :  { %8364 = vmatprep.mubr.bf16.mxu0 %v1192_v21  ;;  %v3570_v21 = vld [vmem:[#allocation2 + $0x9a] sm:$0xff] }
 0x2ab   :  { %8621 = vmatmul.mubr.bf16.gmra.mrb[16].mxu1 %v3128_v39  ;;  %v3571_v39 = vld [vmem:[#allocation2 + $0xaa] sm:$0xff] }
 0x2ac   :  { %8624 = vmatprep.mubr.bf16.mxu1 %v3129_v37  ;;  %v3572_v37 = vld [vmem:[#allocation2 + $0xb2] sm:$0xff] }
 0x2ad   :  { %v12069_v10 = vpack.c.bf16 %v3572_v37, %v3571_v39  ;;  %v3604_v39 = vld [vmem:[#allocation2 + $0x262] sm:$0xff] }
 0x2af   :  { %8365 = vmatmul.mubr.bf16.gmra.mrb[84].mxu0 %v11630_v48  ;;  %v3097_v48 = vld [vmem:[#allocation2 + $0x2b9] sm:$0xff] }
 0x2b0   :  { %8368 = vmatprep.mubr.bf16.mxu0 %v11638_v35  ;;  %v3135_v35 = vpack.c.bf16 %v3098_v55, %v3097_v48  ;;  %v3581_v55 = vld [vmem:[#allocation2 + $0x122] sm:$0xff] }
 0x2b3   :  { %8625 = vmatmul.mubr.bf16.gmra.mrb[20].mxu1 %v3130_v12  ;;  %v3575_v12 = vld [vmem:[#allocation2 + $0xda] sm:$0xff] }
 0x2b4   :  { %8628 = vmatprep.mubr.bf16.mxu1 %v3131_v7  ;;  %v3576_v7 = vld [vmem:[#allocation2 + $0xe2] sm:$0xff] }
 0x2b5   :  { %v12083_v18 = vpack.c.bf16 %v3576_v7, %v3575_v12  ;;  %v2049_v7 = vld [vmem:[#allocation2 + $0x1b2] sm:$0xff] }
 0x2b7   :  { %8369 = vmatmul.mubr.bf16.gmra.mrb[88].mxu0 %v11667_v28  ;;  %v3101_v28 = vld [vmem:[#allocation2 + $0x2e9] sm:$0xff] }
 0x2b8   :  { %8372 = vmatprep.mubr.bf16.mxu0 %v11764_v57  ;;  %v3137_v57 = vpack.c.bf16 %v3102_v38, %v3101_v28  ;;  %v3585_v38 = vld [vmem:[#allocation2 + $0x152] sm:$0xff] }
 0x2bb   :  { %8629 = vmatmul.mubr.bf16.gmra.mrb[24].mxu1 %v3132_v61  ;;  %v3577_v61 = vld [vmem:[#allocation2 + $0xf2] sm:$0xff] }
 0x2bc   :  { %8632 = vmatprep.mubr.bf16.mxu1 %v3133_v43  ;;  %v3578_v43 = vld [vmem:[#allocation2 + $0xfa] sm:$0xff] }
 0x2bf   :  { %8373 = vmatmul.mubr.bf16.gmra.mrb[92].mxu0 %v11788_v22  ;;  %v3105_v22 = vld [vmem:[#allocation2 + $0x319] sm:$0xff] }
 0x2c0   :  { %8376 = vmatprep.mubr.bf16.mxu0 %v11983_v54  ;;  %v3139_v44 = vpack.c.bf16 %v11976_v9, %v3105_v22  ;;  %v3562_v9 = vld [vmem:[#allocation2 + $0x3a] sm:$0xff]  ;;  %v9802_v22 = vld [vmem:[%s15387_s4 + $0xd0] sm:$0xff]  }
 0x2c3   :  { %8633 = vmatmul.mubr.bf16.gmra.mrb[28].mxu1 %v3134_v33  ;;  %v3582_v33 = vld [vmem:[#allocation2 + $0x12a] sm:$0xff] }
 0x2c4   :  { %8636 = vmatprep.mubr.bf16.mxu1 %v3135_v35  ;;  %v3583_v35 = vld [vmem:[#allocation2 + $0x13a] sm:$0xff]  ;;  %v12101_v26 = vpack.c.bf16 %v3582_v33, %v3581_v55 }
 0x2c5   :  { %v12104_v28 = vpack.c.bf16 %v3584_v25, %v3583_v35  ;;  %v3617_v35 = vld [vmem:[#allocation2 + $0x302] sm:$0xff]  ;;  %v3618_v25 = vld [vmem:[#allocation2 + $0x30a] sm:$0xff] }
 0x2c7   :  { %8377 = vmatmul.mubr.bf16.gmra.mrb[96].mxu0 %v11848_v60  ;;  %v3559_v60 = vld [vmem:[#allocation2 + $0x1a] sm:$0xff] }
 0x2c8   :  { %8380 = vmatprep.mubr.bf16.mxu0 %v11861_v42  ;;  %v12030_v42 = vpack.c.bf16 %v3560_v59, %v3559_v60  ;;  %v3592_v60 = vld [vmem:[#allocation2 + $0x1d2] sm:$0xff] }
 0x2cb   :  { %8637 = vmatmul.mubr.bf16.gmra.mrb[32].mxu1 %v3136_v36  ;;  %v3586_v36 = vld [vmem:[#allocation2 + $0x15a] sm:$0xff] }
 0x2cc   :  { %8640 = vmatprep.mubr.bf16.mxu1 %v3137_v57  ;;  %v3587_v57 = vld [vmem:[#allocation2 + $0x16a] sm:$0xff]  ;;  %v12113_v3 = vpack.c.bf16 %v3586_v36, %v3585_v38  ;;  %v3621_v36 = vld [vmem:[#allocation2 + $0x332] sm:$0xff] }
 0x2cf   :  { %8381 = vmatmul.mubr.bf16.gmra.mrb[100].mxu0 %v11867_v17  ;;  %v3561_v17 = vld [vmem:[#allocation2 + $0x32] sm:$0xff] }
 0x2d0   :  { %8384 = vmatprep.mubr.bf16.mxu0 %v11883_v6  ;;  %v3564_v6 = vld [vmem:[#allocation2 + $0x52] sm:$0xff]  ;;  %v12034_v40 = vpack.c.bf16 %v3562_v9, %v3561_v17  ;;  %v9805_v17 = vld [vmem:[%s15387_s4 + $0xe8] sm:$0xff]  }
 0x2d1   :  { %v3593_v9 = vld [vmem:[#allocation2 + $0x1e2] sm:$0xff] }
 0x2d3   :  { %8641 = vmatmul.mubr.bf16.gmra.mrb[36].mxu1 %v3138_v20  ;;  %v9803_v20 = vld [vmem:[%s15387_s4 + $0xd8] sm:$0xff]  }
 0x2d4   :  { %8644 = vmatprep.mubr.bf16.mxu1 %v3139_v44  ;;  %v3589_v44 = vld [vmem:[#allocation2 + $0x182] sm:$0xff] }
 0x2d5   :  { %v3638_v59 = vpack.c.bf16 %v3590_v2, %v3589_v44  ;;  %v4077_v44 = vld [vmem:[#allocation2 + $0x50] sm:$0xff]  ;;  %v4078_v2 = vld [vmem:[#allocation2 + $0x60] sm:$0xff] }
 0x2d7   :  { %8385 = vmatmul.mubr.bf16.gmra.mrb[104].mxu0 %v11887_v41  ;;  %v12040_v41 = vpack.c.bf16 %v3564_v6, %v3563_v52  ;;  %v3594_v52 = vld [vmem:[#allocation2 + $0x1ea] sm:$0xff]  ;;  %v3595_v6 = vld [vmem:[#allocation2 + $0x1fa] sm:$0xff] }
 0x2d8   :  { %8388 = vmatprep.mubr.bf16.mxu0 %v11892_v4  ;;  %v9758_v4 = vld [vmem:[%s15387_s4 + $0x190] sm:$0xff]  }
 0x2db   :  { %8645 = vmatmul.mubr.bf16.gmra.mrb[40].mxu1 %v3140_v56  ;;  %v9804_v56 = vld [vmem:[%s15387_s4 + $0xe0] sm:$0xff]  }
 0x2dc   :  { %8664 = vmatprep.mubr.bf16.mxu1 %v12030_v42 }
 0x2df   :  { %8389 = vmatmul.mubr.bf16.gmra.mrb[108].mxu0 %v11895_v51  ;;  %v12049_v51 = vpack.c.bf16 %v3566_v50, %v3565_v11  ;;  %v9807_v11 = vld [vmem:[%s15387_s4 + $0xf8] sm:$0xff]  }
 0x2e0   :  { %8392 = vmatprep.mubr.bf16.mxu0 %v11900_v34  ;;  %v9760_v34 = vld [vmem:[%s15387_s4 + $0x198] sm:$0xff]  }
 0x2e1   :  { %v3597_v50 = vld [vmem:[#allocation2 + $0x212] sm:$0xff] }
 0x2e3   :  { %8665 = vmatmul.mubr.bf16.vlgmr.msra.gmra.mrb[44].mxu1 %v12034_v40 }
 0x2e4   :  { %8729 = vmatpush3.bf16.msra.mxu1 %v11981_v62  ;;  %8668 = vmatprep.mubr.bf16.mxu1 %v12040_v41  ;;  %v12055_v62 = vpack.c.bf16 %v3568_v8, %v3567_v14  ;;  %v3598_v14 = vld [vmem:[#allocation2 + $0x21a] sm:$0xff]  ;;  %v3599_v8 = vld [vmem:[#allocation2 + $0x22a] sm:$0xff] }
 0x2e5   :  { %8730 = vmatprep.subr.bf16.mxu1 %v9753_v15 }
 0x2e7   :  { %8393 = vmatmul.mubr.bf16.gmra.mrb[112].mxu0 %v11903_v23  ;;  %v12063_v23 = vpack.c.bf16 %v3570_v21, %v3569_v45  ;;  %v3602_v45 = vld [vmem:[#allocation2 + $0x24a] sm:$0xff]  ;;  %v3603_v21 = vld [vmem:[#allocation2 + $0x25a] sm:$0xff] }
 0x2e8   :  { %8731 = vmatpush3.bf16.msra.mxu1 %v9753_v15  ;;  %8396 = vmatprep.mubr.bf16.mxu0 %v11908_v27  ;;  %v9762_v27 = vld [vmem:[%s15387_s4 + $0x1a8] sm:$0xff]   ;;  %v3640_v15 = vpack.c.bf16 %v3594_v52, %v3593_v9  ;;  %v4081_v9 = vld [vmem:[#allocation2 + $0x80] sm:$0xff]  ;;  %v4082_v52 = vld [vmem:[#allocation2 + $0x90] sm:$0xff] }
 0x2e9   :  { %8732 = vmatprep.subr.bf16.mxu1 %v9758_v4 }
 0x2eb   :  { %8669 = vmatmul.mubr.bf16.gmra.mrb[48].mxu1 %v12049_v51 }
 0x2ec   :  { %8672 = vmatprep.mubr.bf16.mxu1 %v12055_v62  ;;  %8733 = vmatpush3.bf16.msra.mxu1 %v9758_v4 }
 0x2ed   :  { %8734 = vmatprep.subr.bf16.mxu1 %v9760_v34 }
 0x2ef   :  { %8397 = vmatmul.mubr.bf16.gmra.mrb[116].mxu0 %v11911_v32  ;;  %v12077_v32 = vpack.c.bf16 %v3574_v46, %v3573_v47  ;;  %v3608_v47 = vld [vmem:[#allocation2 + $0x292] sm:$0xff] }
 0x2f0   :  { %8735 = vmatpush3.bf16.msra.mxu1 %v9760_v34  ;;  %8400 = vmatprep.mubr.bf16.mxu0 %v11915_v0  ;;  %v9764_v0 = vld [vmem:[%s15387_s4 + $0x1b8] sm:$0xff]   ;;  %v3642_v34 = vpack.c.bf16 %v3598_v14, %v3597_v50  ;;  %v4086_v50 = vld [vmem:[#allocation2 + $0xc0] sm:$0xff]  ;;  %v4087_v14 = vld [vmem:[#allocation2 + $0xc8] sm:$0xff] }
 0x2f1   :  { %8736 = vmatprep.subr.bf16.mxu1 %v9761_v49 }
 0x2f3   :  { %8673 = vmatmul.mubr.bf16.gmra.mrb[52].mxu1 %v12063_v23 }
 0x2f4   :  { %8676 = vmatprep.mubr.bf16.mxu1 %v12069_v10  ;;  %8737 = vmatpush3.bf16.msra.mxu1 %v9761_v49  ;;  %v3601_v49 = vld [vmem:[#allocation2 + $0x242] sm:$0xff] }
 0x2f5   :  { %8738 = vmatprep.subr.bf16.mxu1 %v9762_v27  ;;  %v3644_v37 = vpack.c.bf16 %v3602_v45, %v3601_v49  ;;  %v4088_v49 = vld [vmem:[#allocation2 + $0xd8] sm:$0xff]  ;;  %v4089_v45 = vld [vmem:[#allocation2 + $0xe0] sm:$0xff] }
 0x2f7   :  { %8401 = vmatmul.mubr.bf16.gmra.mrb[120].mxu0 %v11918_v24  ;;  %v3579_v24 = vld [vmem:[#allocation2 + $0x10a] sm:$0xff] }
 0x2f8   :  { %8739 = vmatpush3.bf16.msra.mxu1 %v9762_v27  ;;  %8404 = vmatprep.mubr.bf16.mxu0 %v11923_v53  ;;  %v12093_v53 = vpack.c.bf16 %v3578_v43, %v3577_v61  ;;  %v12097_v48 = vpack.c.bf16 %v3580_v13, %v3579_v24  ;;  %v3605_v27 = vld [vmem:[#allocation2 + $0x272] sm:$0xff]  ;;  %v12159_v24 = vpack.c.bf16 %v3612_v5, %v3611_v29 }
 0x2f9   :  { %8740 = vmatprep.subr.bf16.mxu1 %v9763_v16  ;;  %v3613_v13 = vld [vmem:[#allocation2 + $0x2d2] sm:$0xff] }
 0x2fa   :  { %v4096_v5 = vld [vmem:[#allocation2 + $0x138] sm:$0xff] }
 0x2fb   :  { %8677 = vmatmul.mubr.bf16.gmra.mrb[56].mxu1 %v12077_v32 }
 0x2fc   :  { %8680 = vmatprep.mubr.bf16.mxu1 %v12083_v18  ;;  %8741 = vmatpush3.bf16.msra.mxu1 %v9763_v16  ;;  %v3607_v16 = vld [vmem:[#allocation2 + $0x28a] sm:$0xff] }
 0x2fd   :  { %8742 = vmatprep.subr.bf16.mxu1 %v9764_v0  ;;  %v12154_v12 = vpack.c.bf16 %v3608_v47, %v3607_v16  ;;  %v12230_v16 = vld [vmem:[%s15387_s4 + $0x200] sm:$0xff]  }
 0x2fe   :  { %v2532_v47 = vld [vmem:[#allocation2 + $0x20] sm:$0xff] }
 0x2ff   :  { %8405 = vmatmul.mubr.bf16.gmra.mrb[124].mxu0 %v11926_v31  ;;  %v9801_v31 = vld [vmem:[%s15387_s4 + $0xc8] sm:$0xff]  }
 0x300   :  { %8743 = vmatpush3.bf16.msra.mxu1 %v9764_v0  ;;  %8424 = vmatprep.mubr.bf16.mxu0 %v2081_v58  ;;  %v3609_v0 = vld [vmem:[#allocation2 + $0x2a2] sm:$0xff]  ;;  %v3614_v58 = vld [vmem:[#allocation2 + $0x2da] sm:$0xff] }
 0x301   :  { %8808 = vmatprep.subr.bf16.mxu1 %v12091_v30  ;;  %v12162_v55 = vpack.c.bf16 %v3614_v58, %v3613_v13 }
 0x303   :  { %8681 = vmatmul.mubr.bf16.gmra.mrb[60].mxu1 %v12093_v53 }
 0x304   :  { %8684 = vmatprep.mubr.bf16.mxu1 %v12097_v48 }
 0x307   :  { %8425 = vmatmul.mubr.bf16.vlgmr.msra.gmra.mrb[64].mxu0 %v12030_v42  ;;  %v12131_v42 = vpack.c.bf16 %v3592_v60, %v3591_v63  ;;  %v4079_v63 = vld [vmem:[#allocation2 + $0x68] sm:$0xff] }
 0x308   :  { %8428 = vmatprep.mubr.bf16.mxu0 %v12034_v40  ;;  %8489 = vmatpush3.bf16.msra.mxu0 %v12015_v1  ;;  %v12119_v1 = vpack.c.bf16 %v3588_v19, %v3587_v57  ;;  %v3596_v40 = vld [vmem:[#allocation2 + $0x202] sm:$0xff]  ;;  %v3622_v57 = vld [vmem:[#allocation2 + $0x33a] sm:$0xff]  ;;  %v4074_v19 = vld [vmem:[#allocation2 + $0x30] sm:$0xff] }
 0x309   :  { %8490 = vmatprep.subr.bf16.mxu0 %v9801_v31  ;;  %v12142_v4 = vpack.c.bf16 %v3596_v40, %v3595_v6  ;;  %v4083_v6 = vld [vmem:[#allocation2 + $0x98] sm:$0xff] }
 0x30b   :  { %8685 = vmatmul.mubr.bf16.gmra.mrb[0].mxu1 %v12101_v26 }
 0x30c   :  { %8688 = vmatprep.mubr.bf16.mxu1 %v12104_v28  ;;  %8491 = vmatpush3.bf16.msra.mxu0 %v9801_v31  ;;  %v12169_v31 = vpack.c.bf16 %v3618_v25, %v3617_v35 }
 0x30d   :  { %8492 = vmatprep.subr.bf16.mxu0 %v9802_v22 }
 0x30f   :  { %8429 = vmatmul.mubr.bf16.gmra.mrb[68].mxu0 %v12040_v41  ;;  %v9806_v41 = vld [vmem:[%s15387_s4 + $0xf0] sm:$0xff]  }
 0x310   :  { %8432 = vmatprep.mubr.bf16.mxu0 %v12049_v51  ;;  %8493 = vmatpush3.bf16.msra.mxu0 %v9802_v22  ;;  %v3600_v51 = vld [vmem:[#allocation2 + $0x232] sm:$0xff]  ;;  %v3654_v22 = vpack.c.bf16 %v3622_v57, %v3621_v36  ;;  %v4109_v36 = vld [vmem:[#allocation2 + $0x200] sm:$0xff] }
 0x311   :  { %8494 = vmatprep.subr.bf16.mxu0 %v9803_v20  ;;  %v4110_v57 = vld [vmem:[#allocation2 + $0x210] sm:$0xff] }
 0x313   :  { %8689 = vmatmul.mubr.bf16.gmra.mrb[4].mxu1 %v12113_v3 }
 0x314   :  { %8692 = vmatprep.mubr.bf16.mxu1 %v12119_v1  ;;  %8495 = vmatpush3.bf16.msra.mxu0 %v9803_v20  ;;  %v4076_v20 = vld [vmem:[#allocation2 + $0x48] sm:$0xff] }
 0x315   :  { %8496 = vmatprep.subr.bf16.mxu0 %v9804_v56  ;;  %v12179_v60 = vpack.c.bf16 %v4077_v44, %v4076_v20  ;;  %v4113_v20 = vld [vmem:[#allocation2 + $0x230] sm:$0xff]  ;;  %v4114_v44 = vld [vmem:[#allocation2 + $0x240] sm:$0xff] }
 0x317   :  { %8433 = vmatmul.mubr.bf16.gmra.mrb[72].mxu0 %v12055_v62  ;;  %v3643_v62 = vpack.c.bf16 %v3600_v51, %v3599_v8  ;;  %v9770_v51 = vld [vmem:[%s15387_s4 + $0x1e8] sm:$0xff]  }
 0x318   :  { %8436 = vmatprep.mubr.bf16.mxu0 %v12063_v23  ;;  %8497 = vmatpush3.bf16.msra.mxu0 %v9804_v56  ;;  %v3645_v23 = vpack.c.bf16 %v3604_v39, %v3603_v21  ;;  %v12184_v56 = vpack.c.bf16 %v4079_v63, %v4078_v2  ;;  %v4090_v21 = vld [vmem:[#allocation2 + $0xf0] sm:$0xff]  ;;  %v4091_v39 = vld [vmem:[#allocation2 + $0xf8] sm:$0xff]  ;;  %v4115_v2 = vld [vmem:[#allocation2 + $0x248] sm:$0xff] }
 0x319   :  { %8498 = vmatprep.subr.bf16.mxu0 %v9805_v17 }
 0x31b   :  { %8693 = vmatmul.mubr.bf16.gmra.mrb[8].mxu1 %v3638_v59  ;;  %v9766_v59 = vld [vmem:[%s15387_s4 + $0x1c8] sm:$0xff]  }
 0x31c   :  { %8696 = vmatprep.mubr.bf16.mxu1 %v12131_v42  ;;  %8499 = vmatpush3.bf16.msra.mxu0 %v9805_v17  ;;  %v4080_v17 = vld [vmem:[#allocation2 + $0x78] sm:$0xff] }
 0x31d   :  { %8500 = vmatprep.subr.bf16.mxu0 %v9806_v41  ;;  %v12192_v40 = vpack.c.bf16 %v4081_v9, %v4080_v17  ;;  %v4119_v17 = vld [vmem:[#allocation2 + $0x278] sm:$0xff] }
 0x31f   :  { %8437 = vmatmul.mubr.bf16.gmra.mrb[76].mxu0 %v12069_v10  ;;  %v3606_v10 = vld [vmem:[#allocation2 + $0x27a] sm:$0xff] }
 0x320   :  { %8440 = vmatprep.mubr.bf16.mxu0 %v12077_v32  ;;  %8501 = vmatpush3.bf16.msra.mxu0 %v9806_v41  ;;  %v3646_v46 = vpack.c.bf16 %v3606_v10, %v3605_v27  ;;  %v2050_v32 = vld [vmem:[#allocation2 + $0x1ba] sm:$0xff]  ;;  %v12223_v27 = vpack.c.bf16 %v4091_v39, %v4090_v21  ;;  %v4131_v21 = vld [vmem:[#allocation2 + $0x308] sm:$0xff] }
 0x321   :  { %8502 = vmatprep.subr.bf16.mxu0 %v9807_v11  ;;  %v2097_v61 = vpack.c.bf16 %v2050_v32, %v2049_v7  ;;  %v9769_v41 = vld [vmem:[%s15387_s4 + $0x1e0] sm:$0xff]   ;;  %v2531_v10 = vld [vmem:[#allocation2 + $0x18] sm:$0xff]  ;;  %v4095_v32 = vld [vmem:[#allocation2 + $0x128] sm:$0xff] }
 0x322   :  { %v4094_v7 = vld [vmem:[#allocation2 + $0x120] sm:$0xff] }
 0x323   :  { %8697 = vmatmul.mubr.bf16.gmra.mrb[12].mxu1 %v3640_v15  ;;  %v4148_v29 = vpack.c.bf16 %v4095_v32, %v4094_v7  ;;  %v4588_v7 = vld [vmem:[#allocation2 + $0x31] sm:$0xff]  ;;  %v4589_v32 = vld [vmem:[#allocation2 + $0x39] sm:$0xff] }
 0x324   :  { %8700 = vmatprep.mubr.bf16.mxu1 %v12142_v4  ;;  %8503 = vmatpush3.bf16.msra.mxu0 %v9807_v11  ;;  %v4085_v11 = vld [vmem:[#allocation2 + $0xb0] sm:$0xff] }
 0x327   :  { %8441 = vmatmul.mubr.bf16.gmra.mrb[80].mxu0 %v12083_v18  ;;  %v3610_v18 = vld [vmem:[#allocation2 + $0x2aa] sm:$0xff] }
 0x328   :  { %8444 = vmatprep.mubr.bf16.mxu0 %v12093_v53  ;;  %v3648_v43 = vpack.c.bf16 %v3610_v18, %v3609_v0  ;;  %v3615_v53 = vld [vmem:[#allocation2 + $0x2ea] sm:$0xff]  ;;  %v2595_v0 = vpack.c.bf16 %v2532_v47, %v2531_v10  ;;  %v4135_v47 = vld [vmem:[#allocation2 + $0x338] sm:$0xff] }
 0x329   :  { %v4134_v10 = vld [vmem:[#allocation2 + $0x330] sm:$0xff] }
 0x32b   :  { %8701 = vmatmul.mubr.bf16.gmra.mrb[16].mxu1 %v3642_v34 }
 0x32c   :  { %8704 = vmatprep.mubr.bf16.mxu1 %v3643_v62 }
 0x32f   :  { %8445 = vmatmul.mubr.bf16.gmra.mrb[84].mxu0 %v12097_v48  ;;  %v3616_v48 = vld [vmem:[#allocation2 + $0x2f2] sm:$0xff] }
 0x330   :  { %8448 = vmatprep.mubr.bf16.mxu0 %v12101_v26  ;;  %v12165_v33 = vpack.c.bf16 %v3616_v48, %v3615_v53  ;;  %v3619_v26 = vld [vmem:[#allocation2 + $0x31a] sm:$0xff]  ;;  %v4100_v53 = vld [vmem:[#allocation2 + $0x168] sm:$0xff]  ;;  %v4101_v48 = vld [vmem:[#allocation2 + $0x170] sm:$0xff] }
 0x331   :  { %v4151_v35 = vpack.c.bf16 %v4101_v48, %v4100_v53  ;;  %v4595_v53 = vld [vmem:[#allocation2 + $0x81] sm:$0xff]  ;;  %v4596_v48 = vld [vmem:[#allocation2 + $0x91] sm:$0xff] }
 0x333   :  { %8705 = vmatmul.mubr.bf16.gmra.mrb[20].mxu1 %v3644_v37 }
 0x334   :  { %8708 = vmatprep.mubr.bf16.mxu1 %v3645_v23 }
 0x337   :  { %8449 = vmatmul.mubr.bf16.gmra.mrb[88].mxu0 %v12104_v28  ;;  %v3620_v28 = vld [vmem:[#allocation2 + $0x322] sm:$0xff] }
 0x338   :  { %8452 = vmatprep.mubr.bf16.mxu0 %v12113_v3  ;;  %v12172_v38 = vpack.c.bf16 %v3620_v28, %v3619_v26  ;;  %v4075_v3 = vld [vmem:[#allocation2 + $0x38] sm:$0xff]  ;;  %v4106_v26 = vld [vmem:[#allocation2 + $0x1e0] sm:$0xff]  ;;  %v4107_v28 = vld [vmem:[#allocation2 + $0x1e8] sm:$0xff] }
 0x33b   :  { %8709 = vmatmul.mubr.bf16.gmra.mrb[24].mxu1 %v3646_v46 }
 0x33c   :  { %8712 = vmatprep.mubr.bf16.mxu1 %v12154_v12 }
 0x33f   :  { %8453 = vmatmul.mubr.bf16.gmra.mrb[92].mxu0 %v12119_v1  ;;  %v12176_v1 = vpack.c.bf16 %v4075_v3, %v4074_v19  ;;  %v4111_v19 = vld [vmem:[#allocation2 + $0x218] sm:$0xff] }
 0x340   :  { %8456 = vmatprep.mubr.bf16.mxu0 %v2097_v61  ;;  %v4097_v61 = vld [vmem:[#allocation2 + $0x140] sm:$0xff] }
 0x341   :  { %v4149_v13 = vpack.c.bf16 %v4097_v61, %v4096_v5  ;;  %v4592_v5 = vld [vmem:[#allocation2 + $0x61] sm:$0xff]  ;;  %v4593_v61 = vld [vmem:[#allocation2 + $0x69] sm:$0xff] }
 0x343   :  { %8713 = vmatmul.mubr.bf16.gmra.mrb[28].mxu1 %v3648_v43 }
 0x344   :  { %8716 = vmatprep.mubr.bf16.mxu1 %v12159_v24 }
 0x347   :  { %8457 = vmatmul.mubr.bf16.gmra.mrb[96].mxu0 %v12131_v42  ;;  %v9767_v42 = vld [vmem:[%s15387_s4 + $0x1d0] sm:$0xff]  }
 0x348   :  { %8460 = vmatprep.mubr.bf16.mxu0 %v3640_v15  ;;  %v9768_v15 = vld [vmem:[%s15387_s4 + $0x1d8] sm:$0xff]  }
 0x34b   :  { %8717 = vmatmul.mubr.bf16.gmra.mrb[32].mxu1 %v12162_v55 }
 0x34c   :  { %8720 = vmatprep.mubr.bf16.mxu1 %v12165_v33 }
 0x34f   :  { %8461 = vmatmul.mubr.bf16.gmra.mrb[100].mxu0 %v12142_v4  ;;  %v4084_v4 = vld [vmem:[#allocation2 + $0xa8] sm:$0xff] }
 0x350   :  { %8464 = vmatprep.mubr.bf16.mxu0 %v3642_v34  ;;  %v12205_v8 = vpack.c.bf16 %v4085_v11, %v4084_v4  ;;  %v12211_v34 = vpack.c.bf16 %v4087_v14, %v4086_v50  ;;  %v4124_v11 = vld [vmem:[#allocation2 + $0x2b8] sm:$0xff]  ;;  %v4125_v50 = vld [vmem:[#allocation2 + $0x2c0] sm:$0xff]  ;;  %v4126_v14 = vld [vmem:[#allocation2 + $0x2d0] sm:$0xff] }
 0x353   :  { %8721 = vmatmul.mubr.bf16.gmra.mrb[36].mxu1 %v12169_v31 }
 0x354   :  { %8724 = vmatprep.mubr.bf16.mxu1 %v12172_v38 }
 0x357   :  { %8465 = vmatmul.mubr.bf16.gmra.mrb[104].mxu0 %v3643_v62  ;;  %v9771_v62 = vld [vmem:[%s15387_s4 + $0x1f0] sm:$0xff]  }
 0x358   :  { %8468 = vmatprep.mubr.bf16.mxu0 %v3644_v37  ;;  %v4145_v37 = vpack.c.bf16 %v4089_v45, %v4088_v49  ;;  %v4129_v49 = vld [vmem:[#allocation2 + $0x2f0] sm:$0xff]  ;;  %v4130_v45 = vld [vmem:[#allocation2 + $0x300] sm:$0xff] }
 0x35b   :  { %8725 = vmatmul.mubr.bf16.gmra.mrb[40].mxu1 %v3654_v22  ;;  %v4156_v22 = vpack.c.bf16 %v4111_v19, %v4110_v57  ;;  %v9778_v57 = vld [vmem:[%s15387_s4 + $0x228] sm:$0xff]  }
 0x35c   :  { %8744 = vmatprep.mubr.bf16.mxu1 %v12176_v1 }
 0x35f   :  { %8469 = vmatmul.mubr.bf16.gmra.mrb[108].mxu0 %v3645_v23  ;;  %v9772_v23 = vld [vmem:[%s15387_s4 + $0x1f8] sm:$0xff]  }
 0x360   :  { %8472 = vmatprep.mubr.bf16.mxu0 %v3646_v46  ;;  %v4092_v46 = vld [vmem:[#allocation2 + $0x108] sm:$0xff] }
 0x363   :  { %8745 = vmatmul.mubr.bf16.vlgmr.msra.gmra.mrb[44].mxu1 %v12179_v60 }
 0x364   :  { %8809 = vmatpush3.bf16.msra.mxu1 %v12091_v30  ;;  %8748 = vmatprep.mubr.bf16.mxu1 %v12184_v56  ;;  %v12198_v30 = vpack.c.bf16 %v4083_v6, %v4082_v52  ;;  %v4120_v6 = vld [vmem:[#allocation2 + $0x288] sm:$0xff] }
 0x365   :  { %8810 = vmatprep.subr.bf16.mxu1 %v9766_v59 }
 0x367   :  { %8473 = vmatmul.mubr.bf16.gmra.mrb[112].mxu0 %v12154_v12  ;;  %v4093_v12 = vld [vmem:[#allocation2 + $0x110] sm:$0xff] }
 0x368   :  { %8811 = vmatpush3.bf16.msra.mxu1 %v9766_v59  ;;  %8476 = vmatprep.mubr.bf16.mxu0 %v3648_v43  ;;  %v4147_v18 = vpack.c.bf16 %v4093_v12, %v4092_v46  ;;  %v4098_v43 = vld [vmem:[#allocation2 + $0x150] sm:$0xff]  ;;  %v4116_v59 = vld [vmem:[#allocation2 + $0x258] sm:$0xff]  ;;  %v4168_v12 = vpack.c.bf16 %v4135_v47, %v4134_v10  ;;  %v4619_v47 = vld [vmem:[#allocation2 + $0x1a1] sm:$0xff] }
 0x369   :  { %8812 = vmatprep.subr.bf16.mxu1 %v9767_v42  ;;  %v4618_v10 = vld [vmem:[#allocation2 + $0x199] sm:$0xff] }
 0x36b   :  { %8749 = vmatmul.mubr.bf16.gmra.mrb[48].mxu1 %v12192_v40 }
 0x36c   :  { %8752 = vmatprep.mubr.bf16.mxu1 %v12198_v30  ;;  %8813 = vmatpush3.bf16.msra.mxu1 %v9767_v42  ;;  %v4118_v42 = vld [vmem:[#allocation2 + $0x270] sm:$0xff] }
 0x36d   :  { %8814 = vmatprep.subr.bf16.mxu1 %v9768_v15  ;;  %v4160_v52 = vpack.c.bf16 %v4119_v17, %v4118_v42  ;;  %v4608_v42 = vld [vmem:[#allocation2 + $0x121] sm:$0xff]  ;;  %v4609_v17 = vld [vmem:[#allocation2 + $0x129] sm:$0xff] }
 0x36f   :  { %8477 = vmatmul.mubr.bf16.gmra.mrb[116].mxu0 %v12159_v24  ;;  %v4099_v24 = vld [vmem:[#allocation2 + $0x158] sm:$0xff] }
 0x370   :  { %8815 = vmatpush3.bf16.msra.mxu1 %v9768_v15  ;;  %8480 = vmatprep.mubr.bf16.mxu0 %v12162_v55  ;;  %v4150_v58 = vpack.c.bf16 %v4099_v24, %v4098_v43  ;;  %v4102_v55 = vld [vmem:[#allocation2 + $0x180] sm:$0xff]  ;;  %v9774_v24 = vld [vmem:[%s15387_s4 + $0x208] sm:$0xff]  }
 0x371   :  { %8816 = vmatprep.subr.bf16.mxu1 %v9769_v41  ;;  %v4122_v15 = vld [vmem:[#allocation2 + $0x2a0] sm:$0xff] }
 0x373   :  { %8753 = vmatmul.mubr.bf16.gmra.mrb[52].mxu1 %v12205_v8 }
 0x374   :  { %8756 = vmatprep.mubr.bf16.mxu1 %v12211_v34  ;;  %8817 = vmatpush3.bf16.msra.mxu1 %v9769_v41 }
 0x375   :  { %8818 = vmatprep.subr.bf16.mxu1 %v9770_v51 }
 0x377   :  { %8481 = vmatmul.mubr.bf16.gmra.mrb[120].mxu0 %v12165_v33  ;;  %v4103_v33 = vld [vmem:[#allocation2 + $0x188] sm:$0xff] }
 0x378   :  { %8819 = vmatpush3.bf16.msra.mxu1 %v9770_v51  ;;  %8484 = vmatprep.mubr.bf16.mxu0 %v12169_v31  ;;  %v4152_v25 = vpack.c.bf16 %v4103_v33, %v4102_v55  ;;  %v4154_v31 = vpack.c.bf16 %v4107_v28, %v4106_v26  ;;  %v4163_v51 = vpack.c.bf16 %v4125_v50, %v4124_v11  ;;  %v4597_v55 = vld [vmem:[#allocation2 + $0x99] sm:$0xff]  ;;  %v4598_v26 = vld [vmem:[#allocation2 + $0xa9] sm:$0xff]  ;;  %v4599_v28 = vld [vmem:[#allocation2 + $0xb1] sm:$0xff] }
 0x379   :  { %8820 = vmatprep.subr.bf16.mxu1 %v9771_v62  ;;  %v4613_v11 = vld [vmem:[#allocation2 + $0x159] sm:$0xff] }
 0x37b   :  { %8757 = vmatmul.mubr.bf16.gmra.mrb[56].mxu1 %v4145_v37 }
 0x37c   :  { %8760 = vmatprep.mubr.bf16.mxu1 %v12223_v27  ;;  %8821 = vmatpush3.bf16.msra.mxu1 %v9771_v62  ;;  %v4128_v62 = vld [vmem:[#allocation2 + $0x2e8] sm:$0xff] }
 0x37d   :  { %8822 = vmatprep.subr.bf16.mxu1 %v9772_v23  ;;  %v4165_v39 = vpack.c.bf16 %v4129_v49, %v4128_v62  ;;  %v4614_v62 = vld [vmem:[#allocation2 + $0x169] sm:$0xff]  ;;  %v4615_v49 = vld [vmem:[#allocation2 + $0x171] sm:$0xff] }
 0x37f   :  { %8485 = vmatmul.mubr.bf16.gmra.mrb[124].mxu0 %v12172_v38  ;;  %v4108_v38 = vld [vmem:[#allocation2 + $0x1f8] sm:$0xff] }
 0x380   :  { %8823 = vmatpush3.bf16.msra.mxu1 %v9772_v23  ;;  %8504 = vmatprep.mubr.bf16.mxu0 %v2595_v0  ;;  %v4155_v3 = vpack.c.bf16 %v4109_v36, %v4108_v38  ;;  %v4132_v23 = vld [vmem:[#allocation2 + $0x318] sm:$0xff]  ;;  %v4652_v0 = vpack.c.bf16 %v4589_v32, %v4588_v7  ;;  %v4601_v38 = vld [vmem:[#allocation2 + $0xc9] sm:$0xff]  ;;  %v4657_v36 = vpack.c.bf16 %v4599_v28, %v4598_v26 }
 0x381   :  { %8888 = vmatprep.subr.bf16.mxu1 %v12230_v16  ;;  %v4667_v32 = vpack.c.bf16 %v4619_v47, %v4618_v10  ;;  %v4627_v26 = vld [vmem:[#allocation2 + $0x231] sm:$0xff]  ;;  %v4641_v10 = vld [vmem:[#allocation2 + $0x2d9] sm:$0xff] }
 0x383   :  { %8761 = vmatmul.mubr.bf16.gmra.mrb[60].mxu1 %v4147_v18  ;;  %v4590_v18 = vld [vmem:[#allocation2 + $0x49] sm:$0xff] }
 0x384   :  { %8764 = vmatprep.mubr.bf16.mxu1 %v4148_v29  ;;  %v4591_v29 = vld [vmem:[#allocation2 + $0x51] sm:$0xff] }
 0x385   :  { %v4653_v43 = vpack.c.bf16 %v4591_v29, %v4590_v18  ;;  %v4621_v18 = vld [vmem:[#allocation2 + $0x1e9] sm:$0xff] }
 0x387   :  { %8505 = vmatmul.mubr.bf16.vlgmr.msra.gmra.mrb[64].mxu0 %v12176_v1  ;;  %v4112_v1 = vld [vmem:[#allocation2 + $0x228] sm:$0xff] }
 0x388   :  { %8508 = vmatprep.mubr.bf16.mxu0 %v12179_v60  ;;  %v4157_v63 = vpack.c.bf16 %v4113_v20, %v4112_v1  ;;  %v4158_v60 = vpack.c.bf16 %v4115_v2, %v4114_v44  ;;  %v4603_v1 = vld [vmem:[#allocation2 + $0xe1] sm:$0xff]  ;;  %v4604_v20 = vld [vmem:[#allocation2 + $0xf1] sm:$0xff]  ;;  %v4605_v44 = vld [vmem:[#allocation2 + $0xf9] sm:$0xff] }
 0x38b   :  { %8765 = vmatmul.mubr.bf16.gmra.mrb[0].mxu1 %v4149_v13  ;;  %v4654_v13 = vpack.c.bf16 %v4593_v61, %v4592_v5 }
 0x38c   :  { %8768 = vmatprep.mubr.bf16.mxu1 %v4150_v58  ;;  %v4594_v58 = vld [vmem:[#allocation2 + $0x79] sm:$0xff] }
 0x38d   :  { %v4655_v33 = vpack.c.bf16 %v4595_v53, %v4594_v58  ;;  %v4624_v58 = vld [vmem:[#allocation2 + $0x211] sm:$0xff]  ;;  %v4625_v53 = vld [vmem:[#allocation2 + $0x219] sm:$0xff] }
 0x38f   :  { %8509 = vmatmul.mubr.bf16.gmra.mrb[68].mxu0 %v12184_v56  ;;  %v4117_v56 = vld [vmem:[#allocation2 + $0x260] sm:$0xff] }
 0x390   :  { %8512 = vmatprep.mubr.bf16.mxu0 %v12192_v40  ;;  %v4159_v9 = vpack.c.bf16 %v4117_v56, %v4116_v59  ;;  %v4121_v40 = vld [vmem:[#allocation2 + $0x290] sm:$0xff] }
 0x391   :  { %v4161_v41 = vpack.c.bf16 %v4121_v40, %v4120_v6  ;;  %v4606_v59 = vld [vmem:[#allocation2 + $0x109] sm:$0xff]  ;;  %v4607_v56 = vld [vmem:[#allocation2 + $0x111] sm:$0xff] }
 0x393   :  { %8769 = vmatmul.mubr.bf16.gmra.mrb[4].mxu1 %v4151_v35  ;;  %v9776_v35 = vld [vmem:[%s15387_s4 + $0x218] sm:$0xff]  }
 0x394   :  { %8772 = vmatprep.mubr.bf16.mxu1 %v4152_v25  ;;  %v4656_v25 = vpack.c.bf16 %v4597_v55, %v4596_v48 }
 0x397   :  { %8513 = vmatmul.mubr.bf16.gmra.mrb[72].mxu0 %v12198_v30  ;;  %v4123_v30 = vld [vmem:[#allocation2 + $0x2a8] sm:$0xff] }
 0x398   :  { %8516 = vmatprep.mubr.bf16.mxu0 %v12205_v8  ;;  %v4162_v4 = vpack.c.bf16 %v4123_v30, %v4122_v15  ;;  %v4127_v8 = vld [vmem:[#allocation2 + $0x2d8] sm:$0xff]  ;;  %v4611_v30 = vld [vmem:[#allocation2 + $0x141] sm:$0xff] }
 0x399   :  { %v4610_v15 = vld [vmem:[#allocation2 + $0x139] sm:$0xff] }
 0x39b   :  { %8773 = vmatmul.mubr.bf16.gmra.mrb[8].mxu1 %v11983_v54 }
 0x39c   :  { %8776 = vmatprep.mubr.bf16.mxu1 %v4154_v31  ;;  %v4600_v31 = vld [vmem:[#allocation2 + $0xc1] sm:$0xff] }
 0x39d   :  { %v4658_v19 = vpack.c.bf16 %v4601_v38, %v4600_v31  ;;  %v4628_v31 = vld [vmem:[#allocation2 + $0x241] sm:$0xff]  ;;  %v4629_v38 = vld [vmem:[#allocation2 + $0x249] sm:$0xff] }
 0x39f   :  { %8517 = vmatmul.mubr.bf16.gmra.mrb[76].mxu0 %v12211_v34  ;;  %v4164_v34 = vpack.c.bf16 %v4127_v8, %v4126_v14  ;;  %v4663_v14 = vpack.c.bf16 %v4611_v30, %v4610_v15  ;;  %v4636_v30 = vld [vmem:[#allocation2 + $0x2a1] sm:$0xff] }
 0x3a0   :  { %8520 = vmatprep.mubr.bf16.mxu0 %v4145_v37  ;;  %v4166_v37 = vpack.c.bf16 %v4131_v21, %v4130_v45  ;;  %v4616_v21 = vld [vmem:[#allocation2 + $0x181] sm:$0xff] }
 0x3a3   :  { %8777 = vmatmul.mubr.bf16.gmra.mrb[12].mxu1 %v4155_v3  ;;  %v9779_v3 = vld [vmem:[%s15387_s4 + $0x230] sm:$0xff]  }
 0x3a4   :  { %8780 = vmatprep.mubr.bf16.mxu1 %v4156_v22  ;;  %v4602_v22 = vld [vmem:[#allocation2 + $0xd9] sm:$0xff] }
 0x3a5   :  { %v4659_v2 = vpack.c.bf16 %v4603_v1, %v4602_v22  ;;  %v4630_v1 = vld [vmem:[#allocation2 + $0x259] sm:$0xff] }
 0x3a7   :  { %8521 = vmatmul.mubr.bf16.gmra.mrb[80].mxu0 %v12223_v27  ;;  %v4133_v27 = vld [vmem:[#allocation2 + $0x320] sm:$0xff] }
 0x3a8   :  { %v4167_v46 = vpack.c.bf16 %v4133_v27, %v4132_v23  ;;  %v4665_v23 = vpack.c.bf16 %v4615_v49, %v4614_v62 }
 0x3ab   :  { %8781 = vmatmul.mubr.bf16.gmra.mrb[16].mxu1 %v4157_v63  ;;  %v9780_v63 = vld [vmem:[%s15387_s4 + $0x238] sm:$0xff]  }
 0x3ac   :  { %8784 = vmatprep.mubr.bf16.mxu1 %v4158_v60  ;;  %v4660_v60 = vpack.c.bf16 %v4605_v44, %v4604_v20  ;;  %v4631_v20 = vld [vmem:[#allocation2 + $0x261] sm:$0xff] }
 0x3b3   :  { %8785 = vmatmul.mubr.bf16.gmra.mrb[20].mxu1 %v4159_v9  ;;  %v4661_v9 = vpack.c.bf16 %v4607_v56, %v4606_v59  ;;  %v4673_v59 = vpack.c.bf16 %v4631_v20, %v4630_v1  ;;  %v4648_v20 = vld [vmem:[#allocation2 + $0x331] sm:$0xff] }
 0x3b4   :  { %8788 = vmatprep.mubr.bf16.mxu1 %v4160_v52  ;;  %v4662_v52 = vpack.c.bf16 %v4609_v17, %v4608_v42 }
 0x3bb   :  { %8789 = vmatmul.mubr.bf16.gmra.mrb[24].mxu1 %v4161_v41 }
 0x3bc   :  { %8792 = vmatprep.mubr.bf16.mxu1 %v4162_v4  ;;  %v4612_v4 = vld [vmem:[#allocation2 + $0x151] sm:$0xff] }
 0x3bd   :  { %v4664_v8 = vpack.c.bf16 %v4613_v11, %v4612_v4  ;;  %v4637_v4 = vld [vmem:[#allocation2 + $0x2a9] sm:$0xff] }
 0x3c3   :  { %8793 = vmatmul.mubr.bf16.gmra.mrb[28].mxu1 %v4163_v51 }
 0x3c4   :  { %8796 = vmatprep.mubr.bf16.mxu1 %v4164_v34 }
 0x3cb   :  { %8797 = vmatmul.mubr.bf16.gmra.mrb[32].mxu1 %v4165_v39  ;;  %v4617_v39 = vld [vmem:[#allocation2 + $0x189] sm:$0xff] }
 0x3cc   :  { %8800 = vmatprep.mubr.bf16.mxu1 %v4166_v37  ;;  %v4666_v27 = vpack.c.bf16 %v4617_v39, %v4616_v21  ;;  %v4638_v21 = vld [vmem:[#allocation2 + $0x2b9] sm:$0xff]  ;;  %v4639_v39 = vld [vmem:[#allocation2 + $0x2c1] sm:$0xff] }
 0x3d3   :  { %8801 = vmatmul.mubr.bf16.gmra.mrb[36].mxu1 %v4167_v46 }
 0x3d4   :  { %8804 = vmatprep.mubr.bf16.mxu1 %v4168_v12 }
 0x3db   :  { %8805 = vmatmul.mubr.bf16.gmra.mrb[40].mxu1 %v11983_v54  ;;  %v9775_v54 = vld [vmem:[%s15387_s4 + $0x210] sm:$0xff]  }
 0x3dc   :  { %8824 = vmatprep.mubr.bf16.mxu1 %v4652_v0  ;;  %v4620_v0 = vld [vmem:[#allocation2 + $0x1e1] sm:$0xff] }
 0x3dd   :  { %v4668_v5 = vpack.c.bf16 %v4621_v18, %v4620_v0 }
 0x3e3   :  { %8825 = vmatmul.mubr.bf16.vlgmr.msra.gmra.mrb[44].mxu1 %v4653_v43 }
 0x3e4   :  { %8889 = vmatpush3.bf16.msra.mxu1 %v12230_v16  ;;  %8828 = vmatprep.mubr.bf16.mxu1 %v4654_v13  ;;  %v9777_v16 = vld [vmem:[%s15387_s4 + $0x220] sm:$0xff]  }
 0x3e5   :  { %8890 = vmatprep.subr.bf16.mxu1 %v9774_v24  ;;  %v4623_v13 = vld [vmem:[#allocation2 + $0x201] sm:$0xff] }
 0x3e8   :  { %8891 = vmatpush3.bf16.msra.mxu1 %v9774_v24  ;;  %v4622_v24 = vld [vmem:[#allocation2 + $0x1f9] sm:$0xff] }
 0x3e9   :  { %8892 = vmatprep.subr.bf16.mxu1 %v9775_v54  ;;  %v4669_v55 = vpack.c.bf16 %v4623_v13, %v4622_v24  ;;  %v4642_v24 = vld [vmem:[#allocation2 + $0x2e9] sm:$0xff]  ;;  %v4643_v13 = vld [vmem:[#allocation2 + $0x2f1] sm:$0xff] }
 0x3eb   :  { %8829 = vmatmul.mubr.bf16.gmra.mrb[48].mxu1 %v4655_v33  ;;  %v4670_v33 = vpack.c.bf16 %v4625_v53, %v4624_v58  ;;  %v4644_v53 = vld [vmem:[#allocation2 + $0x301] sm:$0xff] }
 0x3ec   :  { %8832 = vmatprep.mubr.bf16.mxu1 %v4656_v25  ;;  %8893 = vmatpush3.bf16.msra.mxu1 %v9775_v54 }
 0x3ed   :  { %8894 = vmatprep.subr.bf16.mxu1 %v9776_v35 }
 0x3f0   :  { %8895 = vmatpush3.bf16.msra.mxu1 %v9776_v35 }
 0x3f1   :  { %8896 = vmatprep.subr.bf16.mxu1 %v9777_v16 }
 0x3f3   :  { %8833 = vmatmul.mubr.bf16.gmra.mrb[52].mxu1 %v4657_v36 }
 0x3f4   :  { %8836 = vmatprep.mubr.bf16.mxu1 %v4658_v19  ;;  %8897 = vmatpush3.bf16.msra.mxu1 %v9777_v16  ;;  %v4626_v16 = vld [vmem:[#allocation2 + $0x229] sm:$0xff]  ;;  %v4672_v19 = vpack.c.bf16 %v4629_v38, %v4628_v31 }
 0x3f5   :  { %8898 = vmatprep.subr.bf16.mxu1 %v9778_v57 }
 0x3f8   :  { %8899 = vmatpush3.bf16.msra.mxu1 %v9778_v57  ;;  %v4671_v57 = vpack.c.bf16 %v4627_v26, %v4626_v16  ;;  %v4679_v16 = vpack.c.bf16 %v4643_v13, %v4642_v24  ;;  %v5104_v24 = vld [vmem:[#allocation2 + $0x4a] sm:$0xff]  ;;  %v5105_v13 = vld [vmem:[#allocation2 + $0x52] sm:$0xff] }
 0x3f9   :  { %8900 = vmatprep.subr.bf16.mxu1 %v9779_v3 }
 0x3fb   :  { %8837 = vmatmul.mubr.bf16.gmra.mrb[56].mxu1 %v4659_v2  ;;  %v4632_v2 = vld [vmem:[#allocation2 + $0x271] sm:$0xff] }
 0x3fc   :  { %8840 = vmatprep.mubr.bf16.mxu1 %v4660_v60  ;;  %8901 = vmatpush3.bf16.msra.mxu1 %v9779_v3 }
 0x3fd   :  { %8902 = vmatprep.subr.bf16.mxu1 %v9780_v63 }
 0x400   :  { %8903 = vmatpush3.bf16.msra.mxu1 %v9780_v63  ;;  %v4633_v63 = vld [vmem:[#allocation2 + $0x279] sm:$0xff] }
 0x401   :  { %v4674_v56 = vpack.c.bf16 %v4633_v63, %v4632_v2  ;;  %v4649_v2 = vld [vmem:[#allocation2 + $0x339] sm:$0xff] }
 0x402   :  { %v12266_v6 = vpop.f32.mrb[84].mxu0 }
 0x403   :  { %8841 = vmatmul.mubr.bf16.gmra.mrb[60].mxu1 %v4661_v9  ;;  %v12268_v40 = vpop.f32.mrb[85].mxu0  ;;  %v4634_v9 = vld [vmem:[#allocation2 + $0x289] sm:$0xff] }
 0x404   :  { %8844 = vmatprep.mubr.bf16.mxu1 %v4662_v52  ;;  %v12270_v41 = vpop.f32.mrb[86].mxu0  ;;  %v4635_v52 = vld [vmem:[#allocation2 + $0x291] sm:$0xff] }
 0x405   :  { %v12272_v50 = vpop.f32.mrb[87].mxu0 }
 0x40a   :  { %v12274_v51 = vpop.f32.mrb[88].mxu0 }
 0x40b   :  { %8845 = vmatmul.mubr.bf16.gmra.mrb[0].mxu1 %v4663_v14  ;;  %v12276_v34 = vpop.f32.mrb[89].mxu0  ;;  %v4675_v14 = vpack.c.bf16 %v4635_v52, %v4634_v9  ;;  %v4650_v9 = vld [vmem:[#allocation2 + $0x349] sm:$0xff]  ;;  %v4651_v52 = vld [vmem:[#allocation2 + $0x351] sm:$0xff] }
 0x40c   :  { %8848 = vmatprep.mubr.bf16.mxu1 %v4664_v8  ;;  %v12278_v45 = vpop.f32.mrb[90].mxu0  ;;  %v4676_v8 = vpack.c.bf16 %v4637_v4, %v4636_v30 }
 0x40d   :  { %v12280_v37 = vpop.f32.mrb[91].mxu0 }
 0x412   :  { %v12282_v46 = vpop.f32.mrb[92].mxu0 }
 0x413   :  { %8849 = vmatmul.mubr.bf16.gmra.mrb[4].mxu1 %v4665_v23  ;;  %v12284_v12 = vpop.f32.mrb[93].mxu0 }
 0x414   :  { %8852 = vmatprep.mubr.bf16.mxu1 %v4666_v27  ;;  %v12286_v7 = vpop.f32.mrb[94].mxu0  ;;  %v4640_v27 = vld [vmem:[#allocation2 + $0x2d1] sm:$0xff] }
 0x415   :  { %v12288_v29 = vpop.f32.mrb[95].mxu0  ;;  %v4678_v0 = vpack.c.bf16 %v4641_v10, %v4640_v27 }
 0x41a   :  { %v12290_v61 = vpop.f32.mrb[96].mxu0 }
 0x41b   :  { %8853 = vmatmul.mubr.bf16.gmra.mrb[8].mxu1 %v4667_v32  ;;  %v12292_v43 = vpop.f32.mrb[97].mxu0  ;;  %v4677_v32 = vpack.c.bf16 %v4639_v39, %v4638_v21  ;;  %v5102_v21 = vld [vmem:[#allocation2 + $0x32] sm:$0xff]  ;;  %v5103_v39 = vld [vmem:[#allocation2 + $0x3a] sm:$0xff] }
 0x41c   :  { %8856 = vmatprep.mubr.bf16.mxu1 %v4668_v5  ;;  %v12294_v54 = vpop.f32.mrb[98].mxu0  ;;  %v5166_v10 = vpack.c.bf16 %v5103_v39, %v5102_v21 }
 0x41d   :  { %v12296_v48 = vpop.f32.mrb[99].mxu0 }
 0x422   :  { %v12298_v35 = vpop.f32.mrb[100].mxu0 }
 0x423   :  { %8857 = vmatmul.mubr.bf16.gmra.mrb[12].mxu1 %v4669_v55  ;;  %v12300_v25 = vpop.f32.mrb[101].mxu0  ;;  %v4645_v55 = vld [vmem:[#allocation2 + $0x309] sm:$0xff] }
 0x424   :  { %8860 = vmatprep.mubr.bf16.mxu1 %v4670_v33  ;;  %v12302_v28 = vpop.f32.mrb[102].mxu0  ;;  %v4680_v26 = vpack.c.bf16 %v4645_v55, %v4644_v53  ;;  %v5106_v55 = vld [vmem:[#allocation2 + $0x62] sm:$0xff] }
 0x425   :  { %v12304_v36 = vpop.f32.mrb[103].mxu0 }
 0x42a   :  { %v12306_v3 = vpop.f32.mrb[104].mxu0 }
 0x42b   :  { %8861 = vmatmul.mubr.bf16.gmra.mrb[16].mxu1 %v4671_v57  ;;  %v12308_v22 = vpop.f32.mrb[105].mxu0  ;;  %v4646_v57 = vld [vmem:[#allocation2 + $0x319] sm:$0xff] }
 0x42c   :  { %8864 = vmatprep.mubr.bf16.mxu1 %v4672_v19  ;;  %v12310_v44 = vpop.f32.mrb[106].mxu0  ;;  %v4647_v19 = vld [vmem:[#allocation2 + $0x321] sm:$0xff] }
 0x42d   :  { %v12312_v60 = vpop.f32.mrb[107].mxu0 }
 0x432   :  { %v12314_v42 = vpop.f32.mrb[108].mxu0 }
 0x433   :  { %8865 = vmatmul.mubr.bf16.gmra.mrb[20].mxu1 %v4673_v59  ;;  %v12316_v17 = vpop.f32.mrb[109].mxu0  ;;  %v4681_v59 = vpack.c.bf16 %v4647_v19, %v4646_v57  ;;  %v5167_v57 = vpack.c.bf16 %v5105_v13, %v5104_v24 }
 0x434   :  { %8868 = vmatprep.mubr.bf16.mxu1 %v4674_v56  ;;  %v12318_v15 = vpop.f32.mrb[110].mxu0  ;;  %v4682_v56 = vpack.c.bf16 %v4649_v2, %v4648_v20 }
 0x435   :  { %15865 = vst [vmem:[#allocation23_spill] sm:$0xff] %v12318_v15  ;;  %v12320_v11 = vpop.f32.mrb[111].mxu0 }
 0x436   :  { %15866 = vst [vmem:[#allocation25_spill] sm:$0xff] %v12320_v11 }
 0x43a   :  { %v12322_v62 = vpop.f32.mrb[112].mxu0 }
 0x43b   :  { %8869 = vmatmul.mubr.bf16.gmra.mrb[24].mxu1 %v4675_v14  ;;  %15867 = vst [vmem:[#allocation28_spill] sm:$0xff] %v12322_v62  ;;  %v12324_v49 = vpop.f32.mrb[113].mxu0  ;;  %v5131_v62 = vld [vmem:[#allocation2 + $0x18a] sm:$0xff] }
 0x43c   :  { %8872 = vmatprep.mubr.bf16.mxu1 %v4676_v8  ;;  %15868 = vst [vmem:[#allocation27_spill] sm:$0xff] %v12324_v49  ;;  %v12326_v23 = vpop.f32.mrb[114].mxu0  ;;  %v4683_v8 = vpack.c.bf16 %v4651_v52, %v4650_v9  ;;  %v5110_v52 = vld [vmem:[#allocation2 + $0x92] sm:$0xff]  ;;  %v5130_v49 = vld [vmem:[#allocation2 + $0x182] sm:$0xff] }
 0x43d   :  { %15869 = vst [vmem:[#allocation6_spill] sm:$0xff] %v12326_v23  ;;  %v12328_v47 = vpop.f32.mrb[115].mxu0  ;;  %v5129_v23 = vld [vmem:[#allocation2 + $0x172] sm:$0xff]  ;;  %v5180_v15 = vpack.c.bf16 %v5131_v62, %v5130_v49 }
 0x43e   :  { %15870 = vst [vmem:[#allocation8_spill] sm:$0xff] %v12328_v47  ;;  %v5128_v47 = vld [vmem:[#allocation2 + $0x16a] sm:$0xff]  ;;  %v5141_v62 = vld [vmem:[#allocation2 + $0x232] sm:$0xff] }
 0x43f   :  { %v5179_v11 = vpack.c.bf16 %v5129_v23, %v5128_v47  ;;  %v5140_v23 = vld [vmem:[#allocation2 + $0x22a] sm:$0xff] }
 0x440   :  { %v5185_v49 = vpack.c.bf16 %v5141_v62, %v5140_v23  ;;  %v5152_v23 = vld [vmem:[#allocation2 + $0x2ba] sm:$0xff]  ;;  %v5153_v62 = vld [vmem:[#allocation2 + $0x2c2] sm:$0xff] }
 0x442   :  { %v12330_v18 = vpop.f32.mrb[116].mxu0 }
 0x443   :  { %8873 = vmatmul.mubr.bf16.gmra.mrb[28].mxu1 %v4677_v32  ;;  %15871 = vst [vmem:[#allocation11_spill] sm:$0xff] %v12330_v18  ;;  %v12332_v5 = vpop.f32.mrb[117].mxu0 }
 0x444   :  { %8876 = vmatprep.mubr.bf16.mxu1 %v4678_v0  ;;  %15872 = vst [vmem:[#allocation13_spill] sm:$0xff] %v12332_v5  ;;  %v12334_v58 = vpop.f32.mrb[118].mxu0 }
 0x445   :  { %15873 = vst [vmem:[#allocation14_spill] sm:$0xff] %v12334_v58  ;;  %v12336_v33 = vpop.f32.mrb[119].mxu0 }
 0x446   :  { %15874 = vst [vmem:[#allocation10_spill] sm:$0xff] %v12336_v33  ;;  %v5123_v33 = vld [vmem:[#allocation2 + $0x12a] sm:$0xff] }
 0x44a   :  { %v12338_v31 = vpop.f32.mrb[120].mxu0 }
 0x44b   :  { %8877 = vmatmul.mubr.bf16.gmra.mrb[32].mxu1 %v4679_v16  ;;  %15875 = vst [vmem:[#allocation12_spill] sm:$0xff] %v12338_v31  ;;  %v12340_v38 = vpop.f32.mrb[121].mxu0  ;;  %v5107_v16 = vld [vmem:[#allocation2 + $0x6a] sm:$0xff] }
 0x44c   :  { %8880 = vmatprep.mubr.bf16.mxu1 %v4680_v26  ;;  %15876 = vst [vmem:[#allocation16_spill] sm:$0xff] %v12340_v38  ;;  %v12342_v1 = vpop.f32.mrb[122].mxu0  ;;  %v5168_v19 = vpack.c.bf16 %v5107_v16, %v5106_v55  ;;  %v5112_v55 = vld [vmem:[#allocation2 + $0xaa] sm:$0xff]  ;;  %v5113_v16 = vld [vmem:[#allocation2 + $0xb2] sm:$0xff] }
 0x44d   :  { %15877 = vst [vmem:[#allocation18_spill] sm:$0xff] %v12342_v1  ;;  %v12344_v63 = vpop.f32.mrb[123].mxu0 }
 0x44e   :  { %15878 = vst [vmem:[#allocation15_spill] sm:$0xff] %v12344_v63  ;;  %v5119_v63 = vld [vmem:[#allocation2 + $0xfa] sm:$0xff] }
 0x452   :  { %v12346_v30 = vpop.f32.mrb[124].mxu0 }
 0x453   :  { %8881 = vmatmul.mubr.bf16.gmra.mrb[36].mxu1 %v4681_v59  ;;  %15879 = vst [vmem:[#allocation17_spill] sm:$0xff] %v12346_v30  ;;  %v12348_v4 = vpop.f32.mrb[125].mxu0  ;;  %v5108_v59 = vld [vmem:[#allocation2 + $0x7a] sm:$0xff] }
 0x454   :  { %8884 = vmatprep.mubr.bf16.mxu1 %v4682_v56  ;;  %15880 = vst [vmem:[#allocation20_spill] sm:$0xff] %v12348_v4  ;;  %v12350_v14 = vpop.f32.mrb[126].mxu0  ;;  %v5109_v56 = vld [vmem:[#allocation2 + $0x82] sm:$0xff]  ;;  %v5171_v4 = vpack.c.bf16 %v5113_v16, %v5112_v55 }
 0x455   :  { %15881 = vst [vmem:[#allocation22_spill] sm:$0xff] %v12350_v14  ;;  %v12352_v27 = vpop.f32.mrb[127].mxu0  ;;  %v5169_v39 = vpack.c.bf16 %v5109_v56, %v5108_v59 }
 0x456   :  { %15882 = vst [vmem:[#allocation19_spill] sm:$0xff] %v12352_v27  ;;  %v5115_v27 = vld [vmem:[#allocation2 + $0xca] sm:$0xff] }
 0x45a   :  { %v12354_v32 = vpop.f32.mrb[64].mxu0 }
 0x45b   :  { %8885 = vmatmul.mubr.bf16.gmra.mrb[40].mxu1 %v4683_v8  ;;  %v12356_v0 = vpop.f32.mrb[65].mxu0  ;;  %v5111_v8 = vld [vmem:[#allocation2 + $0x9a] sm:$0xff] }
 0x45c   :  { %8904 = vmatprep.mubr.bf16.mxu1 %v5166_v10  ;;  %v12358_v53 = vpop.f32.mrb[66].mxu0  ;;  %v5170_v10 = vpack.c.bf16 %v5111_v8, %v5110_v52  ;;  %v5116_v52 = vld [vmem:[#allocation2 + $0xda] sm:$0xff]  ;;  %v5117_v8 = vld [vmem:[#allocation2 + $0xe2] sm:$0xff] }
 0x45d   :  { %v12360_v26 = vpop.f32.mrb[67].mxu0  ;;  %v5173_v38 = vpack.c.bf16 %v5117_v8, %v5116_v52  ;;  %v5124_v52 = vld [vmem:[#allocation2 + $0x13a] sm:$0xff] }
 0x462   :  { %v12362_v20 = vpop.f32.mrb[68].mxu0 }
 0x463   :  { %8905 = vmatmul.mubr.bf16.vlgmr.msra.gmra.mrb[44].mxu1 %v5167_v57  ;;  %v12364_v2 = vpop.f32.mrb[69].mxu0 }
 0x464   :  { %8908 = vmatprep.mubr.bf16.mxu1 %v5168_v19  ;;  %v12366_v9 = vpop.f32.mrb[70].mxu0  ;;  %v5114_v19 = vld [vmem:[#allocation2 + $0xc2] sm:$0xff] }
 0x465   :  { %v12368_v21 = vpop.f32.mrb[71].mxu0  ;;  %v5172_v30 = vpack.c.bf16 %v5115_v27, %v5114_v19  ;;  %v5121_v27 = vld [vmem:[#allocation2 + $0x112] sm:$0xff]  ;;  %v5122_v19 = vld [vmem:[#allocation2 + $0x122] sm:$0xff] }
 0x466   :  { %v5176_v18 = vpack.c.bf16 %v5123_v33, %v5122_v19  ;;  %v5133_v33 = vld [vmem:[#allocation2 + $0x1a2] sm:$0xff] }
 0x46a   :  { %v12370_v24 = vpop.f32.mrb[72].mxu0 }
 0x46b   :  { %8909 = vmatmul.mubr.bf16.gmra.mrb[48].mxu1 %v5169_v39  ;;  %v12372_v13 = vpop.f32.mrb[73].mxu0 }
 0x46c   :  { %8912 = vmatprep.mubr.bf16.mxu1 %v5170_v10  ;;  %v12374_v57 = vpop.f32.mrb[74].mxu0  ;;  %v5118_v10 = vld [vmem:[#allocation2 + $0xf2] sm:$0xff] }
 0x46d   :  { %v12376_v14 = vpop.f32.mrb[75].mxu0  ;;  %v5174_v31 = vpack.c.bf16 %v5119_v63, %v5118_v10  ;;  %v5125_v63 = vld [vmem:[#allocation2 + $0x142] sm:$0xff] }
 0x46e   :  { %v5177_v8 = vpack.c.bf16 %v5125_v63, %v5124_v52  ;;  %v5136_v52 = vld [vmem:[#allocation2 + $0x1fa] sm:$0xff]  ;;  %v5137_v63 = vld [vmem:[#allocation2 + $0x202] sm:$0xff] }
 0x472   :  { %v12378_v59 = vpop.f32.mrb[76].mxu0 }
 0x473   :  { %8913 = vmatmul.mubr.bf16.gmra.mrb[52].mxu1 %v5171_v4  ;;  %v12380_v56 = vpop.f32.mrb[77].mxu0 }
 0x474   :  { %8916 = vmatprep.mubr.bf16.mxu1 %v5172_v30  ;;  %v12382_v39 = vpop.f32.mrb[78].mxu0  ;;  %v5120_v30 = vld [vmem:[#allocation2 + $0x10a] sm:$0xff] }
 0x475   :  { %v12384_v1 = vpop.f32.mrb[79].mxu0  ;;  %v5175_v5 = vpack.c.bf16 %v5121_v27, %v5120_v30  ;;  %v5132_v30 = vld [vmem:[#allocation2 + $0x19a] sm:$0xff]  ;;  %v5135_v27 = vld [vmem:[#allocation2 + $0x1ea] sm:$0xff] }
 0x47a   :  { %v12386_v55 = vpop.f32.mrb[80].mxu0 }
 0x47b   :  { %8917 = vmatmul.mubr.bf16.gmra.mrb[56].mxu1 %v5173_v38  ;;  %v12388_v4 = vpop.f32.mrb[81].mxu0  ;;  %v5126_v38 = vld [vmem:[#allocation2 + $0x152] sm:$0xff] }
 0x47c   :  { %8920 = vmatprep.mubr.bf16.mxu1 %v5174_v31  ;;  %v12390_v16 = vpop.f32.mrb[82].mxu0  ;;  %v5127_v31 = vld [vmem:[#allocation2 + $0x15a] sm:$0xff] }
 0x47d   :  { %v12392_v58 = vpop.f32.mrb[83].mxu0  ;;  %v5178_v10 = vpack.c.bf16 %v5127_v31, %v5126_v38  ;;  %v5138_v38 = vld [vmem:[#allocation2 + $0x212] sm:$0xff]  ;;  %v5139_v31 = vld [vmem:[#allocation2 + $0x21a] sm:$0xff] }
 0x483   :  { %8921 = vmatmul.mubr.bf16.gmra.mrb[60].mxu1 %v5175_v5  ;;  %v5181_v5 = vpack.c.bf16 %v5133_v33, %v5132_v30  ;;  %v5144_v30 = vld [vmem:[#allocation2 + $0x25a] sm:$0xff]  ;;  %v5145_v33 = vld [vmem:[#allocation2 + $0x262] sm:$0xff] }
 0x484   :  { %8924 = vmatprep.mubr.bf16.mxu1 %v5176_v18  ;;  %v5134_v18 = vld [vmem:[#allocation2 + $0x1e2] sm:$0xff] }
 0x485   :  { %v5182_v19 = vpack.c.bf16 %v5135_v27, %v5134_v18  ;;  %v5147_v18 = vld [vmem:[#allocation2 + $0x27a] sm:$0xff]  ;;  %v5187_v27 = vpack.c.bf16 %v5145_v33, %v5144_v30  ;;  %v5156_v30 = vld [vmem:[#allocation2 + $0x2ea] sm:$0xff]  ;;  %v5157_v33 = vld [vmem:[#allocation2 + $0x2f2] sm:$0xff] }
 0x48b   :  { %8925 = vmatmul.mubr.bf16.gmra.mrb[0].mxu1 %v5177_v8  ;;  %v5183_v8 = vpack.c.bf16 %v5137_v63, %v5136_v52  ;;  %v5148_v52 = vld [vmem:[#allocation2 + $0x28a] sm:$0xff]  ;;  %v5149_v63 = vld [vmem:[#allocation2 + $0x292] sm:$0xff] }
 0x48c   :  { %8928 = vmatprep.mubr.bf16.mxu1 %v5178_v10  ;;  %v5184_v10 = vpack.c.bf16 %v5139_v31, %v5138_v38  ;;  %v5150_v38 = vld [vmem:[#allocation2 + $0x2a2] sm:$0xff]  ;;  %v5151_v31 = vld [vmem:[#allocation2 + $0x2aa] sm:$0xff] }
 0x493   :  { %8929 = vmatmul.mubr.bf16.gmra.mrb[4].mxu1 %v5179_v11  ;;  %v5142_v11 = vld [vmem:[#allocation2 + $0x242] sm:$0xff] }
 0x494   :  { %8932 = vmatprep.mubr.bf16.mxu1 %v5180_v15  ;;  %v5143_v15 = vld [vmem:[#allocation2 + $0x24a] sm:$0xff] }
 0x495   :  { %v5186_v47 = vpack.c.bf16 %v5143_v15, %v5142_v11  ;;  %v5154_v11 = vld [vmem:[#allocation2 + $0x2d2] sm:$0xff]  ;;  %v5155_v15 = vld [vmem:[#allocation2 + $0x2da] sm:$0xff] }
 0x49b   :  { %8933 = vmatmul.mubr.bf16.gmra.mrb[8].mxu1 %v5181_v5  ;;  %v5146_v5 = vld [vmem:[#allocation2 + $0x272] sm:$0xff] }
 0x49c   :  { %8936 = vmatprep.mubr.bf16.mxu1 %v5182_v19  ;;  %v5188_v19 = vpack.c.bf16 %v5147_v18, %v5146_v5  ;;  %v5158_v5 = vld [vmem:[#allocation2 + $0x302] sm:$0xff]  ;;  %v5159_v18 = vld [vmem:[#allocation2 + $0x30a] sm:$0xff] }
 0x4a3   :  { %8937 = vmatmul.mubr.bf16.gmra.mrb[12].mxu1 %v5183_v8  ;;  %v5189_v8 = vpack.c.bf16 %v5149_v63, %v5148_v52  ;;  %v5160_v52 = vld [vmem:[#allocation2 + $0x31a] sm:$0xff]  ;;  %v5161_v63 = vld [vmem:[#allocation2 + $0x322] sm:$0xff] }
 0x4a4   :  { %8940 = vmatprep.mubr.bf16.mxu1 %v5184_v10  ;;  %v5190_v10 = vpack.c.bf16 %v5151_v31, %v5150_v38  ;;  %v5162_v38 = vld [vmem:[#allocation2 + $0x332] sm:$0xff]  ;;  %v5163_v31 = vld [vmem:[#allocation2 + $0x33a] sm:$0xff] }
 0x4ab   :  { %8941 = vmatmul.mubr.bf16.gmra.mrb[16].mxu1 %v5185_v49  ;;  %v5191_v49 = vpack.c.bf16 %v5153_v62, %v5152_v23  ;;  %v5164_v23 = vld [vmem:[#allocation2 + $0x34a] sm:$0xff]  ;;  %v5165_v62 = vld [vmem:[#allocation2 + $0x352] sm:$0xff] }
 0x4ac   :  { %8944 = vmatprep.mubr.bf16.mxu1 %v5186_v47  ;;  %v5192_v47 = vpack.c.bf16 %v5155_v15, %v5154_v11  ;;  %v5197_v11 = vpack.c.bf16 %v5165_v62, %v5164_v23 }
 0x4b3   :  { %8945 = vmatmul.mubr.bf16.gmra.mrb[20].mxu1 %v5187_v27  ;;  %v5193_v27 = vpack.c.bf16 %v5157_v33, %v5156_v30 }
 0x4b4   :  { %8948 = vmatprep.mubr.bf16.mxu1 %v5188_v19  ;;  %v5194_v19 = vpack.c.bf16 %v5159_v18, %v5158_v5 }
 0x4bb   :  { %8949 = vmatmul.mubr.bf16.gmra.mrb[24].mxu1 %v5189_v8  ;;  %v5195_v8 = vpack.c.bf16 %v5161_v63, %v5160_v52 }
 0x4bc   :  { %8952 = vmatprep.mubr.bf16.mxu1 %v5190_v10  ;;  %v5196_v10 = vpack.c.bf16 %v5163_v31, %v5162_v38 }
 0x4c3   :  { %8953 = vmatmul.mubr.bf16.gmra.mrb[28].mxu1 %v5191_v49 }
 0x4c4   :  { %8956 = vmatprep.mubr.bf16.mxu1 %v5192_v47 }
 0x4cb   :  { %8957 = vmatmul.mubr.bf16.gmra.mrb[32].mxu1 %v5193_v27 }
 0x4cc   :  { %8960 = vmatprep.mubr.bf16.mxu1 %v5194_v19 }
 0x4d3   :  { %8961 = vmatmul.mubr.bf16.gmra.mrb[36].mxu1 %v5195_v8 }
 0x4d4   :  { %8964 = vmatprep.mubr.bf16.mxu1 %v5196_v10 }
 0x4db   :  { %8965 = vmatmul.mubr.bf16.gmra.mrb[40].mxu1 %v5197_v11 }
 0x536   :  { %v8906_v15 = vpop.f32.mrb[44].mxu1 }
 0x537   :  { %v12395_v49 = vadd.f32 %v8906_v15, %v12354_v32  ;;  %v5297_v47 = vpop.f32.mrb[45].mxu1 }
 0x538   :  { %v12398_v30 = vadd.f32 %v5297_v47, %v12356_v0  ;;  %v8907_v33 = vpop.f32.mrb[46].mxu1 }
 0x539   :  { %v12401_v5 = vadd.f32 %v8907_v33, %v12358_v53  ;;  %v5300_v18 = vpop.f32.mrb[47].mxu1  ;;  %v5689_v0 = vmul.f32 %v12395_v49, %v12395_v49 }
 0x53a   :  { %v12404_v27 = vadd.f32 %v5300_v18, %v12360_v26  ;;  %v5687_v19 = vmul.f32 %v12398_v30, %v12398_v30 }
 0x53b   :  { %v5690_v8 = vmul.f32 %v12401_v5, %v12401_v5 }
 0x53c   :  { %v5618_v52 = vadd.f32 %v12404_v27, %v12398_v30  ;;  %v5688_v32 = vmul.f32 %v12404_v27, %v12404_v27 }
 0x53e   :  { %v5619_v63 = vadd.f32 %v12395_v49, %v5618_v52  ;;  %v5751_v53 = vadd.f32 %v5688_v32, %v5687_v19  ;;  %v8910_v38 = vpop.f32.mrb[48].mxu1 }
 0x53f   :  { %v12416_v31 = vadd.f32 %v8910_v38, %v12362_v20  ;;  %v5313_v26 = vpop.f32.mrb[49].mxu1 }
 0x540   :  { %v5752_v10 = vadd.f32 %v5751_v53, %v5689_v0  ;;  %v12421_v23 = vadd.f32 %v5313_v26, %v12364_v2  ;;  %v5620_v62 = vadd.f32 %v12401_v5, %v5619_v63  ;;  %v8911_v11 = vpop.f32.mrb[50].mxu1 }
 0x541   :  { %v12425_v15 = vadd.f32 %v8911_v11, %v12366_v9  ;;  %v5316_v47 = vpop.f32.mrb[51].mxu1  ;;  %v5693_v9 = vmul.f32 %v12416_v31, %v12416_v31 }
 0x542   :  { %v5621_v33 = vadd.f32 %v12421_v23, %v5620_v62  ;;  %v5691_v20 = vmul.f32 %v12421_v23, %v12421_v23  ;;  %v5753_v18 = vadd.f32 %v5752_v10, %v5690_v8  ;;  %v12431_v19 = vadd.f32 %v5316_v47, %v12368_v21 }
 0x543   :  { %v5694_v21 = vmul.f32 %v12425_v15, %v12425_v15 }
 0x544   :  { %v5754_v52 = vadd.f32 %v5753_v18, %v5691_v20  ;;  %v5622_v2 = vadd.f32 %v12431_v19, %v5621_v33  ;;  %v5692_v32 = vmul.f32 %v12431_v19, %v12431_v19 }
 0x546   :  { %v5623_v0 = vadd.f32 %v12416_v31, %v5622_v2  ;;  %v5755_v63 = vadd.f32 %v5754_v52, %v5692_v32  ;;  %v8914_v53 = vpop.f32.mrb[52].mxu1 }
 0x547   :  { %v12440_v38 = vadd.f32 %v8914_v53, %v12370_v24  ;;  %v5329_v26 = vpop.f32.mrb[53].mxu1 }
 0x548   :  { %v5756_v8 = vadd.f32 %v5755_v63, %v5693_v9  ;;  %v12445_v10 = vadd.f32 %v5329_v26, %v12372_v13  ;;  %v5624_v62 = vadd.f32 %v12425_v15, %v5623_v0  ;;  %v8915_v11 = vpop.f32.mrb[54].mxu1 }
 0x549   :  { %v12449_v47 = vadd.f32 %v8915_v11, %v12374_v57  ;;  %v5332_v33 = vpop.f32.mrb[55].mxu1  ;;  %v5697_v57 = vmul.f32 %v12440_v38, %v12440_v38 }
 0x54a   :  { %v5625_v20 = vadd.f32 %v12445_v10, %v5624_v62  ;;  %v5695_v24 = vmul.f32 %v12445_v10, %v12445_v10  ;;  %v5757_v18 = vadd.f32 %v5756_v8, %v5694_v21  ;;  %v12455_v52 = vadd.f32 %v5332_v33, %v12376_v14 }
 0x54b   :  { %v5698_v14 = vmul.f32 %v12449_v47, %v12449_v47 }
 0x54c   :  { %v5758_v2 = vadd.f32 %v5757_v18, %v5695_v24  ;;  %v5626_v13 = vadd.f32 %v12455_v52, %v5625_v20  ;;  %v5696_v32 = vmul.f32 %v12455_v52, %v12455_v52 }
 0x54e   :  { %v5627_v9 = vadd.f32 %v12440_v38, %v5626_v13  ;;  %v5759_v0 = vadd.f32 %v5758_v2, %v5696_v32  ;;  %v8918_v63 = vpop.f32.mrb[56].mxu1 }
 0x54f   :  { %v12464_v53 = vadd.f32 %v8918_v63, %v12378_v59  ;;  %v5345_v26 = vpop.f32.mrb[57].mxu1 }
 0x550   :  { %v5760_v21 = vadd.f32 %v5759_v0, %v5697_v57  ;;  %v12469_v8 = vadd.f32 %v5345_v26, %v12380_v56  ;;  %v5628_v62 = vadd.f32 %v12449_v47, %v5627_v9  ;;  %v8919_v11 = vpop.f32.mrb[58].mxu1 }
 0x551   :  { %v12473_v33 = vadd.f32 %v8919_v11, %v12382_v39  ;;  %v5348_v20 = vpop.f32.mrb[59].mxu1  ;;  %v5701_v39 = vmul.f32 %v12464_v53, %v12464_v53 }
 0x552   :  { %v5629_v24 = vadd.f32 %v12469_v8, %v5628_v62  ;;  %v5699_v59 = vmul.f32 %v12469_v8, %v12469_v8  ;;  %v5761_v18 = vadd.f32 %v5760_v21, %v5698_v14  ;;  %v12479_v2 = vadd.f32 %v5348_v20, %v12384_v1 }
 0x553   :  { %v5702_v1 = vmul.f32 %v12473_v33, %v12473_v33 }
 0x554   :  { %v5762_v13 = vadd.f32 %v5761_v18, %v5699_v59  ;;  %v5630_v56 = vadd.f32 %v12479_v2, %v5629_v24  ;;  %v5700_v32 = vmul.f32 %v12479_v2, %v12479_v2 }
 0x556   :  { %v5631_v57 = vadd.f32 %v12464_v53, %v5630_v56  ;;  %v5763_v9 = vadd.f32 %v5762_v13, %v5700_v32  ;;  %v8922_v0 = vpop.f32.mrb[60].mxu1 }
 0x557   :  { %v12488_v63 = vadd.f32 %v8922_v0, %v12386_v55  ;;  %v5361_v26 = vpop.f32.mrb[61].mxu1 }
 0x558   :  { %v5764_v14 = vadd.f32 %v5763_v9, %v5701_v39  ;;  %v12493_v21 = vadd.f32 %v5361_v26, %v12388_v4  ;;  %v5632_v62 = vadd.f32 %v12473_v33, %v5631_v57  ;;  %v8923_v11 = vpop.f32.mrb[62].mxu1 }
 0x559   :  { %v12497_v20 = vadd.f32 %v8923_v11, %v12390_v16  ;;  %v5364_v24 = vpop.f32.mrb[63].mxu1  ;;  %v5705_v16 = vmul.f32 %v12488_v63, %v12488_v63 }
 0x55a   :  { %v5633_v59 = vadd.f32 %v12493_v21, %v5632_v62  ;;  %v5703_v55 = vmul.f32 %v12493_v21, %v12493_v21  ;;  %v5765_v18 = vadd.f32 %v5764_v14, %v5702_v1  ;;  %v12503_v13 = vadd.f32 %v5364_v24, %v12392_v58 }
 0x55b   :  { %v5706_v58 = vmul.f32 %v12497_v20, %v12497_v20 }
 0x55c   :  { %v5766_v56 = vadd.f32 %v5765_v18, %v5703_v55  ;;  %v5634_v4 = vadd.f32 %v12503_v13, %v5633_v59  ;;  %v5704_v32 = vmul.f32 %v12503_v13, %v12503_v13 }
 0x55e   :  { %v5635_v39 = vadd.f32 %v12488_v63, %v5634_v4  ;;  %v5767_v57 = vadd.f32 %v5766_v56, %v5704_v32  ;;  %v8926_v9 = vpop.f32.mrb[0].mxu1 }
 0x55f   :  { %v12512_v0 = vadd.f32 %v8926_v9, %v12266_v6  ;;  %v5377_v26 = vpop.f32.mrb[1].mxu1 }
 0x560   :  { %v5768_v1 = vadd.f32 %v5767_v57, %v5705_v16  ;;  %v12517_v14 = vadd.f32 %v5377_v26, %v12268_v40  ;;  %v5636_v62 = vadd.f32 %v12497_v20, %v5635_v39  ;;  %v8927_v11 = vpop.f32.mrb[2].mxu1 }
 0x561   :  { %v12521_v24 = vadd.f32 %v8927_v11, %v12270_v41  ;;  %v5380_v59 = vpop.f32.mrb[3].mxu1  ;;  %v5709_v41 = vmul.f32 %v12512_v0, %v12512_v0 }
 0x562   :  { %v5637_v55 = vadd.f32 %v12517_v14, %v5636_v62  ;;  %v5707_v6 = vmul.f32 %v12517_v14, %v12517_v14  ;;  %v5769_v18 = vadd.f32 %v5768_v1, %v5706_v58  ;;  %v12527_v56 = vadd.f32 %v5380_v59, %v12272_v50 }
 0x563   :  { %v5710_v50 = vmul.f32 %v12521_v24, %v12521_v24 }
 0x564   :  { %v5770_v4 = vadd.f32 %v5769_v18, %v5707_v6  ;;  %v5638_v40 = vadd.f32 %v12527_v56, %v5637_v55  ;;  %v5708_v32 = vmul.f32 %v12527_v56, %v12527_v56 }
 0x566   :  { %v5639_v16 = vadd.f32 %v12512_v0, %v5638_v40  ;;  %v5771_v39 = vadd.f32 %v5770_v4, %v5708_v32  ;;  %v8930_v57 = vpop.f32.mrb[4].mxu1 }
 0x567   :  { %v12536_v9 = vadd.f32 %v8930_v57, %v12274_v51  ;;  %v5393_v26 = vpop.f32.mrb[5].mxu1 }
 0x568   :  { %v5772_v58 = vadd.f32 %v5771_v39, %v5709_v41  ;;  %v12541_v1 = vadd.f32 %v5393_v26, %v12276_v34  ;;  %v5640_v62 = vadd.f32 %v12521_v24, %v5639_v16  ;;  %v8931_v11 = vpop.f32.mrb[6].mxu1 }
 0x569   :  { %v12545_v59 = vadd.f32 %v8931_v11, %v12278_v45  ;;  %v5396_v55 = vpop.f32.mrb[7].mxu1  ;;  %v5713_v45 = vmul.f32 %v12536_v9, %v12536_v9 }
 0x56a   :  { %v5641_v6 = vadd.f32 %v12541_v1, %v5640_v62  ;;  %v5711_v51 = vmul.f32 %v12541_v1, %v12541_v1  ;;  %v5773_v18 = vadd.f32 %v5772_v58, %v5710_v50  ;;  %v12551_v4 = vadd.f32 %v5396_v55, %v12280_v37 }
 0x56b   :  { %v5714_v37 = vmul.f32 %v12545_v59, %v12545_v59 }
 0x56c   :  { %v5774_v40 = vadd.f32 %v5773_v18, %v5711_v51  ;;  %v5642_v34 = vadd.f32 %v12551_v4, %v5641_v6  ;;  %v5712_v32 = vmul.f32 %v12551_v4, %v12551_v4 }
 0x56e   :  { %v5643_v41 = vadd.f32 %v12536_v9, %v5642_v34  ;;  %v5775_v16 = vadd.f32 %v5774_v40, %v5712_v32  ;;  %v8934_v39 = vpop.f32.mrb[8].mxu1  ;;  %v9782_v34 = vld [vmem:[%s15390_s7 + $0x8] sm:$0xff]  }
 0x56f   :  { %v12560_v57 = vadd.f32 %v8934_v39, %v12282_v46  ;;  %v5409_v26 = vpop.f32.mrb[9].mxu1 }
 0x570   :  { %v5776_v50 = vadd.f32 %v5775_v16, %v5713_v45  ;;  %v12565_v58 = vadd.f32 %v5409_v26, %v12284_v12  ;;  %v5644_v62 = vadd.f32 %v12545_v59, %v5643_v41  ;;  %v8935_v11 = vpop.f32.mrb[10].mxu1  ;;  %v9781_v12 = vld [vmem:[%s15390_s7] sm:$0xff]  }
 0x571   :  { %15883 = vst [vmem:[#allocation21_spill] sm:$0xff] %v12560_v57  ;;  %v12569_v55 = vadd.f32 %v8935_v11, %v12286_v7  ;;  %v5412_v6 = vpop.f32.mrb[11].mxu1  ;;  %8968 = vmatprep.subr.bf16.mxu0 %v9781_v12  ;;  %v5717_v41 = vmul.f32 %v12560_v57, %v12560_v57 }
 0x572   :  { %15884 = vst [vmem:[#allocation24_spill] sm:$0xff] %v12565_v58  ;;  %v5645_v51 = vadd.f32 %v12565_v58, %v5644_v62  ;;  %v5715_v46 = vmul.f32 %v12565_v58, %v12565_v58  ;;  %v5777_v18 = vadd.f32 %v5776_v50, %v5714_v37  ;;  %v12575_v40 = vadd.f32 %v5412_v6, %v12288_v29  ;;  %v9783_v50 = vld [vmem:[%s15390_s7 + $0x10] sm:$0xff]  }
 0x573   :  { %15885 = vst [vmem:[#allocation26_spill] sm:$0xff] %v12569_v55  ;;  %8969 = vmatpush3.bf16.msra.mxu0 %v9781_v12  ;;  %v5718_v62 = vmul.f32 %v12569_v55, %v12569_v55 }
 0x574   :  { %15886 = vst [vmem:[#allocation9_spill] sm:$0xff] %v12575_v40  ;;  %v5778_v7 = vadd.f32 %v5777_v18, %v5715_v46  ;;  %v5646_v32 = vadd.f32 %v12575_v40, %v5645_v51  ;;  %v5716_v45 = vmul.f32 %v12575_v40, %v12575_v40  ;;  %8970 = vmatprep.subr.bf16.mxu0 %v9782_v34 }
 0x576   :  { %v5647_v29 = vadd.f32 %v12560_v57, %v5646_v32  ;;  %v5779_v16 = vadd.f32 %v5778_v7, %v5716_v45  ;;  %v8938_v39 = vpop.f32.mrb[12].mxu1 }
 0x577   :  { %v12590_v26 = vadd.f32 %v8938_v39, %v12290_v61  ;;  %v5425_v37 = vpop.f32.mrb[13].mxu1  ;;  %8971 = vmatpush3.bf16.msra.mxu0 %v9782_v34 }
 0x578   :  { %v5780_v11 = vadd.f32 %v5779_v16, %v5717_v41  ;;  %v12598_v6 = vadd.f32 %v5425_v37, %v12292_v43  ;;  %v5648_v51 = vadd.f32 %v12569_v55, %v5647_v29  ;;  %v8939_v46 = vpop.f32.mrb[14].mxu1  ;;  %8972 = vmatprep.subr.bf16.mxu0 %v9783_v50  ;;  %v9784_v43 = vld [vmem:[%s15390_s7 + $0x18] sm:$0xff]  }
 0x579   :  { %15887 = vst [vmem:[#allocation30_spill] sm:$0xff] %v12590_v26  ;;  %v12602_v18 = vadd.f32 %v8939_v46, %v12294_v54  ;;  %v5428_v61 = vpop.f32.mrb[15].mxu1  ;;  %v5721_v16 = vmul.f32 %v12590_v26, %v12590_v26 }
 0x57a   :  { %15888 = vst [vmem:[#allocation31_spill] sm:$0xff] %v12598_v6  ;;  %v5649_v12 = vadd.f32 %v12598_v6, %v5648_v51  ;;  %v5719_v7 = vmul.f32 %v12598_v6, %v12598_v6  ;;  %v5781_v32 = vadd.f32 %v5780_v11, %v5718_v62  ;;  %v12608_v45 = vadd.f32 %v5428_v61, %v12296_v48  ;;  %v9785_v11 = vld [vmem:[%s15390_s7 + $0x20] sm:$0xff]  }
 0x57b   :  { %15889 = vst [vmem:[#allocation32_spill] sm:$0xff] %v12602_v18  ;;  %8973 = vmatpush3.bf16.msra.mxu0 %v9783_v50  ;;  %v5722_v51 = vmul.f32 %v12602_v18, %v12602_v18 }
 0x57c   :  { %15890 = vst [vmem:[#allocation33_spill] sm:$0xff] %v12608_v45  ;;  %v5782_v41 = vadd.f32 %v5781_v32, %v5719_v7  ;;  %v5650_v54 = vadd.f32 %v12608_v45, %v5649_v12  ;;  %v5720_v29 = vmul.f32 %v12608_v45, %v12608_v45  ;;  %8974 = vmatprep.subr.bf16.mxu0 %v9784_v43 }
 0x57e   :  { %v5651_v39 = vadd.f32 %v12590_v26, %v5650_v54  ;;  %v5783_v37 = vadd.f32 %v5782_v41, %v5720_v29  ;;  %v8942_v48 = vpop.f32.mrb[16].mxu1 }
 0x57f   :  { %v12620_v34 = vadd.f32 %v8942_v48, %v12298_v35  ;;  %v5441_v62 = vpop.f32.mrb[17].mxu1  ;;  %8975 = vmatpush3.bf16.msra.mxu0 %v9784_v43 }
 0x580   :  { %v5784_v46 = vadd.f32 %v5783_v37, %v5721_v16  ;;  %v12628_v61 = vadd.f32 %v5441_v62, %v12300_v25  ;;  %v5652_v12 = vadd.f32 %v12602_v18, %v5651_v39  ;;  %v8943_v7 = vpop.f32.mrb[18].mxu1  ;;  %8976 = vmatprep.subr.bf16.mxu0 %v9785_v11  ;;  %v9786_v25 = vld [vmem:[%s15390_s7 + $0x28] sm:$0xff]   ;;  %v15927_v18 = vld [vmem:[#allocation22_spill] sm:$0xff] }
 0x581   :  { %15891 = vst [vmem:[#allocation34_spill] sm:$0xff] %v12620_v34  ;;  %v12632_v50 = vadd.f32 %v8943_v7, %v12302_v28  ;;  %v5444_v35 = vpop.f32.mrb[19].mxu1  ;;  %v5725_v37 = vmul.f32 %v12620_v34, %v12620_v34 }
 0x582   :  { %15892 = vst [vmem:[#allocation35_spill] sm:$0xff] %v12628_v61  ;;  %v5653_v32 = vadd.f32 %v12628_v61, %v5652_v12  ;;  %v5723_v41 = vmul.f32 %v12628_v61, %v12628_v61  ;;  %v5785_v54 = vadd.f32 %v5784_v46, %v5722_v51  ;;  %v12638_v29 = vadd.f32 %v5444_v35, %v12304_v36  ;;  %v9787_v46 = vld [vmem:[%s15390_s7 + $0x30] sm:$0xff]  }
 0x583   :  { %15893 = vst [vmem:[#allocation36_spill] sm:$0xff] %v12632_v50  ;;  %8977 = vmatpush3.bf16.msra.mxu0 %v9785_v11  ;;  %v5726_v12 = vmul.f32 %v12632_v50, %v12632_v50 }
 0x584   :  { %15894 = vst [vmem:[#allocation37_spill] sm:$0xff] %v12638_v29  ;;  %v5786_v16 = vadd.f32 %v5785_v54, %v5723_v41  ;;  %v5654_v28 = vadd.f32 %v12638_v29, %v5653_v32  ;;  %v5724_v39 = vmul.f32 %v12638_v29, %v12638_v29  ;;  %8978 = vmatprep.subr.bf16.mxu0 %v9786_v25 }
 0x586   :  { %v5655_v48 = vadd.f32 %v12620_v34, %v5654_v28  ;;  %v5787_v62 = vadd.f32 %v5786_v16, %v5724_v39  ;;  %v8946_v36 = vpop.f32.mrb[20].mxu1 }
 0x587   :  { %v12650_v43 = vadd.f32 %v8946_v36, %v12306_v3  ;;  %v5457_v51 = vpop.f32.mrb[21].mxu1  ;;  %8979 = vmatpush3.bf16.msra.mxu0 %v9786_v25 }
 0x588   :  { %v5788_v7 = vadd.f32 %v5787_v62, %v5725_v37  ;;  %v12658_v35 = vadd.f32 %v5457_v51, %v12308_v22  ;;  %v5656_v32 = vadd.f32 %v12632_v50, %v5655_v48  ;;  %v8947_v41 = vpop.f32.mrb[22].mxu1  ;;  %8980 = vmatprep.subr.bf16.mxu0 %v9787_v46  ;;  %v9788_v22 = vld [vmem:[%s15390_s7 + $0x38] sm:$0xff]   ;;  %v15919_v50 = vld [vmem:[#allocation18_spill] sm:$0xff] }
 0x589   :  { %15895 = vst [vmem:[#allocation38_spill] sm:$0xff] %v12650_v43  ;;  %v12662_v11 = vadd.f32 %v8947_v41, %v12310_v44  ;;  %v5460_v3 = vpop.f32.mrb[23].mxu1  ;;  %v5729_v62 = vmul.f32 %v12650_v43, %v12650_v43 }
 0x58a   :  { %15896 = vst [vmem:[#allocation39_spill] sm:$0xff] %v12658_v35  ;;  %v5657_v54 = vadd.f32 %v12658_v35, %v5656_v32  ;;  %v5727_v16 = vmul.f32 %v12658_v35, %v12658_v35  ;;  %v5789_v28 = vadd.f32 %v5788_v7, %v5726_v12  ;;  %v12668_v39 = vadd.f32 %v5460_v3, %v12312_v60 }
 0x58b   :  { %15897 = vst [vmem:[#allocation40_spill] sm:$0xff] %v12662_v11  ;;  %8981 = vmatpush3.bf16.msra.mxu0 %v9787_v46  ;;  %v5730_v7 = vmul.f32 %v12662_v11, %v12662_v11 }
 0x58c   :  { %15898 = vst [vmem:[#allocation41_spill] sm:$0xff] %v12668_v39  ;;  %v5790_v37 = vadd.f32 %v5789_v28, %v5727_v16  ;;  %v5658_v44 = vadd.f32 %v12668_v39, %v5657_v54  ;;  %v5728_v48 = vmul.f32 %v12668_v39, %v12668_v39  ;;  %8982 = vmatprep.subr.bf16.mxu0 %v9788_v22  ;;  %v15901_v16 = vld [vmem:[#allocation23_spill] sm:$0xff] }
 0x58e   :  { %v5659_v36 = vadd.f32 %v12650_v43, %v5658_v44  ;;  %v5791_v51 = vadd.f32 %v5790_v37, %v5728_v48  ;;  %v8950_v60 = vpop.f32.mrb[24].mxu1  ;;  %v15903_v48 = vld [vmem:[#allocation25_spill] sm:$0xff] }
 0x58f   :  { %v12680_v25 = vadd.f32 %v8950_v60, %v12314_v42  ;;  %v5473_v12 = vpop.f32.mrb[25].mxu1  ;;  %8983 = vmatpush3.bf16.msra.mxu0 %v9788_v22 }
 0x590   :  { %v5792_v32 = vadd.f32 %v5791_v51, %v5729_v62  ;;  %v12685_v41 = vadd.f32 %v5473_v12, %v12316_v17  ;;  %v5660_v3 = vadd.f32 %v12662_v11, %v5659_v36  ;;  %v8951_v54 = vpop.f32.mrb[26].mxu1  ;;  %v15912_v11 = vld [vmem:[#allocation14_spill] sm:$0xff] }
 0x591   :  { %15899 = vst [vmem:[#allocation42_spill] sm:$0xff] %v12680_v25  ;;  %v12689_v28 = vadd.f32 %v8951_v54, %v15901_v16  ;;  %v5476_v37 = vpop.f32.mrb[27].mxu1  ;;  %v5733_v51 = vmul.f32 %v12680_v25, %v12680_v25  ;;  %v15905_v16 = vld [vmem:[#allocation28_spill] sm:$0xff] }
 0x592   :  { %15900 = vst [vmem:[#allocation43_spill] sm:$0xff] %v12685_v41  ;;  %v5661_v46 = vadd.f32 %v12685_v41, %v5660_v3  ;;  %v5731_v42 = vmul.f32 %v12685_v41, %v12685_v41  ;;  %v5793_v44 = vadd.f32 %v5792_v32, %v5730_v7  ;;  %v12695_v60 = vadd.f32 %v5476_v37, %v15903_v48  ;;  %v15906_v37 = vld [vmem:[#allocation27_spill] sm:$0xff]  ;;  %v15907_v48 = vld [vmem:[#allocation6_spill] sm:$0xff] }
 0x593   :  { %15902 = vst [vmem:[#allocation23_spill] sm:$0xff] %v12689_v28  ;;  %v5734_v22 = vmul.f32 %v12689_v28, %v12689_v28 }
 0x594   :  { %15904 = vst [vmem:[#allocation25_spill] sm:$0xff] %v12695_v60  ;;  %v5794_v62 = vadd.f32 %v5793_v44, %v5731_v42  ;;  %v5662_v17 = vadd.f32 %v12695_v60, %v5661_v46  ;;  %v5732_v36 = vmul.f32 %v12695_v60, %v12695_v60 }
 0x596   :  { %v5663_v12 = vadd.f32 %v12680_v25, %v5662_v17  ;;  %v5795_v3 = vadd.f32 %v5794_v62, %v5732_v36  ;;  %v8954_v54 = vpop.f32.mrb[28].mxu1 }
 0x597   :  { %v12704_v41 = vadd.f32 %v8954_v54, %v15905_v16  ;;  %v5489_v7 = vpop.f32.mrb[29].mxu1  ;;  %v15908_v16 = vld [vmem:[#allocation8_spill] sm:$0xff] }
 0x598   :  { %v5796_v32 = vadd.f32 %v5795_v3, %v5733_v51  ;;  %v12709_v46 = vadd.f32 %v5489_v7, %v15906_v37  ;;  %v5664_v42 = vadd.f32 %v12689_v28, %v5663_v12  ;;  %v8955_v44 = vpop.f32.mrb[30].mxu1 }
 0x599   :  { %v12713_v60 = vadd.f32 %v8955_v44, %v15907_v48  ;;  %v5492_v17 = vpop.f32.mrb[31].mxu1  ;;  %v5737_v7 = vmul.f32 %v12704_v41, %v12704_v41  ;;  %v15909_v48 = vld [vmem:[#allocation11_spill] sm:$0xff] }
 0x59a   :  { %v5665_v62 = vadd.f32 %v12709_v46, %v5664_v42  ;;  %v5735_v36 = vmul.f32 %v12709_v46, %v12709_v46  ;;  %v5797_v54 = vadd.f32 %v5796_v32, %v5734_v22  ;;  %v12719_v25 = vadd.f32 %v5492_v17, %v15908_v16 }
 0x59b   :  { %v5738_v32 = vmul.f32 %v12713_v60, %v12713_v60 }
 0x59c   :  { %v5798_v51 = vadd.f32 %v5797_v54, %v5735_v36  ;;  %v5666_v3 = vadd.f32 %v12719_v25, %v5665_v62  ;;  %v5736_v12 = vmul.f32 %v12719_v25, %v12719_v25  ;;  %v15911_v36 = vld [vmem:[#allocation13_spill] sm:$0xff] }
 0x59e   :  { %v5667_v37 = vadd.f32 %v12704_v41, %v5666_v3  ;;  %v5799_v44 = vadd.f32 %v5798_v51, %v5736_v12  ;;  %v8958_v42 = vpop.f32.mrb[32].mxu1 }
 0x59f   :  { %v12728_v28 = vadd.f32 %v8958_v42, %v15909_v48  ;;  %v5505_v22 = vpop.f32.mrb[33].mxu1  ;;  %v15914_v48 = vld [vmem:[#allocation10_spill] sm:$0xff] }
 0x5a0   :  { %v5800_v17 = vadd.f32 %v5799_v44, %v5737_v7  ;;  %v12733_v62 = vadd.f32 %v5505_v22, %v15911_v36  ;;  %v5668_v54 = vadd.f32 %v12713_v60, %v5667_v37  ;;  %v8959_v16 = vpop.f32.mrb[34].mxu1 }
 0x5a1   :  { %15910 = vst [vmem:[#allocation28_spill] sm:$0xff] %v12728_v28  ;;  %v12737_v43 = vadd.f32 %v8959_v16, %v15912_v11  ;;  %v5508_v3 = vpop.f32.mrb[35].mxu1  ;;  %v5741_v11 = vmul.f32 %v12728_v28, %v12728_v28  ;;  %v15915_v16 = vld [vmem:[#allocation12_spill] sm:$0xff] }
 0x5a2   :  { %v5669_v51 = vadd.f32 %v12733_v62, %v5668_v54  ;;  %v5739_v12 = vmul.f32 %v12733_v62, %v12733_v62  ;;  %v5801_v42 = vadd.f32 %v5800_v17, %v5738_v32  ;;  %v12743_v39 = vadd.f32 %v5508_v3, %v15914_v48 }
 0x5a3   :  { %15913 = vst [vmem:[#allocation27_spill] sm:$0xff] %v12737_v43  ;;  %v5742_v17 = vmul.f32 %v12737_v43, %v12737_v43 }
 0x5a4   :  { %v5802_v7 = vadd.f32 %v5801_v42, %v5739_v12  ;;  %v5670_v44 = vadd.f32 %v12743_v39, %v5669_v51  ;;  %v5740_v37 = vmul.f32 %v12743_v39, %v12743_v39  ;;  %v15917_v12 = vld [vmem:[#allocation16_spill] sm:$0xff] }
 0x5a6   :  { %v5671_v22 = vadd.f32 %v12728_v28, %v5670_v44  ;;  %v5803_v36 = vadd.f32 %v5802_v7, %v5740_v37  ;;  %v8962_v54 = vpop.f32.mrb[36].mxu1 }
 0x5a7   :  { %v12752_v35 = vadd.f32 %v8962_v54, %v15915_v16  ;;  %v5521_v32 = vpop.f32.mrb[37].mxu1  ;;  %v15921_v16 = vld [vmem:[#allocation15_spill] sm:$0xff] }
 0x5a8   :  { %v5804_v3 = vadd.f32 %v5803_v36, %v5741_v11  ;;  %v12757_v51 = vadd.f32 %v5521_v32, %v15917_v12  ;;  %v5672_v42 = vadd.f32 %v12737_v43, %v5671_v22  ;;  %v8963_v48 = vpop.f32.mrb[38].mxu1 }
 0x5a9   :  { %15916 = vst [vmem:[#allocation6_spill] sm:$0xff] %v12752_v35  ;;  %v12761_v34 = vadd.f32 %v8963_v48, %v15919_v50  ;;  %v5524_v44 = vpop.f32.mrb[39].mxu1  ;;  %v5745_v50 = vmul.f32 %v12752_v35, %v12752_v35  ;;  %v15923_v48 = vld [vmem:[#allocation17_spill] sm:$0xff] }
 0x5aa   :  { %15918 = vst [vmem:[#allocation8_spill] sm:$0xff] %v12757_v51  ;;  %v5673_v7 = vadd.f32 %v12757_v51, %v5672_v42  ;;  %v5743_v37 = vmul.f32 %v12757_v51, %v12757_v51  ;;  %v5805_v54 = vadd.f32 %v5804_v3, %v5742_v17  ;;  %v12767_v29 = vadd.f32 %v5524_v44, %v15921_v16 }
 0x5ab   :  { %15920 = vst [vmem:[#allocation11_spill] sm:$0xff] %v12761_v34  ;;  %v5746_v3 = vmul.f32 %v12761_v34, %v12761_v34 }
 0x5ac   :  { %15922 = vst [vmem:[#allocation13_spill] sm:$0xff] %v12767_v29  ;;  %v5806_v11 = vadd.f32 %v5805_v54, %v5743_v37  ;;  %v5674_v36 = vadd.f32 %v12767_v29, %v5673_v7  ;;  %v5744_v22 = vmul.f32 %v12767_v29, %v12767_v29  ;;  %v15925_v37 = vld [vmem:[#allocation20_spill] sm:$0xff] }
 0x5ae   :  { %v5675_v32 = vadd.f32 %v12752_v35, %v5674_v36  ;;  %v5807_v12 = vadd.f32 %v5806_v11, %v5744_v22  ;;  %v8966_v42 = vpop.f32.mrb[40].mxu1 }
 0x5af   :  { %v12776_v61 = vadd.f32 %v8966_v42, %v15923_v48  ;;  %v5537_v17 = vpop.f32.mrb[41].mxu1  ;;  %v15929_v48 = vld [vmem:[#allocation19_spill] sm:$0xff] }
 0x5b0   :  { %v5808_v44 = vadd.f32 %v5807_v12, %v5745_v50  ;;  %v12781_v7 = vadd.f32 %v5537_v17, %v15925_v37  ;;  %v5676_v54 = vadd.f32 %v12761_v34, %v5675_v32  ;;  %v8967_v16 = vpop.f32.mrb[42].mxu1 }
 0x5b1   :  { %15924 = vst [vmem:[#allocation14_spill] sm:$0xff] %v12776_v61  ;;  %v12785_v26 = vadd.f32 %v8967_v16, %v15927_v18  ;;  %v5540_v36 = vpop.f32.mrb[43].mxu1  ;;  %v5749_v18 = vmul.f32 %v12776_v61, %v12776_v61 }
 0x5b2   :  { %15926 = vst [vmem:[#allocation10_spill] sm:$0xff] %v12781_v7  ;;  %v5677_v11 = vadd.f32 %v12781_v7, %v5676_v54  ;;  %v5747_v22 = vmul.f32 %v12781_v7, %v12781_v7  ;;  %v5809_v42 = vadd.f32 %v5808_v44, %v5746_v3  ;;  %v12791_v45 = vadd.f32 %v5540_v36, %v15929_v48 }
 0x5b3   :  { %15928 = vst [vmem:[#allocation12_spill] sm:$0xff] %v12785_v26  ;;  %v5750_v54 = vmul.f32 %v12785_v26, %v12785_v26 }
 0x5b4   :  { %v5810_v50 = vadd.f32 %v5809_v42, %v5747_v22  ;;  %v5678_v12 = vadd.f32 %v12791_v45, %v5677_v11  ;;  %v5748_v32 = vmul.f32 %v12791_v45, %v12791_v45 }
 0x5b6   :  { %v5679_v17 = vadd.f32 %v12776_v61, %v5678_v12  ;;  %v5811_v37 = vadd.f32 %v5810_v50, %v5748_v32 }
 0x5b8   :  { %v5680_v3 = vadd.f32 %v12785_v26, %v5679_v17  ;;  %v5812_v44 = vadd.f32 %v5811_v37, %v5749_v18 }
 0x5ba   :  { %v5681_v16 = vrot.slane %v5680_v3, 4  ;;  %v5813_v36 = vadd.f32 %v5812_v44, %v5750_v54  ;;  %v15939_v44 = vld [vmem:[#allocation35_spill] sm:$0xff] }
 0x5bc   :  { %v5682_v22 = vadd.f32 %v5681_v16, %v5680_v3  ;;  %v5814_v42 = vrot.slane %v5813_v36, 4 }
 0x5be   :  { %v5683_v11 = vrot.slane %v5682_v22, 2  ;;  %v5815_v48 = vadd.f32 %v5814_v42, %v5813_v36 }
 0x5c0   :  { %v5684_v6 = vadd.f32 %v5683_v11, %v5682_v22  ;;  %v5816_v55 = vrot.slane %v5815_v48, 2  ;;  %v15935_v11 = vld [vmem:[#allocation31_spill] sm:$0xff] }
 0x5c2   :  { %v5685_v57 = vrot.slane %v5684_v6, 1  ;;  %v5817_v40 = vadd.f32 %v5816_v55, %v5815_v48  ;;  %v15934_v48 = vld [vmem:[#allocation26_spill] sm:$0xff] }
 0x5c4   :  { %v5686_v58 = vadd.f32 %v5685_v57, %v5684_v6  ;;  %v5818_v7 = vrot.slane %v5817_v40, 1  ;;  %v15938_v57 = vld [vmem:[#allocation32_spill] sm:$0xff] }
 0x5c6   :  { %v5819_v12 = vadd.f32 %v5818_v7, %v5817_v40  ;;  %v12802_v50 = vmul.f32 0.001953125, %v5686_v58  ;;  %v15937_v58 = vld [vmem:[#allocation30_spill] sm:$0xff] }
 0x5c8   :  { %v5821_v32 = vmul.f32 0.001953125, %v5819_v12  ;;  %v5822_v17 = vmul.f32 %v12802_v50, %v12802_v50  ;;  %v5856_v6 = vsub.f32 %v15934_v48, %v12802_v50  ;;  %v5857_v40 = vsub.f32 %v15935_v11, %v12802_v50  ;;  %v15941_v48 = vld [vmem:[#allocation34_spill] sm:$0xff]  ;;  %v15942_v11 = vld [vmem:[#allocation36_spill] sm:$0xff] }
 0x5c9   :  { %v5859_v36 = vsub.f32 %v15937_v58, %v12802_v50  ;;  %v5861_v18 = vsub.f32 %v15939_v44, %v12802_v50  ;;  %v5863_v61 = vsub.f32 %v15941_v48, %v12802_v50  ;;  %v5864_v12 = vsub.f32 %v15942_v11, %v12802_v50  ;;  %v15946_v44 = vld [vmem:[#allocation38_spill] sm:$0xff]  ;;  %v15948_v48 = vld [vmem:[#allocation43_spill] sm:$0xff]  ;;  %v15949_v11 = vld [vmem:[#allocation25_spill] sm:$0xff] }
 0x5ca   :  { %v5823_v37 = vsub.f32 %v5821_v32, %v5822_v17  ;;  %v15931_v32 = vld [vmem:[#allocation24_spill] sm:$0xff]  ;;  %v15932_v17 = vld [vmem:[#allocation9_spill] sm:$0xff]  ;;  %v5867_v35 = vsub.f32 %v15946_v44, %v12802_v50  ;;  %v5869_v51 = vsub.f32 %v15948_v48, %v12802_v50  ;;  %v5870_v43 = vsub.f32 %v15949_v11, %v12802_v50 }
 0x5cb   :  { %v5853_v42 = vsub.f32 %v15931_v32, %v12802_v50  ;;  %v5854_v22 = vsub.f32 %v15932_v17, %v12802_v50  ;;  %v15936_v32 = vld [vmem:[#allocation33_spill] sm:$0xff]  ;;  %v15955_v11 = vsub.f32 %v12404_v27, %v12802_v50  ;;  %v15959_v27 = vsub.f32 %v12431_v19, %v12802_v50 }
 0x5cc   :  { %v5824_v54 = vmax.f32 %v5823_v37, 0.0  ;;  %v5616_v37 = vld [vmem:[%s15388_s5] sm:$0x1]  ;;  %v5858_v55 = vsub.f32 %v15936_v32, %v12802_v50  ;;  %v15944_v32 = vld [vmem:[#allocation7_spill] sm:$0xff] }
 0x5ce   :  { %v5889_v3 = vadd.f32 1e-05, %v5824_v54  ;;  %v5860_v54 = vsub.f32 %v15938_v57, %v12802_v50  ;;  %v15945_v57 = vld [vmem:[#allocation41_spill] sm:$0xff] }
 0x5cf   :  { %v5866_v34 = vsub.f32 %v15945_v57, %v12802_v50  ;;  %v15952_v57 = vsub.f32 %v12791_v45, %v12802_v50 }
 0x5d0   :  { %9791 = vrsqrt.f32 %v5889_v3  ;;  %v15933_v3 = vld [vmem:[#allocation21_spill] sm:$0xff] }
 0x5d1   :  { %v5855_v7 = vsub.f32 %v15933_v3, %v12802_v50  ;;  %v15940_v3 = vld [vmem:[#allocation37_spill] sm:$0xff] }
 0x5d2   :  { %v5862_v26 = vsub.f32 %v15940_v3, %v12802_v50  ;;  %v15947_v3 = vld [vmem:[#allocation40_spill] sm:$0xff] }
 0x5d3   :  { %v5868_v29 = vsub.f32 %v15947_v3, %v12802_v50  ;;  %v15954_v3 = vsub.f32 %v12398_v30, %v12802_v50  ;;  %v15958_v30 = vsub.f32 %v12421_v23, %v12802_v50 }
 0x5da   :  { %v9792_v16 = vpop.eup %9791 }
 0x5db   :  { %v5891_v17 = vmul.f32 %v9792_v16, %v5616_v37  ;;  %v15943_v16 = vld [vmem:[#allocation39_spill] sm:$0xff] }
 0x5dc   :  { %v5865_v37 = vsub.f32 %v15943_v16, %v12802_v50  ;;  %v15950_v16 = vld [vmem:[#allocation42_spill] sm:$0xff] }
 0x5dd   :  { %v12924_v58 = vrot.slane %v5891_v17, %v15944_v32  ;;  %v5871_v28 = vsub.f32 %v15950_v16, %v12802_v50  ;;  %v15951_v17 = vld [vmem:[#allocation23_spill] sm:$0xff] }
 0x5de   :  { %v5872_v32 = vsub.f32 %v15951_v17, %v12802_v50  ;;  %v15956_v17 = vsub.f32 %v12395_v49, %v12802_v50  ;;  %v15960_v49 = vsub.f32 %v12416_v31, %v12802_v50 }
 0x5df   :  { %v12944_v44 = vmul.f32 %v12924_v58, %v15952_v57  ;;  %v12950_v48 = vmul.f32 %v12924_v58, %v15954_v3  ;;  %v12956_v16 = vmul.f32 %v12924_v58, %v15955_v11  ;;  %v15957_v57 = vsub.f32 %v12401_v5, %v12802_v50 }
 0x5e0   :  { %v5898_v45 = vmul.f32 %v12924_v58, %v15956_v17  ;;  %v12970_v3 = vmul.f32 %v12924_v58, %v15958_v30  ;;  %v12976_v11 = vmul.f32 %v12924_v58, %v15959_v27  ;;  %v12982_v17 = vmul.f32 %v12924_v58, %v15960_v49 }
 0x5e1   :  { %15953 = vst [vmem:[#allocation16_spill] sm:$0xff] %v12944_v44  ;;  %v5899_v44 = vmul.f32 %v12924_v58, %v15957_v57  ;;  %v15961_v5 = vsub.f32 %v12425_v15, %v12802_v50  ;;  %v15962_v57 = vsub.f32 %v12445_v10, %v12802_v50  ;;  %v15963_v30 = vsub.f32 %v12455_v52, %v12802_v50 }
 0x5e2   :  { %v15964_v27 = vsub.f32 %v12440_v38, %v12802_v50  ;;  %v15965_v49 = vsub.f32 %v12449_v47, %v12802_v50 }
 0x5e3   :  { %v12988_v23 = vmul.f32 %v12924_v58, %v15961_v5  ;;  %v12994_v19 = vmul.f32 %v12924_v58, %v15962_v57  ;;  %v13000_v31 = vmul.f32 %v12924_v58, %v15963_v30  ;;  %v15966_v5 = vsub.f32 %v12469_v8, %v12802_v50 }
 0x5e4   :  { %v13006_v15 = vmul.f32 %v12924_v58, %v15964_v27  ;;  %v13012_v10 = vmul.f32 %v12924_v58, %v15965_v49  ;;  %v15967_v57 = vsub.f32 %v12479_v2, %v12802_v50  ;;  %v15968_v30 = vsub.f32 %v12464_v53, %v12802_v50 }
 0x5e5   :  { %v13018_v52 = vmul.f32 %v12924_v58, %v15966_v5  ;;  %v15969_v27 = vsub.f32 %v12473_v33, %v12802_v50  ;;  %v15970_v49 = vsub.f32 %v12493_v21, %v12802_v50  ;;  %v15971_v5 = vsub.f32 %v12503_v13, %v12802_v50 }
 0x5e6   :  { %v13024_v38 = vmul.f32 %v12924_v58, %v15967_v57  ;;  %v13030_v47 = vmul.f32 %v12924_v58, %v15968_v30  ;;  %v15972_v57 = vsub.f32 %v12488_v63, %v12802_v50  ;;  %v15973_v30 = vsub.f32 %v12497_v20, %v12802_v50 }
 0x5e7   :  { %v13036_v8 = vmul.f32 %v12924_v58, %v15969_v27  ;;  %v13042_v2 = vmul.f32 %v12924_v58, %v15970_v49  ;;  %v13048_v53 = vmul.f32 %v12924_v58, %v15971_v5  ;;  %v15974_v27 = vsub.f32 %v12517_v14, %v12802_v50 }
 0x5e8   :  { %v13054_v33 = vmul.f32 %v12924_v58, %v15972_v57  ;;  %v13060_v21 = vmul.f32 %v12924_v58, %v15973_v30  ;;  %v15975_v49 = vsub.f32 %v12527_v56, %v12802_v50  ;;  %v15976_v5 = vsub.f32 %v12512_v0, %v12802_v50 }
 0x5e9   :  { %v13066_v13 = vmul.f32 %v12924_v58, %v15974_v27  ;;  %v15977_v57 = vsub.f32 %v12521_v24, %v12802_v50  ;;  %v15978_v30 = vsub.f32 %v12541_v1, %v12802_v50  ;;  %v15979_v27 = vsub.f32 %v12551_v4, %v12802_v50 }
 0x5ea   :  { %v13072_v63 = vmul.f32 %v12924_v58, %v15975_v49  ;;  %v13078_v20 = vmul.f32 %v12924_v58, %v15976_v5  ;;  %v15980_v49 = vsub.f32 %v12536_v9, %v12802_v50  ;;  %v15981_v5 = vsub.f32 %v12545_v59, %v12802_v50 }
 0x5eb   :  { %v13084_v14 = vmul.f32 %v12924_v58, %v15977_v57  ;;  %v13090_v56 = vmul.f32 %v12924_v58, %v15978_v30  ;;  %v13096_v0 = vmul.f32 %v12924_v58, %v15979_v27  ;;  %v13111_v57 = vmul.f32 %v12924_v58, %v5853_v42 }
 0x5ec   :  { %v13102_v24 = vmul.f32 %v12924_v58, %v15980_v49  ;;  %v13108_v1 = vmul.f32 %v12924_v58, %v15981_v5  ;;  %v13114_v4 = vmul.f32 %v12924_v58, %v5854_v22  ;;  %v13117_v30 = vmul.f32 %v12924_v58, %v5855_v7 }
 0x5ed   :  { %v13120_v9 = vmul.f32 %v12924_v58, %v5856_v6  ;;  %v13123_v27 = vmul.f32 %v12924_v58, %v5857_v40  ;;  %v13126_v59 = vmul.f32 %v12924_v58, %v5858_v55  ;;  %v13129_v49 = vmul.f32 %v12924_v58, %v5859_v36 }
 0x5ee   :  { %v13132_v42 = vmul.f32 %v12924_v58, %v5860_v54  ;;  %v13135_v22 = vmul.f32 %v12924_v58, %v5861_v18  ;;  %v13138_v7 = vmul.f32 %v12924_v58, %v5862_v26  ;;  %v13141_v6 = vmul.f32 %v12924_v58, %v5863_v61 }
 0x5ef   :  { %v13144_v40 = vmul.f32 %v12924_v58, %v5864_v12  ;;  %v13147_v55 = vmul.f32 %v12924_v58, %v5865_v37  ;;  %v13150_v36 = vmul.f32 %v12924_v58, %v5866_v34  ;;  %v13153_v54 = vmul.f32 %v12924_v58, %v5867_v35 }
 0x5f0   :  { %v13156_v18 = vmul.f32 %v12924_v58, %v5868_v29  ;;  %v13159_v26 = vmul.f32 %v12924_v58, %v5869_v51  ;;  %v13162_v61 = vmul.f32 %v12924_v58, %v5870_v43  ;;  %v13165_v12 = vmul.f32 %v12924_v58, %v5871_v28 }
 0x5f1   :  { %v13168_v37 = vmul.f32 %v12924_v58, %v5872_v32  ;;  %v15982_v34 = vsub.f32 %v12709_v46, %v12802_v50  ;;  %v15984_v29 = vsub.f32 %v12719_v25, %v12802_v50  ;;  %v15986_v43 = vsub.f32 %v12704_v41, %v12802_v50  ;;  %v13191_v32 = vld [vmem:[%s15389_s6] ss:$0 sm:$0xff] }
 0x5f2   :  { %v15988_v46 = vsub.f32 %v12713_v60, %v12802_v50  ;;  %v15990_v25 = vsub.f32 %v12733_v62, %v12802_v50  ;;  %v15992_v41 = vsub.f32 %v12743_v39, %v12802_v50 }
 0x5f3   :  { %v13174_v35 = vmul.f32 %v12924_v58, %v15982_v34  ;;  %v13180_v51 = vmul.f32 %v12924_v58, %v15984_v29  ;;  %v13186_v28 = vmul.f32 %v12924_v58, %v15986_v43  ;;  %v15994_v43 = vld [vmem:[#allocation28_spill] sm:$0xff] }
 0x5f4   :  { %v13197_v5 = vmul.f32 %v12924_v58, %v15988_v46  ;;  %v13203_v34 = vmul.f32 %v12924_v58, %v15990_v25  ;;  %v13209_v29 = vmul.f32 %v12924_v58, %v15992_v41  ;;  %v15997_v46 = vld [vmem:[#allocation27_spill] sm:$0xff]  ;;  %v16000_v25 = vld [vmem:[#allocation8_spill] sm:$0xff]  ;;  %v16003_v41 = vld [vmem:[#allocation13_spill] sm:$0xff] }
 0x5f5   :  { %15983 = vst [vmem:[#allocation18_spill] sm:$0xff] %v13174_v35  ;;  %15985 = vst [vmem:[#allocation15_spill] sm:$0xff] %v13180_v51 }
 0x5f6   :  { %15987 = vst [vmem:[#allocation17_spill] sm:$0xff] %v13186_v28  ;;  %15989 = vst [vmem:[#allocation20_spill] sm:$0xff] %v13197_v5  ;;  %v15995_v28 = vsub.f32 %v15994_v43, %v12802_v50  ;;  %v15998_v5 = vsub.f32 %v15997_v46, %v12802_v50 }
 0x5f7   :  { %15991 = vst [vmem:[#allocation22_spill] sm:$0xff] %v13203_v34  ;;  %15993 = vst [vmem:[#allocation19_spill] sm:$0xff] %v13209_v29  ;;  %v16001_v34 = vsub.f32 %v16000_v25, %v12802_v50  ;;  %v16004_v29 = vsub.f32 %v16003_v41, %v12802_v50 }
 0x5f8   :  { %v13215_v60 = vmul.f32 %v12924_v58, %v15995_v28  ;;  %v13221_v62 = vmul.f32 %v12924_v58, %v15998_v5  ;;  %v16006_v28 = vld [vmem:[#allocation6_spill] sm:$0xff]  ;;  %v16009_v5 = vld [vmem:[#allocation11_spill] sm:$0xff] }
 0x5f9   :  { %v13227_v39 = vmul.f32 %v12924_v58, %v16001_v34  ;;  %v13233_v43 = vmul.f32 %v12924_v58, %v16004_v29  ;;  %v16012_v34 = vld [vmem:[#allocation10_spill] sm:$0xff] }
 0x5fa   :  { %15996 = vst [vmem:[#allocation24_spill] sm:$0xff] %v13215_v60  ;;  %15999 = vst [vmem:[#allocation9_spill] sm:$0xff] %v13221_v62  ;;  %v16007_v60 = vsub.f32 %v16006_v28, %v12802_v50  ;;  %v16010_v62 = vsub.f32 %v16009_v5, %v12802_v50  ;;  %v16015_v29 = vld [vmem:[#allocation14_spill] sm:$0xff] }
 0x5fb   :  { %16002 = vst [vmem:[#allocation21_spill] sm:$0xff] %v13227_v39  ;;  %16005 = vst [vmem:[#allocation26_spill] sm:$0xff] %v13233_v43  ;;  %v16013_v39 = vsub.f32 %v16012_v34, %v12802_v50  ;;  %v16016_v43 = vsub.f32 %v16015_v29, %v12802_v50  ;;  %v5967_v34 = vadd.f32 %v13191_v32, %v12956_v16 }
 0x5fc   :  { %v13239_v46 = vmul.f32 %v12924_v58, %v16007_v60  ;;  %v13245_v25 = vmul.f32 %v12924_v58, %v16010_v62  ;;  %v16018_v60 = vld [vmem:[#allocation12_spill] sm:$0xff]  ;;  %v5968_v62 = vadd.f32 %v13191_v32, %v5898_v45  ;;  %v5971_v29 = vadd.f32 %v13191_v32, %v12976_v11 }
 0x5fd   :  { %v13251_v41 = vmul.f32 %v12924_v58, %v16013_v39  ;;  %v13257_v28 = vmul.f32 %v12924_v58, %v16016_v43  ;;  %v5966_v39 = vadd.f32 %v13191_v32, %v12950_v48  ;;  %v5970_v43 = vadd.f32 %v13191_v32, %v12970_v3 }
 0x5fe   :  { %16008 = vst [vmem:[#allocation31_spill] sm:$0xff] %v13239_v46  ;;  %16011 = vst [vmem:[#allocation33_spill] sm:$0xff] %v13245_v25  ;;  %v16019_v46 = vsub.f32 %v16018_v60, %v12802_v50  ;;  %v5969_v25 = vadd.f32 %v13191_v32, %v5899_v44  ;;  %v5972_v50 = vadd.f32 %v13191_v32, %v12982_v17  ;;  %v6032_v45 = vmax.f32 %v5968_v62, 0.0 }
 0x5ff   :  { %16014 = vst [vmem:[#allocation30_spill] sm:$0xff] %v13251_v41  ;;  %16017 = vst [vmem:[#allocation32_spill] sm:$0xff] %v13257_v28  ;;  %v6031_v60 = vmax.f32 %v5967_v34, 0.0  ;;  %v6034_v48 = vmax.f32 %v5970_v43, 0.0  ;;  %v5974_v3 = vadd.f32 %v13191_v32, %v12994_v19  ;;  %v5975_v11 = vadd.f32 %v13191_v32, %v13000_v31 }
 0x600   :  { %v13263_v5 = vmul.f32 %v12924_v58, %v16019_v46  ;;  %v5973_v58 = vadd.f32 %v13191_v32, %v12988_v23  ;;  %v6033_v44 = vmax.f32 %v5969_v25, 0.0  ;;  %v6030_v46 = vmax.f32 %v5966_v39, 0.0 }
 0x601   :  { %v6036_v28 = vmax.f32 %v5972_v50, 0.0  ;;  %v5976_v23 = vadd.f32 %v13191_v32, %v13006_v15  ;;  %v5977_v25 = vadd.f32 %v13191_v32, %v13012_v10  ;;  %v6038_v62 = vmax.f32 %v5974_v3, 0.0 }
 0x602   :  { %16020 = vst [vmem:[#allocation35_spill] sm:$0xff] %v13263_v5  ;;  %v6035_v5 = vmax.f32 %v5971_v29, 0.0  ;;  %v6037_v16 = vmax.f32 %v5973_v58, 0.0  ;;  %v6095_v41 = vpack.c.bf16 %v6033_v44, %v6032_v45  ;;  %v6094_v51 = vpack.c.bf16 %v6031_v60, %v6030_v46 }
 0x603   :  { %v6039_v39 = vmax.f32 %v5975_v11, 0.0  ;;  %v5978_v34 = vadd.f32 %v13191_v32, %v13018_v52  ;;  %v5979_v19 = vadd.f32 %v13191_v32, %v13024_v38  ;;  %v6040_v43 = vmax.f32 %v5976_v23, 0.0 }
 0x604   :  { %v6096_v17 = vpack.c.bf16 %v6035_v5, %v6034_v48  ;;  %v6097_v35 = vpack.c.bf16 %v6037_v16, %v6036_v28  ;;  %8984 = vmatprep.mubr.bf16.mxu0 %v6094_v51  ;;  %v6041_v31 = vmax.f32 %v5977_v25, 0.0  ;;  %v5980_v28 = vadd.f32 %v13191_v32, %v13030_v47 }
 0x605   :  { %8985 = vmatmul.mubr.bf16.vlgmr.msra.gmra.mrb[128].mxu0 %v6095_v41  ;;  %v5981_v15 = vadd.f32 %v13191_v32, %v13036_v8  ;;  %v6098_v10 = vpack.c.bf16 %v6039_v39, %v6038_v62  ;;  %v6042_v51 = vmax.f32 %v5978_v34, 0.0  ;;  %v6043_v5 = vmax.f32 %v5979_v19, 0.0 }
 0x606   :  { %8988 = vmatprep.mubr.bf16.mxu0 %v6096_v17  ;;  %v5982_v29 = vadd.f32 %v13191_v32, %v13042_v2  ;;  %v6099_v52 = vpack.c.bf16 %v6041_v31, %v6040_v43  ;;  %v6044_v50 = vmax.f32 %v5980_v28, 0.0  ;;  %v5983_v38 = vadd.f32 %v13191_v32, %v13048_v53 }
 0x607   :  { %v6045_v58 = vmax.f32 %v5981_v15, 0.0  ;;  %v6100_v41 = vpack.c.bf16 %v6043_v5, %v6042_v51  ;;  %v5984_v47 = vadd.f32 %v13191_v32, %v13054_v33  ;;  %v5985_v8 = vadd.f32 %v13191_v32, %v13060_v21 }
 0x608   :  { %v6046_v45 = vmax.f32 %v5982_v29, 0.0  ;;  %v6047_v46 = vmax.f32 %v5983_v38, 0.0  ;;  %v5986_v2 = vadd.f32 %v13191_v32, %v13066_v13  ;;  %v5987_v60 = vadd.f32 %v13191_v32, %v13072_v63 }
 0x609   :  { %v13303_v44 = vpack.c.bf16 %v6045_v58, %v6044_v50  ;;  %v6048_v48 = vmax.f32 %v5984_v47, 0.0  ;;  %v6049_v16 = vmax.f32 %v5985_v8, 0.0  ;;  %v5988_v53 = vadd.f32 %v13191_v32, %v13078_v20 }
 0x60a   :  { %v5989_v33 = vadd.f32 %v13191_v32, %v13084_v14  ;;  %v13313_v3 = vpack.c.bf16 %v6047_v46, %v6046_v45  ;;  %v6050_v21 = vmax.f32 %v5986_v2, 0.0  ;;  %v6051_v11 = vmax.f32 %v5987_v60, 0.0 }
 0x60b   :  { %v5990_v17 = vadd.f32 %v13191_v32, %v13090_v56  ;;  %v13317_v23 = vpack.c.bf16 %v6049_v16, %v6048_v48  ;;  %v6052_v13 = vmax.f32 %v5988_v53, 0.0  ;;  %v5991_v63 = vadd.f32 %v13191_v32, %v13096_v0 }
 0x60c   :  { %v6053_v25 = vmax.f32 %v5989_v33, 0.0  ;;  %v13321_v62 = vpack.c.bf16 %v6051_v11, %v6050_v21  ;;  %v5992_v14 = vadd.f32 %v13191_v32, %v13102_v24  ;;  %v5993_v39 = vadd.f32 %v13191_v32, %v13108_v1 }
 0x60d   :  { %8989 = vmatmul.mubr.bf16.gmra.mrb[132].mxu0 %v6097_v35  ;;  %v6054_v20 = vmax.f32 %v5990_v17, 0.0  ;;  %v6055_v56 = vmax.f32 %v5991_v63, 0.0  ;;  %v5994_v19 = vadd.f32 %v13191_v32, %v13111_v57  ;;  %v5995_v0 = vadd.f32 %v13191_v32, %v13114_v4  ;;  %v16021_v63 = vld [vmem:[#allocation18_spill] sm:$0xff] }
 0x60e   :  { %8992 = vmatprep.mubr.bf16.mxu0 %v6098_v10  ;;  %v13327_v34 = vpack.c.bf16 %v6053_v25, %v6052_v13  ;;  %v6056_v35 = vmax.f32 %v5992_v14, 0.0  ;;  %v6057_v43 = vmax.f32 %v5993_v39, 0.0  ;;  %v5996_v31 = vadd.f32 %v13191_v32, %v13117_v30 }
 0x60f   :  { %v5997_v24 = vadd.f32 %v13191_v32, %v13120_v9  ;;  %v13337_v28 = vpack.c.bf16 %v6055_v56, %v6054_v20  ;;  %v6058_v1 = vmax.f32 %v5994_v19, 0.0  ;;  %v6059_v15 = vmax.f32 %v5995_v0, 0.0  ;;  %v16022_v56 = vld [vmem:[#allocation15_spill] sm:$0xff] }
 0x610   :  { %v5998_v10 = vadd.f32 %v13191_v32, %v13123_v27  ;;  %v13341_v51 = vpack.c.bf16 %v6057_v43, %v6056_v35  ;;  %v6060_v57 = vmax.f32 %v5996_v31, 0.0  ;;  %v5999_v4 = vadd.f32 %v13191_v32, %v13126_v59  ;;  %v16023_v35 = vld [vmem:[#allocation17_spill] sm:$0xff]  ;;  %v16024_v43 = vld [vmem:[#allocation20_spill] sm:$0xff] }
 0x611   :  { %v6061_v5 = vmax.f32 %v5997_v24, 0.0  ;;  %v13345_v29 = vpack.c.bf16 %v6059_v15, %v6058_v1  ;;  %v6000_v9 = vadd.f32 %v13191_v32, %v13129_v49  ;;  %v6001_v50 = vadd.f32 %v13191_v32, %v13132_v42  ;;  %v16025_v1 = vld [vmem:[#allocation22_spill] sm:$0xff] }
 0x612   :  { %v6062_v30 = vmax.f32 %v5998_v10, 0.0  ;;  %v6063_v38 = vmax.f32 %v5999_v4, 0.0  ;;  %v6002_v27 = vadd.f32 %v13191_v32, %v13135_v22  ;;  %v6003_v45 = vadd.f32 %v13191_v32, %v13138_v7  ;;  %v16026_v10 = vld [vmem:[#allocation19_spill] sm:$0xff] }
 0x613   :  { %v13351_v58 = vpack.c.bf16 %v6061_v5, %v6060_v57  ;;  %v6064_v47 = vmax.f32 %v6000_v9, 0.0  ;;  %v6065_v59 = vmax.f32 %v6001_v50, 0.0  ;;  %v6004_v8 = vadd.f32 %v13191_v32, %v13141_v6  ;;  %v16028_v50 = vld [vmem:[#allocation9_spill] sm:$0xff] }
 0x614   :  { %v6005_v49 = vadd.f32 %v13191_v32, %v13144_v40  ;;  %v13361_v46 = vpack.c.bf16 %v6063_v38, %v6062_v30  ;;  %v6066_v42 = vmax.f32 %v6002_v27, 0.0  ;;  %v6067_v2 = vmax.f32 %v6003_v45, 0.0  ;;  %v16027_v30 = vld [vmem:[#allocation24_spill] sm:$0xff] }
 0x615   :  { %8993 = vmatmul.mubr.bf16.gmra.mrb[136].mxu0 %v6099_v52  ;;  %v6006_v60 = vadd.f32 %v13191_v32, %v13147_v55  ;;  %v13365_v22 = vpack.c.bf16 %v6065_v59, %v6064_v47  ;;  %v6068_v7 = vmax.f32 %v6004_v8, 0.0  ;;  %v6007_v16 = vadd.f32 %v13191_v32, %v13150_v36  ;;  %v16029_v47 = vld [vmem:[#allocation21_spill] sm:$0xff] }
 0x616   :  { %8996 = vmatprep.mubr.bf16.mxu0 %v6100_v41  ;;  %v6069_v48 = vmax.f32 %v6005_v49, 0.0  ;;  %v13369_v6 = vpack.c.bf16 %v6067_v2, %v6066_v42  ;;  %v6008_v40 = vadd.f32 %v13191_v32, %v13153_v54  ;;  %v6009_v52 = vadd.f32 %v13191_v32, %v13156_v18  ;;  %v16030_v2 = vld [vmem:[#allocation26_spill] sm:$0xff] }
 0x617   :  { %v6070_v53 = vmax.f32 %v6006_v60, 0.0  ;;  %v6071_v55 = vmax.f32 %v6007_v16, 0.0  ;;  %v6010_v41 = vadd.f32 %v13191_v32, %v13159_v26  ;;  %v6011_v21 = vadd.f32 %v13191_v32, %v13162_v61 }
 0x618   :  { %v13375_v33 = vpack.c.bf16 %v6069_v48, %v6068_v7  ;;  %v6072_v11 = vmax.f32 %v6008_v40, 0.0  ;;  %v6073_v36 = vmax.f32 %v6009_v52, 0.0  ;;  %v6012_v17 = vadd.f32 %v13191_v32, %v13165_v12  ;;  %v16031_v48 = vld [vmem:[#allocation31_spill] sm:$0xff] }
 0x619   :  { %v6013_v54 = vadd.f32 %v13191_v32, %v13168_v37  ;;  %v6114_v13 = vpack.c.bf16 %v6071_v55, %v6070_v53  ;;  %v6074_v25 = vmax.f32 %v6010_v41, 0.0  ;;  %v6075_v18 = vmax.f32 %v6011_v21, 0.0  ;;  %v16032_v53 = vld [vmem:[#allocation33_spill] sm:$0xff]  ;;  %v16033_v41 = vld [vmem:[#allocation30_spill] sm:$0xff] }
 0x61a   :  { %v6014_v20 = vadd.f32 %v13191_v32, %v16021_v63  ;;  %v6115_v14 = vpack.c.bf16 %v6073_v36, %v6072_v11  ;;  %v6076_v39 = vmax.f32 %v6012_v17, 0.0  ;;  %v6015_v61 = vadd.f32 %v13191_v32, %v16022_v56  ;;  %v16034_v11 = vld [vmem:[#allocation16_spill] sm:$0xff]  ;;  %v16036_v63 = vld [vmem:[#allocation35_spill] sm:$0xff] }
 0x61b   :  { %v6077_v26 = vmax.f32 %v6013_v54, 0.0  ;;  %v6116_v19 = vpack.c.bf16 %v6075_v18, %v6074_v25  ;;  %v6016_v12 = vadd.f32 %v13191_v32, %v16023_v35  ;;  %v6017_v37 = vadd.f32 %v13191_v32, %v16024_v43  ;;  %v16035_v25 = vld [vmem:[#allocation32_spill] sm:$0xff] }
 0x61c   :  { %v6078_v0 = vmax.f32 %v6014_v20, 0.0  ;;  %v6079_v24 = vmax.f32 %v6015_v61, 0.0  ;;  %v6018_v15 = vadd.f32 %v13191_v32, %v16025_v1  ;;  %v6019_v57 = vadd.f32 %v13191_v32, %v16026_v10 }
 0x61d   :  { %8997 = vmatmul.mubr.bf16.gmra.mrb[140].mxu0 %v13303_v44  ;;  %v6117_v31 = vpack.c.bf16 %v6077_v26, %v6076_v39  ;;  %v6080_v5 = vmax.f32 %v6016_v12, 0.0  ;;  %v6081_v4 = vmax.f32 %v6017_v37, 0.0  ;;  %v6020_v9 = vadd.f32 %v13191_v32, %v16027_v30 }
 0x61e   :  { %9000 = vmatprep.mubr.bf16.mxu0 %v13313_v3  ;;  %v6021_v38 = vadd.f32 %v13191_v32, %v16028_v50  ;;  %v6118_v27 = vpack.c.bf16 %v6079_v24, %v6078_v0  ;;  %v6082_v44 = vmax.f32 %v6018_v15, 0.0  ;;  %v6083_v45 = vmax.f32 %v6019_v57, 0.0 }
 0x61f   :  { %v6022_v59 = vadd.f32 %v13191_v32, %v16029_v47  ;;  %v6119_v8 = vpack.c.bf16 %v6081_v4, %v6080_v5  ;;  %v6084_v49 = vmax.f32 %v6020_v9, 0.0  ;;  %v6023_v3 = vadd.f32 %v13191_v32, %v16030_v2 }
 0x620   :  { %v6085_v42 = vmax.f32 %v6021_v38, 0.0  ;;  %v6120_v60 = vpack.c.bf16 %v6083_v45, %v6082_v44  ;;  %v6024_v16 = vadd.f32 %v13191_v32, %v16031_v48  ;;  %v6025_v40 = vadd.f32 %v13191_v32, %v16032_v53 }
 0x621   :  { %v6086_v7 = vmax.f32 %v6022_v59, 0.0  ;;  %v6087_v55 = vmax.f32 %v6023_v3, 0.0  ;;  %v6026_v21 = vadd.f32 %v13191_v32, %v16033_v41  ;;  %v6027_v36 = vadd.f32 %v13191_v32, %v16034_v11 }
 0x622   :  { %v6121_v52 = vpack.c.bf16 %v6085_v42, %v6084_v49  ;;  %v6088_v17 = vmax.f32 %v6024_v16, 0.0  ;;  %v6089_v54 = vmax.f32 %v6025_v40, 0.0  ;;  %v6028_v18 = vadd.f32 %v13191_v32, %v16035_v25 }
 0x623   :  { %v6029_v20 = vadd.f32 %v13191_v32, %v16036_v63  ;;  %v6122_v39 = vpack.c.bf16 %v6087_v55, %v6086_v7  ;;  %v6090_v26 = vmax.f32 %v6026_v21, 0.0  ;;  %v6091_v56 = vmax.f32 %v6027_v36, 0.0 }
 0x624   :  { %v6123_v61 = vpack.c.bf16 %v6089_v54, %v6088_v17  ;;  %v6092_v0 = vmax.f32 %v6028_v18, 0.0  ;;  %v15513_v32 = vmov 0.0|0.0  }
 0x625   :  { %9001 = vmatmul.mubr.bf16.gmra.mrb[144].mxu0 %v13317_v23  ;;  %v6093_v35 = vmax.f32 %v6029_v20, 0.0  ;;  %v6124_v12 = vpack.c.bf16 %v6091_v56, %v6090_v26  ;;  %9118 = vmatprep.subr.bf16.mxu0 %v15513_v32  ;;  %v6969_v23 = vld [vmem:[%s15393_s10] sm:$0xff] }
 0x626   :  { %9004 = vmatprep.mubr.bf16.mxu0 %v13321_v62  ;;  %v6970_v62 = vld [vmem:[%s15393_s10 + $0x8] sm:$0xff] }
 0x627   :  { %v6125_v43 = vpack.c.bf16 %v6093_v35, %v6092_v0 }
 0x62d   :  { %9005 = vmatmul.mubr.bf16.gmra.mrb[148].mxu0 %v13327_v34  ;;  %v9119_v34 = vpack.c.bf16 %v6970_v62, %v6969_v23 }
 0x62e   :  { %9008 = vmatprep.mubr.bf16.mxu0 %v13337_v28 }
 0x62f   :  { %9120 = vmatpush3.bf16.msra.mxu0 %v9119_v34 }
 0x630   :  { %9121 = vmatprep.subr.bf16.mxu0 %v15513_v32 }
 0x635   :  { %9009 = vmatmul.mubr.bf16.gmra.mrb[152].mxu0 %v13341_v51 }
 0x636   :  { %9012 = vmatprep.mubr.bf16.mxu0 %v13345_v29 }
 0x63d   :  { %9013 = vmatmul.mubr.bf16.gmra.mrb[156].mxu0 %v13351_v58 }
 0x63e   :  { %9016 = vmatprep.mubr.bf16.mxu0 %v13361_v46 }
 0x645   :  { %9017 = vmatmul.mubr.bf16.gmra.mrb[160].mxu0 %v13365_v22 }
 0x646   :  { %9020 = vmatprep.mubr.bf16.mxu0 %v13369_v6 }
 0x64d   :  { %9021 = vmatmul.mubr.bf16.gmra.mrb[164].mxu0 %v13375_v33 }
 0x64e   :  { %9024 = vmatprep.mubr.bf16.mxu0 %v6114_v13 }
 0x655   :  { %9025 = vmatmul.mubr.bf16.gmra.mrb[168].mxu0 %v6115_v14 }
 0x656   :  { %9028 = vmatprep.mubr.bf16.mxu0 %v6116_v19 }
 0x65d   :  { %9029 = vmatmul.mubr.bf16.gmra.mrb[172].mxu0 %v6117_v31 }
 0x65e   :  { %9032 = vmatprep.mubr.bf16.mxu0 %v6118_v27 }
 0x665   :  { %9033 = vmatmul.mubr.bf16.gmra.mrb[176].mxu0 %v6119_v8 }
 0x666   :  { %9036 = vmatprep.mubr.bf16.mxu0 %v6120_v60 }
 0x66d   :  { %9037 = vmatmul.mubr.bf16.gmra.mrb[180].mxu0 %v6121_v52 }
 0x66e   :  { %9040 = vmatprep.mubr.bf16.mxu0 %v6122_v39 }
 0x675   :  { %9041 = vmatmul.mubr.bf16.gmra.mrb[184].mxu0 %v6123_v61 }
 0x676   :  { %9044 = vmatprep.mubr.bf16.mxu0 %v6124_v12 }
 0x67d   :  { %9045 = vmatmul.mubr.bf16.gmra.mrb[188].mxu0 %v6125_v43 }
 0x6d8   :  { %v13438_v28 = vpop.f32.mrb[128].mxu0 }
 0x6d9   :  { %v13440_v51 = vpop.f32.mrb[129].mxu0  ;;  %v6552_v33 = vmul.f32 %v13438_v28, %v13438_v28 }
 0x6da   :  { %v13442_v29 = vpop.f32.mrb[130].mxu0  ;;  %v6550_v46 = vmul.f32 %v13440_v51, %v13440_v51 }
 0x6db   :  { %v13444_v58 = vpop.f32.mrb[131].mxu0  ;;  %v6553_v19 = vmul.f32 %v13442_v29, %v13442_v29 }
 0x6dc   :  { %v6481_v22 = vadd.f32 %v13444_v58, %v13440_v51  ;;  %v6551_v6 = vmul.f32 %v13444_v58, %v13444_v58 }
 0x6de   :  { %v6482_v13 = vadd.f32 %v13438_v28, %v6481_v22  ;;  %v6614_v14 = vadd.f32 %v6551_v6, %v6550_v46 }
 0x6e0   :  { %v6615_v37 = vadd.f32 %v6614_v14, %v6552_v33  ;;  %v13457_v31 = vpop.f32.mrb[132].mxu0  ;;  %v6483_v24 = vadd.f32 %v13442_v29, %v6482_v13 }
 0x6e1   :  { %v13460_v1 = vpop.f32.mrb[133].mxu0  ;;  %v6556_v38 = vmul.f32 %v13457_v31, %v13457_v31 }
 0x6e2   :  { %v6484_v15 = vadd.f32 %v6483_v24, %v13460_v1  ;;  %v6554_v10 = vmul.f32 %v13460_v1, %v13460_v1  ;;  %v6616_v57 = vadd.f32 %v6615_v37, %v6553_v19  ;;  %v13465_v5 = vpop.f32.mrb[134].mxu0 }
 0x6e3   :  { %v13467_v4 = vpop.f32.mrb[135].mxu0  ;;  %v6557_v45 = vmul.f32 %v13465_v5, %v13465_v5 }
 0x6e4   :  { %v6617_v30 = vadd.f32 %v6616_v57, %v6554_v10  ;;  %v6485_v9 = vadd.f32 %v6484_v15, %v13467_v4  ;;  %v6555_v50 = vmul.f32 %v13467_v4, %v13467_v4 }
 0x6e6   :  { %v6486_v27 = vadd.f32 %v13457_v31, %v6485_v9  ;;  %v6618_v44 = vadd.f32 %v6617_v30, %v6555_v50 }
 0x6e8   :  { %v6619_v47 = vadd.f32 %v6618_v44, %v6556_v38  ;;  %v13477_v59 = vpop.f32.mrb[136].mxu0  ;;  %v6487_v8 = vadd.f32 %v13465_v5, %v6486_v27 }
 0x6e9   :  { %16037 = vst [vmem:[#allocation37_spill] sm:$0xff] %v13477_v59  ;;  %v13480_v49 = vpop.f32.mrb[137].mxu0  ;;  %v6560_v40 = vmul.f32 %v13477_v59, %v13477_v59 }
 0x6ea   :  { %v6488_v42 = vadd.f32 %v6487_v8, %v13480_v49  ;;  %v6558_v2 = vmul.f32 %v13480_v49, %v13480_v49  ;;  %v6620_v3 = vadd.f32 %v6619_v47, %v6557_v45  ;;  %v13485_v60 = vpop.f32.mrb[138].mxu0 }
 0x6eb   :  { %16038 = vst [vmem:[#allocation34_spill] sm:$0xff] %v13485_v60  ;;  %v13487_v7 = vpop.f32.mrb[139].mxu0  ;;  %v6561_v41 = vmul.f32 %v13485_v60, %v13485_v60 }
 0x6ec   :  { %v6621_v48 = vadd.f32 %v6620_v3, %v6558_v2  ;;  %v6489_v16 = vadd.f32 %v6488_v42, %v13487_v7  ;;  %v6559_v53 = vmul.f32 %v13487_v7, %v13487_v7 }
 0x6ee   :  { %v6490_v52 = vadd.f32 %v13477_v59, %v6489_v16  ;;  %v6622_v55 = vadd.f32 %v6621_v48, %v6559_v53 }
 0x6f0   :  { %v6623_v21 = vadd.f32 %v6622_v55, %v6560_v40  ;;  %v13497_v11 = vpop.f32.mrb[140].mxu0  ;;  %v6491_v36 = vadd.f32 %v13485_v60, %v6490_v52 }
 0x6f1   :  { %16039 = vst [vmem:[#allocation36_spill] sm:$0xff] %v13497_v11  ;;  %v13500_v17 = vpop.f32.mrb[141].mxu0  ;;  %v6564_v61 = vmul.f32 %v13497_v11, %v13497_v11 }
 0x6f2   :  { %16040 = vst [vmem:[#allocation39_spill] sm:$0xff] %v13500_v17  ;;  %v6492_v54 = vadd.f32 %v6491_v36, %v13500_v17  ;;  %v6562_v25 = vmul.f32 %v13500_v17, %v13500_v17  ;;  %v6624_v18 = vadd.f32 %v6623_v21, %v6561_v41  ;;  %v13505_v63 = vpop.f32.mrb[142].mxu0 }
 0x6f3   :  { %16041 = vst [vmem:[#allocation41_spill] sm:$0xff] %v13505_v63  ;;  %v13507_v20 = vpop.f32.mrb[143].mxu0  ;;  %v6565_v12 = vmul.f32 %v13505_v63, %v13505_v63 }
 0x6f4   :  { %16042 = vst [vmem:[#allocation38_spill] sm:$0xff] %v13507_v20  ;;  %v6625_v39 = vadd.f32 %v6624_v18, %v6562_v25  ;;  %v6493_v26 = vadd.f32 %v6492_v54, %v13507_v20  ;;  %v6563_v56 = vmul.f32 %v13507_v20, %v13507_v20 }
 0x6f6   :  { %v6494_v0 = vadd.f32 %v13497_v11, %v6493_v26  ;;  %v6626_v35 = vadd.f32 %v6625_v39, %v6563_v56 }
 0x6f8   :  { %v6627_v43 = vadd.f32 %v6626_v35, %v6564_v61  ;;  %v13517_v23 = vpop.f32.mrb[144].mxu0  ;;  %v6495_v62 = vadd.f32 %v13505_v63, %v6494_v0 }
 0x6f9   :  { %16043 = vst [vmem:[#allocation40_spill] sm:$0xff] %v13517_v23  ;;  %v13520_v34 = vpop.f32.mrb[145].mxu0  ;;  %v6568_v24 = vmul.f32 %v13517_v23, %v13517_v23 }
 0x6fa   :  { %16044 = vst [vmem:[#allocation43_spill] sm:$0xff] %v13520_v34  ;;  %v6496_v46 = vadd.f32 %v6495_v62, %v13520_v34  ;;  %v6566_v22 = vmul.f32 %v13520_v34, %v13520_v34  ;;  %v6628_v6 = vadd.f32 %v6627_v43, %v6565_v12  ;;  %v13525_v33 = vpop.f32.mrb[146].mxu0 }
 0x6fb   :  { %16045 = vst [vmem:[#allocation25_spill] sm:$0xff] %v13525_v33  ;;  %v13527_v13 = vpop.f32.mrb[147].mxu0  ;;  %v6569_v57 = vmul.f32 %v13525_v33, %v13525_v33 }
 0x6fc   :  { %16046 = vst [vmem:[#allocation42_spill] sm:$0xff] %v13527_v13  ;;  %v6629_v14 = vadd.f32 %v6628_v6, %v6566_v22  ;;  %v6497_v19 = vadd.f32 %v6496_v46, %v13527_v13  ;;  %v6567_v37 = vmul.f32 %v13527_v13, %v13527_v13 }
 0x6fe   :  { %v6498_v15 = vadd.f32 %v13517_v23, %v6497_v19  ;;  %v6630_v10 = vadd.f32 %v6629_v14, %v6567_v37 }
 0x700   :  { %v6631_v30 = vadd.f32 %v6630_v10, %v6568_v24  ;;  %v13537_v9 = vpop.f32.mrb[148].mxu0  ;;  %v6499_v50 = vadd.f32 %v13525_v33, %v6498_v15 }
 0x701   :  { %16047 = vst [vmem:[#allocation23_spill] sm:$0xff] %v13537_v9  ;;  %v13540_v38 = vpop.f32.mrb[149].mxu0  ;;  %v6572_v48 = vmul.f32 %v13537_v9, %v13537_v9 }
 0x702   :  { %16048 = vst [vmem:[#allocation28_spill] sm:$0xff] %v13540_v38  ;;  %v6500_v27 = vadd.f32 %v6499_v50, %v13540_v38  ;;  %v6570_v44 = vmul.f32 %v13540_v38, %v13540_v38  ;;  %v6632_v45 = vadd.f32 %v6631_v30, %v6569_v57  ;;  %v13545_v47 = vpop.f32.mrb[150].mxu0 }
 0x703   :  { %16049 = vst [vmem:[#allocation27_spill] sm:$0xff] %v13545_v47  ;;  %v13547_v8 = vpop.f32.mrb[151].mxu0  ;;  %v6573_v40 = vmul.f32 %v13545_v47, %v13545_v47 }
 0x704   :  { %16050 = vst [vmem:[#allocation8_spill] sm:$0xff] %v13547_v8  ;;  %v6633_v42 = vadd.f32 %v6632_v45, %v6570_v44  ;;  %v6501_v2 = vadd.f32 %v6500_v27, %v13547_v8  ;;  %v6571_v3 = vmul.f32 %v13547_v8, %v13547_v8 }
 0x706   :  { %v6502_v16 = vadd.f32 %v13537_v9, %v6501_v2  ;;  %v6634_v53 = vadd.f32 %v6633_v42, %v6571_v3 }
 0x708   :  { %v6635_v52 = vadd.f32 %v6634_v53, %v6572_v48  ;;  %v13557_v55 = vpop.f32.mrb[152].mxu0  ;;  %v6503_v41 = vadd.f32 %v13545_v47, %v6502_v16 }
 0x709   :  { %16051 = vst [vmem:[#allocation13_spill] sm:$0xff] %v13557_v55  ;;  %v13560_v21 = vpop.f32.mrb[153].mxu0  ;;  %v6576_v0 = vmul.f32 %v13557_v55, %v13557_v55 }
 0x70a   :  { %16052 = vst [vmem:[#allocation6_spill] sm:$0xff] %v13560_v21  ;;  %v6504_v36 = vadd.f32 %v6503_v41, %v13560_v21  ;;  %v6574_v54 = vmul.f32 %v13560_v21, %v13560_v21  ;;  %v6636_v25 = vadd.f32 %v6635_v52, %v6573_v40  ;;  %v13565_v18 = vpop.f32.mrb[154].mxu0 }
 0x70b   :  { %16053 = vst [vmem:[#allocation11_spill] sm:$0xff] %v13565_v18  ;;  %v13567_v39 = vpop.f32.mrb[155].mxu0  ;;  %v6577_v43 = vmul.f32 %v13565_v18, %v13565_v18 }
 0x70c   :  { %16054 = vst [vmem:[#allocation10_spill] sm:$0xff] %v13567_v39  ;;  %v6637_v26 = vadd.f32 %v6636_v25, %v6574_v54  ;;  %v6505_v56 = vadd.f32 %v6504_v36, %v13567_v39  ;;  %v6575_v61 = vmul.f32 %v13567_v39, %v13567_v39 }
 0x70e   :  { %v6506_v35 = vadd.f32 %v13557_v55, %v6505_v56  ;;  %v6638_v12 = vadd.f32 %v6637_v26, %v6575_v61 }
 0x710   :  { %v6639_v62 = vadd.f32 %v6638_v12, %v6576_v0  ;;  %v13577_v46 = vpop.f32.mrb[156].mxu0  ;;  %v6507_v22 = vadd.f32 %v13565_v18, %v6506_v35 }
 0x711   :  { %16055 = vst [vmem:[#allocation14_spill] sm:$0xff] %v13577_v46  ;;  %v13580_v6 = vpop.f32.mrb[157].mxu0  ;;  %v6580_v50 = vmul.f32 %v13577_v46, %v13577_v46 }
 0x712   :  { %16056 = vst [vmem:[#allocation12_spill] sm:$0xff] %v13580_v6  ;;  %v6508_v14 = vadd.f32 %v6507_v22, %v13580_v6  ;;  %v6578_v19 = vmul.f32 %v13580_v6, %v13580_v6  ;;  %v6640_v37 = vadd.f32 %v6639_v62, %v6577_v43  ;;  %v13585_v24 = vpop.f32.mrb[158].mxu0 }
 0x713   :  { %16057 = vst [vmem:[#allocation18_spill] sm:$0xff] %v13585_v24  ;;  %v13587_v15 = vpop.f32.mrb[159].mxu0  ;;  %v6581_v45 = vmul.f32 %v13585_v24, %v13585_v24 }
 0x714   :  { %16058 = vst [vmem:[#allocation15_spill] sm:$0xff] %v13587_v15  ;;  %v6641_v10 = vadd.f32 %v6640_v37, %v6578_v19  ;;  %v6509_v57 = vadd.f32 %v6508_v14, %v13587_v15  ;;  %v6579_v30 = vmul.f32 %v13587_v15, %v13587_v15 }
 0x716   :  { %v6510_v27 = vadd.f32 %v13577_v46, %v6509_v57  ;;  %v6642_v44 = vadd.f32 %v6641_v10, %v6579_v30 }
 0x718   :  { %v6643_v42 = vadd.f32 %v6642_v44, %v6580_v50  ;;  %v13597_v2 = vpop.f32.mrb[160].mxu0  ;;  %v6511_v3 = vadd.f32 %v13585_v24, %v6510_v27 }
 0x719   :  { %v13600_v48 = vpop.f32.mrb[161].mxu0  ;;  %v6584_v26 = vmul.f32 %v13597_v2, %v13597_v2 }
 0x71a   :  { %v6512_v16 = vadd.f32 %v6511_v3, %v13600_v48  ;;  %v6582_v53 = vmul.f32 %v13600_v48, %v13600_v48  ;;  %v6644_v40 = vadd.f32 %v6643_v42, %v6581_v45  ;;  %v13605_v52 = vpop.f32.mrb[162].mxu0 }
 0x71b   :  { %v13607_v41 = vpop.f32.mrb[163].mxu0  ;;  %v6585_v0 = vmul.f32 %v13605_v52, %v13605_v52 }
 0x71c   :  { %v6645_v36 = vadd.f32 %v6644_v40, %v6582_v53  ;;  %v6513_v54 = vadd.f32 %v6512_v16, %v13607_v41  ;;  %v6583_v25 = vmul.f32 %v13607_v41, %v13607_v41 }
 0x71e   :  { %v6514_v56 = vadd.f32 %v13597_v2, %v6513_v54  ;;  %v6646_v61 = vadd.f32 %v6645_v36, %v6583_v25 }
 0x720   :  { %v6647_v35 = vadd.f32 %v6646_v61, %v6584_v26  ;;  %v13617_v12 = vpop.f32.mrb[164].mxu0  ;;  %v6515_v43 = vadd.f32 %v13605_v52, %v6514_v56 }
 0x721   :  { %v13620_v62 = vpop.f32.mrb[165].mxu0  ;;  %v6588_v27 = vmul.f32 %v13617_v12, %v13617_v12 }
 0x722   :  { %v6516_v22 = vadd.f32 %v6515_v43, %v13620_v62  ;;  %v6586_v14 = vmul.f32 %v13620_v62, %v13620_v62  ;;  %v6648_v19 = vadd.f32 %v6647_v35, %v6585_v0  ;;  %v13625_v37 = vpop.f32.mrb[166].mxu0 }
 0x723   :  { %v13627_v10 = vpop.f32.mrb[167].mxu0  ;;  %v6589_v42 = vmul.f32 %v13625_v37, %v13625_v37 }
 0x724   :  { %v6649_v57 = vadd.f32 %v6648_v19, %v6586_v14  ;;  %v6517_v30 = vadd.f32 %v6516_v22, %v13627_v10  ;;  %v6587_v50 = vmul.f32 %v13627_v10, %v13627_v10 }
 0x726   :  { %v6518_v44 = vadd.f32 %v13617_v12, %v6517_v30  ;;  %v6650_v45 = vadd.f32 %v6649_v57, %v6587_v50 }
 0x728   :  { %v6651_v3 = vadd.f32 %v6650_v45, %v6588_v27  ;;  %v13637_v16 = vpop.f32.mrb[168].mxu0  ;;  %v6519_v53 = vadd.f32 %v13625_v37, %v6518_v44 }
 0x729   :  { %v13640_v40 = vpop.f32.mrb[169].mxu0  ;;  %v6592_v43 = vmul.f32 %v13637_v16, %v13637_v16 }
 0x72a   :  { %v6520_v36 = vadd.f32 %v6519_v53, %v13640_v40  ;;  %v6590_v54 = vmul.f32 %v13640_v40, %v13640_v40  ;;  %v6652_v25 = vadd.f32 %v6651_v3, %v6589_v42  ;;  %v13645_v26 = vpop.f32.mrb[170].mxu0 }
 0x72b   :  { %v13647_v56 = vpop.f32.mrb[171].mxu0  ;;  %v6593_v19 = vmul.f32 %v13645_v26, %v13645_v26 }
 0x72c   :  { %v6653_v61 = vadd.f32 %v6652_v25, %v6590_v54  ;;  %v6521_v0 = vadd.f32 %v6520_v36, %v13647_v56  ;;  %v6591_v35 = vmul.f32 %v13647_v56, %v13647_v56 }
 0x72e   :  { %v6522_v22 = vadd.f32 %v13637_v16, %v6521_v0  ;;  %v6654_v14 = vadd.f32 %v6653_v61, %v6591_v35 }
 0x730   :  { %v6655_v57 = vadd.f32 %v6654_v14, %v6592_v43  ;;  %v13657_v30 = vpop.f32.mrb[172].mxu0  ;;  %v6523_v50 = vadd.f32 %v13645_v26, %v6522_v22 }
 0x731   :  { %v13660_v27 = vpop.f32.mrb[173].mxu0  ;;  %v6596_v61 = vmul.f32 %v13657_v30, %v13657_v30 }
 0x732   :  { %v6524_v44 = vadd.f32 %v6523_v50, %v13660_v27  ;;  %v6594_v45 = vmul.f32 %v13660_v27, %v13660_v27  ;;  %v6656_v42 = vadd.f32 %v6655_v57, %v6593_v19  ;;  %v13665_v3 = vpop.f32.mrb[174].mxu0 }
 0x733   :  { %v13667_v53 = vpop.f32.mrb[175].mxu0  ;;  %v6597_v43 = vmul.f32 %v13665_v3, %v13665_v3 }
 0x734   :  { %v6657_v36 = vadd.f32 %v6656_v42, %v6594_v45  ;;  %v6525_v54 = vadd.f32 %v6524_v44, %v13667_v53  ;;  %v6595_v25 = vmul.f32 %v13667_v53, %v13667_v53 }
 0x736   :  { %v6526_v0 = vadd.f32 %v13657_v30, %v6525_v54  ;;  %v6658_v35 = vadd.f32 %v6657_v36, %v6595_v25 }
 0x738   :  { %v6659_v22 = vadd.f32 %v6658_v35, %v6596_v61  ;;  %v13677_v14 = vpop.f32.mrb[176].mxu0  ;;  %v6527_v19 = vadd.f32 %v13665_v3, %v6526_v0 }
 0x739   :  { %v13680_v57 = vpop.f32.mrb[177].mxu0  ;;  %v6600_v0 = vmul.f32 %v13677_v14, %v13677_v14 }
 0x73a   :  { %v6528_v50 = vadd.f32 %v6527_v19, %v13680_v57  ;;  %v6598_v44 = vmul.f32 %v13680_v57, %v13680_v57  ;;  %v6660_v45 = vadd.f32 %v6659_v22, %v6597_v43  ;;  %v13685_v42 = vpop.f32.mrb[178].mxu0 }
 0x73b   :  { %v13687_v54 = vpop.f32.mrb[179].mxu0  ;;  %v6601_v32 = vmul.f32 %v13685_v42, %v13685_v42 }
 0x73c   :  { %v6661_v36 = vadd.f32 %v6660_v45, %v6598_v44  ;;  %v6529_v25 = vadd.f32 %v6528_v50, %v13687_v54  ;;  %v6599_v61 = vmul.f32 %v13687_v54, %v13687_v54 }
 0x73e   :  { %v6530_v35 = vadd.f32 %v13677_v14, %v6529_v25  ;;  %v6662_v19 = vadd.f32 %v6661_v36, %v6599_v61 }
 0x740   :  { %v6663_v43 = vadd.f32 %v6662_v19, %v6600_v0  ;;  %v13697_v22 = vpop.f32.mrb[180].mxu0  ;;  %v6531_v24 = vadd.f32 %v13685_v42, %v6530_v35 }
 0x741   :  { %v13700_v44 = vpop.f32.mrb[181].mxu0  ;;  %v6604_v35 = vmul.f32 %v13697_v22, %v13697_v22 }
 0x742   :  { %v6532_v50 = vadd.f32 %v6531_v24, %v13700_v44  ;;  %v6602_v45 = vmul.f32 %v13700_v44, %v13700_v44  ;;  %v6664_v46 = vadd.f32 %v6663_v43, %v6601_v32  ;;  %v13705_v15 = vpop.f32.mrb[182].mxu0 }
 0x743   :  { %v13707_v25 = vpop.f32.mrb[183].mxu0  ;;  %v6605_v6 = vmul.f32 %v13705_v15, %v13705_v15 }
 0x744   :  { %v6665_v36 = vadd.f32 %v6664_v46, %v6602_v45  ;;  %v6533_v61 = vadd.f32 %v6532_v50, %v13707_v25  ;;  %v6603_v0 = vmul.f32 %v13707_v25, %v13707_v25 }
 0x746   :  { %v6534_v19 = vadd.f32 %v13697_v22, %v6533_v61  ;;  %v6666_v24 = vadd.f32 %v6665_v36, %v6603_v0 }
 0x748   :  { %v6667_v32 = vadd.f32 %v6666_v24, %v6604_v35  ;;  %v13717_v43 = vpop.f32.mrb[184].mxu0  ;;  %v6535_v18 = vadd.f32 %v13705_v15, %v6534_v19 }
 0x749   :  { %v13720_v46 = vpop.f32.mrb[185].mxu0  ;;  %v6608_v19 = vmul.f32 %v13717_v43, %v13717_v43 }
 0x74a   :  { %v6536_v50 = vadd.f32 %v6535_v18, %v13720_v46  ;;  %v6606_v45 = vmul.f32 %v13720_v46, %v13720_v46  ;;  %v6668_v55 = vadd.f32 %v6667_v32, %v6605_v6  ;;  %v13725_v39 = vpop.f32.mrb[186].mxu0 }
 0x74b   :  { %v13727_v61 = vpop.f32.mrb[187].mxu0  ;;  %v6609_v21 = vmul.f32 %v13725_v39, %v13725_v39 }
 0x74c   :  { %v6669_v36 = vadd.f32 %v6668_v55, %v6606_v45  ;;  %v6537_v0 = vadd.f32 %v6536_v50, %v13727_v61  ;;  %v6607_v35 = vmul.f32 %v13727_v61, %v13727_v61 }
 0x74e   :  { %v6538_v24 = vadd.f32 %v13717_v43, %v6537_v0  ;;  %v6670_v18 = vadd.f32 %v6669_v36, %v6607_v35 }
 0x750   :  { %v6671_v6 = vadd.f32 %v6670_v18, %v6608_v19  ;;  %v13737_v32 = vpop.f32.mrb[188].mxu0  ;;  %v6539_v47 = vadd.f32 %v13725_v39, %v6538_v24 }
 0x751   :  { %v13740_v55 = vpop.f32.mrb[189].mxu0  ;;  %v6612_v24 = vmul.f32 %v13737_v32, %v13737_v32 }
 0x752   :  { %v6540_v50 = vadd.f32 %v6539_v47, %v13740_v55  ;;  %v6610_v45 = vmul.f32 %v13740_v55, %v13740_v55  ;;  %v6672_v9 = vadd.f32 %v6671_v6, %v6609_v21  ;;  %v13745_v8 = vpop.f32.mrb[190].mxu0 }
 0x753   :  { %v13747_v0 = vpop.f32.mrb[191].mxu0  ;;  %v6613_v38 = vmul.f32 %v13745_v8, %v13745_v8 }
 0x754   :  { %v6673_v36 = vadd.f32 %v6672_v9, %v6610_v45  ;;  %v6541_v35 = vadd.f32 %v6540_v50, %v13747_v0  ;;  %v6611_v19 = vmul.f32 %v13747_v0, %v13747_v0 }
 0x756   :  { %v6542_v18 = vadd.f32 %v13737_v32, %v6541_v35  ;;  %v6674_v47 = vadd.f32 %v6673_v36, %v6611_v19  ;;  %v6971_v36 = vld [vmem:[%s15393_s10 + $0x10] sm:$0xff]  ;;  %v6972_v35 = vld [vmem:[%s15393_s10 + $0x18] sm:$0xff]  ;;  %v13776_v19 = vld [vmem:[#allocation2] sm:$0xff] }
 0x757   :  { %16059 = vst [vmem:[#allocation17_spill] sm:$0xff] %v13776_v19  ;;  %9080 = vmatprep.mubr.msk.f32.mxu0 %vm9899_vm0, %v13776_v19  ;;  %v6983_v19 = vld [vmem:[%s15393_s10 + $0x70] sm:$0xff] }
 0x758   :  { %v6543_v21 = vadd.f32 %v13745_v8, %v6542_v18  ;;  %v6675_v6 = vadd.f32 %v6674_v47, %v6612_v24  ;;  %v6977_v47 = vld [vmem:[%s15393_s10 + $0x40] sm:$0xff] }
 0x75a   :  { %v6544_v33 = vrot.slane %v6543_v21, 4  ;;  %v6676_v23 = vadd.f32 %v6675_v6, %v6613_v38  ;;  %v6973_v38 = vld [vmem:[%s15393_s10 + $0x20] sm:$0xff]  ;;  %v13789_v6 = vld [vmem:[%s15393_s10 + $0x50] sm:$0xff] }
 0x75c   :  { %v6545_v9 = vadd.f32 %v6544_v33, %v6543_v21  ;;  %v6677_v45 = vrot.slane %v6676_v23, 4  ;;  %v9122_v33 = vpack.c.bf16 %v6972_v35, %v6971_v36  ;;  %v6978_v21 = vld [vmem:[%s15393_s10 + $0x48] sm:$0xff]  ;;  %v16060_v35 = vmov 0.0|0.0  }
 0x75e   :  { %v6546_v50 = vrot.slane %v6545_v9, 2  ;;  %v6678_v13 = vadd.f32 %v6677_v45, %v6676_v23  ;;  %v6974_v23 = vld [vmem:[%s15393_s10 + $0x28] sm:$0xff]  ;;  %9123 = vmatpush3.bf16.msra.mxu0 %v9122_v33  ;;  %v9131_v33 = vpack.c.bf16 %v6978_v21, %v6977_v47 }
 0x75f   :  { %v13804_v45 = vld [vmem:[%s15393_s10 + $0x68] sm:$0xff]  ;;  %9124 = vmatprep.subr.bf16.mxu0 %v16060_v35 }
 0x760   :  { %v6547_v34 = vadd.f32 %v6546_v50, %v6545_v9  ;;  %v6679_v63 = vrot.slane %v6678_v13, 2  ;;  %v9125_v9 = vpack.c.bf16 %v6974_v23, %v6973_v38  ;;  %v16078_v21 = vld [vmem:[#allocation11_spill] sm:$0xff] }
 0x762   :  { %v6548_v11 = vrot.slane %v6547_v34, 1  ;;  %v6680_v20 = vadd.f32 %v6679_v63, %v6678_v13  ;;  %v6975_v63 = vld [vmem:[%s15393_s10 + $0x30] sm:$0xff]  ;;  %v6976_v13 = vld [vmem:[%s15393_s10 + $0x38] sm:$0xff]  ;;  %9126 = vmatpush3.bf16.msra.mxu0 %v9125_v9 }
 0x763   :  { %v9128_v38 = vpack.c.bf16 %v6976_v13, %v6975_v63  ;;  %9127 = vmatprep.subr.bf16.mxu0 %v16060_v35  ;;  %v16079_v13 = vld [vmem:[#allocation12_spill] sm:$0xff] }
 0x764   :  { %v6549_v24 = vadd.f32 %v6548_v11, %v6547_v34  ;;  %v6681_v18 = vrot.slane %v6680_v20, 1  ;;  %v13794_v11 = vld [vmem:[%s15393_s10 + $0x58] sm:$0xff]  ;;  %v13799_v34 = vld [vmem:[%s15393_s10 + $0x60] sm:$0xff] }
 0x765   :  { %v9134_v23 = vpack.c.bf16 %v13794_v11, %v13789_v6  ;;  %v6984_v6 = vld [vmem:[%s15393_s10 + $0x78] sm:$0xff] }
 0x766   :  { %v6682_v50 = vadd.f32 %v6681_v18, %v6680_v20  ;;  %v13806_v36 = vmul.f32 0.001953125, %v6549_v24  ;;  %9129 = vmatpush3.bf16.msra.mxu0 %v9128_v38  ;;  %v16077_v18 = vld [vmem:[#allocation13_spill] sm:$0xff]  ;;  %v16083_v20 = vpack.c.bf16 %v13804_v45, %v13799_v34 }
 0x767   :  { %9130 = vmatprep.subr.bf16.mxu0 %v16060_v35 }
 0x768   :  { %v6684_v17 = vmul.f32 0.001953125, %v6682_v50  ;;  %v6685_v60 = vmul.f32 %v13806_v36, %v13806_v36  ;;  %v16085_v50 = vsub.f32 %v13600_v48, %v13806_v36  ;;  %v16089_v48 = vsub.f32 %v13620_v62, %v13806_v36 }
 0x769   :  { %v16093_v62 = vsub.f32 %v13640_v40, %v13806_v36 }
 0x76a   :  { %v6686_v47 = vsub.f32 %v6684_v17, %v6685_v60  ;;  %9132 = vmatpush3.bf16.msra.mxu0 %v9131_v33  ;;  %v16062_v60 = vld [vmem:[#allocation34_spill] sm:$0xff]  ;;  %v9140_v17 = vpack.c.bf16 %v6984_v6, %v6983_v19  ;;  %v16086_v19 = vsub.f32 %v13607_v41, %v13806_v36  ;;  %v16090_v41 = vsub.f32 %v13627_v10, %v13806_v36 }
 0x76b   :  { %9133 = vmatprep.subr.bf16.mxu0 %v16060_v35  ;;  %v16076_v33 = vld [vmem:[#allocation10_spill] sm:$0xff]  ;;  %v16094_v10 = vsub.f32 %v13647_v56, %v13806_v36 }
 0x76c   :  { %v6687_v9 = vmax.f32 %v6686_v47, 0.0  ;;  %v16061_v47 = vmov %v13477_v59  ;;  %v16082_v59 = vld [vmem:[#allocation18_spill] sm:$0xff] }
 0x76e   :  { %v6752_v24 = vadd.f32 1e-05, %v6687_v9  ;;  %9135 = vmatpush3.bf16.msra.mxu0 %v9134_v23  ;;  %v16080_v23 = vld [vmem:[#allocation15_spill] sm:$0xff]  ;;  %v6479_v9 = vld [vmem:[%s15391_s8] sm:$0x1] }
 0x76f   :  { %9136 = vmatprep.subr.bf16.mxu0 %v16060_v35 }
 0x770   :  { %9793 = vrsqrt.f32 %v6752_v24  ;;  %v16084_v24 = vld [vmem:[#allocation7_spill] sm:$0xff] }
 0x772   :  { %9138 = vmatpush3.bf16.msra.mxu0 %v16083_v20  ;;  %v16087_v20 = vsub.f32 %v13597_v2, %v13806_v36  ;;  %v16091_v2 = vsub.f32 %v13617_v12, %v13806_v36  ;;  %v16095_v12 = vsub.f32 %v13637_v16, %v13806_v36 }
 0x773   :  { %9139 = vmatprep.subr.bf16.mxu0 %v16060_v35 }
 0x776   :  { %9141 = vmatpush3.bf16.msra.mxu0 %v9140_v17  ;;  %v16088_v17 = vsub.f32 %v13605_v52, %v13806_v36  ;;  %v16092_v52 = vsub.f32 %v13625_v37, %v13806_v36 }
 0x777   :  { %9142 = vmatprep.subr.bf16.mxu0 %v16060_v35  ;;  %v16148_v35 = vld [vmem:[#allocation42_spill] sm:$0xff] }
 0x77a   :  { %v9794_v63 = vpop.eup %9793 }
 0x77b   :  { %v6754_v11 = vmul.f32 %v9794_v63, %v6479_v9 }
 0x77d   :  { %v13965_v38 = vrot.slane %v6754_v11, %v16084_v24  ;;  %v16146_v24 = vld [vmem:[#allocation43_spill] sm:$0xff] }
 0x77f   :  { %v6791_v34 = vmul.f32 %v13965_v38, %v16085_v50  ;;  %v6792_v45 = vmul.f32 %v13965_v38, %v16086_v19  ;;  %v6793_v63 = vmul.f32 %v13965_v38, %v16087_v20  ;;  %v6794_v9 = vmul.f32 %v13965_v38, %v16088_v17 }
 0x780   :  { %v6795_v50 = vmul.f32 %v13965_v38, %v16089_v48  ;;  %v6796_v6 = vmul.f32 %v13965_v38, %v16090_v41  ;;  %v6797_v11 = vmul.f32 %v13965_v38, %v16091_v2  ;;  %v13999_v19 = vmul.f32 %v13965_v38, %v16092_v52 }
 0x781   :  { %v14005_v20 = vmul.f32 %v13965_v38, %v16093_v62  ;;  %v14011_v17 = vmul.f32 %v13965_v38, %v16094_v10  ;;  %v14017_v37 = vmul.f32 %v13965_v38, %v16095_v12  ;;  %v16096_v48 = vsub.f32 %v13645_v26, %v13806_v36 }
 0x782   :  { %v16097_v41 = vsub.f32 %v13660_v27, %v13806_v36  ;;  %v16098_v2 = vsub.f32 %v13667_v53, %v13806_v36  ;;  %v16099_v52 = vsub.f32 %v13657_v30, %v13806_v36  ;;  %v16100_v62 = vsub.f32 %v13665_v3, %v13806_v36 }
 0x783   :  { %v14023_v40 = vmul.f32 %v13965_v38, %v16096_v48  ;;  %v16101_v10 = vsub.f32 %v13680_v57, %v13806_v36  ;;  %v16102_v12 = vsub.f32 %v13687_v54, %v13806_v36  ;;  %v16103_v48 = vsub.f32 %v13677_v14, %v13806_v36 }
 0x784   :  { %v14029_v56 = vmul.f32 %v13965_v38, %v16097_v41  ;;  %v14035_v16 = vmul.f32 %v13965_v38, %v16098_v2  ;;  %v14041_v26 = vmul.f32 %v13965_v38, %v16099_v52  ;;  %v14047_v27 = vmul.f32 %v13965_v38, %v16100_v62 }
 0x785   :  { %v14053_v53 = vmul.f32 %v13965_v38, %v16101_v10  ;;  %v14059_v30 = vmul.f32 %v13965_v38, %v16102_v12  ;;  %v14065_v3 = vmul.f32 %v13965_v38, %v16103_v48  ;;  %v16104_v41 = vsub.f32 %v13685_v42, %v13806_v36 }
 0x786   :  { %v16105_v2 = vsub.f32 %v13700_v44, %v13806_v36  ;;  %v16106_v52 = vsub.f32 %v13707_v25, %v13806_v36  ;;  %v16107_v62 = vsub.f32 %v13697_v22, %v13806_v36  ;;  %v16108_v10 = vsub.f32 %v13705_v15, %v13806_v36 }
 0x787   :  { %v14071_v57 = vmul.f32 %v13965_v38, %v16104_v41  ;;  %v16109_v12 = vsub.f32 %v13720_v46, %v13806_v36  ;;  %v16110_v48 = vsub.f32 %v13727_v61, %v13806_v36  ;;  %v16111_v41 = vsub.f32 %v13717_v43, %v13806_v36 }
 0x788   :  { %v14077_v54 = vmul.f32 %v13965_v38, %v16105_v2  ;;  %v14083_v14 = vmul.f32 %v13965_v38, %v16106_v52  ;;  %v14089_v42 = vmul.f32 %v13965_v38, %v16107_v62  ;;  %v14095_v44 = vmul.f32 %v13965_v38, %v16108_v10 }
 0x789   :  { %v14101_v25 = vmul.f32 %v13965_v38, %v16109_v12  ;;  %v14107_v22 = vmul.f32 %v13965_v38, %v16110_v48  ;;  %v14113_v15 = vmul.f32 %v13965_v38, %v16111_v41  ;;  %v16112_v2 = vsub.f32 %v13725_v39, %v13806_v36  ;;  %v14148_v48 = vld [vmem:[%s15392_s9] ss:$0 sm:$0xff] }
 0x78a   :  { %v16113_v52 = vsub.f32 %v13740_v55, %v13806_v36  ;;  %v16115_v62 = vsub.f32 %v13747_v0, %v13806_v36  ;;  %v16117_v10 = vsub.f32 %v13737_v32, %v13806_v36  ;;  %v16119_v12 = vsub.f32 %v13745_v8, %v13806_v36 }
 0x78b   :  { %v14119_v46 = vmul.f32 %v13965_v38, %v16112_v2  ;;  %v14151_v0 = vadd.f32 %v14148_v48, %v6791_v34  ;;  %v14154_v41 = vadd.f32 %v14148_v48, %v6792_v45  ;;  %v14157_v32 = vadd.f32 %v14148_v48, %v6793_v63 }
 0x78c   :  { %v14125_v61 = vmul.f32 %v13965_v38, %v16113_v52  ;;  %v14131_v43 = vmul.f32 %v13965_v38, %v16115_v62  ;;  %v14137_v39 = vmul.f32 %v13965_v38, %v16117_v10  ;;  %v14143_v55 = vmul.f32 %v13965_v38, %v16119_v12 }
 0x78d   :  { %16121 = vst [vmem:[#allocation9_spill] sm:$0xff] %v14151_v0  ;;  %16122 = vst [vmem:[#allocation21_spill] sm:$0xff] %v14154_v41  ;;  %v14160_v2 = vadd.f32 %v14148_v48, %v6794_v9  ;;  %v14163_v8 = vadd.f32 %v14148_v48, %v6795_v50  ;;  %v14166_v52 = vadd.f32 %v14148_v48, %v6796_v6 }
 0x78e   :  { %16114 = vst [vmem:[#allocation20_spill] sm:$0xff] %v14125_v61  ;;  %16116 = vst [vmem:[#allocation22_spill] sm:$0xff] %v14131_v43  ;;  %v14169_v62 = vadd.f32 %v14148_v48, %v6797_v11  ;;  %v6930_v34 = vadd.f32 %v14154_v41, %v14151_v0  ;;  %v16126_v45 = vsub.f32 %v13440_v51, %v13806_v36  ;;  %v16144_v0 = vld [vmem:[#allocation41_spill] sm:$0xff]  ;;  %v16158_v43 = vld [vmem:[#allocation8_spill] sm:$0xff] }
 0x78f   :  { %16118 = vst [vmem:[#allocation19_spill] sm:$0xff] %v14137_v39  ;;  %16120 = vst [vmem:[#allocation24_spill] sm:$0xff] %v14143_v55  ;;  %v16127_v9 = vsub.f32 %v13444_v58, %v13806_v36  ;;  %v16128_v6 = vsub.f32 %v13438_v28, %v13806_v36  ;;  %v16129_v11 = vsub.f32 %v13442_v29, %v13806_v36  ;;  %v16160_v61 = vld [vmem:[#allocation23_spill] sm:$0xff] }
 0x790   :  { %16123 = vst [vmem:[#allocation26_spill] sm:$0xff] %v14157_v32  ;;  %16124 = vst [vmem:[#allocation31_spill] sm:$0xff] %v14160_v2  ;;  %v6759_v63 = vmul.f32 %v13965_v38, %v16126_v45  ;;  %v16130_v51 = vsub.f32 %v13460_v1, %v13806_v36  ;;  %v16131_v58 = vsub.f32 %v13467_v4, %v13806_v36 }
 0x791   :  { %16125 = vst [vmem:[#allocation33_spill] sm:$0xff] %v14163_v8  ;;  %v6760_v50 = vmul.f32 %v13965_v38, %v16127_v9  ;;  %v6761_v10 = vmul.f32 %v13965_v38, %v16128_v6  ;;  %v6762_v12 = vmul.f32 %v13965_v38, %v16129_v11  ;;  %v16132_v28 = vsub.f32 %v13457_v31, %v13806_v36 }
 0x792   :  { %v6763_v45 = vmul.f32 %v13965_v38, %v16130_v51  ;;  %v6764_v9 = vmul.f32 %v13965_v38, %v16131_v58  ;;  %v6931_v41 = vadd.f32 %v6930_v34, %v14157_v32  ;;  %v16133_v29 = vsub.f32 %v13465_v5, %v13806_v36  ;;  %v16142_v32 = vld [vmem:[#allocation36_spill] sm:$0xff] }
 0x793   :  { %v6765_v6 = vmul.f32 %v13965_v38, %v16132_v28  ;;  %v16134_v1 = vsub.f32 %v13480_v49, %v13806_v36  ;;  %v16135_v4 = vsub.f32 %v13487_v7, %v13806_v36  ;;  %v16136_v34 = vsub.f32 %v16061_v47, %v13806_v36  ;;  %v16138_v28 = vld [vmem:[#allocation39_spill] sm:$0xff] }
 0x794   :  { %v6766_v11 = vmul.f32 %v13965_v38, %v16133_v29  ;;  %v16137_v5 = vsub.f32 %v16062_v60, %v13806_v36  ;;  %v16139_v29 = vsub.f32 %v16138_v28, %v13806_v36  ;;  %v16143_v60 = vsub.f32 %v16142_v32, %v13806_v36 }
 0x795   :  { %v14210_v51 = vmul.f32 %v13965_v38, %v16134_v1  ;;  %v14216_v31 = vmul.f32 %v13965_v38, %v16135_v4  ;;  %v14222_v58 = vmul.f32 %v13965_v38, %v16136_v34  ;;  %v16140_v1 = vld [vmem:[#allocation38_spill] sm:$0xff]  ;;  %v6932_v34 = vadd.f32 %v6931_v41, %v14160_v2 }
 0x796   :  { %v14228_v49 = vmul.f32 %v13965_v38, %v16137_v5  ;;  %v14234_v7 = vmul.f32 %v13965_v38, %v16139_v29  ;;  %v16141_v4 = vsub.f32 %v16140_v1, %v13806_v36  ;;  %v14247_v5 = vmul.f32 %v13965_v38, %v16143_v60  ;;  %v16150_v60 = vld [vmem:[#allocation40_spill] sm:$0xff] }
 0x797   :  { %v16145_v28 = vsub.f32 %v16144_v0, %v13806_v36  ;;  %v16147_v1 = vsub.f32 %v16146_v24, %v13806_v36  ;;  %v16149_v41 = vsub.f32 %v16148_v35, %v13806_v36  ;;  %v16151_v2 = vsub.f32 %v16150_v60, %v13806_v36 }
 0x798   :  { %v14240_v47 = vmul.f32 %v13965_v38, %v16141_v4  ;;  %v16159_v60 = vsub.f32 %v16158_v43, %v13806_v36 }
 0x799   :  { %v14253_v29 = vmul.f32 %v13965_v38, %v16145_v28  ;;  %v14259_v4 = vmul.f32 %v13965_v38, %v16147_v1  ;;  %v14265_v32 = vmul.f32 %v13965_v38, %v16149_v41  ;;  %v14271_v0 = vmul.f32 %v13965_v38, %v16151_v2  ;;  %v16152_v28 = vld [vmem:[#allocation25_spill] sm:$0xff]  ;;  %v16155_v1 = vld [vmem:[#allocation28_spill] sm:$0xff] }
 0x79a   :  { %v16153_v55 = vsub.f32 %v16152_v28, %v13806_v36  ;;  %v16156_v39 = vsub.f32 %v16155_v1, %v13806_v36  ;;  %v6933_v41 = vadd.f32 %v6932_v34, %v14163_v8  ;;  %v14290_v2 = vmul.f32 %v13965_v38, %v16159_v60  ;;  %v16171_v8 = vld [vmem:[#allocation14_spill] sm:$0xff] }
 0x79b   :  { %v16161_v28 = vsub.f32 %v16160_v61, %v13806_v36  ;;  %v16166_v60 = vsub.f32 %v16076_v33, %v13806_v36  ;;  %v16169_v33 = vsub.f32 %v16079_v13, %v13806_v36 }
 0x79c   :  { %v14277_v24 = vmul.f32 %v13965_v38, %v16153_v55  ;;  %v14283_v35 = vmul.f32 %v13965_v38, %v16156_v39 }
 0x79d   :  { %v14296_v55 = vmul.f32 %v13965_v38, %v16161_v28  ;;  %v14314_v61 = vmul.f32 %v13965_v38, %v16166_v60  ;;  %v16167_v28 = vsub.f32 %v16077_v18, %v13806_v36  ;;  %v14333_v60 = vmul.f32 %v13965_v38, %v16169_v33 }
 0x79e   :  { %16154 = vst [vmem:[#allocation30_spill] sm:$0xff] %v14277_v24  ;;  %16157 = vst [vmem:[#allocation16_spill] sm:$0xff] %v14283_v35  ;;  %v16162_v24 = vld [vmem:[#allocation27_spill] sm:$0xff]  ;;  %v16164_v35 = vld [vmem:[#allocation6_spill] sm:$0xff]  ;;  %v16170_v18 = vsub.f32 %v16080_v23, %v13806_v36  ;;  %v14355_v33 = vadd.f32 %v14148_v48, %v13999_v19  ;;  %v14376_v19 = vadd.f32 %v14148_v48, %v14017_v37 }
 0x79f   :  { %v16163_v1 = vsub.f32 %v16162_v24, %v13806_v36  ;;  %v16165_v34 = vsub.f32 %v16164_v35, %v13806_v36  ;;  %v14320_v24 = vmul.f32 %v13965_v38, %v16167_v28 }
 0x7a0   :  { %v14339_v28 = vmul.f32 %v13965_v38, %v16170_v18  ;;  %v14360_v18 = vadd.f32 %v14148_v48, %v14005_v20 }
 0x7a1   :  { %v14302_v39 = vmul.f32 %v13965_v38, %v16163_v1  ;;  %v14308_v43 = vmul.f32 %v13965_v38, %v16165_v34  ;;  %v16168_v1 = vsub.f32 %v16078_v21, %v13806_v36  ;;  %v6934_v34 = vadd.f32 %v6933_v41, %v14166_v52 }
 0x7a2   :  { %v16172_v21 = vsub.f32 %v16171_v8, %v13806_v36  ;;  %v16173_v41 = vsub.f32 %v16082_v59, %v13806_v36  ;;  %v14369_v36 = vadd.f32 %v14148_v48, %v6759_v63 }
 0x7a3   :  { %v14326_v35 = vmul.f32 %v13965_v38, %v16168_v1  ;;  %v6935_v23 = vadd.f32 %v6934_v34, %v14169_v62  ;;  %v14381_v34 = vadd.f32 %v14148_v48, %v14023_v40 }
 0x7a4   :  { %v14345_v1 = vmul.f32 %v13965_v38, %v16172_v21  ;;  %v14351_v13 = vmul.f32 %v13965_v38, %v16173_v41  ;;  %v14365_v21 = vadd.f32 %v14148_v48, %v14011_v17  ;;  %v14372_v38 = vadd.f32 %v14148_v48, %v6760_v50 }
 0x7a5   :  { %v6936_v8 = vadd.f32 %v6935_v23, %v14355_v33  ;;  %v14385_v41 = vadd.f32 %v14148_v48, %v6761_v10  ;;  %v14391_v50 = vadd.f32 %v14148_v48, %v14029_v56  ;;  %v14395_v23 = vadd.f32 %v14148_v48, %v6762_v12 }
 0x7a6   :  { %v6893_v63 = vadd.f32 %v14372_v38, %v14369_v36  ;;  %v14409_v56 = vadd.f32 %v14148_v48, %v14041_v26  ;;  %v14427_v26 = vadd.f32 %v14148_v48, %v14053_v53 }
 0x7a7   :  { %v6937_v59 = vadd.f32 %v6936_v8, %v14360_v18  ;;  %v14400_v8 = vadd.f32 %v14148_v48, %v14035_v16  ;;  %v14418_v16 = vadd.f32 %v14148_v48, %v14047_v27  ;;  %v14436_v27 = vadd.f32 %v14148_v48, %v14059_v30 }
 0x7a8   :  { %v6894_v40 = vadd.f32 %v6893_v63, %v14385_v41 }
 0x7a9   :  { %v6938_v20 = vadd.f32 %v6937_v59, %v14365_v21  ;;  %v14404_v59 = vadd.f32 %v14148_v48, %v6763_v45 }
 0x7ab   :  { %v6939_v17 = vadd.f32 %v6938_v20, %v14376_v19  ;;  %v6895_v20 = vadd.f32 %v6894_v40, %v14395_v23 }
 0x7ad   :  { %v6940_v37 = vadd.f32 %v6939_v17, %v14381_v34  ;;  %v14413_v17 = vadd.f32 %v14148_v48, %v6764_v9  ;;  %v6896_v63 = vadd.f32 %v6895_v20, %v14404_v59 }
 0x7af   :  { %v6941_v10 = vadd.f32 %v6940_v37, %v14391_v50  ;;  %v14422_v37 = vadd.f32 %v14148_v48, %v6765_v6  ;;  %v6897_v40 = vadd.f32 %v6896_v63, %v14413_v17  ;;  %v14446_v63 = vadd.f32 %v14148_v48, %v14065_v3 }
 0x7b1   :  { %v6942_v12 = vadd.f32 %v6941_v10, %v14400_v8  ;;  %v14431_v10 = vadd.f32 %v14148_v48, %v6766_v11  ;;  %v6898_v20 = vadd.f32 %v6897_v40, %v14422_v37  ;;  %16174 = vst [vmem:[#allocation32_spill] sm:$0xff] %v14446_v63  ;;  %v14456_v40 = vadd.f32 %v14148_v48, %v14071_v57 }
 0x7b3   :  { %v6943_v45 = vadd.f32 %v6942_v12, %v14409_v56  ;;  %v14441_v12 = vadd.f32 %v14148_v48, %v14210_v51  ;;  %v6899_v53 = vadd.f32 %v6898_v20, %v14431_v10  ;;  %16175 = vst [vmem:[#allocation35_spill] sm:$0xff] %v14456_v40  ;;  %v14466_v20 = vadd.f32 %v14148_v48, %v14077_v54 }
 0x7b5   :  { %v6944_v9 = vadd.f32 %v6943_v45, %v14418_v16  ;;  %v14451_v45 = vadd.f32 %v14148_v48, %v14216_v31  ;;  %v6900_v30 = vadd.f32 %v6899_v53, %v14441_v12  ;;  %16176 = vst [vmem:[#allocation37_spill] sm:$0xff] %v14466_v20  ;;  %v14476_v53 = vadd.f32 %v14148_v48, %v14083_v14 }
 0x7b7   :  { %v6945_v6 = vadd.f32 %v6944_v9, %v14427_v26  ;;  %v14461_v9 = vadd.f32 %v14148_v48, %v14222_v58  ;;  %v6901_v3 = vadd.f32 %v6900_v30, %v14451_v45  ;;  %16177 = vst [vmem:[#allocation34_spill] sm:$0xff] %v14476_v53  ;;  %v14486_v30 = vadd.f32 %v14148_v48, %v14089_v42 }
 0x7b9   :  { %v6946_v11 = vadd.f32 %v6945_v6, %v14436_v27  ;;  %v14471_v6 = vadd.f32 %v14148_v48, %v14228_v49  ;;  %v6902_v57 = vadd.f32 %v6901_v3, %v14461_v9  ;;  %16178 = vst [vmem:[#allocation10_spill] sm:$0xff] %v14486_v30  ;;  %v14496_v3 = vadd.f32 %v14148_v48, %v14095_v44 }
 0x7bb   :  { %v6947_v51 = vadd.f32 %v6946_v11, %v14446_v63  ;;  %v14481_v11 = vadd.f32 %v14148_v48, %v14234_v7  ;;  %v6903_v54 = vadd.f32 %v6902_v57, %v14471_v6  ;;  %16179 = vst [vmem:[#allocation13_spill] sm:$0xff] %v14496_v3  ;;  %v14506_v57 = vadd.f32 %v14148_v48, %v14101_v25 }
 0x7bd   :  { %v6948_v31 = vadd.f32 %v6947_v51, %v14456_v40  ;;  %v14491_v51 = vadd.f32 %v14148_v48, %v14240_v47  ;;  %v6904_v14 = vadd.f32 %v6903_v54, %v14481_v11  ;;  %16180 = vst [vmem:[#allocation11_spill] sm:$0xff] %v14506_v57  ;;  %v14516_v54 = vadd.f32 %v14148_v48, %v14107_v22  ;;  %v16197_v40 = vld [vmem:[#allocation7_spill] sm:$0xff] }
 0x7bf   :  { %v6949_v58 = vadd.f32 %v6948_v31, %v14466_v20  ;;  %v14501_v31 = vadd.f32 %v14148_v48, %v14247_v5  ;;  %v6905_v42 = vadd.f32 %v6904_v14, %v14491_v51  ;;  %16181 = vst [vmem:[#allocation12_spill] sm:$0xff] %v14516_v54  ;;  %v14526_v14 = vadd.f32 %v14148_v48, %v14113_v15 }
 0x7c1   :  { %v6950_v49 = vadd.f32 %v6949_v58, %v14476_v53  ;;  %v14511_v58 = vadd.f32 %v14148_v48, %v14253_v29  ;;  %v6906_v44 = vadd.f32 %v6905_v42, %v14501_v31  ;;  %16182 = vst [vmem:[#allocation15_spill] sm:$0xff] %v14526_v14  ;;  %v14536_v42 = vadd.f32 %v14148_v48, %v14119_v46 }
 0x7c3   :  { %v6951_v7 = vadd.f32 %v6950_v49, %v14486_v30  ;;  %v14521_v49 = vadd.f32 %v14148_v48, %v14259_v4  ;;  %v6907_v25 = vadd.f32 %v6906_v44, %v14511_v58  ;;  %16183 = vst [vmem:[#allocation18_spill] sm:$0xff] %v14536_v42  ;;  %v16184_v44 = vld [vmem:[#allocation20_spill] sm:$0xff] }
 0x7c5   :  { %v6952_v47 = vadd.f32 %v6951_v7, %v14496_v3  ;;  %v14531_v7 = vadd.f32 %v14148_v48, %v14265_v32  ;;  %v6908_v22 = vadd.f32 %v6907_v25, %v14521_v49  ;;  %v16190_v3 = vld [vmem:[#allocation19_spill] sm:$0xff] }
 0x7c7   :  { %v6953_v5 = vadd.f32 %v6952_v47, %v14506_v57  ;;  %v14541_v47 = vadd.f32 %v14148_v48, %v14271_v0  ;;  %v6909_v15 = vadd.f32 %v6908_v22, %v14531_v7  ;;  %v16187_v57 = vld [vmem:[#allocation22_spill] sm:$0xff] }
 0x7c9   :  { %v6954_v29 = vadd.f32 %v6953_v5, %v14516_v54  ;;  %v14546_v5 = vadd.f32 %v14148_v48, %v16184_v44  ;;  %v16186_v54 = vld [vmem:[#allocation30_spill] sm:$0xff]  ;;  %v6910_v46 = vadd.f32 %v6909_v15, %v14541_v47  ;;  %v14571_v15 = vadd.f32 %v14148_v48, %v14290_v2 }
 0x7ca   :  { %v14551_v25 = vadd.f32 %v14148_v48, %v16186_v54 }
 0x7cb   :  { %v6955_v4 = vadd.f32 %v6954_v29, %v14526_v14  ;;  %16185 = vst [vmem:[#allocation39_spill] sm:$0xff] %v14546_v5  ;;  %v14556_v29 = vadd.f32 %v14148_v48, %v16187_v57  ;;  %v16189_v14 = vld [vmem:[#allocation16_spill] sm:$0xff] }
 0x7cc   :  { %v14561_v22 = vadd.f32 %v14148_v48, %v16189_v14  ;;  %v6911_v44 = vadd.f32 %v6910_v46, %v14551_v25  ;;  %v14577_v14 = vadd.f32 %v14148_v48, %v14296_v55 }
 0x7cd   :  { %v6956_v32 = vadd.f32 %v6955_v4, %v14536_v42  ;;  %16188 = vst [vmem:[#allocation38_spill] sm:$0xff] %v14556_v29  ;;  %v14566_v4 = vadd.f32 %v14148_v48, %v16190_v3 }
 0x7ce   :  { %v6912_v57 = vadd.f32 %v6911_v44, %v14561_v22 }
 0x7cf   :  { %v6957_v0 = vadd.f32 %v6956_v32, %v14546_v5  ;;  %16191 = vst [vmem:[#allocation36_spill] sm:$0xff] %v14566_v4  ;;  %v16192_v5 = vld [vmem:[#allocation24_spill] sm:$0xff] }
 0x7d0   :  { %v6913_v46 = vadd.f32 %v6912_v57, %v14571_v15  ;;  %v14582_v3 = vadd.f32 %v14148_v48, %v16192_v5  ;;  %v14597_v57 = vadd.f32 %v14148_v48, %v14314_v61 }
 0x7d1   :  { %v6958_v54 = vadd.f32 %v6957_v0, %v14556_v29  ;;  %v14586_v0 = vadd.f32 %v14148_v48, %v14302_v39  ;;  %v14602_v39 = vadd.f32 %v14148_v48, %v14320_v24 }
 0x7d2   :  { %16193 = vst [vmem:[#allocation41_spill] sm:$0xff] %v14582_v3  ;;  %v6914_v2 = vadd.f32 %v6913_v46, %v14577_v14 }
 0x7d3   :  { %v6959_v32 = vadd.f32 %v6958_v54, %v14566_v4  ;;  %v14592_v54 = vadd.f32 %v14148_v48, %v14308_v43 }
 0x7d4   :  { %v6915_v55 = vadd.f32 %v6914_v2, %v14586_v0  ;;  %v14612_v2 = vadd.f32 %v14148_v48, %v14333_v60  ;;  %v14627_v60 = vadd.f32 %v14148_v48, %v14351_v13 }
 0x7d5   :  { %v6960_v44 = vadd.f32 %v6959_v32, %v14582_v3  ;;  %v14607_v32 = vadd.f32 %v14148_v48, %v14326_v35  ;;  %v14617_v3 = vadd.f32 %v14148_v48, %v14339_v28 }
 0x7d6   :  { %v6916_v5 = vadd.f32 %v6915_v55, %v14592_v54 }
 0x7d7   :  { %v6961_v4 = vrot.slane %v6960_v44, 4 }
 0x7d8   :  { %v6917_v46 = vadd.f32 %v6916_v5, %v14597_v57  ;;  %v14622_v5 = vadd.f32 %v14148_v48, %v14345_v1  ;;  %v7069_v48 = vld [vmem:[%s15395_s12 + $0x8] sm:$0xff] }
 0x7d9   :  { %v6962_v55 = vadd.f32 %v6961_v4, %v6960_v44 }
 0x7da   :  { %v6918_v43 = vadd.f32 %v6917_v46, %v14602_v39 }
 0x7db   :  { %v6963_v46 = vrot.slane %v6962_v55, 2 }
 0x7dc   :  { %v6919_v61 = vadd.f32 %v6918_v43, %v14607_v32 }
 0x7dd   :  { %v6964_v44 = vadd.f32 %v6963_v46, %v6962_v55  ;;  %v7070_v46 = vld [vmem:[%s15395_s12 + $0x10] sm:$0xff] }
 0x7de   :  { %v6920_v24 = vadd.f32 %v6919_v61, %v14612_v2 }
 0x7df   :  { %v6965_v42 = vrot.slane %v6964_v44, 1 }
 0x7e0   :  { %v6921_v35 = vadd.f32 %v6920_v24, %v14617_v3  ;;  %v7068_v24 = vld [vmem:[%s15395_s12] sm:$0xff] }
 0x7e1   :  { %v6966_v53 = vadd.f32 %v6965_v42, %v6964_v44  ;;  %v9143_v55 = vpack.c.bf16 %v7069_v48, %v7068_v24  ;;  %v7071_v42 = vld [vmem:[%s15395_s12 + $0x18] sm:$0xff] }
 0x7e2   :  { %v6922_v43 = vadd.f32 %v6921_v35, %v14622_v5  ;;  %v16194_v44 = vld [vmem:[#allocation17_spill] sm:$0xff] }
 0x7e3   :  { %v6968_v35 = vmul.f32 0.00390625, %v6966_v53  ;;  %v7072_v53 = vld [vmem:[%s15395_s12 + $0x20] sm:$0xff]  ;;  %v7075_v24 = vld [vmem:[%s15395_s12 + $0x38] sm:$0xff] }
 0x7e4   :  { %v6923_v4 = vadd.f32 %v6922_v43, %v14627_v60 }
 0x7e6   :  { %v6924_v28 = vrot.slane %v6923_v4, 4 }
 0x7e8   :  { %v6925_v29 = vadd.f32 %v6924_v28, %v6923_v4  ;;  %v9146_v4 = vpack.c.bf16 %v7071_v42, %v7070_v46  ;;  %v7073_v28 = vld [vmem:[%s15395_s12 + $0x28] sm:$0xff]  ;;  %v7079_v46 = vld [vmem:[%s15395_s12 + $0x58] sm:$0xff] }
 0x7ea   :  { %v6926_v61 = vrot.slane %v6925_v29, 2 }
 0x7ec   :  { %v6927_v30 = vadd.f32 %v6926_v61, %v6925_v29  ;;  %v9149_v61 = vpack.c.bf16 %v7073_v28, %v7072_v53  ;;  %v7082_v53 = vld [vmem:[%s15395_s12 + $0x70] sm:$0xff]  ;;  %v7083_v28 = vld [vmem:[%s15395_s12 + $0x78] sm:$0xff] }
 0x7ee   :  { %v6928_v1 = vrot.slane %v6927_v30, 1 }
 0x7f0   :  { %v6929_v13 = vadd.f32 %v6928_v1, %v6927_v30  ;;  %v16195_v30 = vmov 0.0|0.0   ;;  %v7074_v1 = vld [vmem:[%s15395_s12 + $0x30] sm:$0xff] }
 0x7f1   :  { %v9152_v48 = vpack.c.bf16 %v7075_v24, %v7074_v1  ;;  %v7691_v1 = vld [vmem:[%s15394_s11] ss:$0 sm:$0xff] }
 0x7f2   :  { %v6967_v43 = vmul.f32 0.00390625, %v6929_v13  ;;  %v7076_v13 = vld [vmem:[%s15395_s12 + $0x40] sm:$0xff] }
 0x7f4   :  { %v6995_v29 = vsel %vm6994_vm1, %v6968_v35, %v6967_v43  ;;  %v7077_v35 = vld [vmem:[%s15395_s12 + $0x48] sm:$0xff] }
 0x7f5   :  { %9081 = vmatmul.mubr.f32.vlgmr.msra.gmra.mrb[192].mxu0 %v6995_v29  ;;  %v9155_v43 = vpack.c.bf16 %v7077_v35, %v7076_v13  ;;  %v7080_v29 = vld [vmem:[%s15395_s12 + $0x60] sm:$0xff] }
 0x7f6   :  { %9144 = vmatpush3.bf16.msra.mxu0 %v9143_v55  ;;  %9115 = vmatprep.mubr.msk.f32.mxu0 %vm9899_vm0, %v16194_v44  ;;  %v7078_v55 = vld [vmem:[%s15395_s12 + $0x50] sm:$0xff] }
 0x7f7   :  { %9145 = vmatprep.subr.bf16.mxu0 %v16195_v30  ;;  %v9158_v42 = vpack.c.bf16 %v7079_v46, %v7078_v55 }
 0x7fa   :  { %9147 = vmatpush3.bf16.msra.mxu0 %v9146_v4  ;;  %v7081_v4 = vld [vmem:[%s15395_s12 + $0x68] sm:$0xff] }
 0x7fb   :  { %9148 = vmatprep.subr.bf16.mxu0 %v16195_v30  ;;  %v9161_v44 = vpack.c.bf16 %v7081_v4, %v7080_v29 }
 0x7fe   :  { %9150 = vmatpush3.bf16.msra.mxu0 %v9149_v61  ;;  %v9164_v61 = vpack.c.bf16 %v7083_v28, %v7082_v53 }
 0x7ff   :  { %9151 = vmatprep.subr.bf16.mxu0 %v16195_v30 }
 0x802   :  { %9153 = vmatpush3.bf16.msra.mxu0 %v9152_v48 }
 0x803   :  { %9154 = vmatprep.subr.bf16.mxu0 %v16195_v30 }
 0x806   :  { %9156 = vmatpush3.bf16.msra.mxu0 %v9155_v43 }
 0x807   :  { %9157 = vmatprep.subr.bf16.mxu0 %v16195_v30 }
 0x80a   :  { %9159 = vmatpush3.bf16.msra.mxu0 %v9158_v42 }
 0x80b   :  { %9160 = vmatprep.subr.bf16.mxu0 %v16195_v30 }
 0x80e   :  { %9162 = vmatpush3.bf16.msra.mxu0 %v9161_v44  ;;  %v9900_v44 = vmov 1966171168  }
 0x80f   :  { %9163 = vmatprep.subr.bf16.mxu0 %v16195_v30  ;;  %v7692_v30 = vld [vmem:[%s15396_s13] ss:$0 sm:$0xff]  ;;  %v7169_v53 = vunpack.c.l.s4 %v9900_v44 }
 0x810   :  { %v16200_v44 = vld [vmem:[#allocation26_spill] sm:$0xff] }
 0x811   :  { %v7170_v28 = vunpack.c.0.s8 %v7169_v53 }
 0x812   :  { %9165 = vmatpush3.bf16.msra.mxu0 %v9164_v61  ;;  %v16196_v61 = vld [vmem:[#allocation29_spill] sm:$0xff] }
 0x8c8   :  { %v7063_v24 = vpop.f32.mrb[192].mxu0 }
 0x8c9   :  { %v7064_v48 = vadd.f32 %v7691_v1, %v7063_v24  ;;  %v9082_v13 = vpop.f32.mrb[193].mxu0  ;;  %v7173_v1 = vsub.s32 %v7170_v28, %v16196_v61 }
 0x8cb   :  { %v7067_v35 = vmax.f32 %v7064_v48, 0.0 }
 0x8cd   :  { %9116 = vmatmul.mubr.f32.vlgmr.msra.gmra.mrb[194].mxu0 %v7067_v35 }
 0x9a0   :  { %v7157_v43 = vpop.f32.mrb[194].mxu0 }
 0x9a1   :  { %v7158_v55 = vadd.f32 %v7692_v30, %v7157_v43  ;;  %v9117_v46 = vpop.f32.mrb[195].mxu0 }
 0x9a3   :  { %v7693_v42 = vmul.f32 -1.442695, %v7158_v55 }
 0x9a5   :  { %9795 = vpow2.f32 %v7693_v42 }
 0x9af   :  { %v9796_v29 = vpop.eup %9795 }
 0x9b0   :  { %v7164_v4 = vadd.f32 1.0, %v9796_v29 }
 0x9b2   :  { %9797 = vrcp.f32 %v7164_v4 }
 0x9bc   :  { %v9798_v24 = vpop.eup %9797 }
 0x9bd   :  { %v7174_v48 = vrot.slane %v9798_v24, %v7173_v1 }
 0x9bf   :  { %v7175_v13 = vcombine.high %v7174_v48, %v7174_v48  ;;  %v7182_v35 = vrot.slane %v7174_v48, %v7173_v1  ;;  %v16203_v48 = vld [vmem:[#allocation32_spill] sm:$0xff] }
 0x9c1   :  { %v7189_v20 = vrot.slane %v7175_v13, %v7173_v1  ;;  %v7193_v63 = vrot.slane %v7182_v35, %v16197_v40  ;;  %v16204_v13 = vld [vmem:[#allocation35_spill] sm:$0xff]  ;;  %v16205_v35 = vld [vmem:[#allocation37_spill] sm:$0xff] }
 0x9c3   :  { %v14697_v30 = vrot.slane %v7189_v20, %v16197_v40  ;;  %v14700_v43 = vmul.f32 %v7193_v63, %v14369_v36  ;;  %v14703_v55 = vmul.f32 %v7193_v63, %v14372_v38  ;;  %v14706_v46 = vmul.f32 %v7193_v63, %v14385_v41 }
 0x9c4   :  { %v14709_v42 = vmul.f32 %v7193_v63, %v14395_v23  ;;  %v14712_v29 = vmul.f32 %v7193_v63, %v14404_v59  ;;  %v14715_v4 = vmul.f32 %v7193_v63, %v14413_v17  ;;  %v14718_v40 = vmul.f32 %v7193_v63, %v14422_v37 }
 0x9c5   :  { %v14721_v36 = vmul.f32 %v7193_v63, %v14431_v10  ;;  %v14724_v38 = vmul.f32 %v7193_v63, %v14441_v12  ;;  %v14727_v41 = vmul.f32 %v7193_v63, %v14451_v45  ;;  %v14730_v23 = vmul.f32 %v7193_v63, %v14461_v9 }
 0x9c6   :  { %v14733_v59 = vmul.f32 %v7193_v63, %v14471_v6  ;;  %v14736_v17 = vmul.f32 %v7193_v63, %v14481_v11  ;;  %v14739_v37 = vmul.f32 %v7193_v63, %v14491_v51  ;;  %v14742_v10 = vmul.f32 %v7193_v63, %v14501_v31 }
 0x9c7   :  { %v14745_v12 = vmul.f32 %v7193_v63, %v14511_v58  ;;  %v14748_v45 = vmul.f32 %v7193_v63, %v14521_v49  ;;  %v14751_v9 = vmul.f32 %v7193_v63, %v14531_v7  ;;  %v14754_v20 = vmul.f32 %v7193_v63, %v14541_v47 }
 0x9c8   :  { %v14757_v6 = vmul.f32 %v7193_v63, %v14551_v25  ;;  %v14760_v11 = vmul.f32 %v7193_v63, %v14561_v22  ;;  %v14763_v51 = vmul.f32 %v7193_v63, %v14571_v15  ;;  %v14766_v31 = vmul.f32 %v7193_v63, %v14577_v14 }
 0x9c9   :  { %v14769_v58 = vmul.f32 %v7193_v63, %v14586_v0  ;;  %v14772_v49 = vmul.f32 %v7193_v63, %v14592_v54  ;;  %v14775_v7 = vmul.f32 %v7193_v63, %v14597_v57  ;;  %v14778_v47 = vmul.f32 %v7193_v63, %v14602_v39  ;;  %v16198_v54 = vld [vmem:[#allocation9_spill] sm:$0xff] }
 0x9ca   :  { %v14781_v25 = vmul.f32 %v7193_v63, %v14607_v32  ;;  %v14784_v22 = vmul.f32 %v7193_v63, %v14612_v2  ;;  %v14787_v15 = vmul.f32 %v7193_v63, %v14617_v3  ;;  %v14790_v14 = vmul.f32 %v7193_v63, %v14622_v5  ;;  %v16199_v39 = vld [vmem:[#allocation21_spill] sm:$0xff]  ;;  %v16201_v3 = vld [vmem:[#allocation31_spill] sm:$0xff] }
 0x9cb   :  { %v14793_v0 = vmul.f32 %v7193_v63, %v14627_v60  ;;  %v14797_v57 = vmul.f32 %v14697_v30, %v16198_v54  ;;  %v14801_v32 = vmul.f32 %v14697_v30, %v16199_v39  ;;  %v14805_v2 = vmul.f32 %v14697_v30, %v16200_v44  ;;  %v16202_v5 = vld [vmem:[#allocation33_spill] sm:$0xff]  ;;  %v16207_v54 = vld [vmem:[#allocation34_spill] sm:$0xff] }
 0x9cc   :  { %v14809_v53 = vmul.f32 %v14697_v30, %v16201_v3  ;;  %v14813_v63 = vmul.f32 %v14697_v30, %v16202_v5  ;;  %v14817_v60 = vmul.f32 %v14697_v30, %v14166_v52  ;;  %v14821_v28 = vmul.f32 %v14697_v30, %v14169_v62  ;;  %v16209_v39 = vld [vmem:[#allocation10_spill] sm:$0xff]  ;;  %v16211_v44 = vld [vmem:[#allocation13_spill] sm:$0xff]  ;;  %v16213_v5 = vld [vmem:[#allocation11_spill] sm:$0xff] }
 0x9cd   :  { %v14825_v61 = vmul.f32 %v14697_v30, %v14355_v33  ;;  %v14829_v1 = vmul.f32 %v14697_v30, %v14360_v18  ;;  %v14833_v24 = vmul.f32 %v14697_v30, %v14365_v21  ;;  %v14837_v52 = vmul.f32 %v14697_v30, %v14376_v19 }
 0x9ce   :  { %v14841_v62 = vmul.f32 %v14697_v30, %v14381_v34  ;;  %v14845_v33 = vmul.f32 %v14697_v30, %v14391_v50  ;;  %v14849_v18 = vmul.f32 %v14697_v30, %v14400_v8  ;;  %v14853_v21 = vmul.f32 %v14697_v30, %v14409_v56 }
 0x9cf   :  { %v14857_v19 = vmul.f32 %v14697_v30, %v14418_v16  ;;  %v14861_v34 = vmul.f32 %v14697_v30, %v14427_v26  ;;  %v14865_v50 = vmul.f32 %v14697_v30, %v14436_v27  ;;  %v14869_v8 = vmul.f32 %v14697_v30, %v16203_v48 }
 0x9d0   :  { %v14873_v56 = vmul.f32 %v14697_v30, %v16204_v13  ;;  %v14877_v16 = vmul.f32 %v14697_v30, %v16205_v35  ;;  %v14881_v26 = vmul.f32 %v14697_v30, %v16207_v54  ;;  %v14885_v27 = vmul.f32 %v14697_v30, %v16209_v39  ;;  %v16215_v13 = vld [vmem:[#allocation12_spill] sm:$0xff] }
 0x9d1   :  { %v14889_v3 = vmul.f32 %v14697_v30, %v16211_v44  ;;  %v14893_v48 = vmul.f32 %v14697_v30, %v16213_v5  ;;  %v14897_v35 = vmul.f32 %v14697_v30, %v16215_v13 }
 0x9d2   :  { %16206 = vst [vmem:[#allocation43_spill] sm:$0xff] %v14877_v16  ;;  %16208 = vst [vmem:[#allocation42_spill] sm:$0xff] %v14881_v26  ;;  %v16217_v16 = vld [vmem:[#allocation15_spill] sm:$0xff]  ;;  %v16218_v26 = vld [vmem:[#allocation18_spill] sm:$0xff] }
 0x9d3   :  { %16210 = vst [vmem:[#allocation40_spill] sm:$0xff] %v14885_v27  ;;  %16212 = vst [vmem:[#allocation25_spill] sm:$0xff] %v14889_v3  ;;  %v14901_v54 = vmul.f32 %v14697_v30, %v16217_v16  ;;  %v14905_v39 = vmul.f32 %v14697_v30, %v16218_v26  ;;  %v16220_v27 = vld [vmem:[#allocation39_spill] sm:$0xff]  ;;  %v16221_v3 = vld [vmem:[#allocation38_spill] sm:$0xff] }
 0x9d4   :  { %16214 = vst [vmem:[#allocation28_spill] sm:$0xff] %v14893_v48  ;;  %16216 = vst [vmem:[#allocation8_spill] sm:$0xff] %v14897_v35  ;;  %v14909_v44 = vmul.f32 %v14697_v30, %v16220_v27  ;;  %v14913_v5 = vmul.f32 %v14697_v30, %v16221_v3  ;;  %v16222_v48 = vld [vmem:[#allocation36_spill] sm:$0xff]  ;;  %v16223_v35 = vld [vmem:[#allocation41_spill] sm:$0xff] }
 0x9d5   :  { %16219 = vst [vmem:[#allocation23_spill] sm:$0xff] %v14905_v39  ;;  %v14917_v13 = vmul.f32 %v14697_v30, %v16222_v48  ;;  %v14921_v16 = vmul.f32 %v14697_v30, %v16223_v35  ;;  %v9809_v26 = vld [vmem:[%s15383_s0] sm:$0xff]  ;;  %v9810_v27 = vld [vmem:[%s15383_s0 + $0x8] sm:$0xff]  ;;  %v9811_v48 = vld [vmem:[%s15383_s0 + $0x10] sm:$0xff] }
 0x9d6   :  { %v14927_v39 = vadd.f32 %v9809_v26, %v14700_v43  ;;  %v14933_v3 = vadd.f32 %v9810_v27, %v14703_v55  ;;  %v14939_v30 = vadd.f32 %v9811_v48, %v14706_v46  ;;  %v9812_v35 = vld [vmem:[%s15383_s0 + $0x18] sm:$0xff]  ;;  %v9813_v26 = vld [vmem:[%s15383_s0 + $0x20] sm:$0xff]  ;;  %v9814_v27 = vld [vmem:[%s15383_s0 + $0x28] sm:$0xff] }
 0x9d7   :  { %v14945_v43 = vadd.f32 %v9812_v35, %v14709_v42  ;;  %v14951_v55 = vadd.f32 %v9813_v26, %v14712_v29  ;;  %v14957_v46 = vadd.f32 %v9814_v27, %v14715_v4  ;;  %v9815_v48 = vld [vmem:[%s15383_s0 + $0x30] sm:$0xff]  ;;  %v9816_v35 = vld [vmem:[%s15383_s0 + $0x38] sm:$0xff]  ;;  %v9817_v26 = vld [vmem:[%s15383_s0 + $0x40] sm:$0xff] }
 0x9d8   :  { %v14963_v42 = vadd.f32 %v9815_v48, %v14718_v40  ;;  %v14969_v29 = vadd.f32 %v9816_v35, %v14721_v36  ;;  %v14975_v4 = vadd.f32 %v9817_v26, %v14724_v38  ;;  %v9818_v27 = vld [vmem:[%s15383_s0 + $0x48] sm:$0xff]  ;;  %v9819_v48 = vld [vmem:[%s15383_s0 + $0x50] sm:$0xff]  ;;  %v9820_v35 = vld [vmem:[%s15383_s0 + $0x58] sm:$0xff] }
 0x9d9   :  { %v14981_v40 = vadd.f32 %v9818_v27, %v14727_v41  ;;  %v14987_v36 = vadd.f32 %v9819_v48, %v14730_v23  ;;  %v14993_v38 = vadd.f32 %v9820_v35, %v14733_v59  ;;  %v9821_v26 = vld [vmem:[%s15383_s0 + $0x60] sm:$0xff]  ;;  %v9822_v27 = vld [vmem:[%s15383_s0 + $0x68] sm:$0xff]  ;;  %v9823_v48 = vld [vmem:[%s15383_s0 + $0x70] sm:$0xff] }
 0x9da   :  { %v14999_v41 = vadd.f32 %v9821_v26, %v14736_v17  ;;  %v15005_v23 = vadd.f32 %v9822_v27, %v14739_v37  ;;  %v15011_v59 = vadd.f32 %v9823_v48, %v14742_v10  ;;  %v9824_v35 = vld [vmem:[%s15383_s0 + $0x78] sm:$0xff]  ;;  %v9825_v26 = vld [vmem:[%s15383_s0 + $0x80] sm:$0xff]  ;;  %v9826_v27 = vld [vmem:[%s15383_s0 + $0x88] sm:$0xff] }
 0x9db   :  { %v15017_v17 = vadd.f32 %v9824_v35, %v14745_v12  ;;  %v15023_v37 = vadd.f32 %v9825_v26, %v14748_v45  ;;  %v15029_v10 = vadd.f32 %v9826_v27, %v14751_v9  ;;  %v9827_v48 = vld [vmem:[%s15383_s0 + $0x90] sm:$0xff]  ;;  %v9828_v35 = vld [vmem:[%s15383_s0 + $0x98] sm:$0xff]  ;;  %v9829_v26 = vld [vmem:[%s15383_s0 + $0xa0] sm:$0xff] }
 0x9dc   :  { %v15035_v12 = vadd.f32 %v9827_v48, %v14754_v20  ;;  %v15041_v45 = vadd.f32 %v9828_v35, %v14757_v6  ;;  %v15047_v9 = vadd.f32 %v9829_v26, %v14760_v11  ;;  %v9830_v27 = vld [vmem:[%s15383_s0 + $0xa8] sm:$0xff]  ;;  %v9831_v48 = vld [vmem:[%s15383_s0 + $0xb0] sm:$0xff]  ;;  %v9832_v35 = vld [vmem:[%s15383_s0 + $0xb8] sm:$0xff] }
 0x9dd   :  { %v15053_v20 = vadd.f32 %v9830_v27, %v14763_v51  ;;  %v15059_v6 = vadd.f32 %v9831_v48, %v14766_v31  ;;  %v15065_v11 = vadd.f32 %v9832_v35, %v14769_v58  ;;  %v9833_v26 = vld [vmem:[%s15383_s0 + $0xc0] sm:$0xff]  ;;  %v9834_v27 = vld [vmem:[%s15383_s0 + $0xc8] sm:$0xff]  ;;  %v9835_v48 = vld [vmem:[%s15383_s0 + $0xd0] sm:$0xff] }
 0x9de   :  { %v15071_v51 = vadd.f32 %v9833_v26, %v14772_v49  ;;  %v15077_v31 = vadd.f32 %v9834_v27, %v14775_v7  ;;  %v15083_v58 = vadd.f32 %v9835_v48, %v14778_v47  ;;  %v9836_v35 = vld [vmem:[%s15383_s0 + $0xd8] sm:$0xff]  ;;  %v9837_v26 = vld [vmem:[%s15383_s0 + $0xe0] sm:$0xff]  ;;  %v9838_v27 = vld [vmem:[%s15383_s0 + $0xe8] sm:$0xff] }
 0x9df   :  { %v15089_v49 = vadd.f32 %v9836_v35, %v14781_v25  ;;  %v15095_v7 = vadd.f32 %v9837_v26, %v14784_v22  ;;  %v15101_v47 = vadd.f32 %v9838_v27, %v14787_v15  ;;  %v9839_v48 = vld [vmem:[%s15383_s0 + $0xf0] sm:$0xff]  ;;  %v9840_v35 = vld [vmem:[%s15383_s0 + $0xf8] sm:$0xff]  ;;  %v9841_v26 = vld [vmem:[%s15383_s0 + $0x100] sm:$0xff] }
 0x9e0   :  { %v15107_v25 = vadd.f32 %v9839_v48, %v14790_v14  ;;  %v15113_v22 = vadd.f32 %v9840_v35, %v14793_v0  ;;  %v15119_v15 = vadd.f32 %v9841_v26, %v14797_v57  ;;  %v9842_v27 = vld [vmem:[%s15383_s0 + $0x108] sm:$0xff]  ;;  %v9843_v48 = vld [vmem:[%s15383_s0 + $0x110] sm:$0xff]  ;;  %v9844_v35 = vld [vmem:[%s15383_s0 + $0x118] sm:$0xff] }
 0x9e1   :  { %v15125_v14 = vadd.f32 %v9842_v27, %v14801_v32  ;;  %v15131_v0 = vadd.f32 %v9843_v48, %v14805_v2  ;;  %v15137_v57 = vadd.f32 %v9844_v35, %v14809_v53  ;;  %v9845_v26 = vld [vmem:[%s15383_s0 + $0x120] sm:$0xff]  ;;  %v9846_v27 = vld [vmem:[%s15383_s0 + $0x128] sm:$0xff]  ;;  %v9847_v48 = vld [vmem:[%s15383_s0 + $0x130] sm:$0xff] }
 0x9e2   :  { %v15143_v32 = vadd.f32 %v9845_v26, %v14813_v63  ;;  %v15149_v2 = vadd.f32 %v9846_v27, %v14817_v60  ;;  %v15155_v53 = vadd.f32 %v9847_v48, %v14821_v28  ;;  %v9848_v35 = vld [vmem:[%s15383_s0 + $0x138] sm:$0xff]  ;;  %v9849_v26 = vld [vmem:[%s15383_s0 + $0x140] sm:$0xff]  ;;  %v9850_v27 = vld [vmem:[%s15383_s0 + $0x148] sm:$0xff] }
 0x9e3   :  { %v15161_v63 = vadd.f32 %v9848_v35, %v14825_v61  ;;  %v15167_v60 = vadd.f32 %v9849_v26, %v14829_v1  ;;  %v15173_v28 = vadd.f32 %v9850_v27, %v14833_v24  ;;  %v9851_v48 = vld [vmem:[%s15383_s0 + $0x150] sm:$0xff]  ;;  %v9852_v35 = vld [vmem:[%s15383_s0 + $0x158] sm:$0xff]  ;;  %v9853_v26 = vld [vmem:[%s15383_s0 + $0x160] sm:$0xff] }
 0x9e4   :  { %v15179_v61 = vadd.f32 %v9851_v48, %v14837_v52  ;;  %v15185_v1 = vadd.f32 %v9852_v35, %v14841_v62  ;;  %v15191_v24 = vadd.f32 %v9853_v26, %v14845_v33  ;;  %v9854_v27 = vld [vmem:[%s15383_s0 + $0x168] sm:$0xff]  ;;  %v9855_v48 = vld [vmem:[%s15383_s0 + $0x170] sm:$0xff]  ;;  %v9856_v35 = vld [vmem:[%s15383_s0 + $0x178] sm:$0xff] }
 0x9e5   :  { %v15197_v52 = vadd.f32 %v9854_v27, %v14849_v18  ;;  %v15203_v62 = vadd.f32 %v9855_v48, %v14853_v21  ;;  %v15209_v33 = vadd.f32 %v9856_v35, %v14857_v19  ;;  %v9857_v26 = vld [vmem:[%s15383_s0 + $0x180] sm:$0xff]  ;;  %v9858_v27 = vld [vmem:[%s15383_s0 + $0x188] sm:$0xff]  ;;  %v9859_v48 = vld [vmem:[%s15383_s0 + $0x190] sm:$0xff] }
 0x9e6   :  { %v15215_v18 = vadd.f32 %v9857_v26, %v14861_v34  ;;  %v15221_v21 = vadd.f32 %v9858_v27, %v14865_v50  ;;  %v15227_v19 = vadd.f32 %v9859_v48, %v14869_v8  ;;  %v9860_v35 = vld [vmem:[%s15383_s0 + $0x198] sm:$0xff]  ;;  %v9861_v26 = vld [vmem:[%s15383_s0 + $0x1a0] sm:$0xff]  ;;  %v16227_v50 = vld [vmem:[#allocation43_spill] sm:$0xff] }
 0x9e7   :  { %v15233_v34 = vadd.f32 %v9860_v35, %v14873_v56  ;;  %v15239_v27 = vadd.f32 %v9861_v26, %v16227_v50  ;;  %v16229_v8 = vld [vmem:[#allocation42_spill] sm:$0xff]  ;;  %v16231_v56 = vld [vmem:[#allocation40_spill] sm:$0xff]  ;;  %v16233_v26 = vld [vmem:[#allocation25_spill] sm:$0xff] }
 0x9e8   :  { %16224 = vst [vmem:[#allocation27_spill] sm:$0xff] %v15221_v21  ;;  %16225 = vst [vmem:[#allocation6_spill] sm:$0xff] %v15227_v19  ;;  %v9862_v21 = vld [vmem:[%s15383_s0 + $0x1a8] sm:$0xff]  ;;  %v9863_v19 = vld [vmem:[%s15383_s0 + $0x1b0] sm:$0xff] }
 0x9e9   :  { %16226 = vst [vmem:[#allocation14_spill] sm:$0xff] %v15233_v34  ;;  %16228 = vst [vmem:[#allocation20_spill] sm:$0xff] %v15239_v27  ;;  %v15245_v48 = vadd.f32 %v9862_v21, %v16229_v8  ;;  %v15251_v35 = vadd.f32 %v9863_v19, %v16231_v56  ;;  %v9864_v34 = vld [vmem:[%s15383_s0 + $0x1b8] sm:$0xff]  ;;  %v9865_v27 = vld [vmem:[%s15383_s0 + $0x1c0] sm:$0xff] }
 0x9ea   :  { %v15257_v50 = vadd.f32 %v9864_v34, %v16233_v26  ;;  %v16234_v21 = vld [vmem:[#allocation28_spill] sm:$0xff]  ;;  %v9868_v26 = vld [vmem:[%s15383_s0 + $0x1d8] sm:$0xff] }
 0x9eb   :  { %16230 = vst [vmem:[#allocation30_spill] sm:$0xff] %v15245_v48  ;;  %16232 = vst [vmem:[#allocation22_spill] sm:$0xff] %v15251_v35  ;;  %v15263_v8 = vadd.f32 %v9865_v27, %v16234_v21  ;;  %v9866_v48 = vld [vmem:[%s15383_s0 + $0x1c8] sm:$0xff]  ;;  %v16236_v19 = vld [vmem:[#allocation8_spill] sm:$0xff] }
 0x9ec   :  { %v15269_v56 = vadd.f32 %v9866_v48, %v16236_v19  ;;  %v9867_v35 = vld [vmem:[%s15383_s0 + $0x1d0] sm:$0xff]  ;;  %v16237_v27 = vld [vmem:[#allocation23_spill] sm:$0xff] }
 0x9ed   :  { %16235 = vst [vmem:[#allocation16_spill] sm:$0xff] %v15263_v8  ;;  %v15275_v34 = vadd.f32 %v9867_v35, %v14901_v54  ;;  %v15281_v21 = vadd.f32 %v9868_v26, %v16237_v27  ;;  %v9869_v8 = vld [vmem:[%s15383_s0 + $0x1e0] sm:$0xff]  ;;  %v9870_v19 = vld [vmem:[%s15383_s0 + $0x1e8] sm:$0xff]  ;;  %v9871_v35 = vld [vmem:[%s15383_s0 + $0x1f0] sm:$0xff] }
 0x9ee   :  { %v15287_v48 = vadd.f32 %v9869_v8, %v14909_v44  ;;  %v15293_v54 = vadd.f32 %v9870_v19, %v14913_v5  ;;  %v15299_v26 = vadd.f32 %v9871_v35, %v14917_v13  ;;  %v9872_v27 = vld [vmem:[%s15383_s0 + $0x1f8] sm:$0xff]  ;;  %v7328_v8 = vmax.f32 %v14927_v39, 0.0  ;;  %s9901_s0 = smov [#allocation3]  }
 0x9ef   :  { %16238 = vst [vmem:[#allocation19_spill] sm:$0xff] %v15281_v21  ;;  %v15305_v44 = vadd.f32 %v9872_v27, %v14921_v16  ;;  %v7330_v5 = vmax.f32 %v14939_v30, 0.0  ;;  %v7331_v19 = vmax.f32 %v14945_v43, 0.0  ;;  %v7333_v13 = vmax.f32 %v14957_v46, 0.0  ;;  %s7461_s21 = sshll.u32 %s9901_s0, 4  ;;  %s7462_s21 = int_to_ptr.vmem [resolvable:$true] %s7461_s21 }
 0x9f0   :  { %16239 = vst [vmem:[#allocation24_spill] sm:$0xff] %v15287_v48  ;;  %16240 = vst [vmem:[#allocation17_spill] sm:$0xff] %v15293_v54  ;;  %v7329_v48 = vmax.f32 %v14933_v3, 0.0  ;;  %v7332_v54 = vmax.f32 %v14951_v55, 0.0  ;;  %v7334_v35 = vmax.f32 %v14963_v42, 0.0  ;;  %v7336_v21 = vmax.f32 %v14975_v4, 0.0  ;;  %p9878_p1 = scmp.lt.s32.totalorder %s7462_s21, %s7462_s21 }
 0x9f1   :  { %16241 = vst [vmem:[#allocation29_spill] sm:$0xff] %v15299_v26  ;;  %v7335_v26 = vmax.f32 %v14969_v29, 0.0  ;;  %v7337_v16 = vmax.f32 %v14981_v40, 0.0  ;;  %v7338_v39 = vmax.f32 %v14987_v36, 0.0  ;;  %7392 = vst [vmem:[#allocation3] sm:$0xff] %v7328_v8  ;;  %v7339_v3 = vmax.f32 %v14993_v38, 0.0 }
 0x9f2   :  { %7393 = vst [vmem:[#allocation3 + $0x8] sm:$0xff] %v7329_v48  ;;  %7394 = vst [vmem:[#allocation3 + $0x10] sm:$0xff] %v7330_v5  ;;  %v7340_v30 = vmax.f32 %v14999_v41, 0.0  ;;  %v7341_v43 = vmax.f32 %v15005_v23, 0.0  ;;  %v7342_v55 = vmax.f32 %v15011_v59, 0.0  ;;  %v7343_v46 = vmax.f32 %v15017_v17, 0.0 }
 0x9f3   :  { %7395 = vst [vmem:[#allocation3 + $0x18] sm:$0xff] %v7331_v19  ;;  %7396 = vst [vmem:[#allocation3 + $0x20] sm:$0xff] %v7332_v54  ;;  %v7344_v42 = vmax.f32 %v15023_v37, 0.0  ;;  %v7345_v29 = vmax.f32 %v15029_v10, 0.0  ;;  %v7346_v4 = vmax.f32 %v15035_v12, 0.0  ;;  %v7347_v40 = vmax.f32 %v15041_v45, 0.0 }
 0x9f4   :  { %7397 = vst [vmem:[#allocation3 + $0x28] sm:$0xff] %v7333_v13  ;;  %7398 = vst [vmem:[#allocation3 + $0x30] sm:$0xff] %v7334_v35  ;;  %v7348_v36 = vmax.f32 %v15047_v9, 0.0  ;;  %v7349_v38 = vmax.f32 %v15053_v20, 0.0  ;;  %v7350_v41 = vmax.f32 %v15059_v6, 0.0  ;;  %v7351_v23 = vmax.f32 %v15065_v11, 0.0 }
 0x9f5   :  { %7399 = vst [vmem:[#allocation3 + $0x38] sm:$0xff] %v7335_v26  ;;  %7400 = vst [vmem:[#allocation3 + $0x40] sm:$0xff] %v7336_v21  ;;  %v7352_v59 = vmax.f32 %v15071_v51, 0.0  ;;  %v7353_v17 = vmax.f32 %v15077_v31, 0.0  ;;  %v7354_v37 = vmax.f32 %v15083_v58, 0.0  ;;  %v7355_v10 = vmax.f32 %v15089_v49, 0.0 }
 0x9f6   :  { %7401 = vst [vmem:[#allocation3 + $0x48] sm:$0xff] %v7337_v16  ;;  %7402 = vst [vmem:[#allocation3 + $0x50] sm:$0xff] %v7338_v39  ;;  %v7356_v12 = vmax.f32 %v15095_v7, 0.0  ;;  %v7357_v45 = vmax.f32 %v15101_v47, 0.0  ;;  %v7358_v9 = vmax.f32 %v15107_v25, 0.0  ;;  %v7359_v20 = vmax.f32 %v15113_v22, 0.0 }
 0x9f7   :  { %7403 = vst [vmem:[#allocation3 + $0x58] sm:$0xff] %v7339_v3  ;;  %7404 = vst [vmem:[#allocation3 + $0x60] sm:$0xff] %v7340_v30  ;;  %v7360_v6 = vmax.f32 %v15119_v15, 0.0  ;;  %v7361_v11 = vmax.f32 %v15125_v14, 0.0  ;;  %v7362_v51 = vmax.f32 %v15131_v0, 0.0  ;;  %v7363_v31 = vmax.f32 %v15137_v57, 0.0 }
 0x9f8   :  { %7405 = vst [vmem:[#allocation3 + $0x68] sm:$0xff] %v7341_v43  ;;  %7406 = vst [vmem:[#allocation3 + $0x70] sm:$0xff] %v7342_v55  ;;  %v7364_v58 = vmax.f32 %v15143_v32, 0.0  ;;  %v7365_v49 = vmax.f32 %v15149_v2, 0.0  ;;  %v7366_v7 = vmax.f32 %v15155_v53, 0.0  ;;  %v7367_v47 = vmax.f32 %v15161_v63, 0.0 }
 0x9f9   :  { %7407 = vst [vmem:[#allocation3 + $0x78] sm:$0xff] %v7343_v46  ;;  %7408 = vst [vmem:[#allocation3 + $0x80] sm:$0xff] %v7344_v42  ;;  %v7368_v25 = vmax.f32 %v15167_v60, 0.0  ;;  %v7369_v22 = vmax.f32 %v15173_v28, 0.0  ;;  %v7370_v15 = vmax.f32 %v15179_v61, 0.0  ;;  %v7371_v14 = vmax.f32 %v15185_v1, 0.0 }
 0x9fa   :  { %7409 = vst [vmem:[#allocation3 + $0x88] sm:$0xff] %v7345_v29  ;;  %7410 = vst [vmem:[#allocation3 + $0x90] sm:$0xff] %v7346_v4  ;;  %v7372_v0 = vmax.f32 %v15191_v24, 0.0  ;;  %v7373_v57 = vmax.f32 %v15197_v52, 0.0  ;;  %v7374_v32 = vmax.f32 %v15203_v62, 0.0  ;;  %v7375_v2 = vmax.f32 %v15209_v33, 0.0 }
 0x9fb   :  { %7411 = vst [vmem:[#allocation3 + $0x98] sm:$0xff] %v7347_v40  ;;  %7412 = vst [vmem:[#allocation3 + $0xa0] sm:$0xff] %v7348_v36  ;;  %v7376_v53 = vmax.f32 %v15215_v18, 0.0  ;;  %v16242_v63 = vld [vmem:[#allocation27_spill] sm:$0xff]  ;;  %v16243_v28 = vld [vmem:[#allocation6_spill] sm:$0xff]  ;;  %v7383_v33 = vmax.f32 %v15257_v50, 0.0 }
 0x9fc   :  { %7413 = vst [vmem:[#allocation3 + $0xa8] sm:$0xff] %v7349_v38  ;;  %7414 = vst [vmem:[#allocation3 + $0xb0] sm:$0xff] %v7350_v41  ;;  %v7377_v60 = vmax.f32 %v16242_v63, 0.0  ;;  %v7378_v61 = vmax.f32 %v16243_v28, 0.0  ;;  %v16244_v1 = vld [vmem:[#allocation14_spill] sm:$0xff]  ;;  %v16245_v52 = vld [vmem:[#allocation20_spill] sm:$0xff] }
 0x9fd   :  { %7415 = vst [vmem:[#allocation3 + $0xb8] sm:$0xff] %v7351_v23  ;;  %7416 = vst [vmem:[#allocation3 + $0xc0] sm:$0xff] %v7352_v59  ;;  %v7379_v24 = vmax.f32 %v16244_v1, 0.0  ;;  %v7380_v62 = vmax.f32 %v16245_v52, 0.0  ;;  %v16246_v21 = vld [vmem:[#allocation30_spill] sm:$0xff]  ;;  %v16248_v18 = vld [vmem:[#allocation16_spill] sm:$0xff] }
 0x9fe   :  { %7417 = vst [vmem:[#allocation3 + $0xc8] sm:$0xff] %v7353_v17  ;;  %7418 = vst [vmem:[#allocation3 + $0xd0] sm:$0xff] %v7354_v37  ;;  %v7381_v48 = vmax.f32 %v16246_v21, 0.0  ;;  %v16247_v54 = vld [vmem:[#allocation22_spill] sm:$0xff]  ;;  %v7384_v27 = vmax.f32 %v16248_v18, 0.0  ;;  %v7385_v8 = vmax.f32 %v15269_v56, 0.0 }
 0x9ff   :  { %7419 = vst [vmem:[#allocation3 + $0xd8] sm:$0xff] %v7355_v10  ;;  %7420 = vst [vmem:[#allocation3 + $0xe0] sm:$0xff] %v7356_v12  ;;  %v7382_v26 = vmax.f32 %v16247_v54, 0.0  ;;  %v7386_v5 = vmax.f32 %v15275_v34, 0.0  ;;  %v16249_v19 = vld [vmem:[#allocation19_spill] sm:$0xff]  ;;  %v16250_v35 = vld [vmem:[#allocation24_spill] sm:$0xff] }
 0xa00   :  { %7421 = vst [vmem:[#allocation3 + $0xe8] sm:$0xff] %v7357_v45  ;;  %7422 = vst [vmem:[#allocation3 + $0xf0] sm:$0xff] %v7358_v9  ;;  %v7387_v13 = vmax.f32 %v16249_v19, 0.0  ;;  %v7388_v16 = vmax.f32 %v16250_v35, 0.0  ;;  %v16251_v39 = vld [vmem:[#allocation17_spill] sm:$0xff]  ;;  %v7391_v50 = vmax.f32 %v15305_v44, 0.0 }
 0xa01   :  { %7423 = vst [vmem:[#allocation3 + $0xf8] sm:$0xff] %v7359_v20  ;;  %7424 = vst [vmem:[#allocation3 + $0x100] sm:$0xff] %v7360_v6  ;;  %v7389_v3 = vmax.f32 %v16251_v39, 0.0  ;;  %v16252_v30 = vld [vmem:[#allocation29_spill] sm:$0xff]  ;;  %s9873_s22 = scalar_lea.vmem %s7462_s21, 8192 }
 0xa02   :  { %7425 = vst [vmem:[#allocation3 + $0x108] sm:$0xff] %v7361_v11  ;;  %7426 = vst [vmem:[#allocation3 + $0x110] sm:$0xff] %v7362_v51  ;;  %v7390_v43 = vmax.f32 %v16252_v30, 0.0  ;;  %p9874_p0 = scmp.ne.s32.totalorder %s7462_s21, %s9873_s22  ;;  %p9879_p2 = scmp.lt.s32.totalorder %s9873_s22, %s9873_s22 }
 0xa03   :  { %7427 = vst [vmem:[#allocation3 + $0x118] sm:$0xff] %v7363_v31  ;;  %7428 = vst [vmem:[#allocation3 + $0x120] sm:$0xff] %v7364_v58 }
 0xa04   :  { %7429 = vst [vmem:[#allocation3 + $0x128] sm:$0xff] %v7365_v49  ;;  %7430 = vst [vmem:[#allocation3 + $0x130] sm:$0xff] %v7366_v7  ;;  %p9880_p3 = por %p9879_p2, %p9878_p1 }
 0xa05   :  { %7431 = vst [vmem:[#allocation3 + $0x138] sm:$0xff] %v7367_v47  ;;  %7432 = vst [vmem:[#allocation3 + $0x140] sm:$0xff] %v7368_v25 }
 0xa06   :  { %7433 = vst [vmem:[#allocation3 + $0x148] sm:$0xff] %v7369_v22  ;;  %7434 = vst [vmem:[#allocation3 + $0x150] sm:$0xff] %v7370_v15  ;;  %p9881_p4 = pnand %p9880_p3, %p9874_p0 }
 0xa07   :  { %7435 = vst [vmem:[#allocation3 + $0x158] sm:$0xff] %v7371_v14  ;;  %7436 = vst [vmem:[#allocation3 + $0x160] sm:$0xff] %v7372_v0 }
 0xa08   :  { %7437 = vst [vmem:[#allocation3 + $0x168] sm:$0xff] %v7373_v57  ;;  %7438 = vst [vmem:[#allocation3 + $0x170] sm:$0xff] %v7374_v32 }
 0xa09   :  { %7439 = vst [vmem:[#allocation3 + $0x178] sm:$0xff] %v7375_v2  ;;  %7440 = vst [vmem:[#allocation3 + $0x180] sm:$0xff] %v7376_v53 }
 0xa0a   :  { %7441 = vst [vmem:[#allocation3 + $0x188] sm:$0xff] %v7377_v60  ;;  %7442 = vst [vmem:[#allocation3 + $0x190] sm:$0xff] %v7378_v61 }
 0xa0b   :  { %7443 = vst [vmem:[#allocation3 + $0x198] sm:$0xff] %v7379_v24  ;;  %7444 = vst [vmem:[#allocation3 + $0x1a0] sm:$0xff] %v7380_v62 }
 0xa0c   :  { %7445 = vst [vmem:[#allocation3 + $0x1a8] sm:$0xff] %v7381_v48  ;;  %7446 = vst [vmem:[#allocation3 + $0x1b0] sm:$0xff] %v7382_v26 }
 0xa0d   :  { %7447 = vst [vmem:[#allocation3 + $0x1b8] sm:$0xff] %v7383_v33  ;;  %7448 = vst [vmem:[#allocation3 + $0x1c0] sm:$0xff] %v7384_v27 }
 0xa0e   :  { %7449 = vst [vmem:[#allocation3 + $0x1c8] sm:$0xff] %v7385_v8  ;;  %7450 = vst [vmem:[#allocation3 + $0x1d0] sm:$0xff] %v7386_v5 }
 0xa0f   :  { %7451 = vst [vmem:[#allocation3 + $0x1d8] sm:$0xff] %v7387_v13  ;;  %7452 = vst [vmem:[#allocation3 + $0x1e0] sm:$0xff] %v7388_v16 }
 0xa10   :  { %7453 = vst [vmem:[#allocation3 + $0x1e8] sm:$0xff] %v7389_v3  ;;  %7454 = vst [vmem:[#allocation3 + $0x1f0] sm:$0xff] %v7390_v43 }
 0xa11   :  { %7455 = vst [vmem:[#allocation3 + $0x1f8] sm:$0xff] %v7391_v50 }
 0xa12   :  { %9884 = shalt.err (!%p9881_p4)
}
 0xa13   :  { %s9885_s2 = scalar_lea.hbm %s15397_s14, 8192 }
 0xa14   :  { %p9886_p5 = scmp.ne.s32.totalorder %s15397_s14, %s9885_s2  ;;  %p9889_p6 = scmp.lt.u32.totalorder %s9885_s2, %s15397_s14 }
 0xa16   :  { %p9891_p7 = pnand %p9889_p6, %p9886_p5 }
 0xa18   :  { %9894 = shalt.err (!%p9891_p7)
}
 0xa19   :  { %s9902_s1 = smov 128   ;;  %s9903_s25 = smov 8  }
 0xa1a   :  { %7467 = dma.vmem_to_hbm [thread:$0]  %s7462_s21, 8192, %s15397_s14, [#allocation4], %s9902_s1, %s9902_s1, %s9903_s25  }
 0xa1b   :  { %9895 = dma.done.wait [#allocation4], 8192  }
 0xa1c   :  { %9896 = vsyncadd [#allocation4], 4294959104 }
 0xa1d   :  { %7471 = vsyncpa [#allocation4], 1 }

</bundles_post_ra>
